<compile_context>
chip_gen: v5e
topology: v5e:2x2
jax: 0.10.0
libtpu: 0.0.40
codegen_flags: <defaults>
</compile_context>

<pallas_src>
import functools
import math

import jax
import jax.numpy as jnp
from jax.experimental import pallas as pl
from jax.experimental.pallas import tpu as pltpu


# ------------------------------ in-kernel helpers ----------------------------

def _ln(x, g, b, eps=1e-5):
    """LayerNorm over the last (lane) axis."""
    mu = jnp.mean(x, axis=-1, keepdims=True)
    xc = x - mu
    var = jnp.mean(xc * xc, axis=-1, keepdims=True)
    return xc * jax.lax.rsqrt(var + eps) * g + b


def _glu(x, w, b, d):
    """GLU(Linear(x)) with a fused (K, 2D) weight: val * sigmoid(gate)."""
    vg = jnp.dot(x, w, preferred_element_type=jnp.float32) + b
    return vg[:, :d] * jax.nn.sigmoid(vg[:, d:])


def _full_spec(shape):
    nd = len(shape)
    return pl.BlockSpec(shape, lambda i, _nd=nd: (0,) * _nd)


def _call(kernel, args, out_shape, out_specs=None):
    """grid=(1,) pallas_call with full-array blocks (everything VMEM-resident)."""
    if out_specs is None:
        if isinstance(out_shape, (tuple, list)):
            out_specs = tuple(_full_spec(o.shape) for o in out_shape)
        else:
            out_specs = _full_spec(out_shape.shape)
    return pl.pallas_call(
        kernel,
        out_shape=out_shape,
        grid=(1,),
        in_specs=[_full_spec(a.shape) for a in args],
        out_specs=out_specs,
        compiler_params=pltpu.CompilerParams(dimension_semantics=("arbitrary",)),
    )(*args)


# ----------------------------- fused Pallas kernels --------------------------

def _grn_kernel(x_ref, skip_w_ref, skip_b_ref, fc1_w_ref, fc1_b_ref,
                fc2_w_ref, fc2_b_ref, glu_w_ref, glu_b_ref,
                ln_g_ref, ln_b_ref, o_ref):
    """Gated residual network on the whole [B*L, Fin] slab in one step."""
    d = fc2_w_ref.shape[1]
    x = x_ref[...]
    skip = jnp.dot(x, skip_w_ref[...], preferred_element_type=jnp.float32) + skip_b_ref[...]
    h = jnp.dot(x, fc1_w_ref[...], preferred_element_type=jnp.float32) + fc1_b_ref[...]
    h = jnp.where(h > 0.0, h, jnp.exp(h) - 1.0)                     # ELU
    h = jnp.dot(h, fc2_w_ref[...], preferred_element_type=jnp.float32) + fc2_b_ref[...]
    g = _glu(h, glu_w_ref[...], glu_b_ref[...], d)
    o_ref[...] = _ln(g + skip, ln_g_ref[...], ln_b_ref[...])


def _lstm_embed_kernel(x_ref, wih_ref, whh_ref, b_ref,
                       glu_w_ref, glu_b_ref, ln_g_ref, ln_b_ref, o_ref):
    """LSTM locality layer (all layers, all timesteps) + GLU gated residual +
    LayerNorm, fully inside one kernel.  x_ref/o_ref are time-major [L, B, D]."""
    seqlen, bsz, d = x_ref.shape
    num_layers = wih_ref.shape[0]

    xs = [x_ref[t] for t in range(seqlen)]          # list of [B, D]
    hs = xs
    for l in range(num_layers):
        wih = wih_ref[l]                             # [D, 4D]
        whh = whh_ref[l]                             # [D, 4D]
        bias = b_ref[l]                              # [1, 4D]
        h = jnp.zeros((bsz, d), jnp.float32)
        c = jnp.zeros((bsz, d), jnp.float32)
        new_hs = []
        for t in range(seqlen):                      # static unroll (L is small)
            gates = (jnp.dot(hs[t], wih, preferred_element_type=jnp.float32) + bias
                     + jnp.dot(h, whh, preferred_element_type=jnp.float32))
            i = jax.nn.sigmoid(gates[:, 0 * d:1 * d])
            f = jax.nn.sigmoid(gates[:, 1 * d:2 * d])
            g = jnp.tanh(gates[:, 2 * d:3 * d])
            o = jax.nn.sigmoid(gates[:, 3 * d:4 * d])
            c = f * c + i * g
            h = o * jnp.tanh(c)
            new_hs.append(h)
        hs = new_hs

    glu_w = glu_w_ref[...]
    glu_b = glu_b_ref[...]
    ln_g = ln_g_ref[...]
    ln_b = ln_b_ref[...]
    for t in range(seqlen):
        gl = _glu(hs[t], glu_w, glu_b, d)
        o_ref[t] = _ln(gl + xs[t], ln_g, ln_b)


def _encoder_layer_kernel(x_ref, wqkv_ref, bqkv_ref, wo_ref, bo_ref,
                          g1_w_ref, g1_b_ref, ln1_g_ref, ln1_b_ref,
                          fc1_w_ref, fc1_b_ref, fc2_w_ref, fc2_b_ref,
                          g2_w_ref, g2_b_ref, ln2_g_ref, ln2_b_ref,
                          o_ref, *, bsz, seqlen, n_heads, activation):
    """One TFT encoder layer (fused QKV MHSA + GLU add&norm + FF + GLU add&norm)."""
    d = wo_ref.shape[0]
    dh = d // n_heads
    scale = 1.0 / math.sqrt(dh)

    x = x_ref[...]                                                   # [B*L, D]
    qkv = jnp.dot(x, wqkv_ref[...], preferred_element_type=jnp.float32) + bqkv_ref[...]
    q = qkv[:, 0 * d:1 * d]
    k = qkv[:, 1 * d:2 * d]
    v = qkv[:, 2 * d:3 * d]

    # per-head lane masks (avoids sub-lane gathers/concats: all ops stay [L, D])
    lane = jax.lax.broadcasted_iota(jnp.int32, (seqlen, d), 1)
    batch_outs = []
    for b in range(bsz):
        rs, re = b * seqlen, (b + 1) * seqlen
        qb, kb, vb = q[rs:re, :], k[rs:re, :], v[rs:re, :]
        acc = jnp.zeros((seqlen, d), jnp.float32)
        for h in range(n_heads):
            mask = jnp.logical_and(lane >= h * dh, lane < (h + 1) * dh)
            qm = jnp.where(mask, qb, 0.0)
            km = jnp.where(mask, kb, 0.0)
            vm = jnp.where(mask, vb, 0.0)
            s = jax.lax.dot_general(qm, km, (((1,), (1,)), ((), ())),
                                    preferred_element_type=jnp.float32) * scale
            m = jnp.max(s, axis=-1, keepdims=True)
            e = jnp.exp(s - m)
            p = e * pl.reciprocal(jnp.sum(e, axis=-1, keepdims=True), approx=True)
            acc = acc + jnp.dot(p, vm, preferred_element_type=jnp.float32)
        batch_outs.append(acc)
    attn_out = batch_outs[0] if bsz == 1 else jnp.concatenate(batch_outs, axis=0)

    new_x = jnp.dot(attn_out, wo_ref[...], preferred_element_type=jnp.float32) + bo_ref[...]
    g1 = _glu(new_x, g1_w_ref[...], g1_b_ref[...], d)
    x1 = _ln(g1 + x, ln1_g_ref[...], ln1_b_ref[...])

    y = jnp.dot(x1, fc1_w_ref[...], preferred_element_type=jnp.float32) + fc1_b_ref[...]
    if activation == "relu":
        y = jnp.maximum(y, 0.0)
    else:
        y = jax.nn.gelu(y)
    y = jnp.dot(y, fc2_w_ref[...], preferred_element_type=jnp.float32) + fc2_b_ref[...]
    g2 = _glu(y, g2_w_ref[...], g2_b_ref[...], d)
    o_ref[...] = _ln(g2 + x1, ln2_g_ref[...], ln2_b_ref[...])


def _decoder_head_kernel(x_ref, gate_w_ref, gate_b_ref, weight_w_ref, weight_b_ref,
                         norm_g_ref, norm_b_ref, dec_w_ref, dec_b_ref,
                         ygl_ref, ygw_ref):
    """gatelinear / sigmoid(weightlinear) -> LayerNorm -> declinear, fused.
    Two outputs (gated-value path, gate-weight path); the time-axis concat is a
    trivial XLA op outside (LN / declinear are row-wise so order-independent)."""
    x = x_ref[...]
    gl = jnp.dot(x, gate_w_ref[...], preferred_element_type=jnp.float32) + gate_b_ref[...]
    gw = jax.nn.sigmoid(
        jnp.dot(x, weight_w_ref[...], preferred_element_type=jnp.float32) + weight_b_ref[...])
    ng = norm_g_ref[...]
    nb = norm_b_ref[...]
    dw = dec_w_ref[...]
    db = dec_b_ref[...]
    ygl_ref[...] = jnp.dot(_ln(gl, ng, nb), dw, preferred_element_type=jnp.float32) + db
    ygw_ref[...] = jnp.dot(_ln(gw, ng, nb), dw, preferred_element_type=jnp.float32) + db


# ------------------------------ module wrappers -------------------------------

def grn_apply(p, x):
    bsz, seqlen, fin = x.shape
    d = p["fc2_w"].shape[1]
    x2 = x.reshape(bsz * seqlen, fin)
    args = (x2, p["skip_w"], p["skip_b"], p["fc1_w"], p["fc1_b"],
            p["fc2_w"], p["fc2_b"], p["glu_w"], p["glu_b"], p["ln_g"], p["ln_b"])
    out = _call(_grn_kernel, args,
                jax.ShapeDtypeStruct((bsz * seqlen, d), jnp.float32))
    return out.reshape(bsz, seqlen, d)


def lstm_embed_apply(p, x):
    bsz, seqlen, d = x.shape
    xt = jnp.transpose(x, (1, 0, 2))                                # time-major [L, B, D]
    args = (xt, p["wih"], p["whh"], p["b"],
            p["glu_w"], p["glu_b"], p["ln_g"], p["ln_b"])
    out = _call(_lstm_embed_kernel, args,
                jax.ShapeDtypeStruct((seqlen, bsz, d), jnp.float32))
    return jnp.transpose(out, (1, 0, 2))


def encoder_layer_apply(p, x, n_heads, activation):
    bsz, seqlen, d = x.shape
    x2 = x.reshape(bsz * seqlen, d)
    args = (x2, p["wqkv"], p["bqkv"], p["wo"], p["bo"],
            p["g1_w"], p["g1_b"], p["ln1_g"], p["ln1_b"],
            p["fc1_w"], p["fc1_b"], p["fc2_w"], p["fc2_b"],
            p["g2_w"], p["g2_b"], p["ln2_g"], p["ln2_b"])
    kernel = functools.partial(_encoder_layer_kernel, bsz=bsz, seqlen=seqlen,
                               n_heads=n_heads, activation=activation)
    out = _call(kernel, args, jax.ShapeDtypeStruct((bsz * seqlen, d), jnp.float32))
    return out.reshape(bsz, seqlen, d)


def decoder_head_apply(params, enc_out, pred_len, d_output):
    bsz, _, d = enc_out.shape
    tail = enc_out[:, -pred_len:, :].reshape(bsz * pred_len, d)
    args = (tail, params["gate_w"], params["gate_b"], params["weight_w"],
            params["weight_b"], params["norm_g"], params["norm_b"],
            params["dec_w"], params["dec_b"])
    out_shape = (jax.ShapeDtypeStruct((bsz * pred_len, d_output), jnp.float32),
                 jax.ShapeDtypeStruct((bsz * pred_len, d_output), jnp.float32))
    ygl, ygw = _call(_decoder_head_kernel, args, out_shape)
    # reference: torch.cat((gatelinear(tail), sigmoid(weightlinear(tail))), dim=1)
    dec = jnp.concatenate([ygl.reshape(bsz, pred_len, d_output),
                           ygw.reshape(bsz, pred_len, d_output)], axis=1)
    return dec


def tft_forward(params, cfg, x_enc):
    """Forward pass of TemporalFusionTransformer (x_enc_known=None path)."""
    emb_out = grn_apply(params["grn"], x_enc)
    lstm_out = lstm_embed_apply(params["lstm_embed"], emb_out)
    enc_out = lstm_out
    for lp in params["encoder"]:
        enc_out = encoder_layer_apply(lp, enc_out, cfg["num_heads"], cfg["activation"])
    # TODO(synk): output_attention=True branch (returning attention maps) not implemented.
    return decoder_head_apply(params, enc_out, cfg["pred_len"], cfg["d_output"])


# ------------------------------ parameter init --------------------------------

def init_params(key, cfg):
    d = cfg["d_model"]
    fin = cfg["input_size"]
    nl = cfg["embed_layer"]
    keys = iter(jax.random.split(key, 128))

    def unif(shape, fan_in):
        bound = 1.0 / math.sqrt(fan_in)
        return jax.random.uniform(next(keys), shape, jnp.float32, -bound, bound)

    params = {}
    params["grn"] = dict(
        skip_w=unif((fin, d), fin), skip_b=unif((1, d), fin),
        fc1_w=unif((fin, d), fin), fc1_b=unif((1, d), fin),
        fc2_w=unif((d, d), d), fc2_b=unif((1, d), d),
        glu_w=unif((d, 2 * d), d), glu_b=unif((1, 2 * d), d),
        ln_g=jnp.ones((1, d), jnp.float32), ln_b=jnp.zeros((1, d), jnp.float32))

    params["lstm_embed"] = dict(
        wih=unif((nl, d, 4 * d), d), whh=unif((nl, d, 4 * d), d),
        b=unif((nl, 1, 4 * d), d),                                   # b_ih + b_hh folded
        glu_w=unif((d, 2 * d), d), glu_b=unif((1, 2 * d), d),
        ln_g=jnp.ones((1, d), jnp.float32), ln_b=jnp.zeros((1, d), jnp.float32))

    enc = []
    for _ in range(cfg["e_layers"]):
        enc.append(dict(
            wqkv=unif((d, 3 * d), d), bqkv=unif((1, 3 * d), d),
            wo=unif((d, d), d), bo=unif((1, d), d),
            g1_w=unif((d, 2 * d), d), g1_b=unif((1, 2 * d), d),
            ln1_g=jnp.ones((1, d), jnp.float32), ln1_b=jnp.zeros((1, d), jnp.float32),
            fc1_w=unif((d, d), d), fc1_b=unif((1, d), d),
            fc2_w=unif((d, d), d), fc2_b=unif((1, d), d),
            g2_w=unif((d, 2 * d), d), g2_b=unif((1, 2 * d), d),
            ln2_g=jnp.ones((1, d), jnp.float32), ln2_b=jnp.zeros((1, d), jnp.float32)))
    params["encoder"] = enc

    params["gate_w"] = unif((d, d), d)
    params["gate_b"] = unif((1, d), d)
    params["weight_w"] = unif((d, d), d)
    params["weight_b"] = unif((1, d), d)
    params["norm_g"] = jnp.ones((1, d), jnp.float32)
    params["norm_b"] = jnp.zeros((1, d), jnp.float32)
    params["dec_w"] = unif((d, cfg["d_output"]), d)
    params["dec_b"] = unif((1, cfg["d_output"]), d)
    return params


# ----------------------------------- main --------------------------------------

if __name__ == "__main__":
    cfg = dict(pred_len=4, output_attention=False, input_size=8, d_model=32,
               dropout=0.0, embed_layer=1, factor=5, num_heads=4, e_layers=2,
               activation="relu", d_output=8)
    bsz, seqlen = 2, 8

    key = jax.random.PRNGKey(0)
    kx, kp = jax.random.split(key)
    x_enc = jax.random.normal(kx, (bsz, seqlen, cfg["input_size"]), jnp.float32)
    params = init_params(kp, cfg)

    fwd = jax.jit(lambda p, x: tft_forward(p, cfg, x))
    out = fwd(params, x_enc)
    out = jax.block_until_ready(out)

    expected_shape = (bsz, 2 * cfg["pred_len"], cfg["d_output"])
    assert out.shape == expected_shape, (out.shape, expected_shape)
    assert bool(jnp.all(jnp.isfinite(out)))
    print("KERNEL_OK")
</pallas_src>

<mosaic_0001>
module attributes {stable_mosaic.version = 11 : i64} {
  func.func @_grn_kernel(%arg0: i32, %arg1: memref<16x8xf32, #tpu.memory_space<vmem>>, %arg2: memref<8x32xf32, #tpu.memory_space<vmem>>, %arg3: memref<1x32xf32, #tpu.memory_space<vmem>>, %arg4: memref<8x32xf32, #tpu.memory_space<vmem>>, %arg5: memref<1x32xf32, #tpu.memory_space<vmem>>, %arg6: memref<32x32xf32, #tpu.memory_space<vmem>>, %arg7: memref<1x32xf32, #tpu.memory_space<vmem>>, %arg8: memref<32x64xf32, #tpu.memory_space<vmem>>, %arg9: memref<1x64xf32, #tpu.memory_space<vmem>>, %arg10: memref<1x32xf32, #tpu.memory_space<vmem>>, %arg11: memref<1x32xf32, #tpu.memory_space<vmem>>, %arg12: memref<16x32xf32, #tpu.memory_space<vmem>>) attributes {dimension_semantics = [#tpu.dimension_semantics<arbitrary>], iteration_bounds = array<i64: 1>, scalar_prefetch = 0 : i64, scratch_operands = 0 : i64, tpu.core_type = #tpu.core_type<tc>, window_params = [{pipeline_mode = #tpu.pipeline_mode<synchronous>, transform_indices = @transform_0, window_bounds = array<i64: 16, 8>}, {pipeline_mode = #tpu.pipeline_mode<synchronous>, transform_indices = @transform_1, window_bounds = array<i64: 8, 32>}, {pipeline_mode = #tpu.pipeline_mode<synchronous>, transform_indices = @transform_2, window_bounds = array<i64: 1, 32>}, {pipeline_mode = #tpu.pipeline_mode<synchronous>, transform_indices = @transform_3, window_bounds = array<i64: 8, 32>}, {pipeline_mode = #tpu.pipeline_mode<synchronous>, transform_indices = @transform_4, window_bounds = array<i64: 1, 32>}, {pipeline_mode = #tpu.pipeline_mode<synchronous>, transform_indices = @transform_5, window_bounds = array<i64: 32, 32>}, {pipeline_mode = #tpu.pipeline_mode<synchronous>, transform_indices = @transform_6, window_bounds = array<i64: 1, 32>}, {pipeline_mode = #tpu.pipeline_mode<synchronous>, transform_indices = @transform_7, window_bounds = array<i64: 32, 64>}, {pipeline_mode = #tpu.pipeline_mode<synchronous>, transform_indices = @transform_8, window_bounds = array<i64: 1, 64>}, {pipeline_mode = #tpu.pipeline_mode<synchronous>, transform_indices = @transform_9, window_bounds = array<i64: 1, 32>}, {pipeline_mode = #tpu.pipeline_mode<synchronous>, transform_indices = @transform_10, window_bounds = array<i64: 1, 32>}, {pipeline_mode = #tpu.pipeline_mode<synchronous>, transform_indices = @transform_11, window_bounds = array<i64: 16, 32>}]} {
    %c0 = arith.constant 0 : index
    %c0_0 = arith.constant 0 : index
    %0 = vector.load %arg1[%c0, %c0_0] : memref<16x8xf32, #tpu.memory_space<vmem>>, vector<16x8xf32>
    %c0_1 = arith.constant 0 : index
    %c0_2 = arith.constant 0 : index
    %1 = vector.load %arg2[%c0_1, %c0_2] : memref<8x32xf32, #tpu.memory_space<vmem>>, vector<8x32xf32>
    %cst = arith.constant dense<0.000000e+00> : vector<16x32xf32>
    %2 = tpu.matmul %0, %1, %cst {dimension_numbers = #tpu.dot_dimension_numbers<[1], [0], [0], [1], [0, 0, 1, 1], [], []>} : vector<16x8xf32>, vector<8x32xf32>, vector<16x32xf32> -> vector<16x32xf32>
    %c0_3 = arith.constant 0 : index
    %c0_4 = arith.constant 0 : index
    %3 = vector.load %arg3[%c0_3, %c0_4] : memref<1x32xf32, #tpu.memory_space<vmem>>, vector<1x32xf32>
    %4 = vector.broadcast %3 : vector<1x32xf32> to vector<16x32xf32>
    %5 = arith.addf %2, %4 : vector<16x32xf32>
    %c0_5 = arith.constant 0 : index
    %c0_6 = arith.constant 0 : index
    %6 = vector.load %arg4[%c0_5, %c0_6] : memref<8x32xf32, #tpu.memory_space<vmem>>, vector<8x32xf32>
    %cst_7 = arith.constant dense<0.000000e+00> : vector<16x32xf32>
    %7 = tpu.matmul %0, %6, %cst_7 {dimension_numbers = #tpu.dot_dimension_numbers<[1], [0], [0], [1], [0, 0, 1, 1], [], []>} : vector<16x8xf32>, vector<8x32xf32>, vector<16x32xf32> -> vector<16x32xf32>
    %c0_8 = arith.constant 0 : index
    %c0_9 = arith.constant 0 : index
    %8 = vector.load %arg5[%c0_8, %c0_9] : memref<1x32xf32, #tpu.memory_space<vmem>>, vector<1x32xf32>
    %9 = vector.broadcast %8 : vector<1x32xf32> to vector<16x32xf32>
    %10 = arith.addf %7, %9 : vector<16x32xf32>
    %cst_10 = arith.constant 0.000000e+00 : f32
    %11 = vector.broadcast %cst_10 : f32 to vector<16x32xf32>
    %12 = arith.cmpf ogt, %10, %11 : vector<16x32xf32>
    %13 = math.exp %10 : vector<16x32xf32>
    %cst_11 = arith.constant 1.000000e+00 : f32
    %14 = vector.broadcast %cst_11 : f32 to vector<16x32xf32>
    %15 = arith.subf %13, %14 : vector<16x32xf32>
    %16 = arith.select %12, %10, %15 : vector<16x32xi1>, vector<16x32xf32>
    %c0_12 = arith.constant 0 : index
    %c0_13 = arith.constant 0 : index
    %17 = vector.load %arg6[%c0_12, %c0_13] : memref<32x32xf32, #tpu.memory_space<vmem>>, vector<32x32xf32>
    %cst_14 = arith.constant dense<0.000000e+00> : vector<16x32xf32>
    %18 = tpu.matmul %16, %17, %cst_14 {dimension_numbers = #tpu.dot_dimension_numbers<[1], [0], [0], [1], [0, 0, 1, 1], [], []>} : vector<16x32xf32>, vector<32x32xf32>, vector<16x32xf32> -> vector<16x32xf32>
    %c0_15 = arith.constant 0 : index
    %c0_16 = arith.constant 0 : index
    %19 = vector.load %arg7[%c0_15, %c0_16] : memref<1x32xf32, #tpu.memory_space<vmem>>, vector<1x32xf32>
    %20 = vector.broadcast %19 : vector<1x32xf32> to vector<16x32xf32>
    %21 = arith.addf %18, %20 : vector<16x32xf32>
    %c0_17 = arith.constant 0 : index
    %c0_18 = arith.constant 0 : index
    %22 = vector.load %arg8[%c0_17, %c0_18] : memref<32x64xf32, #tpu.memory_space<vmem>>, vector<32x64xf32>
    %c0_19 = arith.constant 0 : index
    %c0_20 = arith.constant 0 : index
    %23 = vector.load %arg9[%c0_19, %c0_20] : memref<1x64xf32, #tpu.memory_space<vmem>>, vector<1x64xf32>
    %cst_21 = arith.constant dense<0.000000e+00> : vector<16x64xf32>
    %24 = tpu.matmul %21, %22, %cst_21 {dimension_numbers = #tpu.dot_dimension_numbers<[1], [0], [0], [1], [0, 0, 1, 1], [], []>} : vector<16x32xf32>, vector<32x64xf32>, vector<16x64xf32> -> vector<16x64xf32>
    %25 = vector.broadcast %23 : vector<1x64xf32> to vector<16x64xf32>
    %26 = arith.addf %24, %25 : vector<16x64xf32>
    %27 = vector.extract_strided_slice %26 {offsets = [0, 0], sizes = [16, 32], strides = [1, 1]} : vector<16x64xf32> to vector<16x32xf32>
    %28 = vector.extract_strided_slice %26 {offsets = [0, 32], sizes = [16, 32], strides = [1, 1]} : vector<16x64xf32> to vector<16x32xf32>
    %29 = arith.negf %28 : vector<16x32xf32>
    %30 = math.exp %29 : vector<16x32xf32>
    %cst_22 = arith.constant 1.000000e+00 : f32
    %31 = vector.broadcast %cst_22 : f32 to vector<16x32xf32>
    %32 = arith.addf %31, %30 : vector<16x32xf32>
    %33 = arith.divf %31, %32 : vector<16x32xf32>
    %34 = arith.mulf %27, %33 : vector<16x32xf32>
    %35 = arith.addf %34, %5 : vector<16x32xf32>
    %c0_23 = arith.constant 0 : index
    %c0_24 = arith.constant 0 : index
    %36 = vector.load %arg10[%c0_23, %c0_24] : memref<1x32xf32, #tpu.memory_space<vmem>>, vector<1x32xf32>
    %c0_25 = arith.constant 0 : index
    %c0_26 = arith.constant 0 : index
    %37 = vector.load %arg11[%c0_25, %c0_26] : memref<1x32xf32, #tpu.memory_space<vmem>>, vector<1x32xf32>
    %cst_27 = arith.constant dense<0.000000e+00> : vector<16xf32>
    %38 = vector.multi_reduction <add>, %35, %cst_27 [1] : vector<16x32xf32> to vector<16xf32>
    %39 = vector.shape_cast %38 : vector<16xf32> to vector<16x1xf32>
    %cst_28 = arith.constant 3.200000e+01 : f32
    %40 = vector.broadcast %cst_28 : f32 to vector<16x1xf32>
    %41 = arith.divf %39, %40 : vector<16x1xf32>
    %42 = vector.broadcast %41 : vector<16x1xf32> to vector<16x32xf32>
    %43 = arith.subf %35, %42 : vector<16x32xf32>
    %44 = arith.mulf %43, %43 : vector<16x32xf32>
    %cst_29 = arith.constant dense<0.000000e+00> : vector<16xf32>
    %45 = vector.multi_reduction <add>, %44, %cst_29 [1] : vector<16x32xf32> to vector<16xf32>
    %46 = vector.shape_cast %45 : vector<16xf32> to vector<16x1xf32>
    %cst_30 = arith.constant 3.200000e+01 : f32
    %47 = vector.broadcast %cst_30 : f32 to vector<16x1xf32>
    %48 = arith.divf %46, %47 : vector<16x1xf32>
    %cst_31 = arith.constant 9.99999974E-6 : f32
    %49 = vector.broadcast %cst_31 : f32 to vector<16x1xf32>
    %50 = arith.addf %48, %49 : vector<16x1xf32>
    %51 = math.rsqrt %50 : vector<16x1xf32>
    %52 = vector.broadcast %51 : vector<16x1xf32> to vector<16x32xf32>
    %53 = arith.mulf %43, %52 : vector<16x32xf32>
    %54 = vector.broadcast %36 : vector<1x32xf32> to vector<16x32xf32>
    %55 = arith.mulf %53, %54 : vector<16x32xf32>
    %56 = vector.broadcast %37 : vector<1x32xf32> to vector<16x32xf32>
    %57 = arith.addf %55, %56 : vector<16x32xf32>
    %c0_32 = arith.constant 0 : index
    %c0_33 = arith.constant 0 : index
    %58 = vector.load %arg12[%c0_32, %c0_33] : memref<16x32xf32, #tpu.memory_space<vmem>>, vector<16x32xf32>
    tpu.vector_store %arg12[%c0_32, %c0_33], %57 {strides = array<i32>} : memref<16x32xf32, #tpu.memory_space<vmem>>, vector<16x32xf32>,
    return
  }
  func.func @transform_0(%arg0: i32) -> (i32, i32) {
    %c0_i32 = arith.constant 0 : i32
    %c0_i32_0 = arith.constant 0 : i32
    %c0_i32_1 = arith.constant 0 : i32
    return %c0_i32, %c0_i32_0 : i32, i32
  }
  func.func @transform_1(%arg0: i32) -> (i32, i32) {
    %c0_i32 = arith.constant 0 : i32
    %c0_i32_0 = arith.constant 0 : i32
    %c0_i32_1 = arith.constant 0 : i32
    return %c0_i32, %c0_i32_0 : i32, i32
  }
  func.func @transform_2(%arg0: i32) -> (i32, i32) {
    %c0_i32 = arith.constant 0 : i32
    %c0_i32_0 = arith.constant 0 : i32
    %c0_i32_1 = arith.constant 0 : i32
    return %c0_i32, %c0_i32_0 : i32, i32
  }
  func.func @transform_3(%arg0: i32) -> (i32, i32) {
    %c0_i32 = arith.constant 0 : i32
    %c0_i32_0 = arith.constant 0 : i32
    %c0_i32_1 = arith.constant 0 : i32
    return %c0_i32, %c0_i32_0 : i32, i32
  }
  func.func @transform_4(%arg0: i32) -> (i32, i32) {
    %c0_i32 = arith.constant 0 : i32
    %c0_i32_0 = arith.constant 0 : i32
    %c0_i32_1 = arith.constant 0 : i32
    return %c0_i32, %c0_i32_0 : i32, i32
  }
  func.func @transform_5(%arg0: i32) -> (i32, i32) {
    %c0_i32 = arith.constant 0 : i32
    %c0_i32_0 = arith.constant 0 : i32
    %c0_i32_1 = arith.constant 0 : i32
    return %c0_i32, %c0_i32_0 : i32, i32
  }
  func.func @transform_6(%arg0: i32) -> (i32, i32) {
    %c0_i32 = arith.constant 0 : i32
    %c0_i32_0 = arith.constant 0 : i32
    %c0_i32_1 = arith.constant 0 : i32
    return %c0_i32, %c0_i32_0 : i32, i32
  }
  func.func @transform_7(%arg0: i32) -> (i32, i32) {
    %c0_i32 = arith.constant 0 : i32
    %c0_i32_0 = arith.constant 0 : i32
    %c0_i32_1 = arith.constant 0 : i32
    return %c0_i32, %c0_i32_0 : i32, i32
  }
  func.func @transform_8(%arg0: i32) -> (i32, i32) {
    %c0_i32 = arith.constant 0 : i32
    %c0_i32_0 = arith.constant 0 : i32
    %c0_i32_1 = arith.constant 0 : i32
    return %c0_i32, %c0_i32_0 : i32, i32
  }
  func.func @transform_9(%arg0: i32) -> (i32, i32) {
    %c0_i32 = arith.constant 0 : i32
    %c0_i32_0 = arith.constant 0 : i32
    %c0_i32_1 = arith.constant 0 : i32
    return %c0_i32, %c0_i32_0 : i32, i32
  }
  func.func @transform_10(%arg0: i32) -> (i32, i32) {
    %c0_i32 = arith.constant 0 : i32
    %c0_i32_0 = arith.constant 0 : i32
    %c0_i32_1 = arith.constant 0 : i32
    return %c0_i32, %c0_i32_0 : i32, i32
  }
  func.func @transform_11(%arg0: i32) -> (i32, i32) {
    %c0_i32 = arith.constant 0 : i32
    %c0_i32_0 = arith.constant 0 : i32
    %c0_i32_1 = arith.constant 0 : i32
    return %c0_i32, %c0_i32_0 : i32, i32
  }
}

module attributes {stable_mosaic.version = 11 : i64} {
  func.func @_lstm_embed_kernel(%arg0: i32, %arg1: memref<8x2x32xf32, #tpu.memory_space<vmem>>, %arg2: memref<1x32x128xf32, #tpu.memory_space<vmem>>, %arg3: memref<1x32x128xf32, #tpu.memory_space<vmem>>, %arg4: memref<1x1x128xf32, #tpu.memory_space<vmem>>, %arg5: memref<32x64xf32, #tpu.memory_space<vmem>>, %arg6: memref<1x64xf32, #tpu.memory_space<vmem>>, %arg7: memref<1x32xf32, #tpu.memory_space<vmem>>, %arg8: memref<1x32xf32, #tpu.memory_space<vmem>>, %arg9: memref<8x2x32xf32, #tpu.memory_space<vmem>>) attributes {dimension_semantics = [#tpu.dimension_semantics<arbitrary>], iteration_bounds = array<i64: 1>, scalar_prefetch = 0 : i64, scratch_operands = 0 : i64, tpu.core_type = #tpu.core_type<tc>, window_params = [{pipeline_mode = #tpu.pipeline_mode<synchronous>, transform_indices = @transform_0, window_bounds = array<i64: 8, 2, 32>}, {pipeline_mode = #tpu.pipeline_mode<synchronous>, transform_indices = @transform_1, window_bounds = array<i64: 1, 32, 128>}, {pipeline_mode = #tpu.pipeline_mode<synchronous>, transform_indices = @transform_2, window_bounds = array<i64: 1, 32, 128>}, {pipeline_mode = #tpu.pipeline_mode<synchronous>, transform_indices = @transform_3, window_bounds = array<i64: 1, 1, 128>}, {pipeline_mode = #tpu.pipeline_mode<synchronous>, transform_indices = @transform_4, window_bounds = array<i64: 32, 64>}, {pipeline_mode = #tpu.pipeline_mode<synchronous>, transform_indices = @transform_5, window_bounds = array<i64: 1, 64>}, {pipeline_mode = #tpu.pipeline_mode<synchronous>, transform_indices = @transform_6, window_bounds = array<i64: 1, 32>}, {pipeline_mode = #tpu.pipeline_mode<synchronous>, transform_indices = @transform_7, window_bounds = array<i64: 1, 32>}, {pipeline_mode = #tpu.pipeline_mode<synchronous>, transform_indices = @transform_8, window_bounds = array<i64: 8, 2, 32>}]} {
    %c0 = arith.constant 0 : index
    %c0_0 = arith.constant 0 : index
    %c0_1 = arith.constant 0 : index
    %0 = vector.load %arg1[%c0, %c0_0, %c0_1] : memref<8x2x32xf32, #tpu.memory_space<vmem>>, vector<1x2x32xf32>
    %1 = vector.shape_cast %0 : vector<1x2x32xf32> to vector<2x32xf32>
    %c1 = arith.constant 1 : index
    %c0_2 = arith.constant 0 : index
    %c0_3 = arith.constant 0 : index
    %2 = vector.load %arg1[%c1, %c0_2, %c0_3] : memref<8x2x32xf32, #tpu.memory_space<vmem>>, vector<1x2x32xf32>
    %3 = vector.shape_cast %2 : vector<1x2x32xf32> to vector<2x32xf32>
    %c2 = arith.constant 2 : index
    %c0_4 = arith.constant 0 : index
    %c0_5 = arith.constant 0 : index
    %4 = vector.load %arg1[%c2, %c0_4, %c0_5] : memref<8x2x32xf32, #tpu.memory_space<vmem>>, vector<1x2x32xf32>
    %5 = vector.shape_cast %4 : vector<1x2x32xf32> to vector<2x32xf32>
    %c3 = arith.constant 3 : index
    %c0_6 = arith.constant 0 : index
    %c0_7 = arith.constant 0 : index
    %6 = vector.load %arg1[%c3, %c0_6, %c0_7] : memref<8x2x32xf32, #tpu.memory_space<vmem>>, vector<1x2x32xf32>
    %7 = vector.shape_cast %6 : vector<1x2x32xf32> to vector<2x32xf32>
    %c4 = arith.constant 4 : index
    %c0_8 = arith.constant 0 : index
    %c0_9 = arith.constant 0 : index
    %8 = vector.load %arg1[%c4, %c0_8, %c0_9] : memref<8x2x32xf32, #tpu.memory_space<vmem>>, vector<1x2x32xf32>
    %9 = vector.shape_cast %8 : vector<1x2x32xf32> to vector<2x32xf32>
    %c5 = arith.constant 5 : index
    %c0_10 = arith.constant 0 : index
    %c0_11 = arith.constant 0 : index
    %10 = vector.load %arg1[%c5, %c0_10, %c0_11] : memref<8x2x32xf32, #tpu.memory_space<vmem>>, vector<1x2x32xf32>
    %11 = vector.shape_cast %10 : vector<1x2x32xf32> to vector<2x32xf32>
    %c6 = arith.constant 6 : index
    %c0_12 = arith.constant 0 : index
    %c0_13 = arith.constant 0 : index
    %12 = vector.load %arg1[%c6, %c0_12, %c0_13] : memref<8x2x32xf32, #tpu.memory_space<vmem>>, vector<1x2x32xf32>
    %13 = vector.shape_cast %12 : vector<1x2x32xf32> to vector<2x32xf32>
    %c7 = arith.constant 7 : index
    %c0_14 = arith.constant 0 : index
    %c0_15 = arith.constant 0 : index
    %14 = vector.load %arg1[%c7, %c0_14, %c0_15] : memref<8x2x32xf32, #tpu.memory_space<vmem>>, vector<1x2x32xf32>
    %15 = vector.shape_cast %14 : vector<1x2x32xf32> to vector<2x32xf32>
    %c0_16 = arith.constant 0 : index
    %c0_17 = arith.constant 0 : index
    %c0_18 = arith.constant 0 : index
    %16 = vector.load %arg2[%c0_16, %c0_17, %c0_18] : memref<1x32x128xf32, #tpu.memory_space<vmem>>, vector<1x32x128xf32>
    %17 = vector.shape_cast %16 : vector<1x32x128xf32> to vector<32x128xf32>
    %c0_19 = arith.constant 0 : index
    %c0_20 = arith.constant 0 : index
    %c0_21 = arith.constant 0 : index
    %18 = vector.load %arg3[%c0_19, %c0_20, %c0_21] : memref<1x32x128xf32, #tpu.memory_space<vmem>>, vector<1x32x128xf32>
    %19 = vector.shape_cast %18 : vector<1x32x128xf32> to vector<32x128xf32>
    %c0_22 = arith.constant 0 : index
    %c0_23 = arith.constant 0 : index
    %c0_24 = arith.constant 0 : index
    %20 = vector.load %arg4[%c0_22, %c0_23, %c0_24] : memref<1x1x128xf32, #tpu.memory_space<vmem>>, vector<1x1x128xf32>
    %21 = vector.shape_cast %20 : vector<1x1x128xf32> to vector<1x128xf32>
    %cst = arith.constant 0.000000e+00 : f32
    %22 = vector.broadcast %cst : f32 to vector<2x32xf32>
    %cst_25 = arith.constant 0.000000e+00 : f32
    %23 = vector.broadcast %cst_25 : f32 to vector<2x32xf32>
    %cst_26 = arith.constant dense<0.000000e+00> : vector<2x128xf32>
    %24 = tpu.matmul %1, %17, %cst_26 {dimension_numbers = #tpu.dot_dimension_numbers<[1], [0], [0], [1], [0, 0, 1, 1], [], []>} : vector<2x32xf32>, vector<32x128xf32>, vector<2x128xf32> -> vector<2x128xf32>
    %25 = vector.broadcast %21 : vector<1x128xf32> to vector<2x128xf32>
    %26 = arith.addf %24, %25 : vector<2x128xf32>
    %cst_27 = arith.constant dense<0.000000e+00> : vector<2x128xf32>
    %27 = tpu.matmul %22, %19, %cst_27 {dimension_numbers = #tpu.dot_dimension_numbers<[1], [0], [0], [1], [0, 0, 1, 1], [], []>} : vector<2x32xf32>, vector<32x128xf32>, vector<2x128xf32> -> vector<2x128xf32>
    %28 = arith.addf %26, %27 : vector<2x128xf32>
    %29 = vector.extract_strided_slice %28 {offsets = [0, 0], sizes = [2, 32], strides = [1, 1]} : vector<2x128xf32> to vector<2x32xf32>
    %30 = arith.negf %29 : vector<2x32xf32>
    %31 = math.exp %30 : vector<2x32xf32>
    %cst_28 = arith.constant 1.000000e+00 : f32
    %32 = vector.broadcast %cst_28 : f32 to vector<2x32xf32>
    %33 = arith.addf %32, %31 : vector<2x32xf32>
    %34 = arith.divf %32, %33 : vector<2x32xf32>
    %35 = vector.extract_strided_slice %28 {offsets = [0, 32], sizes = [2, 32], strides = [1, 1]} : vector<2x128xf32> to vector<2x32xf32>
    %36 = arith.negf %35 : vector<2x32xf32>
    %37 = math.exp %36 : vector<2x32xf32>
    %cst_29 = arith.constant 1.000000e+00 : f32
    %38 = vector.broadcast %cst_29 : f32 to vector<2x32xf32>
    %39 = arith.addf %38, %37 : vector<2x32xf32>
    %40 = arith.divf %38, %39 : vector<2x32xf32>
    %41 = vector.extract_strided_slice %28 {offsets = [0, 64], sizes = [2, 32], strides = [1, 1]} : vector<2x128xf32> to vector<2x32xf32>
    %42 = math.tanh %41 : vector<2x32xf32>
    %43 = vector.extract_strided_slice %28 {offsets = [0, 96], sizes = [2, 32], strides = [1, 1]} : vector<2x128xf32> to vector<2x32xf32>
    %44 = arith.negf %43 : vector<2x32xf32>
    %45 = math.exp %44 : vector<2x32xf32>
    %cst_30 = arith.constant 1.000000e+00 : f32
    %46 = vector.broadcast %cst_30 : f32 to vector<2x32xf32>
    %47 = arith.addf %46, %45 : vector<2x32xf32>
    %48 = arith.divf %46, %47 : vector<2x32xf32>
    %49 = arith.mulf %40, %23 : vector<2x32xf32>
    %50 = arith.mulf %34, %42 : vector<2x32xf32>
    %51 = arith.addf %49, %50 : vector<2x32xf32>
    %52 = math.tanh %51 : vector<2x32xf32>
    %53 = arith.mulf %48, %52 : vector<2x32xf32>
    %cst_31 = arith.constant dense<0.000000e+00> : vector<2x128xf32>
    %54 = tpu.matmul %3, %17, %cst_31 {dimension_numbers = #tpu.dot_dimension_numbers<[1], [0], [0], [1], [0, 0, 1, 1], [], []>} : vector<2x32xf32>, vector<32x128xf32>, vector<2x128xf32> -> vector<2x128xf32>
    %55 = vector.broadcast %21 : vector<1x128xf32> to vector<2x128xf32>
    %56 = arith.addf %54, %55 : vector<2x128xf32>
    %cst_32 = arith.constant dense<0.000000e+00> : vector<2x128xf32>
    %57 = tpu.matmul %53, %19, %cst_32 {dimension_numbers = #tpu.dot_dimension_numbers<[1], [0], [0], [1], [0, 0, 1, 1], [], []>} : vector<2x32xf32>, vector<32x128xf32>, vector<2x128xf32> -> vector<2x128xf32>
    %58 = arith.addf %56, %57 : vector<2x128xf32>
    %59 = vector.extract_strided_slice %58 {offsets = [0, 0], sizes = [2, 32], strides = [1, 1]} : vector<2x128xf32> to vector<2x32xf32>
    %60 = arith.negf %59 : vector<2x32xf32>
    %61 = math.exp %60 : vector<2x32xf32>
    %cst_33 = arith.constant 1.000000e+00 : f32
    %62 = vector.broadcast %cst_33 : f32 to vector<2x32xf32>
    %63 = arith.addf %62, %61 : vector<2x32xf32>
    %64 = arith.divf %62, %63 : vector<2x32xf32>
    %65 = vector.extract_strided_slice %58 {offsets = [0, 32], sizes = [2, 32], strides = [1, 1]} : vector<2x128xf32> to vector<2x32xf32>
    %66 = arith.negf %65 : vector<2x32xf32>
    %67 = math.exp %66 : vector<2x32xf32>
    %cst_34 = arith.constant 1.000000e+00 : f32
    %68 = vector.broadcast %cst_34 : f32 to vector<2x32xf32>
    %69 = arith.addf %68, %67 : vector<2x32xf32>
    %70 = arith.divf %68, %69 : vector<2x32xf32>
    %71 = vector.extract_strided_slice %58 {offsets = [0, 64], sizes = [2, 32], strides = [1, 1]} : vector<2x128xf32> to vector<2x32xf32>
    %72 = math.tanh %71 : vector<2x32xf32>
    %73 = vector.extract_strided_slice %58 {offsets = [0, 96], sizes = [2, 32], strides = [1, 1]} : vector<2x128xf32> to vector<2x32xf32>
    %74 = arith.negf %73 : vector<2x32xf32>
    %75 = math.exp %74 : vector<2x32xf32>
    %cst_35 = arith.constant 1.000000e+00 : f32
    %76 = vector.broadcast %cst_35 : f32 to vector<2x32xf32>
    %77 = arith.addf %76, %75 : vector<2x32xf32>
    %78 = arith.divf %76, %77 : vector<2x32xf32>
    %79 = arith.mulf %70, %51 : vector<2x32xf32>
    %80 = arith.mulf %64, %72 : vector<2x32xf32>
    %81 = arith.addf %79, %80 : vector<2x32xf32>
    %82 = math.tanh %81 : vector<2x32xf32>
    %83 = arith.mulf %78, %82 : vector<2x32xf32>
    %cst_36 = arith.constant dense<0.000000e+00> : vector<2x128xf32>
    %84 = tpu.matmul %5, %17, %cst_36 {dimension_numbers = #tpu.dot_dimension_numbers<[1], [0], [0], [1], [0, 0, 1, 1], [], []>} : vector<2x32xf32>, vector<32x128xf32>, vector<2x128xf32> -> vector<2x128xf32>
    %85 = vector.broadcast %21 : vector<1x128xf32> to vector<2x128xf32>
    %86 = arith.addf %84, %85 : vector<2x128xf32>
    %cst_37 = arith.constant dense<0.000000e+00> : vector<2x128xf32>
    %87 = tpu.matmul %83, %19, %cst_37 {dimension_numbers = #tpu.dot_dimension_numbers<[1], [0], [0], [1], [0, 0, 1, 1], [], []>} : vector<2x32xf32>, vector<32x128xf32>, vector<2x128xf32> -> vector<2x128xf32>
    %88 = arith.addf %86, %87 : vector<2x128xf32>
    %89 = vector.extract_strided_slice %88 {offsets = [0, 0], sizes = [2, 32], strides = [1, 1]} : vector<2x128xf32> to vector<2x32xf32>
    %90 = arith.negf %89 : vector<2x32xf32>
    %91 = math.exp %90 : vector<2x32xf32>
    %cst_38 = arith.constant 1.000000e+00 : f32
    %92 = vector.broadcast %cst_38 : f32 to vector<2x32xf32>
    %93 = arith.addf %92, %91 : vector<2x32xf32>
    %94 = arith.divf %92, %93 : vector<2x32xf32>
    %95 = vector.extract_strided_slice %88 {offsets = [0, 32], sizes = [2, 32], strides = [1, 1]} : vector<2x128xf32> to vector<2x32xf32>
    %96 = arith.negf %95 : vector<2x32xf32>
    %97 = math.exp %96 : vector<2x32xf32>
    %cst_39 = arith.constant 1.000000e+00 : f32
    %98 = vector.broadcast %cst_39 : f32 to vector<2x32xf32>
    %99 = arith.addf %98, %97 : vector<2x32xf32>
    %100 = arith.divf %98, %99 : vector<2x32xf32>
    %101 = vector.extract_strided_slice %88 {offsets = [0, 64], sizes = [2, 32], strides = [1, 1]} : vector<2x128xf32> to vector<2x32xf32>
    %102 = math.tanh %101 : vector<2x32xf32>
    %103 = vector.extract_strided_slice %88 {offsets = [0, 96], sizes = [2, 32], strides = [1, 1]} : vector<2x128xf32> to vector<2x32xf32>
    %104 = arith.negf %103 : vector<2x32xf32>
    %105 = math.exp %104 : vector<2x32xf32>
    %cst_40 = arith.constant 1.000000e+00 : f32
    %106 = vector.broadcast %cst_40 : f32 to vector<2x32xf32>
    %107 = arith.addf %106, %105 : vector<2x32xf32>
    %108 = arith.divf %106, %107 : vector<2x32xf32>
    %109 = arith.mulf %100, %81 : vector<2x32xf32>
    %110 = arith.mulf %94, %102 : vector<2x32xf32>
    %111 = arith.addf %109, %110 : vector<2x32xf32>
    %112 = math.tanh %111 : vector<2x32xf32>
    %113 = arith.mulf %108, %112 : vector<2x32xf32>
    %cst_41 = arith.constant dense<0.000000e+00> : vector<2x128xf32>
    %114 = tpu.matmul %7, %17, %cst_41 {dimension_numbers = #tpu.dot_dimension_numbers<[1], [0], [0], [1], [0, 0, 1, 1], [], []>} : vector<2x32xf32>, vector<32x128xf32>, vector<2x128xf32> -> vector<2x128xf32>
    %115 = vector.broadcast %21 : vector<1x128xf32> to vector<2x128xf32>
    %116 = arith.addf %114, %115 : vector<2x128xf32>
    %cst_42 = arith.constant dense<0.000000e+00> : vector<2x128xf32>
    %117 = tpu.matmul %113, %19, %cst_42 {dimension_numbers = #tpu.dot_dimension_numbers<[1], [0], [0], [1], [0, 0, 1, 1], [], []>} : vector<2x32xf32>, vector<32x128xf32>, vector<2x128xf32> -> vector<2x128xf32>
    %118 = arith.addf %116, %117 : vector<2x128xf32>
    %119 = vector.extract_strided_slice %118 {offsets = [0, 0], sizes = [2, 32], strides = [1, 1]} : vector<2x128xf32> to vector<2x32xf32>
    %120 = arith.negf %119 : vector<2x32xf32>
    %121 = math.exp %120 : vector<2x32xf32>
    %cst_43 = arith.constant 1.000000e+00 : f32
    %122 = vector.broadcast %cst_43 : f32 to vector<2x32xf32>
    %123 = arith.addf %122, %121 : vector<2x32xf32>
    %124 = arith.divf %122, %123 : vector<2x32xf32>
    %125 = vector.extract_strided_slice %118 {offsets = [0, 32], sizes = [2, 32], strides = [1, 1]} : vector<2x128xf32> to vector<2x32xf32>
    %126 = arith.negf %125 : vector<2x32xf32>
    %127 = math.exp %126 : vector<2x32xf32>
    %cst_44 = arith.constant 1.000000e+00 : f32
    %128 = vector.broadcast %cst_44 : f32 to vector<2x32xf32>
    %129 = arith.addf %128, %127 : vector<2x32xf32>
    %130 = arith.divf %128, %129 : vector<2x32xf32>
    %131 = vector.extract_strided_slice %118 {offsets = [0, 64], sizes = [2, 32], strides = [1, 1]} : vector<2x128xf32> to vector<2x32xf32>
    %132 = math.tanh %131 : vector<2x32xf32>
    %133 = vector.extract_strided_slice %118 {offsets = [0, 96], sizes = [2, 32], strides = [1, 1]} : vector<2x128xf32> to vector<2x32xf32>
    %134 = arith.negf %133 : vector<2x32xf32>
    %135 = math.exp %134 : vector<2x32xf32>
    %cst_45 = arith.constant 1.000000e+00 : f32
    %136 = vector.broadcast %cst_45 : f32 to vector<2x32xf32>
    %137 = arith.addf %136, %135 : vector<2x32xf32>
    %138 = arith.divf %136, %137 : vector<2x32xf32>
    %139 = arith.mulf %130, %111 : vector<2x32xf32>
    %140 = arith.mulf %124, %132 : vector<2x32xf32>
    %141 = arith.addf %139, %140 : vector<2x32xf32>
    %142 = math.tanh %141 : vector<2x32xf32>
    %143 = arith.mulf %138, %142 : vector<2x32xf32>
    %cst_46 = arith.constant dense<0.000000e+00> : vector<2x128xf32>
    %144 = tpu.matmul %9, %17, %cst_46 {dimension_numbers = #tpu.dot_dimension_numbers<[1], [0], [0], [1], [0, 0, 1, 1], [], []>} : vector<2x32xf32>, vector<32x128xf32>, vector<2x128xf32> -> vector<2x128xf32>
    %145 = vector.broadcast %21 : vector<1x128xf32> to vector<2x128xf32>
    %146 = arith.addf %144, %145 : vector<2x128xf32>
    %cst_47 = arith.constant dense<0.000000e+00> : vector<2x128xf32>
    %147 = tpu.matmul %143, %19, %cst_47 {dimension_numbers = #tpu.dot_dimension_numbers<[1], [0], [0], [1], [0, 0, 1, 1], [], []>} : vector<2x32xf32>, vector<32x128xf32>, vector<2x128xf32> -> vector<2x128xf32>
    %148 = arith.addf %146, %147 : vector<2x128xf32>
    %149 = vector.extract_strided_slice %148 {offsets = [0, 0], sizes = [2, 32], strides = [1, 1]} : vector<2x128xf32> to vector<2x32xf32>
    %150 = arith.negf %149 : vector<2x32xf32>
    %151 = math.exp %150 : vector<2x32xf32>
    %cst_48 = arith.constant 1.000000e+00 : f32
    %152 = vector.broadcast %cst_48 : f32 to vector<2x32xf32>
    %153 = arith.addf %152, %151 : vector<2x32xf32>
    %154 = arith.divf %152, %153 : vector<2x32xf32>
    %155 = vector.extract_strided_slice %148 {offsets = [0, 32], sizes = [2, 32], strides = [1, 1]} : vector<2x128xf32> to vector<2x32xf32>
    %156 = arith.negf %155 : vector<2x32xf32>
    %157 = math.exp %156 : vector<2x32xf32>
    %cst_49 = arith.constant 1.000000e+00 : f32
    %158 = vector.broadcast %cst_49 : f32 to vector<2x32xf32>
    %159 = arith.addf %158, %157 : vector<2x32xf32>
    %160 = arith.divf %158, %159 : vector<2x32xf32>
    %161 = vector.extract_strided_slice %148 {offsets = [0, 64], sizes = [2, 32], strides = [1, 1]} : vector<2x128xf32> to vector<2x32xf32>
    %162 = math.tanh %161 : vector<2x32xf32>
    %163 = vector.extract_strided_slice %148 {offsets = [0, 96], sizes = [2, 32], strides = [1, 1]} : vector<2x128xf32> to vector<2x32xf32>
    %164 = arith.negf %163 : vector<2x32xf32>
    %165 = math.exp %164 : vector<2x32xf32>
    %cst_50 = arith.constant 1.000000e+00 : f32
    %166 = vector.broadcast %cst_50 : f32 to vector<2x32xf32>
    %167 = arith.addf %166, %165 : vector<2x32xf32>
    %168 = arith.divf %166, %167 : vector<2x32xf32>
    %169 = arith.mulf %160, %141 : vector<2x32xf32>
    %170 = arith.mulf %154, %162 : vector<2x32xf32>
    %171 = arith.addf %169, %170 : vector<2x32xf32>
    %172 = math.tanh %171 : vector<2x32xf32>
    %173 = arith.mulf %168, %172 : vector<2x32xf32>
    %cst_51 = arith.constant dense<0.000000e+00> : vector<2x128xf32>
    %174 = tpu.matmul %11, %17, %cst_51 {dimension_numbers = #tpu.dot_dimension_numbers<[1], [0], [0], [1], [0, 0, 1, 1], [], []>} : vector<2x32xf32>, vector<32x128xf32>, vector<2x128xf32> -> vector<2x128xf32>
    %175 = vector.broadcast %21 : vector<1x128xf32> to vector<2x128xf32>
    %176 = arith.addf %174, %175 : vector<2x128xf32>
    %cst_52 = arith.constant dense<0.000000e+00> : vector<2x128xf32>
    %177 = tpu.matmul %173, %19, %cst_52 {dimension_numbers = #tpu.dot_dimension_numbers<[1], [0], [0], [1], [0, 0, 1, 1], [], []>} : vector<2x32xf32>, vector<32x128xf32>, vector<2x128xf32> -> vector<2x128xf32>
    %178 = arith.addf %176, %177 : vector<2x128xf32>
    %179 = vector.extract_strided_slice %178 {offsets = [0, 0], sizes = [2, 32], strides = [1, 1]} : vector<2x128xf32> to vector<2x32xf32>
    %180 = arith.negf %179 : vector<2x32xf32>
    %181 = math.exp %180 : vector<2x32xf32>
    %cst_53 = arith.constant 1.000000e+00 : f32
    %182 = vector.broadcast %cst_53 : f32 to vector<2x32xf32>
    %183 = arith.addf %182, %181 : vector<2x32xf32>
    %184 = arith.divf %182, %183 : vector<2x32xf32>
    %185 = vector.extract_strided_slice %178 {offsets = [0, 32], sizes = [2, 32], strides = [1, 1]} : vector<2x128xf32> to vector<2x32xf32>
    %186 = arith.negf %185 : vector<2x32xf32>
    %187 = math.exp %186 : vector<2x32xf32>
    %cst_54 = arith.constant 1.000000e+00 : f32
    %188 = vector.broadcast %cst_54 : f32 to vector<2x32xf32>
    %189 = arith.addf %188, %187 : vector<2x32xf32>
    %190 = arith.divf %188, %189 : vector<2x32xf32>
    %191 = vector.extract_strided_slice %178 {offsets = [0, 64], sizes = [2, 32], strides = [1, 1]} : vector<2x128xf32> to vector<2x32xf32>
    %192 = math.tanh %191 : vector<2x32xf32>
    %193 = vector.extract_strided_slice %178 {offsets = [0, 96], sizes = [2, 32], strides = [1, 1]} : vector<2x128xf32> to vector<2x32xf32>
    %194 = arith.negf %193 : vector<2x32xf32>
    %195 = math.exp %194 : vector<2x32xf32>
    %cst_55 = arith.constant 1.000000e+00 : f32
    %196 = vector.broadcast %cst_55 : f32 to vector<2x32xf32>
    %197 = arith.addf %196, %195 : vector<2x32xf32>
    %198 = arith.divf %196, %197 : vector<2x32xf32>
    %199 = arith.mulf %190, %171 : vector<2x32xf32>
    %200 = arith.mulf %184, %192 : vector<2x32xf32>
    %201 = arith.addf %199, %200 : vector<2x32xf32>
    %202 = math.tanh %201 : vector<2x32xf32>
    %203 = arith.mulf %198, %202 : vector<2x32xf32>
    %cst_56 = arith.constant dense<0.000000e+00> : vector<2x128xf32>
    %204 = tpu.matmul %13, %17, %cst_56 {dimension_numbers = #tpu.dot_dimension_numbers<[1], [0], [0], [1], [0, 0, 1, 1], [], []>} : vector<2x32xf32>, vector<32x128xf32>, vector<2x128xf32> -> vector<2x128xf32>
    %205 = vector.broadcast %21 : vector<1x128xf32> to vector<2x128xf32>
    %206 = arith.addf %204, %205 : vector<2x128xf32>
    %cst_57 = arith.constant dense<0.000000e+00> : vector<2x128xf32>
    %207 = tpu.matmul %203, %19, %cst_57 {dimension_numbers = #tpu.dot_dimension_numbers<[1], [0], [0], [1], [0, 0, 1, 1], [], []>} : vector<2x32xf32>, vector<32x128xf32>, vector<2x128xf32> -> vector<2x128xf32>
    %208 = arith.addf %206, %207 : vector<2x128xf32>
    %209 = vector.extract_strided_slice %208 {offsets = [0, 0], sizes = [2, 32], strides = [1, 1]} : vector<2x128xf32> to vector<2x32xf32>
    %210 = arith.negf %209 : vector<2x32xf32>
    %211 = math.exp %210 : vector<2x32xf32>
    %cst_58 = arith.constant 1.000000e+00 : f32
    %212 = vector.broadcast %cst_58 : f32 to vector<2x32xf32>
    %213 = arith.addf %212, %211 : vector<2x32xf32>
    %214 = arith.divf %212, %213 : vector<2x32xf32>
    %215 = vector.extract_strided_slice %208 {offsets = [0, 32], sizes = [2, 32], strides = [1, 1]} : vector<2x128xf32> to vector<2x32xf32>
    %216 = arith.negf %215 : vector<2x32xf32>
    %217 = math.exp %216 : vector<2x32xf32>
    %cst_59 = arith.constant 1.000000e+00 : f32
    %218 = vector.broadcast %cst_59 : f32 to vector<2x32xf32>
    %219 = arith.addf %218, %217 : vector<2x32xf32>
    %220 = arith.divf %218, %219 : vector<2x32xf32>
    %221 = vector.extract_strided_slice %208 {offsets = [0, 64], sizes = [2, 32], strides = [1, 1]} : vector<2x128xf32> to vector<2x32xf32>
    %222 = math.tanh %221 : vector<2x32xf32>
    %223 = vector.extract_strided_slice %208 {offsets = [0, 96], sizes = [2, 32], strides = [1, 1]} : vector<2x128xf32> to vector<2x32xf32>
    %224 = arith.negf %223 : vector<2x32xf32>
    %225 = math.exp %224 : vector<2x32xf32>
    %cst_60 = arith.constant 1.000000e+00 : f32
    %226 = vector.broadcast %cst_60 : f32 to vector<2x32xf32>
    %227 = arith.addf %226, %225 : vector<2x32xf32>
    %228 = arith.divf %226, %227 : vector<2x32xf32>
    %229 = arith.mulf %220, %201 : vector<2x32xf32>
    %230 = arith.mulf %214, %222 : vector<2x32xf32>
    %231 = arith.addf %229, %230 : vector<2x32xf32>
    %232 = math.tanh %231 : vector<2x32xf32>
    %233 = arith.mulf %228, %232 : vector<2x32xf32>
    %cst_61 = arith.constant dense<0.000000e+00> : vector<2x128xf32>
    %234 = tpu.matmul %15, %17, %cst_61 {dimension_numbers = #tpu.dot_dimension_numbers<[1], [0], [0], [1], [0, 0, 1, 1], [], []>} : vector<2x32xf32>, vector<32x128xf32>, vector<2x128xf32> -> vector<2x128xf32>
    %235 = vector.broadcast %21 : vector<1x128xf32> to vector<2x128xf32>
    %236 = arith.addf %234, %235 : vector<2x128xf32>
    %cst_62 = arith.constant dense<0.000000e+00> : vector<2x128xf32>
    %237 = tpu.matmul %233, %19, %cst_62 {dimension_numbers = #tpu.dot_dimension_numbers<[1], [0], [0], [1], [0, 0, 1, 1], [], []>} : vector<2x32xf32>, vector<32x128xf32>, vector<2x128xf32> -> vector<2x128xf32>
    %238 = arith.addf %236, %237 : vector<2x128xf32>
    %239 = vector.extract_strided_slice %238 {offsets = [0, 0], sizes = [2, 32], strides = [1, 1]} : vector<2x128xf32> to vector<2x32xf32>
    %240 = arith.negf %239 : vector<2x32xf32>
    %241 = math.exp %240 : vector<2x32xf32>
    %cst_63 = arith.constant 1.000000e+00 : f32
    %242 = vector.broadcast %cst_63 : f32 to vector<2x32xf32>
    %243 = arith.addf %242, %241 : vector<2x32xf32>
    %244 = arith.divf %242, %243 : vector<2x32xf32>
    %245 = vector.extract_strided_slice %238 {offsets = [0, 32], sizes = [2, 32], strides = [1, 1]} : vector<2x128xf32> to vector<2x32xf32>
    %246 = arith.negf %245 : vector<2x32xf32>
    %247 = math.exp %246 : vector<2x32xf32>
    %cst_64 = arith.constant 1.000000e+00 : f32
    %248 = vector.broadcast %cst_64 : f32 to vector<2x32xf32>
    %249 = arith.addf %248, %247 : vector<2x32xf32>
    %250 = arith.divf %248, %249 : vector<2x32xf32>
    %251 = vector.extract_strided_slice %238 {offsets = [0, 64], sizes = [2, 32], strides = [1, 1]} : vector<2x128xf32> to vector<2x32xf32>
    %252 = math.tanh %251 : vector<2x32xf32>
    %253 = vector.extract_strided_slice %238 {offsets = [0, 96], sizes = [2, 32], strides = [1, 1]} : vector<2x128xf32> to vector<2x32xf32>
    %254 = arith.negf %253 : vector<2x32xf32>
    %255 = math.exp %254 : vector<2x32xf32>
    %cst_65 = arith.constant 1.000000e+00 : f32
    %256 = vector.broadcast %cst_65 : f32 to vector<2x32xf32>
    %257 = arith.addf %256, %255 : vector<2x32xf32>
    %258 = arith.divf %256, %257 : vector<2x32xf32>
    %259 = arith.mulf %250, %231 : vector<2x32xf32>
    %260 = arith.mulf %244, %252 : vector<2x32xf32>
    %261 = arith.addf %259, %260 : vector<2x32xf32>
    %262 = math.tanh %261 : vector<2x32xf32>
    %263 = arith.mulf %258, %262 : vector<2x32xf32>
    %c0_66 = arith.constant 0 : index
    %c0_67 = arith.constant 0 : index
    %264 = vector.load %arg5[%c0_66, %c0_67] : memref<32x64xf32, #tpu.memory_space<vmem>>, vector<32x64xf32>
    %c0_68 = arith.constant 0 : index
    %c0_69 = arith.constant 0 : index
    %265 = vector.load %arg6[%c0_68, %c0_69] : memref<1x64xf32, #tpu.memory_space<vmem>>, vector<1x64xf32>
    %c0_70 = arith.constant 0 : index
    %c0_71 = arith.constant 0 : index
    %266 = vector.load %arg7[%c0_70, %c0_71] : memref<1x32xf32, #tpu.memory_space<vmem>>, vector<1x32xf32>
    %c0_72 = arith.constant 0 : index
    %c0_73 = arith.constant 0 : index
    %267 = vector.load %arg8[%c0_72, %c0_73] : memref<1x32xf32, #tpu.memory_space<vmem>>, vector<1x32xf32>
    %cst_74 = arith.constant dense<0.000000e+00> : vector<2x64xf32>
    %268 = tpu.matmul %53, %264, %cst_74 {dimension_numbers = #tpu.dot_dimension_numbers<[1], [0], [0], [1], [0, 0, 1, 1], [], []>} : vector<2x32xf32>, vector<32x64xf32>, vector<2x64xf32> -> vector<2x64xf32>
    %269 = vector.broadcast %265 : vector<1x64xf32> to vector<2x64xf32>
    %270 = arith.addf %268, %269 : vector<2x64xf32>
    %271 = vector.extract_strided_slice %270 {offsets = [0, 0], sizes = [2, 32], strides = [1, 1]} : vector<2x64xf32> to vector<2x32xf32>
    %272 = vector.extract_strided_slice %270 {offsets = [0, 32], sizes = [2, 32], strides = [1, 1]} : vector<2x64xf32> to vector<2x32xf32>
    %273 = arith.negf %272 : vector<2x32xf32>
    %274 = math.exp %273 : vector<2x32xf32>
    %cst_75 = arith.constant 1.000000e+00 : f32
    %275 = vector.broadcast %cst_75 : f32 to vector<2x32xf32>
    %276 = arith.addf %275, %274 : vector<2x32xf32>
    %277 = arith.divf %275, %276 : vector<2x32xf32>
    %278 = arith.mulf %271, %277 : vector<2x32xf32>
    %279 = arith.addf %278, %1 : vector<2x32xf32>
    %cst_76 = arith.constant dense<0.000000e+00> : vector<2xf32>
    %280 = vector.multi_reduction <add>, %279, %cst_76 [1] : vector<2x32xf32> to vector<2xf32>
    %281 = vector.shape_cast %280 : vector<2xf32> to vector<2x1xf32>
    %cst_77 = arith.constant 3.200000e+01 : f32
    %282 = vector.broadcast %cst_77 : f32 to vector<2x1xf32>
    %283 = arith.divf %281, %282 : vector<2x1xf32>
    %284 = vector.broadcast %283 : vector<2x1xf32> to vector<2x32xf32>
    %285 = arith.subf %279, %284 : vector<2x32xf32>
    %286 = arith.mulf %285, %285 : vector<2x32xf32>
    %cst_78 = arith.constant dense<0.000000e+00> : vector<2xf32>
    %287 = vector.multi_reduction <add>, %286, %cst_78 [1] : vector<2x32xf32> to vector<2xf32>
    %288 = vector.shape_cast %287 : vector<2xf32> to vector<2x1xf32>
    %cst_79 = arith.constant 3.200000e+01 : f32
    %289 = vector.broadcast %cst_79 : f32 to vector<2x1xf32>
    %290 = arith.divf %288, %289 : vector<2x1xf32>
    %cst_80 = arith.constant 9.99999974E-6 : f32
    %291 = vector.broadcast %cst_80 : f32 to vector<2x1xf32>
    %292 = arith.addf %290, %291 : vector<2x1xf32>
    %293 = math.rsqrt %292 : vector<2x1xf32>
    %294 = vector.broadcast %293 : vector<2x1xf32> to vector<2x32xf32>
    %295 = arith.mulf %285, %294 : vector<2x32xf32>
    %296 = vector.broadcast %266 : vector<1x32xf32> to vector<2x32xf32>
    %297 = arith.mulf %295, %296 : vector<2x32xf32>
    %298 = vector.broadcast %267 : vector<1x32xf32> to vector<2x32xf32>
    %299 = arith.addf %297, %298 : vector<2x32xf32>
    %c0_81 = arith.constant 0 : index
    %c0_82 = arith.constant 0 : index
    %c0_83 = arith.constant 0 : index
    %300 = vector.load %arg9[%c0_81, %c0_82, %c0_83] : memref<8x2x32xf32, #tpu.memory_space<vmem>>, vector<1x2x32xf32>
    %301 = vector.shape_cast %300 : vector<1x2x32xf32> to vector<2x32xf32>
    %302 = vector.shape_cast %299 : vector<2x32xf32> to vector<1x2x32xf32>
    tpu.vector_store %arg9[%c0_81, %c0_82, %c0_83], %302 {strides = array<i32>} : memref<8x2x32xf32, #tpu.memory_space<vmem>>, vector<1x2x32xf32>,
    %cst_84 = arith.constant dense<0.000000e+00> : vector<2x64xf32>
    %303 = tpu.matmul %83, %264, %cst_84 {dimension_numbers = #tpu.dot_dimension_numbers<[1], [0], [0], [1], [0, 0, 1, 1], [], []>} : vector<2x32xf32>, vector<32x64xf32>, vector<2x64xf32> -> vector<2x64xf32>
    %304 = vector.broadcast %265 : vector<1x64xf32> to vector<2x64xf32>
    %305 = arith.addf %303, %304 : vector<2x64xf32>
    %306 = vector.extract_strided_slice %305 {offsets = [0, 0], sizes = [2, 32], strides = [1, 1]} : vector<2x64xf32> to vector<2x32xf32>
    %307 = vector.extract_strided_slice %305 {offsets = [0, 32], sizes = [2, 32], strides = [1, 1]} : vector<2x64xf32> to vector<2x32xf32>
    %308 = arith.negf %307 : vector<2x32xf32>
    %309 = math.exp %308 : vector<2x32xf32>
    %cst_85 = arith.constant 1.000000e+00 : f32
    %310 = vector.broadcast %cst_85 : f32 to vector<2x32xf32>
    %311 = arith.addf %310, %309 : vector<2x32xf32>
    %312 = arith.divf %310, %311 : vector<2x32xf32>
    %313 = arith.mulf %306, %312 : vector<2x32xf32>
    %314 = arith.addf %313, %3 : vector<2x32xf32>
    %cst_86 = arith.constant dense<0.000000e+00> : vector<2xf32>
    %315 = vector.multi_reduction <add>, %314, %cst_86 [1] : vector<2x32xf32> to vector<2xf32>
    %316 = vector.shape_cast %315 : vector<2xf32> to vector<2x1xf32>
    %cst_87 = arith.constant 3.200000e+01 : f32
    %317 = vector.broadcast %cst_87 : f32 to vector<2x1xf32>
    %318 = arith.divf %316, %317 : vector<2x1xf32>
    %319 = vector.broadcast %318 : vector<2x1xf32> to vector<2x32xf32>
    %320 = arith.subf %314, %319 : vector<2x32xf32>
    %321 = arith.mulf %320, %320 : vector<2x32xf32>
    %cst_88 = arith.constant dense<0.000000e+00> : vector<2xf32>
    %322 = vector.multi_reduction <add>, %321, %cst_88 [1] : vector<2x32xf32> to vector<2xf32>
    %323 = vector.shape_cast %322 : vector<2xf32> to vector<2x1xf32>
    %cst_89 = arith.constant 3.200000e+01 : f32
    %324 = vector.broadcast %cst_89 : f32 to vector<2x1xf32>
    %325 = arith.divf %323, %324 : vector<2x1xf32>
    %cst_90 = arith.constant 9.99999974E-6 : f32
    %326 = vector.broadcast %cst_90 : f32 to vector<2x1xf32>
    %327 = arith.addf %325, %326 : vector<2x1xf32>
    %328 = math.rsqrt %327 : vector<2x1xf32>
    %329 = vector.broadcast %328 : vector<2x1xf32> to vector<2x32xf32>
    %330 = arith.mulf %320, %329 : vector<2x32xf32>
    %331 = vector.broadcast %266 : vector<1x32xf32> to vector<2x32xf32>
    %332 = arith.mulf %330, %331 : vector<2x32xf32>
    %333 = vector.broadcast %267 : vector<1x32xf32> to vector<2x32xf32>
    %334 = arith.addf %332, %333 : vector<2x32xf32>
    %c1_91 = arith.constant 1 : index
    %c0_92 = arith.constant 0 : index
    %c0_93 = arith.constant 0 : index
    %335 = vector.load %arg9[%c1_91, %c0_92, %c0_93] : memref<8x2x32xf32, #tpu.memory_space<vmem>>, vector<1x2x32xf32>
    %336 = vector.shape_cast %335 : vector<1x2x32xf32> to vector<2x32xf32>
    %337 = vector.shape_cast %334 : vector<2x32xf32> to vector<1x2x32xf32>
    tpu.vector_store %arg9[%c1_91, %c0_92, %c0_93], %337 {strides = array<i32>} : memref<8x2x32xf32, #tpu.memory_space<vmem>>, vector<1x2x32xf32>,
    %cst_94 = arith.constant dense<0.000000e+00> : vector<2x64xf32>
    %338 = tpu.matmul %113, %264, %cst_94 {dimension_numbers = #tpu.dot_dimension_numbers<[1], [0], [0], [1], [0, 0, 1, 1], [], []>} : vector<2x32xf32>, vector<32x64xf32>, vector<2x64xf32> -> vector<2x64xf32>
    %339 = vector.broadcast %265 : vector<1x64xf32> to vector<2x64xf32>
    %340 = arith.addf %338, %339 : vector<2x64xf32>
    %341 = vector.extract_strided_slice %340 {offsets = [0, 0], sizes = [2, 32], strides = [1, 1]} : vector<2x64xf32> to vector<2x32xf32>
    %342 = vector.extract_strided_slice %340 {offsets = [0, 32], sizes = [2, 32], strides = [1, 1]} : vector<2x64xf32> to vector<2x32xf32>
    %343 = arith.negf %342 : vector<2x32xf32>
    %344 = math.exp %343 : vector<2x32xf32>
    %cst_95 = arith.constant 1.000000e+00 : f32
    %345 = vector.broadcast %cst_95 : f32 to vector<2x32xf32>
    %346 = arith.addf %345, %344 : vector<2x32xf32>
    %347 = arith.divf %345, %346 : vector<2x32xf32>
    %348 = arith.mulf %341, %347 : vector<2x32xf32>
    %349 = arith.addf %348, %5 : vector<2x32xf32>
    %cst_96 = arith.constant dense<0.000000e+00> : vector<2xf32>
    %350 = vector.multi_reduction <add>, %349, %cst_96 [1] : vector<2x32xf32> to vector<2xf32>
    %351 = vector.shape_cast %350 : vector<2xf32> to vector<2x1xf32>
    %cst_97 = arith.constant 3.200000e+01 : f32
    %352 = vector.broadcast %cst_97 : f32 to vector<2x1xf32>
    %353 = arith.divf %351, %352 : vector<2x1xf32>
    %354 = vector.broadcast %353 : vector<2x1xf32> to vector<2x32xf32>
    %355 = arith.subf %349, %354 : vector<2x32xf32>
    %356 = arith.mulf %355, %355 : vector<2x32xf32>
    %cst_98 = arith.constant dense<0.000000e+00> : vector<2xf32>
    %357 = vector.multi_reduction <add>, %356, %cst_98 [1] : vector<2x32xf32> to vector<2xf32>
    %358 = vector.shape_cast %357 : vector<2xf32> to vector<2x1xf32>
    %cst_99 = arith.constant 3.200000e+01 : f32
    %359 = vector.broadcast %cst_99 : f32 to vector<2x1xf32>
    %360 = arith.divf %358, %359 : vector<2x1xf32>
    %cst_100 = arith.constant 9.99999974E-6 : f32
    %361 = vector.broadcast %cst_100 : f32 to vector<2x1xf32>
    %362 = arith.addf %360, %361 : vector<2x1xf32>
    %363 = math.rsqrt %362 : vector<2x1xf32>
    %364 = vector.broadcast %363 : vector<2x1xf32> to vector<2x32xf32>
    %365 = arith.mulf %355, %364 : vector<2x32xf32>
    %366 = vector.broadcast %266 : vector<1x32xf32> to vector<2x32xf32>
    %367 = arith.mulf %365, %366 : vector<2x32xf32>
    %368 = vector.broadcast %267 : vector<1x32xf32> to vector<2x32xf32>
    %369 = arith.addf %367, %368 : vector<2x32xf32>
    %c2_101 = arith.constant 2 : index
    %c0_102 = arith.constant 0 : index
    %c0_103 = arith.constant 0 : index
    %370 = vector.load %arg9[%c2_101, %c0_102, %c0_103] : memref<8x2x32xf32, #tpu.memory_space<vmem>>, vector<1x2x32xf32>
    %371 = vector.shape_cast %370 : vector<1x2x32xf32> to vector<2x32xf32>
    %372 = vector.shape_cast %369 : vector<2x32xf32> to vector<1x2x32xf32>
    tpu.vector_store %arg9[%c2_101, %c0_102, %c0_103], %372 {strides = array<i32>} : memref<8x2x32xf32, #tpu.memory_space<vmem>>, vector<1x2x32xf32>,
    %cst_104 = arith.constant dense<0.000000e+00> : vector<2x64xf32>
    %373 = tpu.matmul %143, %264, %cst_104 {dimension_numbers = #tpu.dot_dimension_numbers<[1], [0], [0], [1], [0, 0, 1, 1], [], []>} : vector<2x32xf32>, vector<32x64xf32>, vector<2x64xf32> -> vector<2x64xf32>
    %374 = vector.broadcast %265 : vector<1x64xf32> to vector<2x64xf32>
    %375 = arith.addf %373, %374 : vector<2x64xf32>
    %376 = vector.extract_strided_slice %375 {offsets = [0, 0], sizes = [2, 32], strides = [1, 1]} : vector<2x64xf32> to vector<2x32xf32>
    %377 = vector.extract_strided_slice %375 {offsets = [0, 32], sizes = [2, 32], strides = [1, 1]} : vector<2x64xf32> to vector<2x32xf32>
    %378 = arith.negf %377 : vector<2x32xf32>
    %379 = math.exp %378 : vector<2x32xf32>
    %cst_105 = arith.constant 1.000000e+00 : f32
    %380 = vector.broadcast %cst_105 : f32 to vector<2x32xf32>
    %381 = arith.addf %380, %379 : vector<2x32xf32>
    %382 = arith.divf %380, %381 : vector<2x32xf32>
    %383 = arith.mulf %376, %382 : vector<2x32xf32>
    %384 = arith.addf %383, %7 : vector<2x32xf32>
    %cst_106 = arith.constant dense<0.000000e+00> : vector<2xf32>
    %385 = vector.multi_reduction <add>, %384, %cst_106 [1] : vector<2x32xf32> to vector<2xf32>
    %386 = vector.shape_cast %385 : vector<2xf32> to vector<2x1xf32>
    %cst_107 = arith.constant 3.200000e+01 : f32
    %387 = vector.broadcast %cst_107 : f32 to vector<2x1xf32>
    %388 = arith.divf %386, %387 : vector<2x1xf32>
    %389 = vector.broadcast %388 : vector<2x1xf32> to vector<2x32xf32>
    %390 = arith.subf %384, %389 : vector<2x32xf32>
    %391 = arith.mulf %390, %390 : vector<2x32xf32>
    %cst_108 = arith.constant dense<0.000000e+00> : vector<2xf32>
    %392 = vector.multi_reduction <add>, %391, %cst_108 [1] : vector<2x32xf32> to vector<2xf32>
    %393 = vector.shape_cast %392 : vector<2xf32> to vector<2x1xf32>
    %cst_109 = arith.constant 3.200000e+01 : f32
    %394 = vector.broadcast %cst_109 : f32 to vector<2x1xf32>
    %395 = arith.divf %393, %394 : vector<2x1xf32>
    %cst_110 = arith.constant 9.99999974E-6 : f32
    %396 = vector.broadcast %cst_110 : f32 to vector<2x1xf32>
    %397 = arith.addf %395, %396 : vector<2x1xf32>
    %398 = math.rsqrt %397 : vector<2x1xf32>
    %399 = vector.broadcast %398 : vector<2x1xf32> to vector<2x32xf32>
    %400 = arith.mulf %390, %399 : vector<2x32xf32>
    %401 = vector.broadcast %266 : vector<1x32xf32> to vector<2x32xf32>
    %402 = arith.mulf %400, %401 : vector<2x32xf32>
    %403 = vector.broadcast %267 : vector<1x32xf32> to vector<2x32xf32>
    %404 = arith.addf %402, %403 : vector<2x32xf32>
    %c3_111 = arith.constant 3 : index
    %c0_112 = arith.constant 0 : index
    %c0_113 = arith.constant 0 : index
    %405 = vector.load %arg9[%c3_111, %c0_112, %c0_113] : memref<8x2x32xf32, #tpu.memory_space<vmem>>, vector<1x2x32xf32>
    %406 = vector.shape_cast %405 : vector<1x2x32xf32> to vector<2x32xf32>
    %407 = vector.shape_cast %404 : vector<2x32xf32> to vector<1x2x32xf32>
    tpu.vector_store %arg9[%c3_111, %c0_112, %c0_113], %407 {strides = array<i32>} : memref<8x2x32xf32, #tpu.memory_space<vmem>>, vector<1x2x32xf32>,
    %cst_114 = arith.constant dense<0.000000e+00> : vector<2x64xf32>
    %408 = tpu.matmul %173, %264, %cst_114 {dimension_numbers = #tpu.dot_dimension_numbers<[1], [0], [0], [1], [0, 0, 1, 1], [], []>} : vector<2x32xf32>, vector<32x64xf32>, vector<2x64xf32> -> vector<2x64xf32>
    %409 = vector.broadcast %265 : vector<1x64xf32> to vector<2x64xf32>
    %410 = arith.addf %408, %409 : vector<2x64xf32>
    %411 = vector.extract_strided_slice %410 {offsets = [0, 0], sizes = [2, 32], strides = [1, 1]} : vector<2x64xf32> to vector<2x32xf32>
    %412 = vector.extract_strided_slice %410 {offsets = [0, 32], sizes = [2, 32], strides = [1, 1]} : vector<2x64xf32> to vector<2x32xf32>
    %413 = arith.negf %412 : vector<2x32xf32>
    %414 = math.exp %413 : vector<2x32xf32>
    %cst_115 = arith.constant 1.000000e+00 : f32
    %415 = vector.broadcast %cst_115 : f32 to vector<2x32xf32>
    %416 = arith.addf %415, %414 : vector<2x32xf32>
    %417 = arith.divf %415, %416 : vector<2x32xf32>
    %418 = arith.mulf %411, %417 : vector<2x32xf32>
    %419 = arith.addf %418, %9 : vector<2x32xf32>
    %cst_116 = arith.constant dense<0.000000e+00> : vector<2xf32>
    %420 = vector.multi_reduction <add>, %419, %cst_116 [1] : vector<2x32xf32> to vector<2xf32>
    %421 = vector.shape_cast %420 : vector<2xf32> to vector<2x1xf32>
    %cst_117 = arith.constant 3.200000e+01 : f32
    %422 = vector.broadcast %cst_117 : f32 to vector<2x1xf32>
    %423 = arith.divf %421, %422 : vector<2x1xf32>
    %424 = vector.broadcast %423 : vector<2x1xf32> to vector<2x32xf32>
    %425 = arith.subf %419, %424 : vector<2x32xf32>
    %426 = arith.mulf %425, %425 : vector<2x32xf32>
    %cst_118 = arith.constant dense<0.000000e+00> : vector<2xf32>
    %427 = vector.multi_reduction <add>, %426, %cst_118 [1] : vector<2x32xf32> to vector<2xf32>
    %428 = vector.shape_cast %427 : vector<2xf32> to vector<2x1xf32>
    %cst_119 = arith.constant 3.200000e+01 : f32
    %429 = vector.broadcast %cst_119 : f32 to vector<2x1xf32>
    %430 = arith.divf %428, %429 : vector<2x1xf32>
    %cst_120 = arith.constant 9.99999974E-6 : f32
    %431 = vector.broadcast %cst_120 : f32 to vector<2x1xf32>
    %432 = arith.addf %430, %431 : vector<2x1xf32>
    %433 = math.rsqrt %432 : vector<2x1xf32>
    %434 = vector.broadcast %433 : vector<2x1xf32> to vector<2x32xf32>
    %435 = arith.mulf %425, %434 : vector<2x32xf32>
    %436 = vector.broadcast %266 : vector<1x32xf32> to vector<2x32xf32>
    %437 = arith.mulf %435, %436 : vector<2x32xf32>
    %438 = vector.broadcast %267 : vector<1x32xf32> to vector<2x32xf32>
    %439 = arith.addf %437, %438 : vector<2x32xf32>
    %c4_121 = arith.constant 4 : index
    %c0_122 = arith.constant 0 : index
    %c0_123 = arith.constant 0 : index
    %440 = vector.load %arg9[%c4_121, %c0_122, %c0_123] : memref<8x2x32xf32, #tpu.memory_space<vmem>>, vector<1x2x32xf32>
    %441 = vector.shape_cast %440 : vector<1x2x32xf32> to vector<2x32xf32>
    %442 = vector.shape_cast %439 : vector<2x32xf32> to vector<1x2x32xf32>
    tpu.vector_store %arg9[%c4_121, %c0_122, %c0_123], %442 {strides = array<i32>} : memref<8x2x32xf32, #tpu.memory_space<vmem>>, vector<1x2x32xf32>,
    %cst_124 = arith.constant dense<0.000000e+00> : vector<2x64xf32>
    %443 = tpu.matmul %203, %264, %cst_124 {dimension_numbers = #tpu.dot_dimension_numbers<[1], [0], [0], [1], [0, 0, 1, 1], [], []>} : vector<2x32xf32>, vector<32x64xf32>, vector<2x64xf32> -> vector<2x64xf32>
    %444 = vector.broadcast %265 : vector<1x64xf32> to vector<2x64xf32>
    %445 = arith.addf %443, %444 : vector<2x64xf32>
    %446 = vector.extract_strided_slice %445 {offsets = [0, 0], sizes = [2, 32], strides = [1, 1]} : vector<2x64xf32> to vector<2x32xf32>
    %447 = vector.extract_strided_slice %445 {offsets = [0, 32], sizes = [2, 32], strides = [1, 1]} : vector<2x64xf32> to vector<2x32xf32>
    %448 = arith.negf %447 : vector<2x32xf32>
    %449 = math.exp %448 : vector<2x32xf32>
    %cst_125 = arith.constant 1.000000e+00 : f32
    %450 = vector.broadcast %cst_125 : f32 to vector<2x32xf32>
    %451 = arith.addf %450, %449 : vector<2x32xf32>
    %452 = arith.divf %450, %451 : vector<2x32xf32>
    %453 = arith.mulf %446, %452 : vector<2x32xf32>
    %454 = arith.addf %453, %11 : vector<2x32xf32>
    %cst_126 = arith.constant dense<0.000000e+00> : vector<2xf32>
    %455 = vector.multi_reduction <add>, %454, %cst_126 [1] : vector<2x32xf32> to vector<2xf32>
    %456 = vector.shape_cast %455 : vector<2xf32> to vector<2x1xf32>
    %cst_127 = arith.constant 3.200000e+01 : f32
    %457 = vector.broadcast %cst_127 : f32 to vector<2x1xf32>
    %458 = arith.divf %456, %457 : vector<2x1xf32>
    %459 = vector.broadcast %458 : vector<2x1xf32> to vector<2x32xf32>
    %460 = arith.subf %454, %459 : vector<2x32xf32>
    %461 = arith.mulf %460, %460 : vector<2x32xf32>
    %cst_128 = arith.constant dense<0.000000e+00> : vector<2xf32>
    %462 = vector.multi_reduction <add>, %461, %cst_128 [1] : vector<2x32xf32> to vector<2xf32>
    %463 = vector.shape_cast %462 : vector<2xf32> to vector<2x1xf32>
    %cst_129 = arith.constant 3.200000e+01 : f32
    %464 = vector.broadcast %cst_129 : f32 to vector<2x1xf32>
    %465 = arith.divf %463, %464 : vector<2x1xf32>
    %cst_130 = arith.constant 9.99999974E-6 : f32
    %466 = vector.broadcast %cst_130 : f32 to vector<2x1xf32>
    %467 = arith.addf %465, %466 : vector<2x1xf32>
    %468 = math.rsqrt %467 : vector<2x1xf32>
    %469 = vector.broadcast %468 : vector<2x1xf32> to vector<2x32xf32>
    %470 = arith.mulf %460, %469 : vector<2x32xf32>
    %471 = vector.broadcast %266 : vector<1x32xf32> to vector<2x32xf32>
    %472 = arith.mulf %470, %471 : vector<2x32xf32>
    %473 = vector.broadcast %267 : vector<1x32xf32> to vector<2x32xf32>
    %474 = arith.addf %472, %473 : vector<2x32xf32>
    %c5_131 = arith.constant 5 : index
    %c0_132 = arith.constant 0 : index
    %c0_133 = arith.constant 0 : index
    %475 = vector.load %arg9[%c5_131, %c0_132, %c0_133] : memref<8x2x32xf32, #tpu.memory_space<vmem>>, vector<1x2x32xf32>
    %476 = vector.shape_cast %475 : vector<1x2x32xf32> to vector<2x32xf32>
    %477 = vector.shape_cast %474 : vector<2x32xf32> to vector<1x2x32xf32>
    tpu.vector_store %arg9[%c5_131, %c0_132, %c0_133], %477 {strides = array<i32>} : memref<8x2x32xf32, #tpu.memory_space<vmem>>, vector<1x2x32xf32>,
    %cst_134 = arith.constant dense<0.000000e+00> : vector<2x64xf32>
    %478 = tpu.matmul %233, %264, %cst_134 {dimension_numbers = #tpu.dot_dimension_numbers<[1], [0], [0], [1], [0, 0, 1, 1], [], []>} : vector<2x32xf32>, vector<32x64xf32>, vector<2x64xf32> -> vector<2x64xf32>
    %479 = vector.broadcast %265 : vector<1x64xf32> to vector<2x64xf32>
    %480 = arith.addf %478, %479 : vector<2x64xf32>
    %481 = vector.extract_strided_slice %480 {offsets = [0, 0], sizes = [2, 32], strides = [1, 1]} : vector<2x64xf32> to vector<2x32xf32>
    %482 = vector.extract_strided_slice %480 {offsets = [0, 32], sizes = [2, 32], strides = [1, 1]} : vector<2x64xf32> to vector<2x32xf32>
    %483 = arith.negf %482 : vector<2x32xf32>
    %484 = math.exp %483 : vector<2x32xf32>
    %cst_135 = arith.constant 1.000000e+00 : f32
    %485 = vector.broadcast %cst_135 : f32 to vector<2x32xf32>
    %486 = arith.addf %485, %484 : vector<2x32xf32>
    %487 = arith.divf %485, %486 : vector<2x32xf32>
    %488 = arith.mulf %481, %487 : vector<2x32xf32>
    %489 = arith.addf %488, %13 : vector<2x32xf32>
    %cst_136 = arith.constant dense<0.000000e+00> : vector<2xf32>
    %490 = vector.multi_reduction <add>, %489, %cst_136 [1] : vector<2x32xf32> to vector<2xf32>
    %491 = vector.shape_cast %490 : vector<2xf32> to vector<2x1xf32>
    %cst_137 = arith.constant 3.200000e+01 : f32
    %492 = vector.broadcast %cst_137 : f32 to vector<2x1xf32>
    %493 = arith.divf %491, %492 : vector<2x1xf32>
    %494 = vector.broadcast %493 : vector<2x1xf32> to vector<2x32xf32>
    %495 = arith.subf %489, %494 : vector<2x32xf32>
    %496 = arith.mulf %495, %495 : vector<2x32xf32>
    %cst_138 = arith.constant dense<0.000000e+00> : vector<2xf32>
    %497 = vector.multi_reduction <add>, %496, %cst_138 [1] : vector<2x32xf32> to vector<2xf32>
    %498 = vector.shape_cast %497 : vector<2xf32> to vector<2x1xf32>
    %cst_139 = arith.constant 3.200000e+01 : f32
    %499 = vector.broadcast %cst_139 : f32 to vector<2x1xf32>
    %500 = arith.divf %498, %499 : vector<2x1xf32>
    %cst_140 = arith.constant 9.99999974E-6 : f32
    %501 = vector.broadcast %cst_140 : f32 to vector<2x1xf32>
    %502 = arith.addf %500, %501 : vector<2x1xf32>
    %503 = math.rsqrt %502 : vector<2x1xf32>
    %504 = vector.broadcast %503 : vector<2x1xf32> to vector<2x32xf32>
    %505 = arith.mulf %495, %504 : vector<2x32xf32>
    %506 = vector.broadcast %266 : vector<1x32xf32> to vector<2x32xf32>
    %507 = arith.mulf %505, %506 : vector<2x32xf32>
    %508 = vector.broadcast %267 : vector<1x32xf32> to vector<2x32xf32>
    %509 = arith.addf %507, %508 : vector<2x32xf32>
    %c6_141 = arith.constant 6 : index
    %c0_142 = arith.constant 0 : index
    %c0_143 = arith.constant 0 : index
    %510 = vector.load %arg9[%c6_141, %c0_142, %c0_143] : memref<8x2x32xf32, #tpu.memory_space<vmem>>, vector<1x2x32xf32>
    %511 = vector.shape_cast %510 : vector<1x2x32xf32> to vector<2x32xf32>
    %512 = vector.shape_cast %509 : vector<2x32xf32> to vector<1x2x32xf32>
    tpu.vector_store %arg9[%c6_141, %c0_142, %c0_143], %512 {strides = array<i32>} : memref<8x2x32xf32, #tpu.memory_space<vmem>>, vector<1x2x32xf32>,
    %cst_144 = arith.constant dense<0.000000e+00> : vector<2x64xf32>
    %513 = tpu.matmul %263, %264, %cst_144 {dimension_numbers = #tpu.dot_dimension_numbers<[1], [0], [0], [1], [0, 0, 1, 1], [], []>} : vector<2x32xf32>, vector<32x64xf32>, vector<2x64xf32> -> vector<2x64xf32>
    %514 = vector.broadcast %265 : vector<1x64xf32> to vector<2x64xf32>
    %515 = arith.addf %513, %514 : vector<2x64xf32>
    %516 = vector.extract_strided_slice %515 {offsets = [0, 0], sizes = [2, 32], strides = [1, 1]} : vector<2x64xf32> to vector<2x32xf32>
    %517 = vector.extract_strided_slice %515 {offsets = [0, 32], sizes = [2, 32], strides = [1, 1]} : vector<2x64xf32> to vector<2x32xf32>
    %518 = arith.negf %517 : vector<2x32xf32>
    %519 = math.exp %518 : vector<2x32xf32>
    %cst_145 = arith.constant 1.000000e+00 : f32
    %520 = vector.broadcast %cst_145 : f32 to vector<2x32xf32>
    %521 = arith.addf %520, %519 : vector<2x32xf32>
    %522 = arith.divf %520, %521 : vector<2x32xf32>
    %523 = arith.mulf %516, %522 : vector<2x32xf32>
    %524 = arith.addf %523, %15 : vector<2x32xf32>
    %cst_146 = arith.constant dense<0.000000e+00> : vector<2xf32>
    %525 = vector.multi_reduction <add>, %524, %cst_146 [1] : vector<2x32xf32> to vector<2xf32>
    %526 = vector.shape_cast %525 : vector<2xf32> to vector<2x1xf32>
    %cst_147 = arith.constant 3.200000e+01 : f32
    %527 = vector.broadcast %cst_147 : f32 to vector<2x1xf32>
    %528 = arith.divf %526, %527 : vector<2x1xf32>
    %529 = vector.broadcast %528 : vector<2x1xf32> to vector<2x32xf32>
    %530 = arith.subf %524, %529 : vector<2x32xf32>
    %531 = arith.mulf %530, %530 : vector<2x32xf32>
    %cst_148 = arith.constant dense<0.000000e+00> : vector<2xf32>
    %532 = vector.multi_reduction <add>, %531, %cst_148 [1] : vector<2x32xf32> to vector<2xf32>
    %533 = vector.shape_cast %532 : vector<2xf32> to vector<2x1xf32>
    %cst_149 = arith.constant 3.200000e+01 : f32
    %534 = vector.broadcast %cst_149 : f32 to vector<2x1xf32>
    %535 = arith.divf %533, %534 : vector<2x1xf32>
    %cst_150 = arith.constant 9.99999974E-6 : f32
    %536 = vector.broadcast %cst_150 : f32 to vector<2x1xf32>
    %537 = arith.addf %535, %536 : vector<2x1xf32>
    %538 = math.rsqrt %537 : vector<2x1xf32>
    %539 = vector.broadcast %538 : vector<2x1xf32> to vector<2x32xf32>
    %540 = arith.mulf %530, %539 : vector<2x32xf32>
    %541 = vector.broadcast %266 : vector<1x32xf32> to vector<2x32xf32>
    %542 = arith.mulf %540, %541 : vector<2x32xf32>
    %543 = vector.broadcast %267 : vector<1x32xf32> to vector<2x32xf32>
    %544 = arith.addf %542, %543 : vector<2x32xf32>
    %c7_151 = arith.constant 7 : index
    %c0_152 = arith.constant 0 : index
    %c0_153 = arith.constant 0 : index
    %545 = vector.load %arg9[%c7_151, %c0_152, %c0_153] : memref<8x2x32xf32, #tpu.memory_space<vmem>>, vector<1x2x32xf32>
    %546 = vector.shape_cast %545 : vector<1x2x32xf32> to vector<2x32xf32>
    %547 = vector.shape_cast %544 : vector<2x32xf32> to vector<1x2x32xf32>
    tpu.vector_store %arg9[%c7_151, %c0_152, %c0_153], %547 {strides = array<i32>} : memref<8x2x32xf32, #tpu.memory_space<vmem>>, vector<1x2x32xf32>,
    return
  }
  func.func @transform_0(%arg0: i32) -> (i32, i32, i32) {
    %c0_i32 = arith.constant 0 : i32
    %c0_i32_0 = arith.constant 0 : i32
    %c0_i32_1 = arith.constant 0 : i32
    %c0_i32_2 = arith.constant 0 : i32
    return %c0_i32, %c0_i32_0, %c0_i32_1 : i32, i32, i32
  }
  func.func @transform_1(%arg0: i32) -> (i32, i32, i32) {
    %c0_i32 = arith.constant 0 : i32
    %c0_i32_0 = arith.constant 0 : i32
    %c0_i32_1 = arith.constant 0 : i32
    %c0_i32_2 = arith.constant 0 : i32
    return %c0_i32, %c0_i32_0, %c0_i32_1 : i32, i32, i32
  }
  func.func @transform_2(%arg0: i32) -> (i32, i32, i32) {
    %c0_i32 = arith.constant 0 : i32
    %c0_i32_0 = arith.constant 0 : i32
    %c0_i32_1 = arith.constant 0 : i32
    %c0_i32_2 = arith.constant 0 : i32
    return %c0_i32, %c0_i32_0, %c0_i32_1 : i32, i32, i32
  }
  func.func @transform_3(%arg0: i32) -> (i32, i32, i32) {
    %c0_i32 = arith.constant 0 : i32
    %c0_i32_0 = arith.constant 0 : i32
    %c0_i32_1 = arith.constant 0 : i32
    %c0_i32_2 = arith.constant 0 : i32
    return %c0_i32, %c0_i32_0, %c0_i32_1 : i32, i32, i32
  }
  func.func @transform_4(%arg0: i32) -> (i32, i32) {
    %c0_i32 = arith.constant 0 : i32
    %c0_i32_0 = arith.constant 0 : i32
    %c0_i32_1 = arith.constant 0 : i32
    return %c0_i32, %c0_i32_0 : i32, i32
  }
  func.func @transform_5(%arg0: i32) -> (i32, i32) {
    %c0_i32 = arith.constant 0 : i32
    %c0_i32_0 = arith.constant 0 : i32
    %c0_i32_1 = arith.constant 0 : i32
    return %c0_i32, %c0_i32_0 : i32, i32
  }
  func.func @transform_6(%arg0: i32) -> (i32, i32) {
    %c0_i32 = arith.constant 0 : i32
    %c0_i32_0 = arith.constant 0 : i32
    %c0_i32_1 = arith.constant 0 : i32
    return %c0_i32, %c0_i32_0 : i32, i32
  }
  func.func @transform_7(%arg0: i32) -> (i32, i32) {
    %c0_i32 = arith.constant 0 : i32
    %c0_i32_0 = arith.constant 0 : i32
    %c0_i32_1 = arith.constant 0 : i32
    return %c0_i32, %c0_i32_0 : i32, i32
  }
  func.func @transform_8(%arg0: i32) -> (i32, i32, i32) {
    %c0_i32 = arith.constant 0 : i32
    %c0_i32_0 = arith.constant 0 : i32
    %c0_i32_1 = arith.constant 0 : i32
    %c0_i32_2 = arith.constant 0 : i32
    return %c0_i32, %c0_i32_0, %c0_i32_1 : i32, i32, i32
  }
}

module attributes {stable_mosaic.version = 11 : i64} {
  func.func @_encoder_layer_kernel(%arg0: i32, %arg1: memref<16x32xf32, #tpu.memory_space<vmem>>, %arg2: memref<32x96xf32, #tpu.memory_space<vmem>>, %arg3: memref<1x96xf32, #tpu.memory_space<vmem>>, %arg4: memref<32x32xf32, #tpu.memory_space<vmem>>, %arg5: memref<1x32xf32, #tpu.memory_space<vmem>>, %arg6: memref<32x64xf32, #tpu.memory_space<vmem>>, %arg7: memref<1x64xf32, #tpu.memory_space<vmem>>, %arg8: memref<1x32xf32, #tpu.memory_space<vmem>>, %arg9: memref<1x32xf32, #tpu.memory_space<vmem>>, %arg10: memref<32x32xf32, #tpu.memory_space<vmem>>, %arg11: memref<1x32xf32, #tpu.memory_space<vmem>>, %arg12: memref<32x32xf32, #tpu.memory_space<vmem>>, %arg13: memref<1x32xf32, #tpu.memory_space<vmem>>, %arg14: memref<32x64xf32, #tpu.memory_space<vmem>>, %arg15: memref<1x64xf32, #tpu.memory_space<vmem>>, %arg16: memref<1x32xf32, #tpu.memory_space<vmem>>, %arg17: memref<1x32xf32, #tpu.memory_space<vmem>>, %arg18: memref<16x32xf32, #tpu.memory_space<vmem>>) attributes {dimension_semantics = [#tpu.dimension_semantics<arbitrary>], iteration_bounds = array<i64: 1>, scalar_prefetch = 0 : i64, scratch_operands = 0 : i64, tpu.core_type = #tpu.core_type<tc>, window_params = [{pipeline_mode = #tpu.pipeline_mode<synchronous>, transform_indices = @transform_0, window_bounds = array<i64: 16, 32>}, {pipeline_mode = #tpu.pipeline_mode<synchronous>, transform_indices = @transform_1, window_bounds = array<i64: 32, 96>}, {pipeline_mode = #tpu.pipeline_mode<synchronous>, transform_indices = @transform_2, window_bounds = array<i64: 1, 96>}, {pipeline_mode = #tpu.pipeline_mode<synchronous>, transform_indices = @transform_3, window_bounds = array<i64: 32, 32>}, {pipeline_mode = #tpu.pipeline_mode<synchronous>, transform_indices = @transform_4, window_bounds = array<i64: 1, 32>}, {pipeline_mode = #tpu.pipeline_mode<synchronous>, transform_indices = @transform_5, window_bounds = array<i64: 32, 64>}, {pipeline_mode = #tpu.pipeline_mode<synchronous>, transform_indices = @transform_6, window_bounds = array<i64: 1, 64>}, {pipeline_mode = #tpu.pipeline_mode<synchronous>, transform_indices = @transform_7, window_bounds = array<i64: 1, 32>}, {pipeline_mode = #tpu.pipeline_mode<synchronous>, transform_indices = @transform_8, window_bounds = array<i64: 1, 32>}, {pipeline_mode = #tpu.pipeline_mode<synchronous>, transform_indices = @transform_9, window_bounds = array<i64: 32, 32>}, {pipeline_mode = #tpu.pipeline_mode<synchronous>, transform_indices = @transform_10, window_bounds = array<i64: 1, 32>}, {pipeline_mode = #tpu.pipeline_mode<synchronous>, transform_indices = @transform_11, window_bounds = array<i64: 32, 32>}, {pipeline_mode = #tpu.pipeline_mode<synchronous>, transform_indices = @transform_12, window_bounds = array<i64: 1, 32>}, {pipeline_mode = #tpu.pipeline_mode<synchronous>, transform_indices = @transform_13, window_bounds = array<i64: 32, 64>}, {pipeline_mode = #tpu.pipeline_mode<synchronous>, transform_indices = @transform_14, window_bounds = array<i64: 1, 64>}, {pipeline_mode = #tpu.pipeline_mode<synchronous>, transform_indices = @transform_15, window_bounds = array<i64: 1, 32>}, {pipeline_mode = #tpu.pipeline_mode<synchronous>, transform_indices = @transform_16, window_bounds = array<i64: 1, 32>}, {pipeline_mode = #tpu.pipeline_mode<synchronous>, transform_indices = @transform_17, window_bounds = array<i64: 16, 32>}]} {
    %c0 = arith.constant 0 : index
    %c0_0 = arith.constant 0 : index
    %0 = vector.load %arg1[%c0, %c0_0] : memref<16x32xf32, #tpu.memory_space<vmem>>, vector<16x32xf32>
    %c0_1 = arith.constant 0 : index
    %c0_2 = arith.constant 0 : index
    %1 = vector.load %arg2[%c0_1, %c0_2] : memref<32x96xf32, #tpu.memory_space<vmem>>, vector<32x96xf32>
    %cst = arith.constant dense<0.000000e+00> : vector<16x96xf32>
    %2 = tpu.matmul %0, %1, %cst {dimension_numbers = #tpu.dot_dimension_numbers<[1], [0], [0], [1], [0, 0, 1, 1], [], []>} : vector<16x32xf32>, vector<32x96xf32>, vector<16x96xf32> -> vector<16x96xf32>
    %c0_3 = arith.constant 0 : index
    %c0_4 = arith.constant 0 : index
    %3 = vector.load %arg3[%c0_3, %c0_4] : memref<1x96xf32, #tpu.memory_space<vmem>>, vector<1x96xf32>
    %4 = vector.broadcast %3 : vector<1x96xf32> to vector<16x96xf32>
    %5 = arith.addf %2, %4 : vector<16x96xf32>
    %6 = vector.extract_strided_slice %5 {offsets = [0, 0], sizes = [16, 32], strides = [1, 1]} : vector<16x96xf32> to vector<16x32xf32>
    %7 = vector.extract_strided_slice %5 {offsets = [0, 32], sizes = [16, 32], strides = [1, 1]} : vector<16x96xf32> to vector<16x32xf32>
    %8 = vector.extract_strided_slice %5 {offsets = [0, 64], sizes = [16, 32], strides = [1, 1]} : vector<16x96xf32> to vector<16x32xf32>
    %9 = tpu.iota {dimensions = array<i32: 1>} : vector<8x32xi32>
    %10 = vector.extract_strided_slice %6 {offsets = [0, 0], sizes = [8, 32], strides = [1, 1]} : vector<16x32xf32> to vector<8x32xf32>
    %11 = vector.extract_strided_slice %7 {offsets = [0, 0], sizes = [8, 32], strides = [1, 1]} : vector<16x32xf32> to vector<8x32xf32>
    %12 = vector.extract_strided_slice %8 {offsets = [0, 0], sizes = [8, 32], strides = [1, 1]} : vector<16x32xf32> to vector<8x32xf32>
    %cst_5 = arith.constant 0.000000e+00 : f32
    %13 = vector.broadcast %cst_5 : f32 to vector<8x32xf32>
    %c0_i32 = arith.constant 0 : i32
    %14 = vector.broadcast %c0_i32 : i32 to vector<8x32xi32>
    %15 = arith.cmpi sge, %9, %14 : vector<8x32xi32>
    %c8_i32 = arith.constant 8 : i32
    %16 = vector.broadcast %c8_i32 : i32 to vector<8x32xi32>
    %17 = arith.cmpi slt, %9, %16 : vector<8x32xi32>
    %18 = arith.andi %15, %17 : vector<8x32xi1>
    %cst_6 = arith.constant 0.000000e+00 : f32
    %19 = vector.broadcast %cst_6 : f32 to vector<8x32xf32>
    %20 = arith.select %18, %10, %19 : vector<8x32xi1>, vector<8x32xf32>
    %cst_7 = arith.constant 0.000000e+00 : f32
    %21 = vector.broadcast %cst_7 : f32 to vector<8x32xf32>
    %22 = arith.select %18, %11, %21 : vector<8x32xi1>, vector<8x32xf32>
    %cst_8 = arith.constant 0.000000e+00 : f32
    %23 = vector.broadcast %cst_8 : f32 to vector<8x32xf32>
    %24 = arith.select %18, %12, %23 : vector<8x32xi1>, vector<8x32xf32>
    %cst_9 = arith.constant dense<0.000000e+00> : vector<8x8xf32>
    %25 = tpu.matmul %20, %22, %cst_9 {dimension_numbers = #tpu.dot_dimension_numbers<[1], [1], [0], [0], [0, 0, 1, 0], [], []>} : vector<8x32xf32>, vector<8x32xf32>, vector<8x8xf32> -> vector<8x8xf32>
    %cst_10 = arith.constant 0.353553385 : f32
    %26 = vector.broadcast %cst_10 : f32 to vector<8x8xf32>
    %27 = arith.mulf %25, %26 : vector<8x8xf32>
    %cst_11 = arith.constant dense<0xFF800000> : vector<8xf32>
    %28 = vector.multi_reduction <maximumf>, %27, %cst_11 [1] : vector<8x8xf32> to vector<8xf32>
    %29 = vector.shape_cast %28 : vector<8xf32> to vector<8x1xf32>
    %30 = vector.broadcast %29 : vector<8x1xf32> to vector<8x8xf32>
    %31 = arith.subf %27, %30 : vector<8x8xf32>
    %32 = math.exp %31 : vector<8x8xf32>
    %cst_12 = arith.constant dense<0.000000e+00> : vector<8xf32>
    %33 = vector.multi_reduction <add>, %32, %cst_12 [1] : vector<8x8xf32> to vector<8xf32>
    %34 = vector.shape_cast %33 : vector<8xf32> to vector<8x1xf32>
    %35 = tpu.reciprocal %34 {approx = true} : vector<8x1xf32> -> vector<8x1xf32>
    %36 = vector.broadcast %35 : vector<8x1xf32> to vector<8x8xf32>
    %37 = arith.mulf %32, %36 : vector<8x8xf32>
    %cst_13 = arith.constant dense<0.000000e+00> : vector<8x32xf32>
    %38 = tpu.matmul %37, %24, %cst_13 {dimension_numbers = #tpu.dot_dimension_numbers<[1], [0], [0], [1], [0, 0, 1, 1], [], []>} : vector<8x8xf32>, vector<8x32xf32>, vector<8x32xf32> -> vector<8x32xf32>
    %39 = arith.addf %13, %38 : vector<8x32xf32>
    %c8_i32_14 = arith.constant 8 : i32
    %40 = vector.broadcast %c8_i32_14 : i32 to vector<8x32xi32>
    %41 = arith.cmpi sge, %9, %40 : vector<8x32xi32>
    %c16_i32 = arith.constant 16 : i32
    %42 = vector.broadcast %c16_i32 : i32 to vector<8x32xi32>
    %43 = arith.cmpi slt, %9, %42 : vector<8x32xi32>
    %44 = arith.andi %41, %43 : vector<8x32xi1>
    %cst_15 = arith.constant 0.000000e+00 : f32
    %45 = vector.broadcast %cst_15 : f32 to vector<8x32xf32>
    %46 = arith.select %44, %10, %45 : vector<8x32xi1>, vector<8x32xf32>
    %cst_16 = arith.constant 0.000000e+00 : f32
    %47 = vector.broadcast %cst_16 : f32 to vector<8x32xf32>
    %48 = arith.select %44, %11, %47 : vector<8x32xi1>, vector<8x32xf32>
    %cst_17 = arith.constant 0.000000e+00 : f32
    %49 = vector.broadcast %cst_17 : f32 to vector<8x32xf32>
    %50 = arith.select %44, %12, %49 : vector<8x32xi1>, vector<8x32xf32>
    %cst_18 = arith.constant dense<0.000000e+00> : vector<8x8xf32>
    %51 = tpu.matmul %46, %48, %cst_18 {dimension_numbers = #tpu.dot_dimension_numbers<[1], [1], [0], [0], [0, 0, 1, 0], [], []>} : vector<8x32xf32>, vector<8x32xf32>, vector<8x8xf32> -> vector<8x8xf32>
    %cst_19 = arith.constant 0.353553385 : f32
    %52 = vector.broadcast %cst_19 : f32 to vector<8x8xf32>
    %53 = arith.mulf %51, %52 : vector<8x8xf32>
    %cst_20 = arith.constant dense<0xFF800000> : vector<8xf32>
    %54 = vector.multi_reduction <maximumf>, %53, %cst_20 [1] : vector<8x8xf32> to vector<8xf32>
    %55 = vector.shape_cast %54 : vector<8xf32> to vector<8x1xf32>
    %56 = vector.broadcast %55 : vector<8x1xf32> to vector<8x8xf32>
    %57 = arith.subf %53, %56 : vector<8x8xf32>
    %58 = math.exp %57 : vector<8x8xf32>
    %cst_21 = arith.constant dense<0.000000e+00> : vector<8xf32>
    %59 = vector.multi_reduction <add>, %58, %cst_21 [1] : vector<8x8xf32> to vector<8xf32>
    %60 = vector.shape_cast %59 : vector<8xf32> to vector<8x1xf32>
    %61 = tpu.reciprocal %60 {approx = true} : vector<8x1xf32> -> vector<8x1xf32>
    %62 = vector.broadcast %61 : vector<8x1xf32> to vector<8x8xf32>
    %63 = arith.mulf %58, %62 : vector<8x8xf32>
    %cst_22 = arith.constant dense<0.000000e+00> : vector<8x32xf32>
    %64 = tpu.matmul %63, %50, %cst_22 {dimension_numbers = #tpu.dot_dimension_numbers<[1], [0], [0], [1], [0, 0, 1, 1], [], []>} : vector<8x8xf32>, vector<8x32xf32>, vector<8x32xf32> -> vector<8x32xf32>
    %65 = arith.addf %39, %64 : vector<8x32xf32>
    %c16_i32_23 = arith.constant 16 : i32
    %66 = vector.broadcast %c16_i32_23 : i32 to vector<8x32xi32>
    %67 = arith.cmpi sge, %9, %66 : vector<8x32xi32>
    %c24_i32 = arith.constant 24 : i32
    %68 = vector.broadcast %c24_i32 : i32 to vector<8x32xi32>
    %69 = arith.cmpi slt, %9, %68 : vector<8x32xi32>
    %70 = arith.andi %67, %69 : vector<8x32xi1>
    %cst_24 = arith.constant 0.000000e+00 : f32
    %71 = vector.broadcast %cst_24 : f32 to vector<8x32xf32>
    %72 = arith.select %70, %10, %71 : vector<8x32xi1>, vector<8x32xf32>
    %cst_25 = arith.constant 0.000000e+00 : f32
    %73 = vector.broadcast %cst_25 : f32 to vector<8x32xf32>
    %74 = arith.select %70, %11, %73 : vector<8x32xi1>, vector<8x32xf32>
    %cst_26 = arith.constant 0.000000e+00 : f32
    %75 = vector.broadcast %cst_26 : f32 to vector<8x32xf32>
    %76 = arith.select %70, %12, %75 : vector<8x32xi1>, vector<8x32xf32>
    %cst_27 = arith.constant dense<0.000000e+00> : vector<8x8xf32>
    %77 = tpu.matmul %72, %74, %cst_27 {dimension_numbers = #tpu.dot_dimension_numbers<[1], [1], [0], [0], [0, 0, 1, 0], [], []>} : vector<8x32xf32>, vector<8x32xf32>, vector<8x8xf32> -> vector<8x8xf32>
    %cst_28 = arith.constant 0.353553385 : f32
    %78 = vector.broadcast %cst_28 : f32 to vector<8x8xf32>
    %79 = arith.mulf %77, %78 : vector<8x8xf32>
    %cst_29 = arith.constant dense<0xFF800000> : vector<8xf32>
    %80 = vector.multi_reduction <maximumf>, %79, %cst_29 [1] : vector<8x8xf32> to vector<8xf32>
    %81 = vector.shape_cast %80 : vector<8xf32> to vector<8x1xf32>
    %82 = vector.broadcast %81 : vector<8x1xf32> to vector<8x8xf32>
    %83 = arith.subf %79, %82 : vector<8x8xf32>
    %84 = math.exp %83 : vector<8x8xf32>
    %cst_30 = arith.constant dense<0.000000e+00> : vector<8xf32>
    %85 = vector.multi_reduction <add>, %84, %cst_30 [1] : vector<8x8xf32> to vector<8xf32>
    %86 = vector.shape_cast %85 : vector<8xf32> to vector<8x1xf32>
    %87 = tpu.reciprocal %86 {approx = true} : vector<8x1xf32> -> vector<8x1xf32>
    %88 = vector.broadcast %87 : vector<8x1xf32> to vector<8x8xf32>
    %89 = arith.mulf %84, %88 : vector<8x8xf32>
    %cst_31 = arith.constant dense<0.000000e+00> : vector<8x32xf32>
    %90 = tpu.matmul %89, %76, %cst_31 {dimension_numbers = #tpu.dot_dimension_numbers<[1], [0], [0], [1], [0, 0, 1, 1], [], []>} : vector<8x8xf32>, vector<8x32xf32>, vector<8x32xf32> -> vector<8x32xf32>
    %91 = arith.addf %65, %90 : vector<8x32xf32>
    %c24_i32_32 = arith.constant 24 : i32
    %92 = vector.broadcast %c24_i32_32 : i32 to vector<8x32xi32>
    %93 = arith.cmpi sge, %9, %92 : vector<8x32xi32>
    %c32_i32 = arith.constant 32 : i32
    %94 = vector.broadcast %c32_i32 : i32 to vector<8x32xi32>
    %95 = arith.cmpi slt, %9, %94 : vector<8x32xi32>
    %96 = arith.andi %93, %95 : vector<8x32xi1>
    %cst_33 = arith.constant 0.000000e+00 : f32
    %97 = vector.broadcast %cst_33 : f32 to vector<8x32xf32>
    %98 = arith.select %96, %10, %97 : vector<8x32xi1>, vector<8x32xf32>
    %cst_34 = arith.constant 0.000000e+00 : f32
    %99 = vector.broadcast %cst_34 : f32 to vector<8x32xf32>
    %100 = arith.select %96, %11, %99 : vector<8x32xi1>, vector<8x32xf32>
    %cst_35 = arith.constant 0.000000e+00 : f32
    %101 = vector.broadcast %cst_35 : f32 to vector<8x32xf32>
    %102 = arith.select %96, %12, %101 : vector<8x32xi1>, vector<8x32xf32>
    %cst_36 = arith.constant dense<0.000000e+00> : vector<8x8xf32>
    %103 = tpu.matmul %98, %100, %cst_36 {dimension_numbers = #tpu.dot_dimension_numbers<[1], [1], [0], [0], [0, 0, 1, 0], [], []>} : vector<8x32xf32>, vector<8x32xf32>, vector<8x8xf32> -> vector<8x8xf32>
    %cst_37 = arith.constant 0.353553385 : f32
    %104 = vector.broadcast %cst_37 : f32 to vector<8x8xf32>
    %105 = arith.mulf %103, %104 : vector<8x8xf32>
    %cst_38 = arith.constant dense<0xFF800000> : vector<8xf32>
    %106 = vector.multi_reduction <maximumf>, %105, %cst_38 [1] : vector<8x8xf32> to vector<8xf32>
    %107 = vector.shape_cast %106 : vector<8xf32> to vector<8x1xf32>
    %108 = vector.broadcast %107 : vector<8x1xf32> to vector<8x8xf32>
    %109 = arith.subf %105, %108 : vector<8x8xf32>
    %110 = math.exp %109 : vector<8x8xf32>
    %cst_39 = arith.constant dense<0.000000e+00> : vector<8xf32>
    %111 = vector.multi_reduction <add>, %110, %cst_39 [1] : vector<8x8xf32> to vector<8xf32>
    %112 = vector.shape_cast %111 : vector<8xf32> to vector<8x1xf32>
    %113 = tpu.reciprocal %112 {approx = true} : vector<8x1xf32> -> vector<8x1xf32>
    %114 = vector.broadcast %113 : vector<8x1xf32> to vector<8x8xf32>
    %115 = arith.mulf %110, %114 : vector<8x8xf32>
    %cst_40 = arith.constant dense<0.000000e+00> : vector<8x32xf32>
    %116 = tpu.matmul %115, %102, %cst_40 {dimension_numbers = #tpu.dot_dimension_numbers<[1], [0], [0], [1], [0, 0, 1, 1], [], []>} : vector<8x8xf32>, vector<8x32xf32>, vector<8x32xf32> -> vector<8x32xf32>
    %117 = arith.addf %91, %116 : vector<8x32xf32>
    %118 = vector.extract_strided_slice %6 {offsets = [8, 0], sizes = [8, 32], strides = [1, 1]} : vector<16x32xf32> to vector<8x32xf32>
    %119 = vector.extract_strided_slice %7 {offsets = [8, 0], sizes = [8, 32], strides = [1, 1]} : vector<16x32xf32> to vector<8x32xf32>
    %120 = vector.extract_strided_slice %8 {offsets = [8, 0], sizes = [8, 32], strides = [1, 1]} : vector<16x32xf32> to vector<8x32xf32>
    %cst_41 = arith.constant 0.000000e+00 : f32
    %121 = vector.broadcast %cst_41 : f32 to vector<8x32xf32>
    %c0_i32_42 = arith.constant 0 : i32
    %122 = vector.broadcast %c0_i32_42 : i32 to vector<8x32xi32>
    %123 = arith.cmpi sge, %9, %122 : vector<8x32xi32>
    %c8_i32_43 = arith.constant 8 : i32
    %124 = vector.broadcast %c8_i32_43 : i32 to vector<8x32xi32>
    %125 = arith.cmpi slt, %9, %124 : vector<8x32xi32>
    %126 = arith.andi %123, %125 : vector<8x32xi1>
    %cst_44 = arith.constant 0.000000e+00 : f32
    %127 = vector.broadcast %cst_44 : f32 to vector<8x32xf32>
    %128 = arith.select %126, %118, %127 : vector<8x32xi1>, vector<8x32xf32>
    %cst_45 = arith.constant 0.000000e+00 : f32
    %129 = vector.broadcast %cst_45 : f32 to vector<8x32xf32>
    %130 = arith.select %126, %119, %129 : vector<8x32xi1>, vector<8x32xf32>
    %cst_46 = arith.constant 0.000000e+00 : f32
    %131 = vector.broadcast %cst_46 : f32 to vector<8x32xf32>
    %132 = arith.select %126, %120, %131 : vector<8x32xi1>, vector<8x32xf32>
    %cst_47 = arith.constant dense<0.000000e+00> : vector<8x8xf32>
    %133 = tpu.matmul %128, %130, %cst_47 {dimension_numbers = #tpu.dot_dimension_numbers<[1], [1], [0], [0], [0, 0, 1, 0], [], []>} : vector<8x32xf32>, vector<8x32xf32>, vector<8x8xf32> -> vector<8x8xf32>
    %cst_48 = arith.constant 0.353553385 : f32
    %134 = vector.broadcast %cst_48 : f32 to vector<8x8xf32>
    %135 = arith.mulf %133, %134 : vector<8x8xf32>
    %cst_49 = arith.constant dense<0xFF800000> : vector<8xf32>
    %136 = vector.multi_reduction <maximumf>, %135, %cst_49 [1] : vector<8x8xf32> to vector<8xf32>
    %137 = vector.shape_cast %136 : vector<8xf32> to vector<8x1xf32>
    %138 = vector.broadcast %137 : vector<8x1xf32> to vector<8x8xf32>
    %139 = arith.subf %135, %138 : vector<8x8xf32>
    %140 = math.exp %139 : vector<8x8xf32>
    %cst_50 = arith.constant dense<0.000000e+00> : vector<8xf32>
    %141 = vector.multi_reduction <add>, %140, %cst_50 [1] : vector<8x8xf32> to vector<8xf32>
    %142 = vector.shape_cast %141 : vector<8xf32> to vector<8x1xf32>
    %143 = tpu.reciprocal %142 {approx = true} : vector<8x1xf32> -> vector<8x1xf32>
    %144 = vector.broadcast %143 : vector<8x1xf32> to vector<8x8xf32>
    %145 = arith.mulf %140, %144 : vector<8x8xf32>
    %cst_51 = arith.constant dense<0.000000e+00> : vector<8x32xf32>
    %146 = tpu.matmul %145, %132, %cst_51 {dimension_numbers = #tpu.dot_dimension_numbers<[1], [0], [0], [1], [0, 0, 1, 1], [], []>} : vector<8x8xf32>, vector<8x32xf32>, vector<8x32xf32> -> vector<8x32xf32>
    %147 = arith.addf %121, %146 : vector<8x32xf32>
    %c8_i32_52 = arith.constant 8 : i32
    %148 = vector.broadcast %c8_i32_52 : i32 to vector<8x32xi32>
    %149 = arith.cmpi sge, %9, %148 : vector<8x32xi32>
    %c16_i32_53 = arith.constant 16 : i32
    %150 = vector.broadcast %c16_i32_53 : i32 to vector<8x32xi32>
    %151 = arith.cmpi slt, %9, %150 : vector<8x32xi32>
    %152 = arith.andi %149, %151 : vector<8x32xi1>
    %cst_54 = arith.constant 0.000000e+00 : f32
    %153 = vector.broadcast %cst_54 : f32 to vector<8x32xf32>
    %154 = arith.select %152, %118, %153 : vector<8x32xi1>, vector<8x32xf32>
    %cst_55 = arith.constant 0.000000e+00 : f32
    %155 = vector.broadcast %cst_55 : f32 to vector<8x32xf32>
    %156 = arith.select %152, %119, %155 : vector<8x32xi1>, vector<8x32xf32>
    %cst_56 = arith.constant 0.000000e+00 : f32
    %157 = vector.broadcast %cst_56 : f32 to vector<8x32xf32>
    %158 = arith.select %152, %120, %157 : vector<8x32xi1>, vector<8x32xf32>
    %cst_57 = arith.constant dense<0.000000e+00> : vector<8x8xf32>
    %159 = tpu.matmul %154, %156, %cst_57 {dimension_numbers = #tpu.dot_dimension_numbers<[1], [1], [0], [0], [0, 0, 1, 0], [], []>} : vector<8x32xf32>, vector<8x32xf32>, vector<8x8xf32> -> vector<8x8xf32>
    %cst_58 = arith.constant 0.353553385 : f32
    %160 = vector.broadcast %cst_58 : f32 to vector<8x8xf32>
    %161 = arith.mulf %159, %160 : vector<8x8xf32>
    %cst_59 = arith.constant dense<0xFF800000> : vector<8xf32>
    %162 = vector.multi_reduction <maximumf>, %161, %cst_59 [1] : vector<8x8xf32> to vector<8xf32>
    %163 = vector.shape_cast %162 : vector<8xf32> to vector<8x1xf32>
    %164 = vector.broadcast %163 : vector<8x1xf32> to vector<8x8xf32>
    %165 = arith.subf %161, %164 : vector<8x8xf32>
    %166 = math.exp %165 : vector<8x8xf32>
    %cst_60 = arith.constant dense<0.000000e+00> : vector<8xf32>
    %167 = vector.multi_reduction <add>, %166, %cst_60 [1] : vector<8x8xf32> to vector<8xf32>
    %168 = vector.shape_cast %167 : vector<8xf32> to vector<8x1xf32>
    %169 = tpu.reciprocal %168 {approx = true} : vector<8x1xf32> -> vector<8x1xf32>
    %170 = vector.broadcast %169 : vector<8x1xf32> to vector<8x8xf32>
    %171 = arith.mulf %166, %170 : vector<8x8xf32>
    %cst_61 = arith.constant dense<0.000000e+00> : vector<8x32xf32>
    %172 = tpu.matmul %171, %158, %cst_61 {dimension_numbers = #tpu.dot_dimension_numbers<[1], [0], [0], [1], [0, 0, 1, 1], [], []>} : vector<8x8xf32>, vector<8x32xf32>, vector<8x32xf32> -> vector<8x32xf32>
    %173 = arith.addf %147, %172 : vector<8x32xf32>
    %c16_i32_62 = arith.constant 16 : i32
    %174 = vector.broadcast %c16_i32_62 : i32 to vector<8x32xi32>
    %175 = arith.cmpi sge, %9, %174 : vector<8x32xi32>
    %c24_i32_63 = arith.constant 24 : i32
    %176 = vector.broadcast %c24_i32_63 : i32 to vector<8x32xi32>
    %177 = arith.cmpi slt, %9, %176 : vector<8x32xi32>
    %178 = arith.andi %175, %177 : vector<8x32xi1>
    %cst_64 = arith.constant 0.000000e+00 : f32
    %179 = vector.broadcast %cst_64 : f32 to vector<8x32xf32>
    %180 = arith.select %178, %118, %179 : vector<8x32xi1>, vector<8x32xf32>
    %cst_65 = arith.constant 0.000000e+00 : f32
    %181 = vector.broadcast %cst_65 : f32 to vector<8x32xf32>
    %182 = arith.select %178, %119, %181 : vector<8x32xi1>, vector<8x32xf32>
    %cst_66 = arith.constant 0.000000e+00 : f32
    %183 = vector.broadcast %cst_66 : f32 to vector<8x32xf32>
    %184 = arith.select %178, %120, %183 : vector<8x32xi1>, vector<8x32xf32>
    %cst_67 = arith.constant dense<0.000000e+00> : vector<8x8xf32>
    %185 = tpu.matmul %180, %182, %cst_67 {dimension_numbers = #tpu.dot_dimension_numbers<[1], [1], [0], [0], [0, 0, 1, 0], [], []>} : vector<8x32xf32>, vector<8x32xf32>, vector<8x8xf32> -> vector<8x8xf32>
    %cst_68 = arith.constant 0.353553385 : f32
    %186 = vector.broadcast %cst_68 : f32 to vector<8x8xf32>
    %187 = arith.mulf %185, %186 : vector<8x8xf32>
    %cst_69 = arith.constant dense<0xFF800000> : vector<8xf32>
    %188 = vector.multi_reduction <maximumf>, %187, %cst_69 [1] : vector<8x8xf32> to vector<8xf32>
    %189 = vector.shape_cast %188 : vector<8xf32> to vector<8x1xf32>
    %190 = vector.broadcast %189 : vector<8x1xf32> to vector<8x8xf32>
    %191 = arith.subf %187, %190 : vector<8x8xf32>
    %192 = math.exp %191 : vector<8x8xf32>
    %cst_70 = arith.constant dense<0.000000e+00> : vector<8xf32>
    %193 = vector.multi_reduction <add>, %192, %cst_70 [1] : vector<8x8xf32> to vector<8xf32>
    %194 = vector.shape_cast %193 : vector<8xf32> to vector<8x1xf32>
    %195 = tpu.reciprocal %194 {approx = true} : vector<8x1xf32> -> vector<8x1xf32>
    %196 = vector.broadcast %195 : vector<8x1xf32> to vector<8x8xf32>
    %197 = arith.mulf %192, %196 : vector<8x8xf32>
    %cst_71 = arith.constant dense<0.000000e+00> : vector<8x32xf32>
    %198 = tpu.matmul %197, %184, %cst_71 {dimension_numbers = #tpu.dot_dimension_numbers<[1], [0], [0], [1], [0, 0, 1, 1], [], []>} : vector<8x8xf32>, vector<8x32xf32>, vector<8x32xf32> -> vector<8x32xf32>
    %199 = arith.addf %173, %198 : vector<8x32xf32>
    %c24_i32_72 = arith.constant 24 : i32
    %200 = vector.broadcast %c24_i32_72 : i32 to vector<8x32xi32>
    %201 = arith.cmpi sge, %9, %200 : vector<8x32xi32>
    %c32_i32_73 = arith.constant 32 : i32
    %202 = vector.broadcast %c32_i32_73 : i32 to vector<8x32xi32>
    %203 = arith.cmpi slt, %9, %202 : vector<8x32xi32>
    %204 = arith.andi %201, %203 : vector<8x32xi1>
    %cst_74 = arith.constant 0.000000e+00 : f32
    %205 = vector.broadcast %cst_74 : f32 to vector<8x32xf32>
    %206 = arith.select %204, %118, %205 : vector<8x32xi1>, vector<8x32xf32>
    %cst_75 = arith.constant 0.000000e+00 : f32
    %207 = vector.broadcast %cst_75 : f32 to vector<8x32xf32>
    %208 = arith.select %204, %119, %207 : vector<8x32xi1>, vector<8x32xf32>
    %cst_76 = arith.constant 0.000000e+00 : f32
    %209 = vector.broadcast %cst_76 : f32 to vector<8x32xf32>
    %210 = arith.select %204, %120, %209 : vector<8x32xi1>, vector<8x32xf32>
    %cst_77 = arith.constant dense<0.000000e+00> : vector<8x8xf32>
    %211 = tpu.matmul %206, %208, %cst_77 {dimension_numbers = #tpu.dot_dimension_numbers<[1], [1], [0], [0], [0, 0, 1, 0], [], []>} : vector<8x32xf32>, vector<8x32xf32>, vector<8x8xf32> -> vector<8x8xf32>
    %cst_78 = arith.constant 0.353553385 : f32
    %212 = vector.broadcast %cst_78 : f32 to vector<8x8xf32>
    %213 = arith.mulf %211, %212 : vector<8x8xf32>
    %cst_79 = arith.constant dense<0xFF800000> : vector<8xf32>
    %214 = vector.multi_reduction <maximumf>, %213, %cst_79 [1] : vector<8x8xf32> to vector<8xf32>
    %215 = vector.shape_cast %214 : vector<8xf32> to vector<8x1xf32>
    %216 = vector.broadcast %215 : vector<8x1xf32> to vector<8x8xf32>
    %217 = arith.subf %213, %216 : vector<8x8xf32>
    %218 = math.exp %217 : vector<8x8xf32>
    %cst_80 = arith.constant dense<0.000000e+00> : vector<8xf32>
    %219 = vector.multi_reduction <add>, %218, %cst_80 [1] : vector<8x8xf32> to vector<8xf32>
    %220 = vector.shape_cast %219 : vector<8xf32> to vector<8x1xf32>
    %221 = tpu.reciprocal %220 {approx = true} : vector<8x1xf32> -> vector<8x1xf32>
    %222 = vector.broadcast %221 : vector<8x1xf32> to vector<8x8xf32>
    %223 = arith.mulf %218, %222 : vector<8x8xf32>
    %cst_81 = arith.constant dense<0.000000e+00> : vector<8x32xf32>
    %224 = tpu.matmul %223, %210, %cst_81 {dimension_numbers = #tpu.dot_dimension_numbers<[1], [0], [0], [1], [0, 0, 1, 1], [], []>} : vector<8x8xf32>, vector<8x32xf32>, vector<8x32xf32> -> vector<8x32xf32>
    %225 = arith.addf %199, %224 : vector<8x32xf32>
    %226 = tpu.concatenate %117, %225 in 0 : vector<8x32xf32>, vector<8x32xf32> -> vector<16x32xf32>
    %c0_82 = arith.constant 0 : index
    %c0_83 = arith.constant 0 : index
    %227 = vector.load %arg4[%c0_82, %c0_83] : memref<32x32xf32, #tpu.memory_space<vmem>>, vector<32x32xf32>
    %cst_84 = arith.constant dense<0.000000e+00> : vector<16x32xf32>
    %228 = tpu.matmul %226, %227, %cst_84 {dimension_numbers = #tpu.dot_dimension_numbers<[1], [0], [0], [1], [0, 0, 1, 1], [], []>} : vector<16x32xf32>, vector<32x32xf32>, vector<16x32xf32> -> vector<16x32xf32>
    %c0_85 = arith.constant 0 : index
    %c0_86 = arith.constant 0 : index
    %229 = vector.load %arg5[%c0_85, %c0_86] : memref<1x32xf32, #tpu.memory_space<vmem>>, vector<1x32xf32>
    %230 = vector.broadcast %229 : vector<1x32xf32> to vector<16x32xf32>
    %231 = arith.addf %228, %230 : vector<16x32xf32>
    %c0_87 = arith.constant 0 : index
    %c0_88 = arith.constant 0 : index
    %232 = vector.load %arg6[%c0_87, %c0_88] : memref<32x64xf32, #tpu.memory_space<vmem>>, vector<32x64xf32>
    %c0_89 = arith.constant 0 : index
    %c0_90 = arith.constant 0 : index
    %233 = vector.load %arg7[%c0_89, %c0_90] : memref<1x64xf32, #tpu.memory_space<vmem>>, vector<1x64xf32>
    %cst_91 = arith.constant dense<0.000000e+00> : vector<16x64xf32>
    %234 = tpu.matmul %231, %232, %cst_91 {dimension_numbers = #tpu.dot_dimension_numbers<[1], [0], [0], [1], [0, 0, 1, 1], [], []>} : vector<16x32xf32>, vector<32x64xf32>, vector<16x64xf32> -> vector<16x64xf32>
    %235 = vector.broadcast %233 : vector<1x64xf32> to vector<16x64xf32>
    %236 = arith.addf %234, %235 : vector<16x64xf32>
    %237 = vector.extract_strided_slice %236 {offsets = [0, 0], sizes = [16, 32], strides = [1, 1]} : vector<16x64xf32> to vector<16x32xf32>
    %238 = vector.extract_strided_slice %236 {offsets = [0, 32], sizes = [16, 32], strides = [1, 1]} : vector<16x64xf32> to vector<16x32xf32>
    %239 = arith.negf %238 : vector<16x32xf32>
    %240 = math.exp %239 : vector<16x32xf32>
    %cst_92 = arith.constant 1.000000e+00 : f32
    %241 = vector.broadcast %cst_92 : f32 to vector<16x32xf32>
    %242 = arith.addf %241, %240 : vector<16x32xf32>
    %243 = arith.divf %241, %242 : vector<16x32xf32>
    %244 = arith.mulf %237, %243 : vector<16x32xf32>
    %245 = arith.addf %244, %0 : vector<16x32xf32>
    %c0_93 = arith.constant 0 : index
    %c0_94 = arith.constant 0 : index
    %246 = vector.load %arg8[%c0_93, %c0_94] : memref<1x32xf32, #tpu.memory_space<vmem>>, vector<1x32xf32>
    %c0_95 = arith.constant 0 : index
    %c0_96 = arith.constant 0 : index
    %247 = vector.load %arg9[%c0_95, %c0_96] : memref<1x32xf32, #tpu.memory_space<vmem>>, vector<1x32xf32>
    %cst_97 = arith.constant dense<0.000000e+00> : vector<16xf32>
    %248 = vector.multi_reduction <add>, %245, %cst_97 [1] : vector<16x32xf32> to vector<16xf32>
    %249 = vector.shape_cast %248 : vector<16xf32> to vector<16x1xf32>
    %cst_98 = arith.constant 3.200000e+01 : f32
    %250 = vector.broadcast %cst_98 : f32 to vector<16x1xf32>
    %251 = arith.divf %249, %250 : vector<16x1xf32>
    %252 = vector.broadcast %251 : vector<16x1xf32> to vector<16x32xf32>
    %253 = arith.subf %245, %252 : vector<16x32xf32>
    %254 = arith.mulf %253, %253 : vector<16x32xf32>
    %cst_99 = arith.constant dense<0.000000e+00> : vector<16xf32>
    %255 = vector.multi_reduction <add>, %254, %cst_99 [1] : vector<16x32xf32> to vector<16xf32>
    %256 = vector.shape_cast %255 : vector<16xf32> to vector<16x1xf32>
    %cst_100 = arith.constant 3.200000e+01 : f32
    %257 = vector.broadcast %cst_100 : f32 to vector<16x1xf32>
    %258 = arith.divf %256, %257 : vector<16x1xf32>
    %cst_101 = arith.constant 9.99999974E-6 : f32
    %259 = vector.broadcast %cst_101 : f32 to vector<16x1xf32>
    %260 = arith.addf %258, %259 : vector<16x1xf32>
    %261 = math.rsqrt %260 : vector<16x1xf32>
    %262 = vector.broadcast %261 : vector<16x1xf32> to vector<16x32xf32>
    %263 = arith.mulf %253, %262 : vector<16x32xf32>
    %264 = vector.broadcast %246 : vector<1x32xf32> to vector<16x32xf32>
    %265 = arith.mulf %263, %264 : vector<16x32xf32>
    %266 = vector.broadcast %247 : vector<1x32xf32> to vector<16x32xf32>
    %267 = arith.addf %265, %266 : vector<16x32xf32>
    %c0_102 = arith.constant 0 : index
    %c0_103 = arith.constant 0 : index
    %268 = vector.load %arg10[%c0_102, %c0_103] : memref<32x32xf32, #tpu.memory_space<vmem>>, vector<32x32xf32>
    %cst_104 = arith.constant dense<0.000000e+00> : vector<16x32xf32>
    %269 = tpu.matmul %267, %268, %cst_104 {dimension_numbers = #tpu.dot_dimension_numbers<[1], [0], [0], [1], [0, 0, 1, 1], [], []>} : vector<16x32xf32>, vector<32x32xf32>, vector<16x32xf32> -> vector<16x32xf32>
    %c0_105 = arith.constant 0 : index
    %c0_106 = arith.constant 0 : index
    %270 = vector.load %arg11[%c0_105, %c0_106] : memref<1x32xf32, #tpu.memory_space<vmem>>, vector<1x32xf32>
    %271 = vector.broadcast %270 : vector<1x32xf32> to vector<16x32xf32>
    %272 = arith.addf %269, %271 : vector<16x32xf32>
    %cst_107 = arith.constant 0.000000e+00 : f32
    %273 = vector.broadcast %cst_107 : f32 to vector<16x32xf32>
    %274 = arith.maximumf %272, %273 : vector<16x32xf32>
    %c0_108 = arith.constant 0 : index
    %c0_109 = arith.constant 0 : index
    %275 = vector.load %arg12[%c0_108, %c0_109] : memref<32x32xf32, #tpu.memory_space<vmem>>, vector<32x32xf32>
    %cst_110 = arith.constant dense<0.000000e+00> : vector<16x32xf32>
    %276 = tpu.matmul %274, %275, %cst_110 {dimension_numbers = #tpu.dot_dimension_numbers<[1], [0], [0], [1], [0, 0, 1, 1], [], []>} : vector<16x32xf32>, vector<32x32xf32>, vector<16x32xf32> -> vector<16x32xf32>
    %c0_111 = arith.constant 0 : index
    %c0_112 = arith.constant 0 : index
    %277 = vector.load %arg13[%c0_111, %c0_112] : memref<1x32xf32, #tpu.memory_space<vmem>>, vector<1x32xf32>
    %278 = vector.broadcast %277 : vector<1x32xf32> to vector<16x32xf32>
    %279 = arith.addf %276, %278 : vector<16x32xf32>
    %c0_113 = arith.constant 0 : index
    %c0_114 = arith.constant 0 : index
    %280 = vector.load %arg14[%c0_113, %c0_114] : memref<32x64xf32, #tpu.memory_space<vmem>>, vector<32x64xf32>
    %c0_115 = arith.constant 0 : index
    %c0_116 = arith.constant 0 : index
    %281 = vector.load %arg15[%c0_115, %c0_116] : memref<1x64xf32, #tpu.memory_space<vmem>>, vector<1x64xf32>
    %cst_117 = arith.constant dense<0.000000e+00> : vector<16x64xf32>
    %282 = tpu.matmul %279, %280, %cst_117 {dimension_numbers = #tpu.dot_dimension_numbers<[1], [0], [0], [1], [0, 0, 1, 1], [], []>} : vector<16x32xf32>, vector<32x64xf32>, vector<16x64xf32> -> vector<16x64xf32>
    %283 = vector.broadcast %281 : vector<1x64xf32> to vector<16x64xf32>
    %284 = arith.addf %282, %283 : vector<16x64xf32>
    %285 = vector.extract_strided_slice %284 {offsets = [0, 0], sizes = [16, 32], strides = [1, 1]} : vector<16x64xf32> to vector<16x32xf32>
    %286 = vector.extract_strided_slice %284 {offsets = [0, 32], sizes = [16, 32], strides = [1, 1]} : vector<16x64xf32> to vector<16x32xf32>
    %287 = arith.negf %286 : vector<16x32xf32>
    %288 = math.exp %287 : vector<16x32xf32>
    %cst_118 = arith.constant 1.000000e+00 : f32
    %289 = vector.broadcast %cst_118 : f32 to vector<16x32xf32>
    %290 = arith.addf %289, %288 : vector<16x32xf32>
    %291 = arith.divf %289, %290 : vector<16x32xf32>
    %292 = arith.mulf %285, %291 : vector<16x32xf32>
    %293 = arith.addf %292, %267 : vector<16x32xf32>
    %c0_119 = arith.constant 0 : index
    %c0_120 = arith.constant 0 : index
    %294 = vector.load %arg16[%c0_119, %c0_120] : memref<1x32xf32, #tpu.memory_space<vmem>>, vector<1x32xf32>
    %c0_121 = arith.constant 0 : index
    %c0_122 = arith.constant 0 : index
    %295 = vector.load %arg17[%c0_121, %c0_122] : memref<1x32xf32, #tpu.memory_space<vmem>>, vector<1x32xf32>
    %cst_123 = arith.constant dense<0.000000e+00> : vector<16xf32>
    %296 = vector.multi_reduction <add>, %293, %cst_123 [1] : vector<16x32xf32> to vector<16xf32>
    %297 = vector.shape_cast %296 : vector<16xf32> to vector<16x1xf32>
    %cst_124 = arith.constant 3.200000e+01 : f32
    %298 = vector.broadcast %cst_124 : f32 to vector<16x1xf32>
    %299 = arith.divf %297, %298 : vector<16x1xf32>
    %300 = vector.broadcast %299 : vector<16x1xf32> to vector<16x32xf32>
    %301 = arith.subf %293, %300 : vector<16x32xf32>
    %302 = arith.mulf %301, %301 : vector<16x32xf32>
    %cst_125 = arith.constant dense<0.000000e+00> : vector<16xf32>
    %303 = vector.multi_reduction <add>, %302, %cst_125 [1] : vector<16x32xf32> to vector<16xf32>
    %304 = vector.shape_cast %303 : vector<16xf32> to vector<16x1xf32>
    %cst_126 = arith.constant 3.200000e+01 : f32
    %305 = vector.broadcast %cst_126 : f32 to vector<16x1xf32>
    %306 = arith.divf %304, %305 : vector<16x1xf32>
    %cst_127 = arith.constant 9.99999974E-6 : f32
    %307 = vector.broadcast %cst_127 : f32 to vector<16x1xf32>
    %308 = arith.addf %306, %307 : vector<16x1xf32>
    %309 = math.rsqrt %308 : vector<16x1xf32>
    %310 = vector.broadcast %309 : vector<16x1xf32> to vector<16x32xf32>
    %311 = arith.mulf %301, %310 : vector<16x32xf32>
    %312 = vector.broadcast %294 : vector<1x32xf32> to vector<16x32xf32>
    %313 = arith.mulf %311, %312 : vector<16x32xf32>
    %314 = vector.broadcast %295 : vector<1x32xf32> to vector<16x32xf32>
    %315 = arith.addf %313, %314 : vector<16x32xf32>
    %c0_128 = arith.constant 0 : index
    %c0_129 = arith.constant 0 : index
    %316 = vector.load %arg18[%c0_128, %c0_129] : memref<16x32xf32, #tpu.memory_space<vmem>>, vector<16x32xf32>
    tpu.vector_store %arg18[%c0_128, %c0_129], %315 {strides = array<i32>} : memref<16x32xf32, #tpu.memory_space<vmem>>, vector<16x32xf32>,
    return
  }
  func.func @transform_0(%arg0: i32) -> (i32, i32) {
    %c0_i32 = arith.constant 0 : i32
    %c0_i32_0 = arith.constant 0 : i32
    %c0_i32_1 = arith.constant 0 : i32
    return %c0_i32, %c0_i32_0 : i32, i32
  }
  func.func @transform_1(%arg0: i32) -> (i32, i32) {
    %c0_i32 = arith.constant 0 : i32
    %c0_i32_0 = arith.constant 0 : i32
    %c0_i32_1 = arith.constant 0 : i32
    return %c0_i32, %c0_i32_0 : i32, i32
  }
  func.func @transform_2(%arg0: i32) -> (i32, i32) {
    %c0_i32 = arith.constant 0 : i32
    %c0_i32_0 = arith.constant 0 : i32
    %c0_i32_1 = arith.constant 0 : i32
    return %c0_i32, %c0_i32_0 : i32, i32
  }
  func.func @transform_3(%arg0: i32) -> (i32, i32) {
    %c0_i32 = arith.constant 0 : i32
    %c0_i32_0 = arith.constant 0 : i32
    %c0_i32_1 = arith.constant 0 : i32
    return %c0_i32, %c0_i32_0 : i32, i32
  }
  func.func @transform_4(%arg0: i32) -> (i32, i32) {
    %c0_i32 = arith.constant 0 : i32
    %c0_i32_0 = arith.constant 0 : i32
    %c0_i32_1 = arith.constant 0 : i32
    return %c0_i32, %c0_i32_0 : i32, i32
  }
  func.func @transform_5(%arg0: i32) -> (i32, i32) {
    %c0_i32 = arith.constant 0 : i32
    %c0_i32_0 = arith.constant 0 : i32
    %c0_i32_1 = arith.constant 0 : i32
    return %c0_i32, %c0_i32_0 : i32, i32
  }
  func.func @transform_6(%arg0: i32) -> (i32, i32) {
    %c0_i32 = arith.constant 0 : i32
    %c0_i32_0 = arith.constant 0 : i32
    %c0_i32_1 = arith.constant 0 : i32
    return %c0_i32, %c0_i32_0 : i32, i32
  }
  func.func @transform_7(%arg0: i32) -> (i32, i32) {
    %c0_i32 = arith.constant 0 : i32
    %c0_i32_0 = arith.constant 0 : i32
    %c0_i32_1 = arith.constant 0 : i32
    return %c0_i32, %c0_i32_0 : i32, i32
  }
  func.func @transform_8(%arg0: i32) -> (i32, i32) {
    %c0_i32 = arith.constant 0 : i32
    %c0_i32_0 = arith.constant 0 : i32
    %c0_i32_1 = arith.constant 0 : i32
    return %c0_i32, %c0_i32_0 : i32, i32
  }
  func.func @transform_9(%arg0: i32) -> (i32, i32) {
    %c0_i32 = arith.constant 0 : i32
    %c0_i32_0 = arith.constant 0 : i32
    %c0_i32_1 = arith.constant 0 : i32
    return %c0_i32, %c0_i32_0 : i32, i32
  }
  func.func @transform_10(%arg0: i32) -> (i32, i32) {
    %c0_i32 = arith.constant 0 : i32
    %c0_i32_0 = arith.constant 0 : i32
    %c0_i32_1 = arith.constant 0 : i32
    return %c0_i32, %c0_i32_0 : i32, i32
  }
  func.func @transform_11(%arg0: i32) -> (i32, i32) {
    %c0_i32 = arith.constant 0 : i32
    %c0_i32_0 = arith.constant 0 : i32
    %c0_i32_1 = arith.constant 0 : i32
    return %c0_i32, %c0_i32_0 : i32, i32
  }
  func.func @transform_12(%arg0: i32) -> (i32, i32) {
    %c0_i32 = arith.constant 0 : i32
    %c0_i32_0 = arith.constant 0 : i32
    %c0_i32_1 = arith.constant 0 : i32
    return %c0_i32, %c0_i32_0 : i32, i32
  }
  func.func @transform_13(%arg0: i32) -> (i32, i32) {
    %c0_i32 = arith.constant 0 : i32
    %c0_i32_0 = arith.constant 0 : i32
    %c0_i32_1 = arith.constant 0 : i32
    return %c0_i32, %c0_i32_0 : i32, i32
  }
  func.func @transform_14(%arg0: i32) -> (i32, i32) {
    %c0_i32 = arith.constant 0 : i32
    %c0_i32_0 = arith.constant 0 : i32
    %c0_i32_1 = arith.constant 0 : i32
    return %c0_i32, %c0_i32_0 : i32, i32
  }
  func.func @transform_15(%arg0: i32) -> (i32, i32) {
    %c0_i32 = arith.constant 0 : i32
    %c0_i32_0 = arith.constant 0 : i32
    %c0_i32_1 = arith.constant 0 : i32
    return %c0_i32, %c0_i32_0 : i32, i32
  }
  func.func @transform_16(%arg0: i32) -> (i32, i32) {
    %c0_i32 = arith.constant 0 : i32
    %c0_i32_0 = arith.constant 0 : i32
    %c0_i32_1 = arith.constant 0 : i32
    return %c0_i32, %c0_i32_0 : i32, i32
  }
  func.func @transform_17(%arg0: i32) -> (i32, i32) {
    %c0_i32 = arith.constant 0 : i32
    %c0_i32_0 = arith.constant 0 : i32
    %c0_i32_1 = arith.constant 0 : i32
    return %c0_i32, %c0_i32_0 : i32, i32
  }
}

module attributes {stable_mosaic.version = 11 : i64} {
  func.func @_encoder_layer_kernel(%arg0: i32, %arg1: memref<16x32xf32, #tpu.memory_space<vmem>>, %arg2: memref<32x96xf32, #tpu.memory_space<vmem>>, %arg3: memref<1x96xf32, #tpu.memory_space<vmem>>, %arg4: memref<32x32xf32, #tpu.memory_space<vmem>>, %arg5: memref<1x32xf32, #tpu.memory_space<vmem>>, %arg6: memref<32x64xf32, #tpu.memory_space<vmem>>, %arg7: memref<1x64xf32, #tpu.memory_space<vmem>>, %arg8: memref<1x32xf32, #tpu.memory_space<vmem>>, %arg9: memref<1x32xf32, #tpu.memory_space<vmem>>, %arg10: memref<32x32xf32, #tpu.memory_space<vmem>>, %arg11: memref<1x32xf32, #tpu.memory_space<vmem>>, %arg12: memref<32x32xf32, #tpu.memory_space<vmem>>, %arg13: memref<1x32xf32, #tpu.memory_space<vmem>>, %arg14: memref<32x64xf32, #tpu.memory_space<vmem>>, %arg15: memref<1x64xf32, #tpu.memory_space<vmem>>, %arg16: memref<1x32xf32, #tpu.memory_space<vmem>>, %arg17: memref<1x32xf32, #tpu.memory_space<vmem>>, %arg18: memref<16x32xf32, #tpu.memory_space<vmem>>) attributes {dimension_semantics = [#tpu.dimension_semantics<arbitrary>], iteration_bounds = array<i64: 1>, scalar_prefetch = 0 : i64, scratch_operands = 0 : i64, tpu.core_type = #tpu.core_type<tc>, window_params = [{pipeline_mode = #tpu.pipeline_mode<synchronous>, transform_indices = @transform_0, window_bounds = array<i64: 16, 32>}, {pipeline_mode = #tpu.pipeline_mode<synchronous>, transform_indices = @transform_1, window_bounds = array<i64: 32, 96>}, {pipeline_mode = #tpu.pipeline_mode<synchronous>, transform_indices = @transform_2, window_bounds = array<i64: 1, 96>}, {pipeline_mode = #tpu.pipeline_mode<synchronous>, transform_indices = @transform_3, window_bounds = array<i64: 32, 32>}, {pipeline_mode = #tpu.pipeline_mode<synchronous>, transform_indices = @transform_4, window_bounds = array<i64: 1, 32>}, {pipeline_mode = #tpu.pipeline_mode<synchronous>, transform_indices = @transform_5, window_bounds = array<i64: 32, 64>}, {pipeline_mode = #tpu.pipeline_mode<synchronous>, transform_indices = @transform_6, window_bounds = array<i64: 1, 64>}, {pipeline_mode = #tpu.pipeline_mode<synchronous>, transform_indices = @transform_7, window_bounds = array<i64: 1, 32>}, {pipeline_mode = #tpu.pipeline_mode<synchronous>, transform_indices = @transform_8, window_bounds = array<i64: 1, 32>}, {pipeline_mode = #tpu.pipeline_mode<synchronous>, transform_indices = @transform_9, window_bounds = array<i64: 32, 32>}, {pipeline_mode = #tpu.pipeline_mode<synchronous>, transform_indices = @transform_10, window_bounds = array<i64: 1, 32>}, {pipeline_mode = #tpu.pipeline_mode<synchronous>, transform_indices = @transform_11, window_bounds = array<i64: 32, 32>}, {pipeline_mode = #tpu.pipeline_mode<synchronous>, transform_indices = @transform_12, window_bounds = array<i64: 1, 32>}, {pipeline_mode = #tpu.pipeline_mode<synchronous>, transform_indices = @transform_13, window_bounds = array<i64: 32, 64>}, {pipeline_mode = #tpu.pipeline_mode<synchronous>, transform_indices = @transform_14, window_bounds = array<i64: 1, 64>}, {pipeline_mode = #tpu.pipeline_mode<synchronous>, transform_indices = @transform_15, window_bounds = array<i64: 1, 32>}, {pipeline_mode = #tpu.pipeline_mode<synchronous>, transform_indices = @transform_16, window_bounds = array<i64: 1, 32>}, {pipeline_mode = #tpu.pipeline_mode<synchronous>, transform_indices = @transform_17, window_bounds = array<i64: 16, 32>}]} {
    %c0 = arith.constant 0 : index
    %c0_0 = arith.constant 0 : index
    %0 = vector.load %arg1[%c0, %c0_0] : memref<16x32xf32, #tpu.memory_space<vmem>>, vector<16x32xf32>
    %c0_1 = arith.constant 0 : index
    %c0_2 = arith.constant 0 : index
    %1 = vector.load %arg2[%c0_1, %c0_2] : memref<32x96xf32, #tpu.memory_space<vmem>>, vector<32x96xf32>
    %cst = arith.constant dense<0.000000e+00> : vector<16x96xf32>
    %2 = tpu.matmul %0, %1, %cst {dimension_numbers = #tpu.dot_dimension_numbers<[1], [0], [0], [1], [0, 0, 1, 1], [], []>} : vector<16x32xf32>, vector<32x96xf32>, vector<16x96xf32> -> vector<16x96xf32>
    %c0_3 = arith.constant 0 : index
    %c0_4 = arith.constant 0 : index
    %3 = vector.load %arg3[%c0_3, %c0_4] : memref<1x96xf32, #tpu.memory_space<vmem>>, vector<1x96xf32>
    %4 = vector.broadcast %3 : vector<1x96xf32> to vector<16x96xf32>
    %5 = arith.addf %2, %4 : vector<16x96xf32>
    %6 = vector.extract_strided_slice %5 {offsets = [0, 0], sizes = [16, 32], strides = [1, 1]} : vector<16x96xf32> to vector<16x32xf32>
    %7 = vector.extract_strided_slice %5 {offsets = [0, 32], sizes = [16, 32], strides = [1, 1]} : vector<16x96xf32> to vector<16x32xf32>
    %8 = vector.extract_strided_slice %5 {offsets = [0, 64], sizes = [16, 32], strides = [1, 1]} : vector<16x96xf32> to vector<16x32xf32>
    %9 = tpu.iota {dimensions = array<i32: 1>} : vector<8x32xi32>
    %10 = vector.extract_strided_slice %6 {offsets = [0, 0], sizes = [8, 32], strides = [1, 1]} : vector<16x32xf32> to vector<8x32xf32>
    %11 = vector.extract_strided_slice %7 {offsets = [0, 0], sizes = [8, 32], strides = [1, 1]} : vector<16x32xf32> to vector<8x32xf32>
    %12 = vector.extract_strided_slice %8 {offsets = [0, 0], sizes = [8, 32], strides = [1, 1]} : vector<16x32xf32> to vector<8x32xf32>
    %cst_5 = arith.constant 0.000000e+00 : f32
    %13 = vector.broadcast %cst_5 : f32 to vector<8x32xf32>
    %c0_i32 = arith.constant 0 : i32
    %14 = vector.broadcast %c0_i32 : i32 to vector<8x32xi32>
    %15 = arith.cmpi sge, %9, %14 : vector<8x32xi32>
    %c8_i32 = arith.constant 8 : i32
    %16 = vector.broadcast %c8_i32 : i32 to vector<8x32xi32>
    %17 = arith.cmpi slt, %9, %16 : vector<8x32xi32>
    %18 = arith.andi %15, %17 : vector<8x32xi1>
    %cst_6 = arith.constant 0.000000e+00 : f32
    %19 = vector.broadcast %cst_6 : f32 to vector<8x32xf32>
    %20 = arith.select %18, %10, %19 : vector<8x32xi1>, vector<8x32xf32>
    %cst_7 = arith.constant 0.000000e+00 : f32
    %21 = vector.broadcast %cst_7 : f32 to vector<8x32xf32>
    %22 = arith.select %18, %11, %21 : vector<8x32xi1>, vector<8x32xf32>
    %cst_8 = arith.constant 0.000000e+00 : f32
    %23 = vector.broadcast %cst_8 : f32 to vector<8x32xf32>
    %24 = arith.select %18, %12, %23 : vector<8x32xi1>, vector<8x32xf32>
    %cst_9 = arith.constant dense<0.000000e+00> : vector<8x8xf32>
    %25 = tpu.matmul %20, %22, %cst_9 {dimension_numbers = #tpu.dot_dimension_numbers<[1], [1], [0], [0], [0, 0, 1, 0], [], []>} : vector<8x32xf32>, vector<8x32xf32>, vector<8x8xf32> -> vector<8x8xf32>
    %cst_10 = arith.constant 0.353553385 : f32
    %26 = vector.broadcast %cst_10 : f32 to vector<8x8xf32>
    %27 = arith.mulf %25, %26 : vector<8x8xf32>
    %cst_11 = arith.constant dense<0xFF800000> : vector<8xf32>
    %28 = vector.multi_reduction <maximumf>, %27, %cst_11 [1] : vector<8x8xf32> to vector<8xf32>
    %29 = vector.shape_cast %28 : vector<8xf32> to vector<8x1xf32>
    %30 = vector.broadcast %29 : vector<8x1xf32> to vector<8x8xf32>
    %31 = arith.subf %27, %30 : vector<8x8xf32>
    %32 = math.exp %31 : vector<8x8xf32>
    %cst_12 = arith.constant dense<0.000000e+00> : vector<8xf32>
    %33 = vector.multi_reduction <add>, %32, %cst_12 [1] : vector<8x8xf32> to vector<8xf32>
    %34 = vector.shape_cast %33 : vector<8xf32> to vector<8x1xf32>
    %35 = tpu.reciprocal %34 {approx = true} : vector<8x1xf32> -> vector<8x1xf32>
    %36 = vector.broadcast %35 : vector<8x1xf32> to vector<8x8xf32>
    %37 = arith.mulf %32, %36 : vector<8x8xf32>
    %cst_13 = arith.constant dense<0.000000e+00> : vector<8x32xf32>
    %38 = tpu.matmul %37, %24, %cst_13 {dimension_numbers = #tpu.dot_dimension_numbers<[1], [0], [0], [1], [0, 0, 1, 1], [], []>} : vector<8x8xf32>, vector<8x32xf32>, vector<8x32xf32> -> vector<8x32xf32>
    %39 = arith.addf %13, %38 : vector<8x32xf32>
    %c8_i32_14 = arith.constant 8 : i32
    %40 = vector.broadcast %c8_i32_14 : i32 to vector<8x32xi32>
    %41 = arith.cmpi sge, %9, %40 : vector<8x32xi32>
    %c16_i32 = arith.constant 16 : i32
    %42 = vector.broadcast %c16_i32 : i32 to vector<8x32xi32>
    %43 = arith.cmpi slt, %9, %42 : vector<8x32xi32>
    %44 = arith.andi %41, %43 : vector<8x32xi1>
    %cst_15 = arith.constant 0.000000e+00 : f32
    %45 = vector.broadcast %cst_15 : f32 to vector<8x32xf32>
    %46 = arith.select %44, %10, %45 : vector<8x32xi1>, vector<8x32xf32>
    %cst_16 = arith.constant 0.000000e+00 : f32
    %47 = vector.broadcast %cst_16 : f32 to vector<8x32xf32>
    %48 = arith.select %44, %11, %47 : vector<8x32xi1>, vector<8x32xf32>
    %cst_17 = arith.constant 0.000000e+00 : f32
    %49 = vector.broadcast %cst_17 : f32 to vector<8x32xf32>
    %50 = arith.select %44, %12, %49 : vector<8x32xi1>, vector<8x32xf32>
    %cst_18 = arith.constant dense<0.000000e+00> : vector<8x8xf32>
    %51 = tpu.matmul %46, %48, %cst_18 {dimension_numbers = #tpu.dot_dimension_numbers<[1], [1], [0], [0], [0, 0, 1, 0], [], []>} : vector<8x32xf32>, vector<8x32xf32>, vector<8x8xf32> -> vector<8x8xf32>
    %cst_19 = arith.constant 0.353553385 : f32
    %52 = vector.broadcast %cst_19 : f32 to vector<8x8xf32>
    %53 = arith.mulf %51, %52 : vector<8x8xf32>
    %cst_20 = arith.constant dense<0xFF800000> : vector<8xf32>
    %54 = vector.multi_reduction <maximumf>, %53, %cst_20 [1] : vector<8x8xf32> to vector<8xf32>
    %55 = vector.shape_cast %54 : vector<8xf32> to vector<8x1xf32>
    %56 = vector.broadcast %55 : vector<8x1xf32> to vector<8x8xf32>
    %57 = arith.subf %53, %56 : vector<8x8xf32>
    %58 = math.exp %57 : vector<8x8xf32>
    %cst_21 = arith.constant dense<0.000000e+00> : vector<8xf32>
    %59 = vector.multi_reduction <add>, %58, %cst_21 [1] : vector<8x8xf32> to vector<8xf32>
    %60 = vector.shape_cast %59 : vector<8xf32> to vector<8x1xf32>
    %61 = tpu.reciprocal %60 {approx = true} : vector<8x1xf32> -> vector<8x1xf32>
    %62 = vector.broadcast %61 : vector<8x1xf32> to vector<8x8xf32>
    %63 = arith.mulf %58, %62 : vector<8x8xf32>
    %cst_22 = arith.constant dense<0.000000e+00> : vector<8x32xf32>
    %64 = tpu.matmul %63, %50, %cst_22 {dimension_numbers = #tpu.dot_dimension_numbers<[1], [0], [0], [1], [0, 0, 1, 1], [], []>} : vector<8x8xf32>, vector<8x32xf32>, vector<8x32xf32> -> vector<8x32xf32>
    %65 = arith.addf %39, %64 : vector<8x32xf32>
    %c16_i32_23 = arith.constant 16 : i32
    %66 = vector.broadcast %c16_i32_23 : i32 to vector<8x32xi32>
    %67 = arith.cmpi sge, %9, %66 : vector<8x32xi32>
    %c24_i32 = arith.constant 24 : i32
    %68 = vector.broadcast %c24_i32 : i32 to vector<8x32xi32>
    %69 = arith.cmpi slt, %9, %68 : vector<8x32xi32>
    %70 = arith.andi %67, %69 : vector<8x32xi1>
    %cst_24 = arith.constant 0.000000e+00 : f32
    %71 = vector.broadcast %cst_24 : f32 to vector<8x32xf32>
    %72 = arith.select %70, %10, %71 : vector<8x32xi1>, vector<8x32xf32>
    %cst_25 = arith.constant 0.000000e+00 : f32
    %73 = vector.broadcast %cst_25 : f32 to vector<8x32xf32>
    %74 = arith.select %70, %11, %73 : vector<8x32xi1>, vector<8x32xf32>
    %cst_26 = arith.constant 0.000000e+00 : f32
    %75 = vector.broadcast %cst_26 : f32 to vector<8x32xf32>
    %76 = arith.select %70, %12, %75 : vector<8x32xi1>, vector<8x32xf32>
    %cst_27 = arith.constant dense<0.000000e+00> : vector<8x8xf32>
    %77 = tpu.matmul %72, %74, %cst_27 {dimension_numbers = #tpu.dot_dimension_numbers<[1], [1], [0], [0], [0, 0, 1, 0], [], []>} : vector<8x32xf32>, vector<8x32xf32>, vector<8x8xf32> -> vector<8x8xf32>
    %cst_28 = arith.constant 0.353553385 : f32
    %78 = vector.broadcast %cst_28 : f32 to vector<8x8xf32>
    %79 = arith.mulf %77, %78 : vector<8x8xf32>
    %cst_29 = arith.constant dense<0xFF800000> : vector<8xf32>
    %80 = vector.multi_reduction <maximumf>, %79, %cst_29 [1] : vector<8x8xf32> to vector<8xf32>
    %81 = vector.shape_cast %80 : vector<8xf32> to vector<8x1xf32>
    %82 = vector.broadcast %81 : vector<8x1xf32> to vector<8x8xf32>
    %83 = arith.subf %79, %82 : vector<8x8xf32>
    %84 = math.exp %83 : vector<8x8xf32>
    %cst_30 = arith.constant dense<0.000000e+00> : vector<8xf32>
    %85 = vector.multi_reduction <add>, %84, %cst_30 [1] : vector<8x8xf32> to vector<8xf32>
    %86 = vector.shape_cast %85 : vector<8xf32> to vector<8x1xf32>
    %87 = tpu.reciprocal %86 {approx = true} : vector<8x1xf32> -> vector<8x1xf32>
    %88 = vector.broadcast %87 : vector<8x1xf32> to vector<8x8xf32>
    %89 = arith.mulf %84, %88 : vector<8x8xf32>
    %cst_31 = arith.constant dense<0.000000e+00> : vector<8x32xf32>
    %90 = tpu.matmul %89, %76, %cst_31 {dimension_numbers = #tpu.dot_dimension_numbers<[1], [0], [0], [1], [0, 0, 1, 1], [], []>} : vector<8x8xf32>, vector<8x32xf32>, vector<8x32xf32> -> vector<8x32xf32>
    %91 = arith.addf %65, %90 : vector<8x32xf32>
    %c24_i32_32 = arith.constant 24 : i32
    %92 = vector.broadcast %c24_i32_32 : i32 to vector<8x32xi32>
    %93 = arith.cmpi sge, %9, %92 : vector<8x32xi32>
    %c32_i32 = arith.constant 32 : i32
    %94 = vector.broadcast %c32_i32 : i32 to vector<8x32xi32>
    %95 = arith.cmpi slt, %9, %94 : vector<8x32xi32>
    %96 = arith.andi %93, %95 : vector<8x32xi1>
    %cst_33 = arith.constant 0.000000e+00 : f32
    %97 = vector.broadcast %cst_33 : f32 to vector<8x32xf32>
    %98 = arith.select %96, %10, %97 : vector<8x32xi1>, vector<8x32xf32>
    %cst_34 = arith.constant 0.000000e+00 : f32
    %99 = vector.broadcast %cst_34 : f32 to vector<8x32xf32>
    %100 = arith.select %96, %11, %99 : vector<8x32xi1>, vector<8x32xf32>
    %cst_35 = arith.constant 0.000000e+00 : f32
    %101 = vector.broadcast %cst_35 : f32 to vector<8x32xf32>
    %102 = arith.select %96, %12, %101 : vector<8x32xi1>, vector<8x32xf32>
    %cst_36 = arith.constant dense<0.000000e+00> : vector<8x8xf32>
    %103 = tpu.matmul %98, %100, %cst_36 {dimension_numbers = #tpu.dot_dimension_numbers<[1], [1], [0], [0], [0, 0, 1, 0], [], []>} : vector<8x32xf32>, vector<8x32xf32>, vector<8x8xf32> -> vector<8x8xf32>
    %cst_37 = arith.constant 0.353553385 : f32
    %104 = vector.broadcast %cst_37 : f32 to vector<8x8xf32>
    %105 = arith.mulf %103, %104 : vector<8x8xf32>
    %cst_38 = arith.constant dense<0xFF800000> : vector<8xf32>
    %106 = vector.multi_reduction <maximumf>, %105, %cst_38 [1] : vector<8x8xf32> to vector<8xf32>
    %107 = vector.shape_cast %106 : vector<8xf32> to vector<8x1xf32>
    %108 = vector.broadcast %107 : vector<8x1xf32> to vector<8x8xf32>
    %109 = arith.subf %105, %108 : vector<8x8xf32>
    %110 = math.exp %109 : vector<8x8xf32>
    %cst_39 = arith.constant dense<0.000000e+00> : vector<8xf32>
    %111 = vector.multi_reduction <add>, %110, %cst_39 [1] : vector<8x8xf32> to vector<8xf32>
    %112 = vector.shape_cast %111 : vector<8xf32> to vector<8x1xf32>
    %113 = tpu.reciprocal %112 {approx = true} : vector<8x1xf32> -> vector<8x1xf32>
    %114 = vector.broadcast %113 : vector<8x1xf32> to vector<8x8xf32>
    %115 = arith.mulf %110, %114 : vector<8x8xf32>
    %cst_40 = arith.constant dense<0.000000e+00> : vector<8x32xf32>
    %116 = tpu.matmul %115, %102, %cst_40 {dimension_numbers = #tpu.dot_dimension_numbers<[1], [0], [0], [1], [0, 0, 1, 1], [], []>} : vector<8x8xf32>, vector<8x32xf32>, vector<8x32xf32> -> vector<8x32xf32>
    %117 = arith.addf %91, %116 : vector<8x32xf32>
    %118 = vector.extract_strided_slice %6 {offsets = [8, 0], sizes = [8, 32], strides = [1, 1]} : vector<16x32xf32> to vector<8x32xf32>
    %119 = vector.extract_strided_slice %7 {offsets = [8, 0], sizes = [8, 32], strides = [1, 1]} : vector<16x32xf32> to vector<8x32xf32>
    %120 = vector.extract_strided_slice %8 {offsets = [8, 0], sizes = [8, 32], strides = [1, 1]} : vector<16x32xf32> to vector<8x32xf32>
    %cst_41 = arith.constant 0.000000e+00 : f32
    %121 = vector.broadcast %cst_41 : f32 to vector<8x32xf32>
    %c0_i32_42 = arith.constant 0 : i32
    %122 = vector.broadcast %c0_i32_42 : i32 to vector<8x32xi32>
    %123 = arith.cmpi sge, %9, %122 : vector<8x32xi32>
    %c8_i32_43 = arith.constant 8 : i32
    %124 = vector.broadcast %c8_i32_43 : i32 to vector<8x32xi32>
    %125 = arith.cmpi slt, %9, %124 : vector<8x32xi32>
    %126 = arith.andi %123, %125 : vector<8x32xi1>
    %cst_44 = arith.constant 0.000000e+00 : f32
    %127 = vector.broadcast %cst_44 : f32 to vector<8x32xf32>
    %128 = arith.select %126, %118, %127 : vector<8x32xi1>, vector<8x32xf32>
    %cst_45 = arith.constant 0.000000e+00 : f32
    %129 = vector.broadcast %cst_45 : f32 to vector<8x32xf32>
    %130 = arith.select %126, %119, %129 : vector<8x32xi1>, vector<8x32xf32>
    %cst_46 = arith.constant 0.000000e+00 : f32
    %131 = vector.broadcast %cst_46 : f32 to vector<8x32xf32>
    %132 = arith.select %126, %120, %131 : vector<8x32xi1>, vector<8x32xf32>
    %cst_47 = arith.constant dense<0.000000e+00> : vector<8x8xf32>
    %133 = tpu.matmul %128, %130, %cst_47 {dimension_numbers = #tpu.dot_dimension_numbers<[1], [1], [0], [0], [0, 0, 1, 0], [], []>} : vector<8x32xf32>, vector<8x32xf32>, vector<8x8xf32> -> vector<8x8xf32>
    %cst_48 = arith.constant 0.353553385 : f32
    %134 = vector.broadcast %cst_48 : f32 to vector<8x8xf32>
    %135 = arith.mulf %133, %134 : vector<8x8xf32>
    %cst_49 = arith.constant dense<0xFF800000> : vector<8xf32>
    %136 = vector.multi_reduction <maximumf>, %135, %cst_49 [1] : vector<8x8xf32> to vector<8xf32>
    %137 = vector.shape_cast %136 : vector<8xf32> to vector<8x1xf32>
    %138 = vector.broadcast %137 : vector<8x1xf32> to vector<8x8xf32>
    %139 = arith.subf %135, %138 : vector<8x8xf32>
    %140 = math.exp %139 : vector<8x8xf32>
    %cst_50 = arith.constant dense<0.000000e+00> : vector<8xf32>
    %141 = vector.multi_reduction <add>, %140, %cst_50 [1] : vector<8x8xf32> to vector<8xf32>
    %142 = vector.shape_cast %141 : vector<8xf32> to vector<8x1xf32>
    %143 = tpu.reciprocal %142 {approx = true} : vector<8x1xf32> -> vector<8x1xf32>
    %144 = vector.broadcast %143 : vector<8x1xf32> to vector<8x8xf32>
    %145 = arith.mulf %140, %144 : vector<8x8xf32>
    %cst_51 = arith.constant dense<0.000000e+00> : vector<8x32xf32>
    %146 = tpu.matmul %145, %132, %cst_51 {dimension_numbers = #tpu.dot_dimension_numbers<[1], [0], [0], [1], [0, 0, 1, 1], [], []>} : vector<8x8xf32>, vector<8x32xf32>, vector<8x32xf32> -> vector<8x32xf32>
    %147 = arith.addf %121, %146 : vector<8x32xf32>
    %c8_i32_52 = arith.constant 8 : i32
    %148 = vector.broadcast %c8_i32_52 : i32 to vector<8x32xi32>
    %149 = arith.cmpi sge, %9, %148 : vector<8x32xi32>
    %c16_i32_53 = arith.constant 16 : i32
    %150 = vector.broadcast %c16_i32_53 : i32 to vector<8x32xi32>
    %151 = arith.cmpi slt, %9, %150 : vector<8x32xi32>
    %152 = arith.andi %149, %151 : vector<8x32xi1>
    %cst_54 = arith.constant 0.000000e+00 : f32
    %153 = vector.broadcast %cst_54 : f32 to vector<8x32xf32>
    %154 = arith.select %152, %118, %153 : vector<8x32xi1>, vector<8x32xf32>
    %cst_55 = arith.constant 0.000000e+00 : f32
    %155 = vector.broadcast %cst_55 : f32 to vector<8x32xf32>
    %156 = arith.select %152, %119, %155 : vector<8x32xi1>, vector<8x32xf32>
    %cst_56 = arith.constant 0.000000e+00 : f32
    %157 = vector.broadcast %cst_56 : f32 to vector<8x32xf32>
    %158 = arith.select %152, %120, %157 : vector<8x32xi1>, vector<8x32xf32>
    %cst_57 = arith.constant dense<0.000000e+00> : vector<8x8xf32>
    %159 = tpu.matmul %154, %156, %cst_57 {dimension_numbers = #tpu.dot_dimension_numbers<[1], [1], [0], [0], [0, 0, 1, 0], [], []>} : vector<8x32xf32>, vector<8x32xf32>, vector<8x8xf32> -> vector<8x8xf32>
    %cst_58 = arith.constant 0.353553385 : f32
    %160 = vector.broadcast %cst_58 : f32 to vector<8x8xf32>
    %161 = arith.mulf %159, %160 : vector<8x8xf32>
    %cst_59 = arith.constant dense<0xFF800000> : vector<8xf32>
    %162 = vector.multi_reduction <maximumf>, %161, %cst_59 [1] : vector<8x8xf32> to vector<8xf32>
    %163 = vector.shape_cast %162 : vector<8xf32> to vector<8x1xf32>
    %164 = vector.broadcast %163 : vector<8x1xf32> to vector<8x8xf32>
    %165 = arith.subf %161, %164 : vector<8x8xf32>
    %166 = math.exp %165 : vector<8x8xf32>
    %cst_60 = arith.constant dense<0.000000e+00> : vector<8xf32>
    %167 = vector.multi_reduction <add>, %166, %cst_60 [1] : vector<8x8xf32> to vector<8xf32>
    %168 = vector.shape_cast %167 : vector<8xf32> to vector<8x1xf32>
    %169 = tpu.reciprocal %168 {approx = true} : vector<8x1xf32> -> vector<8x1xf32>
    %170 = vector.broadcast %169 : vector<8x1xf32> to vector<8x8xf32>
    %171 = arith.mulf %166, %170 : vector<8x8xf32>
    %cst_61 = arith.constant dense<0.000000e+00> : vector<8x32xf32>
    %172 = tpu.matmul %171, %158, %cst_61 {dimension_numbers = #tpu.dot_dimension_numbers<[1], [0], [0], [1], [0, 0, 1, 1], [], []>} : vector<8x8xf32>, vector<8x32xf32>, vector<8x32xf32> -> vector<8x32xf32>
    %173 = arith.addf %147, %172 : vector<8x32xf32>
    %c16_i32_62 = arith.constant 16 : i32
    %174 = vector.broadcast %c16_i32_62 : i32 to vector<8x32xi32>
    %175 = arith.cmpi sge, %9, %174 : vector<8x32xi32>
    %c24_i32_63 = arith.constant 24 : i32
    %176 = vector.broadcast %c24_i32_63 : i32 to vector<8x32xi32>
    %177 = arith.cmpi slt, %9, %176 : vector<8x32xi32>
    %178 = arith.andi %175, %177 : vector<8x32xi1>
    %cst_64 = arith.constant 0.000000e+00 : f32
    %179 = vector.broadcast %cst_64 : f32 to vector<8x32xf32>
    %180 = arith.select %178, %118, %179 : vector<8x32xi1>, vector<8x32xf32>
    %cst_65 = arith.constant 0.000000e+00 : f32
    %181 = vector.broadcast %cst_65 : f32 to vector<8x32xf32>
    %182 = arith.select %178, %119, %181 : vector<8x32xi1>, vector<8x32xf32>
    %cst_66 = arith.constant 0.000000e+00 : f32
    %183 = vector.broadcast %cst_66 : f32 to vector<8x32xf32>
    %184 = arith.select %178, %120, %183 : vector<8x32xi1>, vector<8x32xf32>
    %cst_67 = arith.constant dense<0.000000e+00> : vector<8x8xf32>
    %185 = tpu.matmul %180, %182, %cst_67 {dimension_numbers = #tpu.dot_dimension_numbers<[1], [1], [0], [0], [0, 0, 1, 0], [], []>} : vector<8x32xf32>, vector<8x32xf32>, vector<8x8xf32> -> vector<8x8xf32>
    %cst_68 = arith.constant 0.353553385 : f32
    %186 = vector.broadcast %cst_68 : f32 to vector<8x8xf32>
    %187 = arith.mulf %185, %186 : vector<8x8xf32>
    %cst_69 = arith.constant dense<0xFF800000> : vector<8xf32>
    %188 = vector.multi_reduction <maximumf>, %187, %cst_69 [1] : vector<8x8xf32> to vector<8xf32>
    %189 = vector.shape_cast %188 : vector<8xf32> to vector<8x1xf32>
    %190 = vector.broadcast %189 : vector<8x1xf32> to vector<8x8xf32>
    %191 = arith.subf %187, %190 : vector<8x8xf32>
    %192 = math.exp %191 : vector<8x8xf32>
    %cst_70 = arith.constant dense<0.000000e+00> : vector<8xf32>
    %193 = vector.multi_reduction <add>, %192, %cst_70 [1] : vector<8x8xf32> to vector<8xf32>
    %194 = vector.shape_cast %193 : vector<8xf32> to vector<8x1xf32>
    %195 = tpu.reciprocal %194 {approx = true} : vector<8x1xf32> -> vector<8x1xf32>
    %196 = vector.broadcast %195 : vector<8x1xf32> to vector<8x8xf32>
    %197 = arith.mulf %192, %196 : vector<8x8xf32>
    %cst_71 = arith.constant dense<0.000000e+00> : vector<8x32xf32>
    %198 = tpu.matmul %197, %184, %cst_71 {dimension_numbers = #tpu.dot_dimension_numbers<[1], [0], [0], [1], [0, 0, 1, 1], [], []>} : vector<8x8xf32>, vector<8x32xf32>, vector<8x32xf32> -> vector<8x32xf32>
    %199 = arith.addf %173, %198 : vector<8x32xf32>
    %c24_i32_72 = arith.constant 24 : i32
    %200 = vector.broadcast %c24_i32_72 : i32 to vector<8x32xi32>
    %201 = arith.cmpi sge, %9, %200 : vector<8x32xi32>
    %c32_i32_73 = arith.constant 32 : i32
    %202 = vector.broadcast %c32_i32_73 : i32 to vector<8x32xi32>
    %203 = arith.cmpi slt, %9, %202 : vector<8x32xi32>
    %204 = arith.andi %201, %203 : vector<8x32xi1>
    %cst_74 = arith.constant 0.000000e+00 : f32
    %205 = vector.broadcast %cst_74 : f32 to vector<8x32xf32>
    %206 = arith.select %204, %118, %205 : vector<8x32xi1>, vector<8x32xf32>
    %cst_75 = arith.constant 0.000000e+00 : f32
    %207 = vector.broadcast %cst_75 : f32 to vector<8x32xf32>
    %208 = arith.select %204, %119, %207 : vector<8x32xi1>, vector<8x32xf32>
    %cst_76 = arith.constant 0.000000e+00 : f32
    %209 = vector.broadcast %cst_76 : f32 to vector<8x32xf32>
    %210 = arith.select %204, %120, %209 : vector<8x32xi1>, vector<8x32xf32>
    %cst_77 = arith.constant dense<0.000000e+00> : vector<8x8xf32>
    %211 = tpu.matmul %206, %208, %cst_77 {dimension_numbers = #tpu.dot_dimension_numbers<[1], [1], [0], [0], [0, 0, 1, 0], [], []>} : vector<8x32xf32>, vector<8x32xf32>, vector<8x8xf32> -> vector<8x8xf32>
    %cst_78 = arith.constant 0.353553385 : f32
    %212 = vector.broadcast %cst_78 : f32 to vector<8x8xf32>
    %213 = arith.mulf %211, %212 : vector<8x8xf32>
    %cst_79 = arith.constant dense<0xFF800000> : vector<8xf32>
    %214 = vector.multi_reduction <maximumf>, %213, %cst_79 [1] : vector<8x8xf32> to vector<8xf32>
    %215 = vector.shape_cast %214 : vector<8xf32> to vector<8x1xf32>
    %216 = vector.broadcast %215 : vector<8x1xf32> to vector<8x8xf32>
    %217 = arith.subf %213, %216 : vector<8x8xf32>
    %218 = math.exp %217 : vector<8x8xf32>
    %cst_80 = arith.constant dense<0.000000e+00> : vector<8xf32>
    %219 = vector.multi_reduction <add>, %218, %cst_80 [1] : vector<8x8xf32> to vector<8xf32>
    %220 = vector.shape_cast %219 : vector<8xf32> to vector<8x1xf32>
    %221 = tpu.reciprocal %220 {approx = true} : vector<8x1xf32> -> vector<8x1xf32>
    %222 = vector.broadcast %221 : vector<8x1xf32> to vector<8x8xf32>
    %223 = arith.mulf %218, %222 : vector<8x8xf32>
    %cst_81 = arith.constant dense<0.000000e+00> : vector<8x32xf32>
    %224 = tpu.matmul %223, %210, %cst_81 {dimension_numbers = #tpu.dot_dimension_numbers<[1], [0], [0], [1], [0, 0, 1, 1], [], []>} : vector<8x8xf32>, vector<8x32xf32>, vector<8x32xf32> -> vector<8x32xf32>
    %225 = arith.addf %199, %224 : vector<8x32xf32>
    %226 = tpu.concatenate %117, %225 in 0 : vector<8x32xf32>, vector<8x32xf32> -> vector<16x32xf32>
    %c0_82 = arith.constant 0 : index
    %c0_83 = arith.constant 0 : index
    %227 = vector.load %arg4[%c0_82, %c0_83] : memref<32x32xf32, #tpu.memory_space<vmem>>, vector<32x32xf32>
    %cst_84 = arith.constant dense<0.000000e+00> : vector<16x32xf32>
    %228 = tpu.matmul %226, %227, %cst_84 {dimension_numbers = #tpu.dot_dimension_numbers<[1], [0], [0], [1], [0, 0, 1, 1], [], []>} : vector<16x32xf32>, vector<32x32xf32>, vector<16x32xf32> -> vector<16x32xf32>
    %c0_85 = arith.constant 0 : index
    %c0_86 = arith.constant 0 : index
    %229 = vector.load %arg5[%c0_85, %c0_86] : memref<1x32xf32, #tpu.memory_space<vmem>>, vector<1x32xf32>
    %230 = vector.broadcast %229 : vector<1x32xf32> to vector<16x32xf32>
    %231 = arith.addf %228, %230 : vector<16x32xf32>
    %c0_87 = arith.constant 0 : index
    %c0_88 = arith.constant 0 : index
    %232 = vector.load %arg6[%c0_87, %c0_88] : memref<32x64xf32, #tpu.memory_space<vmem>>, vector<32x64xf32>
    %c0_89 = arith.constant 0 : index
    %c0_90 = arith.constant 0 : index
    %233 = vector.load %arg7[%c0_89, %c0_90] : memref<1x64xf32, #tpu.memory_space<vmem>>, vector<1x64xf32>
    %cst_91 = arith.constant dense<0.000000e+00> : vector<16x64xf32>
    %234 = tpu.matmul %231, %232, %cst_91 {dimension_numbers = #tpu.dot_dimension_numbers<[1], [0], [0], [1], [0, 0, 1, 1], [], []>} : vector<16x32xf32>, vector<32x64xf32>, vector<16x64xf32> -> vector<16x64xf32>
    %235 = vector.broadcast %233 : vector<1x64xf32> to vector<16x64xf32>
    %236 = arith.addf %234, %235 : vector<16x64xf32>
    %237 = vector.extract_strided_slice %236 {offsets = [0, 0], sizes = [16, 32], strides = [1, 1]} : vector<16x64xf32> to vector<16x32xf32>
    %238 = vector.extract_strided_slice %236 {offsets = [0, 32], sizes = [16, 32], strides = [1, 1]} : vector<16x64xf32> to vector<16x32xf32>
    %239 = arith.negf %238 : vector<16x32xf32>
    %240 = math.exp %239 : vector<16x32xf32>
    %cst_92 = arith.constant 1.000000e+00 : f32
    %241 = vector.broadcast %cst_92 : f32 to vector<16x32xf32>
    %242 = arith.addf %241, %240 : vector<16x32xf32>
    %243 = arith.divf %241, %242 : vector<16x32xf32>
    %244 = arith.mulf %237, %243 : vector<16x32xf32>
    %245 = arith.addf %244, %0 : vector<16x32xf32>
    %c0_93 = arith.constant 0 : index
    %c0_94 = arith.constant 0 : index
    %246 = vector.load %arg8[%c0_93, %c0_94] : memref<1x32xf32, #tpu.memory_space<vmem>>, vector<1x32xf32>
    %c0_95 = arith.constant 0 : index
    %c0_96 = arith.constant 0 : index
    %247 = vector.load %arg9[%c0_95, %c0_96] : memref<1x32xf32, #tpu.memory_space<vmem>>, vector<1x32xf32>
    %cst_97 = arith.constant dense<0.000000e+00> : vector<16xf32>
    %248 = vector.multi_reduction <add>, %245, %cst_97 [1] : vector<16x32xf32> to vector<16xf32>
    %249 = vector.shape_cast %248 : vector<16xf32> to vector<16x1xf32>
    %cst_98 = arith.constant 3.200000e+01 : f32
    %250 = vector.broadcast %cst_98 : f32 to vector<16x1xf32>
    %251 = arith.divf %249, %250 : vector<16x1xf32>
    %252 = vector.broadcast %251 : vector<16x1xf32> to vector<16x32xf32>
    %253 = arith.subf %245, %252 : vector<16x32xf32>
    %254 = arith.mulf %253, %253 : vector<16x32xf32>
    %cst_99 = arith.constant dense<0.000000e+00> : vector<16xf32>
    %255 = vector.multi_reduction <add>, %254, %cst_99 [1] : vector<16x32xf32> to vector<16xf32>
    %256 = vector.shape_cast %255 : vector<16xf32> to vector<16x1xf32>
    %cst_100 = arith.constant 3.200000e+01 : f32
    %257 = vector.broadcast %cst_100 : f32 to vector<16x1xf32>
    %258 = arith.divf %256, %257 : vector<16x1xf32>
    %cst_101 = arith.constant 9.99999974E-6 : f32
    %259 = vector.broadcast %cst_101 : f32 to vector<16x1xf32>
    %260 = arith.addf %258, %259 : vector<16x1xf32>
    %261 = math.rsqrt %260 : vector<16x1xf32>
    %262 = vector.broadcast %261 : vector<16x1xf32> to vector<16x32xf32>
    %263 = arith.mulf %253, %262 : vector<16x32xf32>
    %264 = vector.broadcast %246 : vector<1x32xf32> to vector<16x32xf32>
    %265 = arith.mulf %263, %264 : vector<16x32xf32>
    %266 = vector.broadcast %247 : vector<1x32xf32> to vector<16x32xf32>
    %267 = arith.addf %265, %266 : vector<16x32xf32>
    %c0_102 = arith.constant 0 : index
    %c0_103 = arith.constant 0 : index
    %268 = vector.load %arg10[%c0_102, %c0_103] : memref<32x32xf32, #tpu.memory_space<vmem>>, vector<32x32xf32>
    %cst_104 = arith.constant dense<0.000000e+00> : vector<16x32xf32>
    %269 = tpu.matmul %267, %268, %cst_104 {dimension_numbers = #tpu.dot_dimension_numbers<[1], [0], [0], [1], [0, 0, 1, 1], [], []>} : vector<16x32xf32>, vector<32x32xf32>, vector<16x32xf32> -> vector<16x32xf32>
    %c0_105 = arith.constant 0 : index
    %c0_106 = arith.constant 0 : index
    %270 = vector.load %arg11[%c0_105, %c0_106] : memref<1x32xf32, #tpu.memory_space<vmem>>, vector<1x32xf32>
    %271 = vector.broadcast %270 : vector<1x32xf32> to vector<16x32xf32>
    %272 = arith.addf %269, %271 : vector<16x32xf32>
    %cst_107 = arith.constant 0.000000e+00 : f32
    %273 = vector.broadcast %cst_107 : f32 to vector<16x32xf32>
    %274 = arith.maximumf %272, %273 : vector<16x32xf32>
    %c0_108 = arith.constant 0 : index
    %c0_109 = arith.constant 0 : index
    %275 = vector.load %arg12[%c0_108, %c0_109] : memref<32x32xf32, #tpu.memory_space<vmem>>, vector<32x32xf32>
    %cst_110 = arith.constant dense<0.000000e+00> : vector<16x32xf32>
    %276 = tpu.matmul %274, %275, %cst_110 {dimension_numbers = #tpu.dot_dimension_numbers<[1], [0], [0], [1], [0, 0, 1, 1], [], []>} : vector<16x32xf32>, vector<32x32xf32>, vector<16x32xf32> -> vector<16x32xf32>
    %c0_111 = arith.constant 0 : index
    %c0_112 = arith.constant 0 : index
    %277 = vector.load %arg13[%c0_111, %c0_112] : memref<1x32xf32, #tpu.memory_space<vmem>>, vector<1x32xf32>
    %278 = vector.broadcast %277 : vector<1x32xf32> to vector<16x32xf32>
    %279 = arith.addf %276, %278 : vector<16x32xf32>
    %c0_113 = arith.constant 0 : index
    %c0_114 = arith.constant 0 : index
    %280 = vector.load %arg14[%c0_113, %c0_114] : memref<32x64xf32, #tpu.memory_space<vmem>>, vector<32x64xf32>
    %c0_115 = arith.constant 0 : index
    %c0_116 = arith.constant 0 : index
    %281 = vector.load %arg15[%c0_115, %c0_116] : memref<1x64xf32, #tpu.memory_space<vmem>>, vector<1x64xf32>
    %cst_117 = arith.constant dense<0.000000e+00> : vector<16x64xf32>
    %282 = tpu.matmul %279, %280, %cst_117 {dimension_numbers = #tpu.dot_dimension_numbers<[1], [0], [0], [1], [0, 0, 1, 1], [], []>} : vector<16x32xf32>, vector<32x64xf32>, vector<16x64xf32> -> vector<16x64xf32>
    %283 = vector.broadcast %281 : vector<1x64xf32> to vector<16x64xf32>
    %284 = arith.addf %282, %283 : vector<16x64xf32>
    %285 = vector.extract_strided_slice %284 {offsets = [0, 0], sizes = [16, 32], strides = [1, 1]} : vector<16x64xf32> to vector<16x32xf32>
    %286 = vector.extract_strided_slice %284 {offsets = [0, 32], sizes = [16, 32], strides = [1, 1]} : vector<16x64xf32> to vector<16x32xf32>
    %287 = arith.negf %286 : vector<16x32xf32>
    %288 = math.exp %287 : vector<16x32xf32>
    %cst_118 = arith.constant 1.000000e+00 : f32
    %289 = vector.broadcast %cst_118 : f32 to vector<16x32xf32>
    %290 = arith.addf %289, %288 : vector<16x32xf32>
    %291 = arith.divf %289, %290 : vector<16x32xf32>
    %292 = arith.mulf %285, %291 : vector<16x32xf32>
    %293 = arith.addf %292, %267 : vector<16x32xf32>
    %c0_119 = arith.constant 0 : index
    %c0_120 = arith.constant 0 : index
    %294 = vector.load %arg16[%c0_119, %c0_120] : memref<1x32xf32, #tpu.memory_space<vmem>>, vector<1x32xf32>
    %c0_121 = arith.constant 0 : index
    %c0_122 = arith.constant 0 : index
    %295 = vector.load %arg17[%c0_121, %c0_122] : memref<1x32xf32, #tpu.memory_space<vmem>>, vector<1x32xf32>
    %cst_123 = arith.constant dense<0.000000e+00> : vector<16xf32>
    %296 = vector.multi_reduction <add>, %293, %cst_123 [1] : vector<16x32xf32> to vector<16xf32>
    %297 = vector.shape_cast %296 : vector<16xf32> to vector<16x1xf32>
    %cst_124 = arith.constant 3.200000e+01 : f32
    %298 = vector.broadcast %cst_124 : f32 to vector<16x1xf32>
    %299 = arith.divf %297, %298 : vector<16x1xf32>
    %300 = vector.broadcast %299 : vector<16x1xf32> to vector<16x32xf32>
    %301 = arith.subf %293, %300 : vector<16x32xf32>
    %302 = arith.mulf %301, %301 : vector<16x32xf32>
    %cst_125 = arith.constant dense<0.000000e+00> : vector<16xf32>
    %303 = vector.multi_reduction <add>, %302, %cst_125 [1] : vector<16x32xf32> to vector<16xf32>
    %304 = vector.shape_cast %303 : vector<16xf32> to vector<16x1xf32>
    %cst_126 = arith.constant 3.200000e+01 : f32
    %305 = vector.broadcast %cst_126 : f32 to vector<16x1xf32>
    %306 = arith.divf %304, %305 : vector<16x1xf32>
    %cst_127 = arith.constant 9.99999974E-6 : f32
    %307 = vector.broadcast %cst_127 : f32 to vector<16x1xf32>
    %308 = arith.addf %306, %307 : vector<16x1xf32>
    %309 = math.rsqrt %308 : vector<16x1xf32>
    %310 = vector.broadcast %309 : vector<16x1xf32> to vector<16x32xf32>
    %311 = arith.mulf %301, %310 : vector<16x32xf32>
    %312 = vector.broadcast %294 : vector<1x32xf32> to vector<16x32xf32>
    %313 = arith.mulf %311, %312 : vector<16x32xf32>
    %314 = vector.broadcast %295 : vector<1x32xf32> to vector<16x32xf32>
    %315 = arith.addf %313, %314 : vector<16x32xf32>
    %c0_128 = arith.constant 0 : index
    %c0_129 = arith.constant 0 : index
    %316 = vector.load %arg18[%c0_128, %c0_129] : memref<16x32xf32, #tpu.memory_space<vmem>>, vector<16x32xf32>
    tpu.vector_store %arg18[%c0_128, %c0_129], %315 {strides = array<i32>} : memref<16x32xf32, #tpu.memory_space<vmem>>, vector<16x32xf32>,
    return
  }
  func.func @transform_0(%arg0: i32) -> (i32, i32) {
    %c0_i32 = arith.constant 0 : i32
    %c0_i32_0 = arith.constant 0 : i32
    %c0_i32_1 = arith.constant 0 : i32
    return %c0_i32, %c0_i32_0 : i32, i32
  }
  func.func @transform_1(%arg0: i32) -> (i32, i32) {
    %c0_i32 = arith.constant 0 : i32
    %c0_i32_0 = arith.constant 0 : i32
    %c0_i32_1 = arith.constant 0 : i32
    return %c0_i32, %c0_i32_0 : i32, i32
  }
  func.func @transform_2(%arg0: i32) -> (i32, i32) {
    %c0_i32 = arith.constant 0 : i32
    %c0_i32_0 = arith.constant 0 : i32
    %c0_i32_1 = arith.constant 0 : i32
    return %c0_i32, %c0_i32_0 : i32, i32
  }
  func.func @transform_3(%arg0: i32) -> (i32, i32) {
    %c0_i32 = arith.constant 0 : i32
    %c0_i32_0 = arith.constant 0 : i32
    %c0_i32_1 = arith.constant 0 : i32
    return %c0_i32, %c0_i32_0 : i32, i32
  }
  func.func @transform_4(%arg0: i32) -> (i32, i32) {
    %c0_i32 = arith.constant 0 : i32
    %c0_i32_0 = arith.constant 0 : i32
    %c0_i32_1 = arith.constant 0 : i32
    return %c0_i32, %c0_i32_0 : i32, i32
  }
  func.func @transform_5(%arg0: i32) -> (i32, i32) {
    %c0_i32 = arith.constant 0 : i32
    %c0_i32_0 = arith.constant 0 : i32
    %c0_i32_1 = arith.constant 0 : i32
    return %c0_i32, %c0_i32_0 : i32, i32
  }
  func.func @transform_6(%arg0: i32) -> (i32, i32) {
    %c0_i32 = arith.constant 0 : i32
    %c0_i32_0 = arith.constant 0 : i32
    %c0_i32_1 = arith.constant 0 : i32
    return %c0_i32, %c0_i32_0 : i32, i32
  }
  func.func @transform_7(%arg0: i32) -> (i32, i32) {
    %c0_i32 = arith.constant 0 : i32
    %c0_i32_0 = arith.constant 0 : i32
    %c0_i32_1 = arith.constant 0 : i32
    return %c0_i32, %c0_i32_0 : i32, i32
  }
  func.func @transform_8(%arg0: i32) -> (i32, i32) {
    %c0_i32 = arith.constant 0 : i32
    %c0_i32_0 = arith.constant 0 : i32
    %c0_i32_1 = arith.constant 0 : i32
    return %c0_i32, %c0_i32_0 : i32, i32
  }
  func.func @transform_9(%arg0: i32) -> (i32, i32) {
    %c0_i32 = arith.constant 0 : i32
    %c0_i32_0 = arith.constant 0 : i32
    %c0_i32_1 = arith.constant 0 : i32
    return %c0_i32, %c0_i32_0 : i32, i32
  }
  func.func @transform_10(%arg0: i32) -> (i32, i32) {
    %c0_i32 = arith.constant 0 : i32
    %c0_i32_0 = arith.constant 0 : i32
    %c0_i32_1 = arith.constant 0 : i32
    return %c0_i32, %c0_i32_0 : i32, i32
  }
  func.func @transform_11(%arg0: i32) -> (i32, i32) {
    %c0_i32 = arith.constant 0 : i32
    %c0_i32_0 = arith.constant 0 : i32
    %c0_i32_1 = arith.constant 0 : i32
    return %c0_i32, %c0_i32_0 : i32, i32
  }
  func.func @transform_12(%arg0: i32) -> (i32, i32) {
    %c0_i32 = arith.constant 0 : i32
    %c0_i32_0 = arith.constant 0 : i32
    %c0_i32_1 = arith.constant 0 : i32
    return %c0_i32, %c0_i32_0 : i32, i32
  }
  func.func @transform_13(%arg0: i32) -> (i32, i32) {
    %c0_i32 = arith.constant 0 : i32
    %c0_i32_0 = arith.constant 0 : i32
    %c0_i32_1 = arith.constant 0 : i32
    return %c0_i32, %c0_i32_0 : i32, i32
  }
  func.func @transform_14(%arg0: i32) -> (i32, i32) {
    %c0_i32 = arith.constant 0 : i32
    %c0_i32_0 = arith.constant 0 : i32
    %c0_i32_1 = arith.constant 0 : i32
    return %c0_i32, %c0_i32_0 : i32, i32
  }
  func.func @transform_15(%arg0: i32) -> (i32, i32) {
    %c0_i32 = arith.constant 0 : i32
    %c0_i32_0 = arith.constant 0 : i32
    %c0_i32_1 = arith.constant 0 : i32
    return %c0_i32, %c0_i32_0 : i32, i32
  }
  func.func @transform_16(%arg0: i32) -> (i32, i32) {
    %c0_i32 = arith.constant 0 : i32
    %c0_i32_0 = arith.constant 0 : i32
    %c0_i32_1 = arith.constant 0 : i32
    return %c0_i32, %c0_i32_0 : i32, i32
  }
  func.func @transform_17(%arg0: i32) -> (i32, i32) {
    %c0_i32 = arith.constant 0 : i32
    %c0_i32_0 = arith.constant 0 : i32
    %c0_i32_1 = arith.constant 0 : i32
    return %c0_i32, %c0_i32_0 : i32, i32
  }
}

module attributes {stable_mosaic.version = 11 : i64} {
  func.func @_decoder_head_kernel(%arg0: i32, %arg1: memref<8x32xf32, #tpu.memory_space<vmem>>, %arg2: memref<32x32xf32, #tpu.memory_space<vmem>>, %arg3: memref<1x32xf32, #tpu.memory_space<vmem>>, %arg4: memref<32x32xf32, #tpu.memory_space<vmem>>, %arg5: memref<1x32xf32, #tpu.memory_space<vmem>>, %arg6: memref<1x32xf32, #tpu.memory_space<vmem>>, %arg7: memref<1x32xf32, #tpu.memory_space<vmem>>, %arg8: memref<32x8xf32, #tpu.memory_space<vmem>>, %arg9: memref<1x8xf32, #tpu.memory_space<vmem>>, %arg10: memref<8x8xf32, #tpu.memory_space<vmem>>, %arg11: memref<8x8xf32, #tpu.memory_space<vmem>>) attributes {dimension_semantics = [#tpu.dimension_semantics<arbitrary>], iteration_bounds = array<i64: 1>, scalar_prefetch = 0 : i64, scratch_operands = 0 : i64, tpu.core_type = #tpu.core_type<tc>, window_params = [{pipeline_mode = #tpu.pipeline_mode<synchronous>, transform_indices = @transform_0, window_bounds = array<i64: 8, 32>}, {pipeline_mode = #tpu.pipeline_mode<synchronous>, transform_indices = @transform_1, window_bounds = array<i64: 32, 32>}, {pipeline_mode = #tpu.pipeline_mode<synchronous>, transform_indices = @transform_2, window_bounds = array<i64: 1, 32>}, {pipeline_mode = #tpu.pipeline_mode<synchronous>, transform_indices = @transform_3, window_bounds = array<i64: 32, 32>}, {pipeline_mode = #tpu.pipeline_mode<synchronous>, transform_indices = @transform_4, window_bounds = array<i64: 1, 32>}, {pipeline_mode = #tpu.pipeline_mode<synchronous>, transform_indices = @transform_5, window_bounds = array<i64: 1, 32>}, {pipeline_mode = #tpu.pipeline_mode<synchronous>, transform_indices = @transform_6, window_bounds = array<i64: 1, 32>}, {pipeline_mode = #tpu.pipeline_mode<synchronous>, transform_indices = @transform_7, window_bounds = array<i64: 32, 8>}, {pipeline_mode = #tpu.pipeline_mode<synchronous>, transform_indices = @transform_8, window_bounds = array<i64: 1, 8>}, {pipeline_mode = #tpu.pipeline_mode<synchronous>, transform_indices = @transform_9, window_bounds = array<i64: 8, 8>}, {pipeline_mode = #tpu.pipeline_mode<synchronous>, transform_indices = @transform_10, window_bounds = array<i64: 8, 8>}]} {
    %c0 = arith.constant 0 : index
    %c0_0 = arith.constant 0 : index
    %0 = vector.load %arg1[%c0, %c0_0] : memref<8x32xf32, #tpu.memory_space<vmem>>, vector<8x32xf32>
    %c0_1 = arith.constant 0 : index
    %c0_2 = arith.constant 0 : index
    %1 = vector.load %arg2[%c0_1, %c0_2] : memref<32x32xf32, #tpu.memory_space<vmem>>, vector<32x32xf32>
    %cst = arith.constant dense<0.000000e+00> : vector<8x32xf32>
    %2 = tpu.matmul %0, %1, %cst {dimension_numbers = #tpu.dot_dimension_numbers<[1], [0], [0], [1], [0, 0, 1, 1], [], []>} : vector<8x32xf32>, vector<32x32xf32>, vector<8x32xf32> -> vector<8x32xf32>
    %c0_3 = arith.constant 0 : index
    %c0_4 = arith.constant 0 : index
    %3 = vector.load %arg3[%c0_3, %c0_4] : memref<1x32xf32, #tpu.memory_space<vmem>>, vector<1x32xf32>
    %4 = vector.broadcast %3 : vector<1x32xf32> to vector<8x32xf32>
    %5 = arith.addf %2, %4 : vector<8x32xf32>
    %c0_5 = arith.constant 0 : index
    %c0_6 = arith.constant 0 : index
    %6 = vector.load %arg4[%c0_5, %c0_6] : memref<32x32xf32, #tpu.memory_space<vmem>>, vector<32x32xf32>
    %cst_7 = arith.constant dense<0.000000e+00> : vector<8x32xf32>
    %7 = tpu.matmul %0, %6, %cst_7 {dimension_numbers = #tpu.dot_dimension_numbers<[1], [0], [0], [1], [0, 0, 1, 1], [], []>} : vector<8x32xf32>, vector<32x32xf32>, vector<8x32xf32> -> vector<8x32xf32>
    %c0_8 = arith.constant 0 : index
    %c0_9 = arith.constant 0 : index
    %8 = vector.load %arg5[%c0_8, %c0_9] : memref<1x32xf32, #tpu.memory_space<vmem>>, vector<1x32xf32>
    %9 = vector.broadcast %8 : vector<1x32xf32> to vector<8x32xf32>
    %10 = arith.addf %7, %9 : vector<8x32xf32>
    %11 = arith.negf %10 : vector<8x32xf32>
    %12 = math.exp %11 : vector<8x32xf32>
    %cst_10 = arith.constant 1.000000e+00 : f32
    %13 = vector.broadcast %cst_10 : f32 to vector<8x32xf32>
    %14 = arith.addf %13, %12 : vector<8x32xf32>
    %15 = arith.divf %13, %14 : vector<8x32xf32>
    %c0_11 = arith.constant 0 : index
    %c0_12 = arith.constant 0 : index
    %16 = vector.load %arg6[%c0_11, %c0_12] : memref<1x32xf32, #tpu.memory_space<vmem>>, vector<1x32xf32>
    %c0_13 = arith.constant 0 : index
    %c0_14 = arith.constant 0 : index
    %17 = vector.load %arg7[%c0_13, %c0_14] : memref<1x32xf32, #tpu.memory_space<vmem>>, vector<1x32xf32>
    %c0_15 = arith.constant 0 : index
    %c0_16 = arith.constant 0 : index
    %18 = vector.load %arg8[%c0_15, %c0_16] : memref<32x8xf32, #tpu.memory_space<vmem>>, vector<32x8xf32>
    %c0_17 = arith.constant 0 : index
    %c0_18 = arith.constant 0 : index
    %19 = vector.load %arg9[%c0_17, %c0_18] : memref<1x8xf32, #tpu.memory_space<vmem>>, vector<1x8xf32>
    %cst_19 = arith.constant dense<0.000000e+00> : vector<8xf32>
    %20 = vector.multi_reduction <add>, %5, %cst_19 [1] : vector<8x32xf32> to vector<8xf32>
    %21 = vector.shape_cast %20 : vector<8xf32> to vector<8x1xf32>
    %cst_20 = arith.constant 3.200000e+01 : f32
    %22 = vector.broadcast %cst_20 : f32 to vector<8x1xf32>
    %23 = arith.divf %21, %22 : vector<8x1xf32>
    %24 = vector.broadcast %23 : vector<8x1xf32> to vector<8x32xf32>
    %25 = arith.subf %5, %24 : vector<8x32xf32>
    %26 = arith.mulf %25, %25 : vector<8x32xf32>
    %cst_21 = arith.constant dense<0.000000e+00> : vector<8xf32>
    %27 = vector.multi_reduction <add>, %26, %cst_21 [1] : vector<8x32xf32> to vector<8xf32>
    %28 = vector.shape_cast %27 : vector<8xf32> to vector<8x1xf32>
    %cst_22 = arith.constant 3.200000e+01 : f32
    %29 = vector.broadcast %cst_22 : f32 to vector<8x1xf32>
    %30 = arith.divf %28, %29 : vector<8x1xf32>
    %cst_23 = arith.constant 9.99999974E-6 : f32
    %31 = vector.broadcast %cst_23 : f32 to vector<8x1xf32>
    %32 = arith.addf %30, %31 : vector<8x1xf32>
    %33 = math.rsqrt %32 : vector<8x1xf32>
    %34 = vector.broadcast %33 : vector<8x1xf32> to vector<8x32xf32>
    %35 = arith.mulf %25, %34 : vector<8x32xf32>
    %36 = vector.broadcast %16 : vector<1x32xf32> to vector<8x32xf32>
    %37 = arith.mulf %35, %36 : vector<8x32xf32>
    %38 = vector.broadcast %17 : vector<1x32xf32> to vector<8x32xf32>
    %39 = arith.addf %37, %38 : vector<8x32xf32>
    %cst_24 = arith.constant dense<0.000000e+00> : vector<8x8xf32>
    %40 = tpu.matmul %39, %18, %cst_24 {dimension_numbers = #tpu.dot_dimension_numbers<[1], [0], [0], [1], [0, 0, 1, 1], [], []>} : vector<8x32xf32>, vector<32x8xf32>, vector<8x8xf32> -> vector<8x8xf32>
    %41 = vector.broadcast %19 : vector<1x8xf32> to vector<8x8xf32>
    %42 = arith.addf %40, %41 : vector<8x8xf32>
    %c0_25 = arith.constant 0 : index
    %c0_26 = arith.constant 0 : index
    %43 = vector.load %arg10[%c0_25, %c0_26] : memref<8x8xf32, #tpu.memory_space<vmem>>, vector<8x8xf32>
    tpu.vector_store %arg10[%c0_25, %c0_26], %42 {strides = array<i32>} : memref<8x8xf32, #tpu.memory_space<vmem>>, vector<8x8xf32>,
    %cst_27 = arith.constant dense<0.000000e+00> : vector<8xf32>
    %44 = vector.multi_reduction <add>, %15, %cst_27 [1] : vector<8x32xf32> to vector<8xf32>
    %45 = vector.shape_cast %44 : vector<8xf32> to vector<8x1xf32>
    %cst_28 = arith.constant 3.200000e+01 : f32
    %46 = vector.broadcast %cst_28 : f32 to vector<8x1xf32>
    %47 = arith.divf %45, %46 : vector<8x1xf32>
    %48 = vector.broadcast %47 : vector<8x1xf32> to vector<8x32xf32>
    %49 = arith.subf %15, %48 : vector<8x32xf32>
    %50 = arith.mulf %49, %49 : vector<8x32xf32>
    %cst_29 = arith.constant dense<0.000000e+00> : vector<8xf32>
    %51 = vector.multi_reduction <add>, %50, %cst_29 [1] : vector<8x32xf32> to vector<8xf32>
    %52 = vector.shape_cast %51 : vector<8xf32> to vector<8x1xf32>
    %cst_30 = arith.constant 3.200000e+01 : f32
    %53 = vector.broadcast %cst_30 : f32 to vector<8x1xf32>
    %54 = arith.divf %52, %53 : vector<8x1xf32>
    %cst_31 = arith.constant 9.99999974E-6 : f32
    %55 = vector.broadcast %cst_31 : f32 to vector<8x1xf32>
    %56 = arith.addf %54, %55 : vector<8x1xf32>
    %57 = math.rsqrt %56 : vector<8x1xf32>
    %58 = vector.broadcast %57 : vector<8x1xf32> to vector<8x32xf32>
    %59 = arith.mulf %49, %58 : vector<8x32xf32>
    %60 = vector.broadcast %16 : vector<1x32xf32> to vector<8x32xf32>
    %61 = arith.mulf %59, %60 : vector<8x32xf32>
    %62 = vector.broadcast %17 : vector<1x32xf32> to vector<8x32xf32>
    %63 = arith.addf %61, %62 : vector<8x32xf32>
    %cst_32 = arith.constant dense<0.000000e+00> : vector<8x8xf32>
    %64 = tpu.matmul %63, %18, %cst_32 {dimension_numbers = #tpu.dot_dimension_numbers<[1], [0], [0], [1], [0, 0, 1, 1], [], []>} : vector<8x32xf32>, vector<32x8xf32>, vector<8x8xf32> -> vector<8x8xf32>
    %65 = vector.broadcast %19 : vector<1x8xf32> to vector<8x8xf32>
    %66 = arith.addf %64, %65 : vector<8x8xf32>
    %c0_33 = arith.constant 0 : index
    %c0_34 = arith.constant 0 : index
    %67 = vector.load %arg11[%c0_33, %c0_34] : memref<8x8xf32, #tpu.memory_space<vmem>>, vector<8x8xf32>
    tpu.vector_store %arg11[%c0_33, %c0_34], %66 {strides = array<i32>} : memref<8x8xf32, #tpu.memory_space<vmem>>, vector<8x8xf32>,
    return
  }
  func.func @transform_0(%arg0: i32) -> (i32, i32) {
    %c0_i32 = arith.constant 0 : i32
    %c0_i32_0 = arith.constant 0 : i32
    %c0_i32_1 = arith.constant 0 : i32
    return %c0_i32, %c0_i32_0 : i32, i32
  }
  func.func @transform_1(%arg0: i32) -> (i32, i32) {
    %c0_i32 = arith.constant 0 : i32
    %c0_i32_0 = arith.constant 0 : i32
    %c0_i32_1 = arith.constant 0 : i32
    return %c0_i32, %c0_i32_0 : i32, i32
  }
  func.func @transform_2(%arg0: i32) -> (i32, i32) {
    %c0_i32 = arith.constant 0 : i32
    %c0_i32_0 = arith.constant 0 : i32
    %c0_i32_1 = arith.constant 0 : i32
    return %c0_i32, %c0_i32_0 : i32, i32
  }
  func.func @transform_3(%arg0: i32) -> (i32, i32) {
    %c0_i32 = arith.constant 0 : i32
    %c0_i32_0 = arith.constant 0 : i32
    %c0_i32_1 = arith.constant 0 : i32
    return %c0_i32, %c0_i32_0 : i32, i32
  }
  func.func @transform_4(%arg0: i32) -> (i32, i32) {
    %c0_i32 = arith.constant 0 : i32
    %c0_i32_0 = arith.constant 0 : i32
    %c0_i32_1 = arith.constant 0 : i32
    return %c0_i32, %c0_i32_0 : i32, i32
  }
  func.func @transform_5(%arg0: i32) -> (i32, i32) {
    %c0_i32 = arith.constant 0 : i32
    %c0_i32_0 = arith.constant 0 : i32
    %c0_i32_1 = arith.constant 0 : i32
    return %c0_i32, %c0_i32_0 : i32, i32
  }
  func.func @transform_6(%arg0: i32) -> (i32, i32) {
    %c0_i32 = arith.constant 0 : i32
    %c0_i32_0 = arith.constant 0 : i32
    %c0_i32_1 = arith.constant 0 : i32
    return %c0_i32, %c0_i32_0 : i32, i32
  }
  func.func @transform_7(%arg0: i32) -> (i32, i32) {
    %c0_i32 = arith.constant 0 : i32
    %c0_i32_0 = arith.constant 0 : i32
    %c0_i32_1 = arith.constant 0 : i32
    return %c0_i32, %c0_i32_0 : i32, i32
  }
  func.func @transform_8(%arg0: i32) -> (i32, i32) {
    %c0_i32 = arith.constant 0 : i32
    %c0_i32_0 = arith.constant 0 : i32
    %c0_i32_1 = arith.constant 0 : i32
    return %c0_i32, %c0_i32_0 : i32, i32
  }
  func.func @transform_9(%arg0: i32) -> (i32, i32) {
    %c0_i32 = arith.constant 0 : i32
    %c0_i32_0 = arith.constant 0 : i32
    %c0_i32_1 = arith.constant 0 : i32
    return %c0_i32, %c0_i32_0 : i32, i32
  }
  func.func @transform_10(%arg0: i32) -> (i32, i32) {
    %c0_i32 = arith.constant 0 : i32
    %c0_i32_0 = arith.constant 0 : i32
    %c0_i32_1 = arith.constant 0 : i32
    return %c0_i32, %c0_i32_0 : i32, i32
  }
}

</mosaic_0001>

<bundles_post_ra>
// kernel: _lambda_.5
= control target key start
LH: loop header
LB: loop body
LE: loop exit
PB: predicated region body
PF: predicated region fallthrough
CT: control target
= control target key end

     0   :  { %16 = vsyncpa [#allocation3], 0  ;;  %s849_s0 = inlined_call_operand.vmem [shape: f32[16,8], index: 0, kind: input, shape index: {}]   ;;  %s850_s1 = inlined_call_operand.hbm [shape: f32[8,32], index: 1, kind: input, shape index: {}]   ;;  %s851_s2 = inlined_call_operand.hbm [shape: f32[1,32], index: 2, kind: input, shape index: {}]   ;;  %s852_s3 = inlined_call_operand.hbm [shape: f32[8,32], index: 3, kind: input, shape index: {}]   ;;  %s853_s4 = inlined_call_operand.hbm [shape: f32[1,32], index: 4, kind: input, shape index: {}]   ;;  %s854_s5 = inlined_call_operand.vmem [shape: f32[32,32], index: 5, kind: input, shape index: {}]   ;;  %s855_s6 = inlined_call_operand.hbm [shape: f32[1,32], index: 6, kind: input, shape index: {}]   ;;  %s856_s7 = inlined_call_operand.hbm [shape: f32[32,64], index: 7, kind: input, shape index: {}]   ;;  %s857_s8 = inlined_call_operand.hbm [shape: f32[1,64], index: 8, kind: input, shape index: {}]   ;;  %s858_s9 = inlined_call_operand.hbm [shape: f32[1,32], index: 9, kind: input, shape index: {}]   ;;  %s859_s10 = inlined_call_operand.hbm [shape: f32[1,32], index: 10, kind: input, shape index: {}]   ;;  %s860_s11 = inlined_call_operand.vmem [shape: f32[16,32], index: 11, kind: output, shape index: {}]  }
   0x1   :  { %17 = vsyncpa [#allocation5], 0 }
   0x2   :  { %18 = vsyncpa [#allocation8], 0 }
   0x3   :  { %19 = vsyncpa [#allocation11], 0  ;;  %s39_s19 = sshll.u32 %s851_s2, 4  ;;  %s40_s19 = int_to_ptr.hbm [resolvable:$true] %s39_s19 }
   0x4   :  { %20 = vsyncpa [#allocation14], 0  ;;  %s711_s20 = smov [#allocation4]   ;;  %s61_s24 = sshll.u32 %s853_s4, 4  ;;  %s62_s24 = int_to_ptr.hbm [resolvable:$true] %s61_s24 }
   0x5   :  { %s41_s21 = sshll.u32 %s711_s20, 4  ;;  %s712_s25 = smov [#allocation7]   ;;  %s42_s21 = int_to_ptr.vmem [resolvable:$true] %s41_s21 }
   0x6   :  { %44 = dma.hbm_to_vmem [thread:$0]  %s40_s19, 16, %s42_s21, [#allocation5]  }
   0x7   :  { %s63_s26 = sshll.u32 %s712_s25, 4  ;;  %s84_s29 = sshll.u32 %s856_s7, 4  ;;  %s64_s26 = int_to_ptr.vmem [resolvable:$true] %s63_s26  ;;  %s85_s29 = int_to_ptr.hbm [resolvable:$true] %s84_s29 }
   0x8   :  { %66 = dma.hbm_to_vmem [thread:$0]  %s62_s24, 16, %s64_s26, [#allocation8]  }
   0x9   :  { %s713_s2 = smov [#allocation10]   ;;  %s109_s14 = sshll.u32 %s858_s9, 4  ;;  %s110_s14 = int_to_ptr.hbm [resolvable:$true] %s109_s14 }
   0xa   :  { %s86_s30 = sshll.u32 %s713_s2, 4  ;;  %s714_s15 = smov 128   ;;  %s87_s30 = int_to_ptr.vmem [resolvable:$true] %s86_s30 }
   0xb   :  { %s715_s4 = smov 8   ;;  %s716_s16 = smov [#allocation13]  }
   0xc   :  { %92 = dma.hbm_to_vmem [thread:$0]  %s85_s29, 512, %s87_s30, [#allocation11], %s714_s15, %s714_s15, %s715_s4  }
   0xd   :  { %s111_s17 = sshll.u32 %s716_s16, 4  ;;  %s28_s7 = sshll.u32 %s850_s1, 4  ;;  %s112_s17 = int_to_ptr.vmem [resolvable:$true] %s111_s17  ;;  %s29_s7 = int_to_ptr.hbm [resolvable:$true] %s28_s7 }
   0xe   :  { %114 = dma.hbm_to_vmem [thread:$0]  %s110_s14, 16, %s112_s17, [#allocation14]  }
   0xf   :  { %s50_s22 = sshll.u32 %s852_s3, 4  ;;  %s717_s23 = smov [#allocation2]   ;;  %s51_s22 = int_to_ptr.hbm [resolvable:$true] %s50_s22 }
  0x10   :  { %s30_s24 = sshll.u32 %s717_s23, 4  ;;  %s718_s9 = smov [#allocation6]   ;;  %s31_s24 = int_to_ptr.vmem [resolvable:$true] %s30_s24 }
  0x11   :  { %33 = dma.hbm_to_vmem [thread:$0]  %s29_s7, 128, %s31_s24, [#allocation3]  }
  0x12   :  { %s52_s25 = sshll.u32 %s718_s9, 4  ;;  %s74_s28 = sshll.u32 %s855_s6, 4  ;;  %s53_s25 = int_to_ptr.vmem [resolvable:$true] %s52_s25  ;;  %s75_s28 = int_to_ptr.hbm [resolvable:$true] %s74_s28 }
  0x13   :  { %55 = dma.hbm_to_vmem [thread:$0]  %s51_s22, 128, %s53_s25, [#allocation5]  }
  0x14   :  { %s98_s2 = sshll.u32 %s857_s8, 4  ;;  %s719_s30 = smov [#allocation9]   ;;  %s99_s2 = int_to_ptr.hbm [resolvable:$true] %s98_s2 }
  0x15   :  { %s76_s3 = sshll.u32 %s719_s30, 4  ;;  %s720_s12 = smov [#allocation12]   ;;  %s77_s3 = int_to_ptr.vmem [resolvable:$true] %s76_s3 }
  0x16   :  { %79 = dma.hbm_to_vmem [thread:$0]  %s75_s28, 16, %s77_s3, [#allocation8]  }
  0x17   :  { %s100_s13 = sshll.u32 %s720_s12, 4  ;;  %s120_s4 = sshll.u32 %s859_s10, 4  ;;  %s101_s13 = int_to_ptr.vmem [resolvable:$true] %s100_s13  ;;  %s121_s4 = int_to_ptr.hbm [resolvable:$true] %s120_s4 }
  0x18   :  { %103 = dma.hbm_to_vmem [thread:$0]  %s99_s2, 16, %s101_s13, [#allocation11]  }
  0x19   :  { %s721_s6 = smov [#allocation15]  }
  0x1a   :  { %s122_s16 = sshll.u32 %s721_s6, 4  ;;  %s123_s16 = int_to_ptr.vmem [resolvable:$true] %s122_s16 }
  0x1b   :  { %125 = dma.hbm_to_vmem [thread:$0]  %s121_s4, 16, %s123_s16, [#allocation14]  }
  0x1c   :  { %701 = dma.done.wait [#allocation3], 128  }
  0x1d   :  { %702 = vsyncadd [#allocation3], 4294967168 }
  0x1e   :  { %703 = dma.done.wait [#allocation5], 144  }
  0x1f   :  { %704 = vsyncadd [#allocation5], 4294967152 }
  0x20   :  { %705 = dma.done.wait [#allocation8], 32  }
  0x21   :  { %706 = vsyncadd [#allocation8], 4294967264 }
  0x22   :  { %707 = dma.done.wait [#allocation11], 528  }
  0x23   :  { %708 = vsyncadd [#allocation11], 4294966768 }
  0x24   :  { %709 = dma.done.wait [#allocation14], 32  }
  0x25   :  { %710 = vsyncadd [#allocation14], 4294967264  ;;  %vm169_vm0 = vcmask 64512   ;;  %v199_v0 = vld [vmem:[#allocation6] sm:$0xff]  ;;  %v162_v1 = vld [vmem:[%s849_s0] sm:$0xff]  ;;  %vm245_vm1 = vcmask 261120  }
  0x26   :  { %219 = vmatpush.msra.mxu1 %v199_v0  ;;  %v163_v2 = vld [vmem:[%s849_s0 + $0x8] sm:$0xff]  ;;  %v240_v3 = vld [vmem:[%s854_s5 + $0x18] sm:$0xff]  ;;  %v239_v4 = vld [vmem:[%s854_s5 + $0x10] sm:$0xff]  ;;  %s722_s0 = smov 96  }
  0x27   :  { %438 = vmatmul.msk.f32.vlgmr.msra.gmra.mxu1 %vm169_vm0, %v162_v1  ;;  %264 = vmatpush.msra.mxu2 %v240_v3  ;;  %v238_v5 = vld [vmem:[%s854_s5 + $0x8] sm:$0xff]  ;;  %v237_v6 = vld [vmem:[%s854_s5] sm:$0xff]  ;;  %v461_v9 = vld [vmem:[#allocation7] ss:$0 sm:$0xff] }
  0x28   :  { %v278_v7 = vld [vmem:[#allocation10 + $0x18] sm:$0xff]  ;;  %v277_v8 = vld [vmem:[#allocation10 + $0x10] sm:$0xff]  ;;  %v276_v22 = vld [vmem:[#allocation10 + $0x8] sm:$0xff] }
  0x29   :  { %265 = vmatpush.msra.mxu2 %v239_v4  ;;  %301 = vmatpush.msra.mxu3 %v278_v7  ;;  %v275_v23 = vld [vmem:[#allocation10] sm:$0xff]  ;;  %v462_v24 = vld [vmem:[#allocation9] ss:$0 sm:$0xff]  ;;  %v164_v29 = vld [vmem:[#allocation2] sm:$0xff] }
  0x2a   :  { %191 = vmatpush.msra.mxu0 %v164_v29  ;;  %v463_v30 = vld [vmem:[#allocation12] ss:$0 sm:$0xff]  ;;  %v464_v62 = vld [vmem:[#allocation4] ss:$0 sm:$0xff] }
  0x2b   :  { %266 = vmatpush.msra.mxu2 %v238_v5  ;;  %302 = vmatpush.msra.mxu3 %v277_v8 }
  0x2c   :  { %436 = vmatmul.msk.f32.vlgmr.msra.gmra.mxu0 %vm169_vm0, %v162_v1 }
  0x2d   :  { %267 = vmatpush.msra.mxu2 %v237_v6  ;;  %303 = vmatpush.msra.mxu3 %v276_v22 }
  0x2f   :  { %439 = vmatmul.msk.f32.gmra.mxu1 %vm169_vm0, %v163_v2  ;;  %304 = vmatpush.msra.mxu3 %v275_v23 }
  0x34   :  { %437 = vmatmul.msk.f32.gmra.mxu0 %vm169_vm0, %v163_v2 }
  0xa4   :  { %v221_v10 = vpop.f32.mrf.mxu1 }
  0xa5   :  { %v222_v11 = vadd.f32 %v461_v9, %v221_v10  ;;  %v723_v10 = vmov 32.0  }
  0xa7   :  { %v229_v12 = vmul.f32 1.442695, %v222_v11  ;;  %vm227_vm2 = vcmp.gt.f32.partialorder %v222_v11, 0.0 }
  0xa9   :  { %467 = vpow2.f32 %v229_v12  ;;  %v193_v61 = vpop.f32.mrf.mxu0 }
  0xaa   :  { %v194_v63 = vadd.f32 %v464_v62, %v193_v61 }
  0xac   :  { %v224_v13 = vpop.f32.mrf.mxu1 }
  0xad   :  { %v225_v14 = vadd.f32 %v461_v9, %v224_v13 }
  0xaf   :  { %v468_v15 = vpop.eup %467  ;;  %v231_v16 = vmul.f32 1.442695, %v225_v14  ;;  %vm228_vm3 = vcmp.gt.f32.partialorder %v225_v14, 0.0 }
  0xb0   :  { %v440_v17 = vadd.f32 -1.0, %v468_v15 }
  0xb1   :  { %469 = vpow2.f32 %v231_v16  ;;  %v196_v3 = vpop.f32.mrf.mxu0 }
  0xb2   :  { %v235_v18 = vsel %vm227_vm2, %v222_v11, %v440_v17  ;;  %v197_v5 = vadd.f32 %v464_v62, %v196_v3 }
  0xb3   :  { %442 = vmatmul.msk.f32.vlgmr.msra.gmra.mxu2 %vm245_vm1, %v235_v18 }
  0xb7   :  { %v470_v19 = vpop.eup %469 }
  0xb8   :  { %v441_v20 = vadd.f32 -1.0, %v470_v19 }
  0xba   :  { %v236_v21 = vsel %vm228_vm3, %v225_v14, %v441_v20 }
  0xbb   :  { %443 = vmatmul.msk.f32.gmra.mxu2 %vm245_vm1, %v236_v21 }
 0x136   :  { %v269_v25 = vpop.f32.mrf.mxu2 }
 0x137   :  { %v270_v26 = vadd.f32 %v462_v24, %v269_v25 }
 0x139   :  { %444 = vmatmul.msk.f32.vlgmr.msra.gmra.mxu3 %vm245_vm1, %v270_v26 }
 0x13e   :  { %v272_v27 = vpop.f32.mrf.mxu2 }
 0x13f   :  { %v273_v28 = vadd.f32 %v462_v24, %v272_v27 }
 0x141   :  { %445 = vmatmul.msk.f32.gmra.mxu3 %vm245_vm1, %v273_v28 }
 0x1bc   :  { %v306_v31 = vpop.f32.mrf.mxu3 }
 0x1bd   :  { %v307_v32 = vadd.f32 %v463_v30, %v306_v31 }
 0x1bf   :  { %v446_v33 = vmul.f32 -1.442695, %v307_v32 }
 0x1c1   :  { %471 = vpow2.f32 %v446_v33 }
 0x1c4   :  { %v309_v34 = vpop.f32.mrf.mxu3 }
 0x1c5   :  { %v310_v35 = vadd.f32 %v463_v30, %v309_v34 }
 0x1c7   :  { %v472_v36 = vpop.eup %471  ;;  %v447_v37 = vmul.f32 -1.442695, %v310_v35 }
 0x1c8   :  { %v318_v38 = vadd.f32 1.0, %v472_v36 }
 0x1c9   :  { %473 = vpow2.f32 %v447_v37 }
 0x1ca   :  { %475 = vrcp.f32 %v318_v38  ;;  %v331_v44 = vand.u32 2147483648, %v318_v38  ;;  %v329_v46 = vand.u32 2147483647, %v318_v38  ;;  %vm325_vm5 = vweird.f32 %v318_v38 }
 0x1cc   :  { %v332_v49 = vor.u32 1.1754944e-38, %v331_v44  ;;  %vm330_vm7 = vcmp.eq.f32.partialorder %v329_v46, 8.507059e+37  ;;  %v466_v44 = vld [vmem:[#allocation15] ss:$0 sm:$0xff] }
 0x1cf   :  { %v474_v39 = vpop.eup %473 }
 0x1d0   :  { %v476_v40 = vpop.eup %475  ;;  %v319_v41 = vadd.f32 1.0, %v474_v39 }
 0x1d1   :  { %v321_v42 = vmul.f32 %v476_v40, %v318_v38  ;;  %vm326_vm4 = vweird.f32 %v476_v40 }
 0x1d2   :  { %477 = vrcp.f32 %v319_v41  ;;  %vm327_vm6 = vmor %vm325_vm5, %vm326_vm4  ;;  %v346_v54 = vand.u32 2147483648, %v319_v41  ;;  %v344_v56 = vand.u32 2147483647, %v319_v41  ;;  %vm340_vm9 = vweird.f32 %v319_v41 }
 0x1d3   :  { %v322_v43 = vsub.f32 1.0, %v321_v42  ;;  %479 = vrcp.f32 %v723_v10 }
 0x1d4   :  { %v347_v58 = vor.u32 1.1754944e-38, %v346_v54  ;;  %vm345_vm11 = vcmp.eq.f32.partialorder %v344_v56, 8.507059e+37 }
 0x1d5   :  { %v323_v45 = vmul.f32 %v476_v40, %v322_v43 }
 0x1d7   :  { %v324_v47 = vadd.f32 %v476_v40, %v323_v45 }
 0x1d8   :  { %v478_v48 = vpop.eup %477 }
 0x1d9   :  { %v328_v50 = vsel %vm327_vm6, %v476_v40, %v324_v47  ;;  %v336_v51 = vmul.f32 %v478_v48, %v319_v41  ;;  %vm341_vm8 = vweird.f32 %v478_v48  ;;  %v480_v11 = vpop.eup %479  ;;  %v465_v41 = vld [vmem:[#allocation13] ss:$0 sm:$0xff] }
 0x1da   :  { %v333_v52 = vsel %vm330_vm7, %v332_v49, %v328_v50  ;;  %vm342_vm10 = vmor %vm340_vm9, %vm341_vm8  ;;  %v371_v12 = vmul.f32 32.0, %v480_v11  ;;  %vm375_vm12 = vweird.f32 %v480_v11 }
 0x1db   :  { %352 = vrot.lane.b32.xlu0 %v333_v52, %s722_s0  ;;  %v337_v53 = vsub.f32 1.0, %v336_v51 }
 0x1dc   :  { %v372_v13 = vsub.f32 1.0, %v371_v12 }
 0x1dd   :  { %v338_v55 = vmul.f32 %v478_v48, %v337_v53 }
 0x1de   :  { %v373_v14 = vmul.f32 %v480_v11, %v372_v13 }
 0x1df   :  { %v339_v57 = vadd.f32 %v478_v48, %v338_v55 }
 0x1e0   :  { %v374_v15 = vadd.f32 %v480_v11, %v373_v14 }
 0x1e1   :  { %v343_v59 = vsel %vm342_vm10, %v478_v48, %v339_v57 }
 0x1e2   :  { %v348_v60 = vsel %vm345_vm11, %v347_v58, %v343_v59  ;;  %v376_v16 = vsel %vm375_vm12, %v480_v11, %v374_v15 }
 0x1e3   :  { %354 = vrot.lane.b32.xlu0 %v348_v60, %s722_s0 }
 0x24d   :  { %v353_v0 = vpop.permute.xlu0 %352 }
 0x24e   :  { %v358_v1 = vmul.f32 %v353_v0, %v307_v32 }
 0x250   :  { %v360_v2 = vadd.f32 %v358_v1, %v194_v63 }
 0x252   :  { %v364_v4 = vsel %vm245_vm1, %v360_v2, 0.0 }
 0x253   :  { %365 = vadd.xlane.f32.xlu1 %v364_v4 }
 0x255   :  { %v355_v6 = vpop.permute.xlu0 %354 }
 0x256   :  { %v359_v7 = vmul.f32 %v355_v6, %v310_v35 }
 0x258   :  { %v361_v8 = vadd.f32 %v359_v7, %v197_v5 }
 0x25a   :  { %v367_v9 = vsel %vm245_vm1, %v361_v8, 0.0 }
 0x25b   :  { %368 = vadd.xlane.f32.xlu1 %v367_v9 }
 0x2c6   :  { %v366_v17 = vpop.xlane.xlu1 %365 }
 0x2c7   :  { %v377_v18 = vmul.f32 %v376_v16, %v366_v17 }
 0x2c9   :  { %v379_v19 = vsub.f32 %v360_v2, %v377_v18 }
 0x2cb   :  { %v381_v20 = vmul.f32 %v379_v19, %v379_v19 }
 0x2cd   :  { %v383_v21 = vsel %vm245_vm1, %v381_v20, 0.0 }
 0x2ce   :  { %384 = vadd.xlane.f32.xlu2 %v383_v21  ;;  %v369_v22 = vpop.xlane.xlu1 %368 }
 0x2cf   :  { %v378_v23 = vmul.f32 %v376_v16, %v369_v22 }
 0x2d1   :  { %v380_v24 = vsub.f32 %v361_v8, %v378_v23 }
 0x2d3   :  { %v382_v25 = vmul.f32 %v380_v24, %v380_v24 }
 0x2d5   :  { %v386_v26 = vsel %vm245_vm1, %v382_v25, 0.0 }
 0x2d6   :  { %387 = vadd.xlane.f32.xlu2 %v386_v26 }
 0x341   :  { %v385_v27 = vpop.xlane.xlu2 %384 }
 0x342   :  { %v389_v28 = vmul.f32 %v385_v27, %v376_v16 }
 0x344   :  { %v391_v29 = vadd.f32 1e-05, %v389_v28 }
 0x346   :  { %481 = vrsqrt.f32 %v391_v29  ;;  %vm399_vm14 = vweird.f32 %v391_v29 }
 0x349   :  { %v388_v30 = vpop.xlane.xlu2 %387 }
 0x34a   :  { %v390_v31 = vmul.f32 %v388_v30, %v376_v16 }
 0x34c   :  { %v482_v32 = vpop.eup %481  ;;  %v392_v33 = vadd.f32 1e-05, %v390_v31 }
 0x34d   :  { %v394_v34 = vmul.f32 %v482_v32, %v391_v29  ;;  %vm400_vm13 = vweird.f32 %v482_v32 }
 0x34e   :  { %483 = vrsqrt.f32 %v392_v33  ;;  %vm401_vm15 = vmor %vm399_vm14, %vm400_vm13  ;;  %vm409_vm2 = vweird.f32 %v392_v33 }
 0x34f   :  { %v395_v35 = vmul.f32 %v482_v32, %v394_v34 }
 0x351   :  { %v396_v36 = vmul.f32 0.5, %v395_v35 }
 0x353   :  { %v397_v37 = vsub.f32 1.5, %v396_v36 }
 0x354   :  { %v484_v38 = vpop.eup %483 }
 0x355   :  { %v398_v39 = vmul.f32 %v482_v32, %v397_v37  ;;  %v404_v40 = vmul.f32 %v484_v38, %v392_v33  ;;  %vm410_vm0 = vweird.f32 %v484_v38 }
 0x356   :  { %vm411_vm3 = vmor %vm409_vm2, %vm410_vm0 }
 0x357   :  { %v402_v42 = vsel %vm401_vm15, %v482_v32, %v398_v39  ;;  %v405_v43 = vmul.f32 %v484_v38, %v404_v40 }
 0x358   :  { %v413_v45 = vmul.f32 %v402_v42, %v379_v19 }
 0x359   :  { %v406_v46 = vmul.f32 0.5, %v405_v43 }
 0x35a   :  { %v418_v47 = vmul.f32 %v465_v41, %v413_v45 }
 0x35b   :  { %v407_v48 = vsub.f32 1.5, %v406_v46 }
 0x35c   :  { %v423_v49 = vadd.f32 %v466_v44, %v418_v47 }
 0x35d   :  { %v408_v50 = vmul.f32 %v484_v38, %v407_v48 }
 0x35e   :  { %425 = vst.msk [vmem:[%s860_s11] sm:$0xff] %vm245_vm1, %v423_v49 }
 0x35f   :  { %v412_v51 = vsel %vm411_vm3, %v484_v38, %v408_v50 }
 0x360   :  { %v414_v52 = vmul.f32 %v412_v51, %v380_v24 }
 0x362   :  { %v419_v53 = vmul.f32 %v465_v41, %v414_v52 }
 0x364   :  { %v424_v54 = vadd.f32 %v466_v44, %v419_v53 }
 0x366   :  { %426 = vst.msk [vmem:[%s860_s11 + $0x8] sm:$0xff] %vm245_vm1, %v424_v54 }
 0x367   :  { %431 = vsyncpa [#allocation3], 1 }
 0x368   :  { %432 = vsyncpa [#allocation5], 1 }
 0x369   :  { %433 = vsyncpa [#allocation8], 1 }
 0x36a   :  { %434 = vsyncpa [#allocation11], 1 }
 0x36b   :  { %435 = vsyncpa [#allocation14], 1 }

// kernel: _lambda_.6
= control target key start
LH: loop header
LB: loop body
LE: loop exit
PB: predicated region body
PF: predicated region fallthrough
CT: control target
= control target key end

     0   :  { %13 = vsyncpa [#allocation3], 0  ;;  %s2249_s0 = inlined_call_operand.vmem [shape: f32[8,2,32], index: 0, kind: input, shape index: {}]   ;;  %s2250_s1 = inlined_call_operand.vmem [shape: f32[1,32,128], index: 1, kind: input, shape index: {}]   ;;  %s2251_s2 = inlined_call_operand.hbm [shape: f32[1,32,128], index: 2, kind: input, shape index: {}]   ;;  %s2252_s3 = inlined_call_operand.vmem [shape: f32[1,1,128], index: 3, kind: input, shape index: {}]   ;;  %s2253_s4 = inlined_call_operand.hbm [shape: f32[32,64], index: 4, kind: input, shape index: {}]   ;;  %s2254_s5 = inlined_call_operand.hbm [shape: f32[1,64], index: 5, kind: input, shape index: {}]   ;;  %s2255_s6 = inlined_call_operand.hbm [shape: f32[1,32], index: 6, kind: input, shape index: {}]   ;;  %s2256_s7 = inlined_call_operand.hbm [shape: f32[1,32], index: 7, kind: input, shape index: {}]   ;;  %s2257_s8 = inlined_call_operand.vmem [shape: f32[8,2,32], index: 8, kind: output, shape index: {}]  }
   0x1   :  { %14 = vsyncpa [#allocation5], 0 }
   0x2   :  { %15 = vsyncpa [#allocation8], 0  ;;  %s39_s29 = sshll.u32 %s2253_s4, 4  ;;  %s1732_s30 = smov [#allocation4]   ;;  %s40_s29 = int_to_ptr.hbm [resolvable:$true] %s39_s29 }
   0x3   :  { %s41_s9 = sshll.u32 %s1732_s30, 4  ;;  %s64_s12 = sshll.u32 %s2255_s6, 4  ;;  %s42_s9 = int_to_ptr.vmem [resolvable:$true] %s41_s9  ;;  %s65_s12 = int_to_ptr.hbm [resolvable:$true] %s64_s12 }
   0x4   :  { %s1733_s13 = smov 128   ;;  %s1734_s14 = smov 8  }
   0x5   :  { %47 = dma.hbm_to_vmem [thread:$0]  %s40_s29, 512, %s42_s9, [#allocation5], %s1733_s13, %s1733_s13, %s1734_s14  }
   0x6   :  { %s1735_s15 = smov [#allocation7]   ;;  %s24_s19 = sshll.u32 %s2251_s2, 4  ;;  %s25_s19 = int_to_ptr.hbm [resolvable:$true] %s24_s19 }
   0x7   :  { %s66_s16 = sshll.u32 %s1735_s15, 4  ;;  %s53_s21 = sshll.u32 %s2254_s5, 4  ;;  %s67_s16 = int_to_ptr.vmem [resolvable:$true] %s66_s16  ;;  %s54_s21 = int_to_ptr.hbm [resolvable:$true] %s53_s21 }
   0x8   :  { %69 = dma.hbm_to_vmem [thread:$0]  %s65_s12, 16, %s67_s16, [#allocation8]  }
   0x9   :  { %s1736_s22 = smov [#allocation2]   ;;  %s1737_s6 = smov [#allocation6]  }
   0xa   :  { %s26_s23 = sshll.u32 %s1736_s22, 4  ;;  %s55_s24 = sshll.u32 %s1737_s6, 4  ;;  %s27_s23 = int_to_ptr.vmem [resolvable:$true] %s26_s23  ;;  %s56_s24 = int_to_ptr.vmem [resolvable:$true] %s55_s24 }
   0xb   :  { %32 = dma.hbm_to_vmem [thread:$0]  %s25_s19, 512, %s27_s23, [#allocation3], %s1733_s13, %s1733_s13, %s1734_s14  }
   0xc   :  { %s75_s27 = sshll.u32 %s2256_s7, 4  ;;  %s1738_s2 = smov [#allocation9]   ;;  %s76_s27 = int_to_ptr.hbm [resolvable:$true] %s75_s27 }
   0xd   :  { %58 = dma.hbm_to_vmem [thread:$0]  %s54_s21, 16, %s56_s24, [#allocation5]  }
   0xe   :  { %s77_s28 = sshll.u32 %s1738_s2, 4  ;;  %s78_s28 = int_to_ptr.vmem [resolvable:$true] %s77_s28 }
   0xf   :  { %80 = dma.hbm_to_vmem [thread:$0]  %s76_s27, 16, %s78_s28, [#allocation8]  }
  0x10   :  { %1726 = dma.done.wait [#allocation3], 512  }
  0x11   :  { %1727 = vsyncadd [#allocation3], 4294966784 }
  0x12   :  { %1728 = dma.done.wait [#allocation5], 528  }
  0x13   :  { %1729 = vsyncadd [#allocation5], 4294966768 }
  0x14   :  { %1730 = dma.done.wait [#allocation8], 32  }
  0x15   :  { %1731 = vsyncadd [#allocation8], 4294967264  ;;  %v1807_v0 = vld [vmem:[%s2250_s1 + $0x18] sm:$0xff]  ;;  %v1812_v1 = vld [vmem:[%s2250_s1 + $0x10] sm:$0xff]  ;;  %vm128_vm0 = vcmask 261120   ;;  %v1739_v9 = vmov 0.0  }
  0x16   :  { %v1814_v2 = vld [vmem:[#allocation2 + $0x18] sm:$0xff]  ;;  %144 = vmatpush.msra.mxu0 %v1807_v0  ;;  %v1818_v3 = vld [vmem:[#allocation2 + $0x10] sm:$0xff]  ;;  %v1823_v4 = vld [vmem:[%s2250_s1 + $0x8] sm:$0xff]  ;;  %228 = vmatpush.msra.mxu2 %v1807_v0  ;;  %s1740_s16 = smov 64   ;;  %s1742_s28 = smov 96  }
  0x17   :  { %167 = vmatpush.msra.mxu1 %v1814_v2  ;;  %v1825_v5 = vld [vmem:[#allocation2 + $0x8] sm:$0xff]  ;;  %253 = vmatpush.msra.mxu3 %v1814_v2  ;;  %v1834_v6 = vld [vmem:[%s2250_s1] sm:$0xff]  ;;  %v1909_v38 = vld [vmem:[#allocation4 + $0x18] sm:$0xff] }
  0x18   :  { %145 = vmatpush.msra.mxu0 %v1812_v1  ;;  %v1836_v7 = vld [vmem:[#allocation2] sm:$0xff]  ;;  %229 = vmatpush.msra.mxu2 %v1812_v1  ;;  %v1905_v37 = vld [vmem:[%s2249_s0 + $0x8] sm:$0x3]  ;;  %v1915_v39 = vld [vmem:[#allocation4 + $0x10] sm:$0xff] }
  0x19   :  { %168 = vmatpush.msra.mxu1 %v1818_v3  ;;  %254 = vmatpush.msra.mxu3 %v1818_v3  ;;  %v101_v8 = vld [vmem:[%s2249_s0] sm:$0x3]  ;;  %v1419_v35 = vld [vmem:[%s2249_s0 + $0x4] sm:$0x3]  ;;  %v1896_v36 = vld [vmem:[%s2249_s0 + $0x2] sm:$0x3] }
  0x1a   :  { %146 = vmatpush.msra.mxu0 %v1823_v4  ;;  %230 = vmatpush.msra.mxu2 %v1823_v4  ;;  %v1879_v10 = vld [vmem:[%s2252_s3] ss:$0 sm:$0xff]  ;;  %s1741_s3 = smov 32   ;;  %v1919_v40 = vld [vmem:[#allocation4 + $0x8] sm:$0xff] }
  0x1b   :  { %169 = vmatpush.msra.mxu1 %v1825_v5  ;;  %255 = vmatpush.msra.mxu3 %v1825_v5  ;;  %v1922_v41 = vld [vmem:[#allocation4] sm:$0xff]  ;;  %v1423_v42 = vld [vmem:[%s2249_s0 + $0xc] sm:$0x3] }
  0x1c   :  { %147 = vmatpush.msra.mxu0 %v1834_v6  ;;  %231 = vmatpush.msra.mxu2 %v1834_v6 }
  0x1d   :  { %170 = vmatpush.msra.mxu1 %v1836_v7  ;;  %1425 = vmatmul.msk.f32.vlgmr.msra.gmra.mxu0 %vm128_vm0, %v101_v8 }
  0x1e   :  { %171 = vmatmul.f32.vlgmr.msra.gmra.mxu1 %v1739_v9  ;;  %314 = vmatpush.msrb.mxu0 %v1807_v0 }
  0x1f   :  { %256 = vmatpush.msra.mxu3 %v1836_v7  ;;  %339 = vmatpush.msrb.mxu1 %v1814_v2 }
  0x20   :  { %315 = vmatpush.msrb.mxu0 %v1812_v1  ;;  %400 = vmatpush.msrb.mxu2 %v1807_v0 }
  0x21   :  { %340 = vmatpush.msrb.mxu1 %v1818_v3  ;;  %425 = vmatpush.msrb.mxu3 %v1814_v2 }
  0x22   :  { %316 = vmatpush.msrb.mxu0 %v1823_v4  ;;  %401 = vmatpush.msrb.mxu2 %v1812_v1 }
  0x23   :  { %341 = vmatpush.msrb.mxu1 %v1825_v5  ;;  %426 = vmatpush.msrb.mxu3 %v1818_v3 }
  0x24   :  { %317 = vmatpush.msrb.mxu0 %v1834_v6  ;;  %402 = vmatpush.msrb.mxu2 %v1823_v4 }
  0x25   :  { %342 = vmatpush.msrb.mxu1 %v1836_v7  ;;  %427 = vmatpush.msrb.mxu3 %v1825_v5 }
  0x26   :  { %486 = vmatpush.msra.mxu0 %v1807_v0  ;;  %403 = vmatpush.msrb.mxu2 %v1834_v6 }
  0x27   :  { %511 = vmatpush.msra.mxu1 %v1814_v2  ;;  %428 = vmatpush.msrb.mxu3 %v1836_v7 }
  0x28   :  { %487 = vmatpush.msra.mxu0 %v1812_v1  ;;  %1427 = vmatmul.msk.f32.vlgmr.msra.gmra.mxu2 %vm128_vm0, %v1896_v36 }
  0x29   :  { %512 = vmatpush.msra.mxu1 %v1818_v3  ;;  %1430 = vmatmul.msk.f32.vlgmr.msrb.gmra.mxu0 %vm128_vm0, %v1419_v35 }
  0x2a   :  { %488 = vmatpush.msra.mxu0 %v1823_v4  ;;  %572 = vmatpush.msra.mxu2 %v1807_v0 }
  0x2b   :  { %513 = vmatpush.msra.mxu1 %v1825_v5 }
  0x2c   :  { %489 = vmatpush.msra.mxu0 %v1834_v6  ;;  %573 = vmatpush.msra.mxu2 %v1812_v1 }
  0x2d   :  { %514 = vmatpush.msra.mxu1 %v1836_v7 }
  0x2e   :  { %658 = vmatpush.msrb.mxu0 %v1807_v0  ;;  %574 = vmatpush.msra.mxu2 %v1823_v4 }
  0x30   :  { %659 = vmatpush.msrb.mxu0 %v1812_v1  ;;  %575 = vmatpush.msra.mxu2 %v1834_v6 }
  0x31   :  { %1436 = vmatmul.msk.f32.vlgmr.msra.gmra.mxu0 %vm128_vm0, %v1905_v37 }
  0x32   :  { %660 = vmatpush.msrb.mxu0 %v1823_v4 }
  0x34   :  { %661 = vmatpush.msrb.mxu0 %v1834_v6 }
  0x36   :  { %837 = vmatpush.msra.mxu0 %v1909_v38 }
  0x38   :  { %838 = vmatpush.msra.mxu0 %v1915_v39 }
  0x39   :  { %1442 = vmatmul.msk.f32.vlgmr.msrb.gmra.mxu0 %vm128_vm0, %v1423_v42 }
  0x3a   :  { %839 = vmatpush.msra.mxu0 %v1919_v40 }
  0x3c   :  { %840 = vmatpush.msra.mxu0 %v1922_v41 }
  0x3e   :  { %1134 = vmatpush.msrb.mxu0 %v1909_v38 }
  0x40   :  { %1135 = vmatpush.msrb.mxu0 %v1915_v39 }
  0x42   :  { %1136 = vmatpush.msrb.mxu0 %v1919_v40 }
  0x44   :  { %1137 = vmatpush.msrb.mxu0 %v1922_v41 }
  0x9a   :  { %v149_v11 = vpop.f32.mrf.mxu0 }
  0x9b   :  { %v172_v12 = vpop.f32.mrf.mxu1  ;;  %v150_v13 = vadd.f32 %v1879_v10, %v149_v11 }
  0x9d   :  { %v175_v14 = vadd.f32 %v172_v12, %v150_v13 }
  0x9f   :  { %1487 = vtanh.f32 %v175_v14  ;;  %v1426_v16 = vmul.f32 -1.442695, %v175_v14 }
  0xa1   :  { %1489 = vpow2.f32 %v1426_v16 }
  0xa5   :  { %v1488_v15 = vpop.eup %1487 }
  0xa6   :  { %198 = vrot.lane.b32.xlu0 %v1488_v15, %s1740_s16 }
  0xa7   :  { %v1490_v17 = vpop.eup %1489 }
  0xa8   :  { %v179_v18 = vadd.f32 1.0, %v1490_v17 }
  0xaa   :  { %1491 = vrcp.f32 %v179_v18  ;;  %v191_v24 = vand.u32 2147483648, %v179_v18  ;;  %vm185_vm2 = vweird.f32 %v179_v18  ;;  %v189_v25 = vand.u32 2147483647, %v179_v18 }
  0xab   :  { %v233_v46 = vpop.f32.mrf.mxu2 }
  0xac   :  { %v192_v27 = vor.u32 1.1754944e-38, %v191_v24  ;;  %vm190_vm4 = vcmp.eq.f32.partialorder %v189_v25, 8.507059e+37  ;;  %v234_v47 = vadd.f32 %v1879_v10, %v233_v46 }
  0xb0   :  { %v1492_v19 = vpop.eup %1491 }
  0xb1   :  { %v181_v20 = vmul.f32 %v1492_v19, %v179_v18  ;;  %vm186_vm1 = vweird.f32 %v1492_v19  ;;  %v319_v18 = vpop.f32.mrf.mxu0 }
  0xb2   :  { %vm187_vm3 = vmor %vm185_vm2, %vm186_vm1 }
  0xb3   :  { %v182_v21 = vsub.f32 1.0, %v181_v20 }
  0xb5   :  { %v183_v22 = vmul.f32 %v1492_v19, %v182_v21 }
  0xb7   :  { %v184_v23 = vadd.f32 %v1492_v19, %v183_v22 }
  0xb9   :  { %v188_v26 = vsel %vm187_vm3, %v1492_v19, %v184_v23  ;;  %v320_v19 = vadd.f32 %v1879_v10, %v319_v18 }
  0xba   :  { %v193_v29 = vsel %vm190_vm4, %v192_v27, %v188_v26 }
  0xbb   :  { %v196_v31 = vmul.f32 0.0, %v193_v29 }
 0x118   :  { %v199_v28 = vpop.permute.xlu0 %198 }
 0x119   :  { %v201_v30 = vmul.f32 %v199_v28, %v193_v29 }
 0x11b   :  { %203 = vrot.lane.b32.xlu0 %v201_v30, %s1741_s3 }
 0x18d   :  { %v204_v32 = vpop.permute.xlu0 %203 }
 0x18e   :  { %v1884_v33 = vadd.f32 %v204_v32, %v196_v31 }
 0x190   :  { %1493 = vtanh.f32 %v1884_v33 }
 0x196   :  { %v1494_v34 = vpop.eup %1493 }
 0x197   :  { %209 = vrot.lane.b32.xlu1 %v1494_v34, %s1740_s16 }
 0x209   :  { %v210_v43 = vpop.permute.xlu1 %209 }
 0x20a   :  { %v212_v44 = vmul.f32 %v210_v43, %v193_v29 }
 0x20c   :  { %237 = vrot.lane.b32.xlu1 %v212_v44, %s1741_s3 }
 0x27e   :  { %v238_v45 = vpop.permute.xlu1 %237 }
 0x27f   :  { %1428 = vmatmul.msk.f32.vlgmr.msra.gmra.mxu3 %vm128_vm0, %v238_v45  ;;  %1448 = vmatmul.msk.f32.vlgmr.msra.gmra.mxu0 %vm128_vm0, %v238_v45 }
 0x280   :  { %597 = vmatpush.msra.mxu3 %v1814_v2 }
 0x282   :  { %598 = vmatpush.msra.mxu3 %v1818_v3 }
 0x284   :  { %599 = vmatpush.msra.mxu3 %v1825_v5 }
 0x286   :  { %600 = vmatpush.msra.mxu3 %v1836_v7 }
 0x302   :  { %v258_v48 = vpop.f32.mrf.mxu3 }
 0x303   :  { %v261_v49 = vadd.f32 %v258_v48, %v234_v47  ;;  %v1420_v48 = vld [vmem:[%s2249_s0 + $0x6] sm:$0x3] }
 0x304   :  { %1433 = vmatmul.msk.f32.vlgmr.msrb.gmra.mxu2 %vm128_vm0, %v1420_v48 }
 0x305   :  { %1495 = vtanh.f32 %v261_v49  ;;  %v1429_v51 = vmul.f32 -1.442695, %v261_v49  ;;  %744 = vmatpush.msrb.mxu2 %v1807_v0  ;;  %v1968_v49 = vld [vmem:[%s2249_s0 + $0xa] sm:$0x3]  ;;  %v1424_v0 = vld [vmem:[%s2249_s0 + $0xe] sm:$0x3] }
 0x307   :  { %1497 = vpow2.f32 %v1429_v51  ;;  %745 = vmatpush.msrb.mxu2 %v1812_v1 }
 0x309   :  { %746 = vmatpush.msrb.mxu2 %v1823_v4 }
 0x30b   :  { %v1496_v50 = vpop.eup %1495  ;;  %747 = vmatpush.msrb.mxu2 %v1834_v6 }
 0x30c   :  { %284 = vrot.lane.b32.xlu2 %v1496_v50, %s1740_s16  ;;  %1439 = vmatmul.msk.f32.vlgmr.msra.gmra.mxu2 %vm128_vm0, %v1968_v49 }
 0x30d   :  { %v1498_v52 = vpop.eup %1497  ;;  %992 = vmatpush.msra.mxu2 %v1909_v38 }
 0x30e   :  { %v265_v53 = vadd.f32 1.0, %v1498_v52 }
 0x30f   :  { %993 = vmatpush.msra.mxu2 %v1915_v39 }
 0x310   :  { %1499 = vrcp.f32 %v265_v53  ;;  %v277_v59 = vand.u32 2147483648, %v265_v53  ;;  %vm271_vm6 = vweird.f32 %v265_v53  ;;  %v275_v60 = vand.u32 2147483647, %v265_v53 }
 0x311   :  { %994 = vmatpush.msra.mxu2 %v1919_v40 }
 0x312   :  { %v278_v62 = vor.u32 1.1754944e-38, %v277_v59  ;;  %vm276_vm8 = vcmp.eq.f32.partialorder %v275_v60, 8.507059e+37 }
 0x313   :  { %995 = vmatpush.msra.mxu2 %v1922_v41 }
 0x314   :  { %1445 = vmatmul.msk.f32.vlgmr.msrb.gmra.mxu2 %vm128_vm0, %v1424_v0 }
 0x315   :  { %1276 = vmatpush.msrb.mxu2 %v1909_v38 }
 0x316   :  { %v1500_v54 = vpop.eup %1499 }
 0x317   :  { %v267_v55 = vmul.f32 %v1500_v54, %v265_v53  ;;  %vm272_vm5 = vweird.f32 %v1500_v54  ;;  %1277 = vmatpush.msrb.mxu2 %v1915_v39 }
 0x318   :  { %vm273_vm7 = vmor %vm271_vm6, %vm272_vm5 }
 0x319   :  { %v268_v56 = vsub.f32 1.0, %v267_v55  ;;  %1278 = vmatpush.msrb.mxu2 %v1919_v40 }
 0x31b   :  { %v269_v57 = vmul.f32 %v1500_v54, %v268_v56  ;;  %1279 = vmatpush.msrb.mxu2 %v1922_v41 }
 0x31d   :  { %v270_v58 = vadd.f32 %v1500_v54, %v269_v57 }
 0x31f   :  { %v274_v61 = vsel %vm273_vm7, %v1500_v54, %v270_v58 }
 0x320   :  { %v279_v8 = vsel %vm276_vm8, %v278_v62, %v274_v61 }
 0x321   :  { %v282_v11 = vmul.f32 %v279_v8, %v1884_v33 }
 0x366   :  { %v285_v63 = vpop.permute.xlu2 %284 }
 0x367   :  { %v287_v9 = vmul.f32 %v285_v63, %v279_v8 }
 0x369   :  { %289 = vrot.lane.b32.xlu2 %v287_v9, %s1741_s3 }
 0x387   :  { %v405_v50 = vpop.f32.mrf.mxu2 }
 0x388   :  { %v406_v51 = vadd.f32 %v1879_v10, %v405_v50 }
 0x3c3   :  { %v290_v12 = vpop.permute.xlu2 %289 }
 0x3c4   :  { %v292_v13 = vadd.f32 %v290_v12, %v282_v11 }
 0x3c6   :  { %1501 = vtanh.f32 %v292_v13 }
 0x3cc   :  { %v1502_v14 = vpop.eup %1501 }
 0x3cd   :  { %295 = vrot.lane.b32.xlu0 %v1502_v14, %s1740_s16 }
 0x43f   :  { %v296_v15 = vpop.permute.xlu0 %295 }
 0x440   :  { %v298_v16 = vmul.f32 %v296_v15, %v279_v8 }
 0x442   :  { %323 = vrot.lane.b32.xlu1 %v298_v16, %s1741_s3 }
 0x4b4   :  { %v1947_v17 = vpop.permute.xlu1 %323 }
 0x4b5   :  { %1431 = vmatmul.msk.f32.vlgmr.msrb.gmra.mxu1 %vm128_vm0, %v1947_v17 }
 0x4b6   :  { %683 = vmatpush.msrb.mxu1 %v1814_v2 }
 0x4b8   :  { %684 = vmatpush.msrb.mxu1 %v1818_v3 }
 0x4ba   :  { %685 = vmatpush.msrb.mxu1 %v1825_v5 }
 0x4bc   :  { %686 = vmatpush.msrb.mxu1 %v1836_v7 }
 0x532   :  { %v344_v20 = vpop.f32.mrf.mxu1 }
 0x533   :  { %v347_v21 = vadd.f32 %v344_v20, %v320_v19  ;;  %v491_v19 = vpop.f32.mrf.mxu0 }
 0x534   :  { %v492_v20 = vadd.f32 %v1879_v10, %v491_v19 }
 0x535   :  { %1503 = vtanh.f32 %v347_v21  ;;  %v1432_v23 = vmul.f32 -1.442695, %v347_v21 }
 0x537   :  { %1505 = vpow2.f32 %v1432_v23 }
 0x53b   :  { %v1504_v22 = vpop.eup %1503  ;;  %v663_v19 = vpop.f32.mrf.mxu0 }
 0x53c   :  { %370 = vrot.lane.b32.xlu2 %v1504_v22, %s1740_s16 }
 0x53d   :  { %v1506_v24 = vpop.eup %1505 }
 0x53e   :  { %v351_v25 = vadd.f32 1.0, %v1506_v24 }
 0x540   :  { %1507 = vrcp.f32 %v351_v25  ;;  %v363_v31 = vand.u32 2147483648, %v351_v25  ;;  %vm357_vm10 = vweird.f32 %v351_v25  ;;  %v361_v32 = vand.u32 2147483647, %v351_v25 }
 0x542   :  { %v364_v34 = vor.u32 1.1754944e-38, %v363_v31  ;;  %vm362_vm12 = vcmp.eq.f32.partialorder %v361_v32, 8.507059e+37 }
 0x546   :  { %v1508_v26 = vpop.eup %1507 }
 0x547   :  { %v353_v27 = vmul.f32 %v1508_v26, %v351_v25  ;;  %vm358_vm9 = vweird.f32 %v1508_v26 }
 0x548   :  { %vm359_vm11 = vmor %vm357_vm10, %vm358_vm9 }
 0x549   :  { %v354_v28 = vsub.f32 1.0, %v353_v27 }
 0x54b   :  { %v355_v29 = vmul.f32 %v1508_v26, %v354_v28 }
 0x54d   :  { %v356_v30 = vadd.f32 %v1508_v26, %v355_v29 }
 0x54f   :  { %v360_v33 = vsel %vm359_vm11, %v1508_v26, %v356_v30 }
 0x550   :  { %v365_v42 = vsel %vm362_vm12, %v364_v34, %v360_v33 }
 0x551   :  { %v368_v44 = vmul.f32 %v365_v42, %v292_v13 }
 0x596   :  { %v371_v35 = vpop.permute.xlu2 %370 }
 0x597   :  { %v373_v43 = vmul.f32 %v371_v35, %v365_v42 }
 0x599   :  { %375 = vrot.lane.b32.xlu0 %v373_v43, %s1741_s3 }
 0x60b   :  { %v376_v45 = vpop.permute.xlu0 %375 }
 0x60c   :  { %v378_v46 = vadd.f32 %v376_v45, %v368_v44 }
 0x60e   :  { %1509 = vtanh.f32 %v378_v46 }
 0x614   :  { %v1510_v47 = vpop.eup %1509 }
 0x615   :  { %381 = vrot.lane.b32.xlu1 %v1510_v47, %s1740_s16 }
 0x687   :  { %v382_v1 = vpop.permute.xlu1 %381 }
 0x688   :  { %v384_v4 = vmul.f32 %v382_v1, %v365_v42 }
 0x68a   :  { %409 = vrot.lane.b32.xlu2 %v384_v4, %s1741_s3 }
 0x6e4   :  { %v410_v6 = vpop.permute.xlu2 %409 }
 0x6e5   :  { %1434 = vmatmul.msk.f32.vlgmr.msrb.gmra.mxu3 %vm128_vm0, %v410_v6  ;;  %1453 = vmatmul.msk.f32.vlgmr.msra.gmra.mxu2 %vm128_vm0, %v410_v6  ;;  %v577_v6 = vpop.f32.mrf.mxu2 }
 0x6e6   :  { %769 = vmatpush.msrb.mxu3 %v1814_v2  ;;  %v578_v50 = vadd.f32 %v1879_v10, %v577_v6 }
 0x6e8   :  { %770 = vmatpush.msrb.mxu3 %v1818_v3 }
 0x6ea   :  { %771 = vmatpush.msrb.mxu3 %v1825_v5 }
 0x6ec   :  { %772 = vmatpush.msrb.mxu3 %v1836_v7 }
 0x768   :  { %v430_v52 = vpop.f32.mrf.mxu3 }
 0x769   :  { %v433_v53 = vadd.f32 %v430_v52, %v406_v51 }
 0x76b   :  { %1511 = vtanh.f32 %v433_v53  ;;  %v1435_v55 = vmul.f32 -1.442695, %v433_v53 }
 0x76d   :  { %1513 = vpow2.f32 %v1435_v55 }
 0x771   :  { %v1512_v54 = vpop.eup %1511 }
 0x772   :  { %456 = vrot.lane.b32.xlu0 %v1512_v54, %s1740_s16 }
 0x773   :  { %v1514_v56 = vpop.eup %1513 }
 0x774   :  { %v437_v57 = vadd.f32 1.0, %v1514_v56 }
 0x776   :  { %1515 = vrcp.f32 %v437_v57  ;;  %v449_v7 = vand.u32 2147483648, %v437_v57  ;;  %vm443_vm14 = vweird.f32 %v437_v57  ;;  %v447_v60 = vand.u32 2147483647, %v437_v57 }
 0x778   :  { %v450_v62 = vor.u32 1.1754944e-38, %v449_v7  ;;  %vm448_vm1 = vcmp.eq.f32.partialorder %v447_v60, 8.507059e+37 }
 0x77c   :  { %v1516_v2 = vpop.eup %1515 }
 0x77d   :  { %v439_v3 = vmul.f32 %v1516_v2, %v437_v57  ;;  %vm444_vm13 = vweird.f32 %v1516_v2 }
 0x77e   :  { %vm445_vm15 = vmor %vm443_vm14, %vm444_vm13 }
 0x77f   :  { %v440_v58 = vsub.f32 1.0, %v439_v3 }
 0x781   :  { %v441_v5 = vmul.f32 %v1516_v2, %v440_v58 }
 0x783   :  { %v442_v59 = vadd.f32 %v1516_v2, %v441_v5 }
 0x785   :  { %v446_v61 = vsel %vm445_vm15, %v1516_v2, %v442_v59 }
 0x786   :  { %v451_v8 = vsel %vm448_vm1, %v450_v62, %v446_v61 }
 0x787   :  { %v454_v11 = vmul.f32 %v451_v8, %v378_v46 }
 0x7e4   :  { %v457_v63 = vpop.permute.xlu0 %456 }
 0x7e5   :  { %v459_v9 = vmul.f32 %v457_v63, %v451_v8 }
 0x7e7   :  { %461 = vrot.lane.b32.xlu1 %v459_v9, %s1741_s3 }
 0x859   :  { %v462_v12 = vpop.permute.xlu1 %461 }
 0x85a   :  { %v464_v13 = vadd.f32 %v462_v12, %v454_v11 }
 0x85c   :  { %1517 = vtanh.f32 %v464_v13 }
 0x862   :  { %v1518_v14 = vpop.eup %1517 }
 0x863   :  { %467 = vrot.lane.b32.xlu2 %v1518_v14, %s1740_s16 }
 0x8bd   :  { %v468_v15 = vpop.permute.xlu2 %467 }
 0x8be   :  { %v470_v16 = vmul.f32 %v468_v15, %v451_v8 }
 0x8c0   :  { %495 = vrot.lane.b32.xlu0 %v470_v16, %s1741_s3 }
 0x932   :  { %v1998_v18 = vpop.permute.xlu0 %495 }
 0x933   :  { %1437 = vmatmul.msk.f32.vlgmr.msra.gmra.mxu1 %vm128_vm0, %v1998_v18 }
 0x934   :  { %921 = vmatpush.msra.mxu1 %v1909_v38 }
 0x936   :  { %922 = vmatpush.msra.mxu1 %v1915_v39 }
 0x938   :  { %923 = vmatpush.msra.mxu1 %v1919_v40 }
 0x93a   :  { %924 = vmatpush.msra.mxu1 %v1922_v41 }
 0x9b0   :  { %v516_v21 = vpop.f32.mrf.mxu1 }
 0x9b1   :  { %v519_v22 = vadd.f32 %v516_v21, %v492_v20  ;;  %v664_v20 = vadd.f32 %v1879_v10, %v663_v19 }
 0x9b3   :  { %1519 = vtanh.f32 %v519_v22  ;;  %v1438_v24 = vmul.f32 -1.442695, %v519_v22 }
 0x9b5   :  { %1521 = vpow2.f32 %v1438_v24 }
 0x9b9   :  { %v1520_v23 = vpop.eup %1519 }
 0x9ba   :  { %542 = vrot.lane.b32.xlu1 %v1520_v23, %s1740_s16 }
 0x9bb   :  { %v1522_v25 = vpop.eup %1521 }
 0x9bc   :  { %v523_v26 = vadd.f32 1.0, %v1522_v25 }
 0x9be   :  { %1523 = vrcp.f32 %v523_v26  ;;  %v535_v32 = vand.u32 2147483648, %v523_v26  ;;  %vm529_vm3 = vweird.f32 %v523_v26  ;;  %v533_v33 = vand.u32 2147483647, %v523_v26 }
 0x9c0   :  { %v536_v35 = vor.u32 1.1754944e-38, %v535_v32  ;;  %vm534_vm5 = vcmp.eq.f32.partialorder %v533_v33, 8.507059e+37 }
 0x9c4   :  { %v1524_v27 = vpop.eup %1523 }
 0x9c5   :  { %v525_v28 = vmul.f32 %v1524_v27, %v523_v26  ;;  %vm530_vm2 = vweird.f32 %v1524_v27 }
 0x9c6   :  { %vm531_vm4 = vmor %vm529_vm3, %vm530_vm2 }
 0x9c7   :  { %v526_v29 = vsub.f32 1.0, %v525_v28 }
 0x9c9   :  { %v527_v30 = vmul.f32 %v1524_v27, %v526_v29 }
 0x9cb   :  { %v528_v31 = vadd.f32 %v1524_v27, %v527_v30 }
 0x9cd   :  { %v532_v34 = vsel %vm531_vm4, %v1524_v27, %v528_v31 }
 0x9ce   :  { %v537_v43 = vsel %vm534_vm5, %v536_v35, %v532_v34 }
 0x9cf   :  { %v540_v45 = vmul.f32 %v537_v43, %v464_v13 }
 0xa2c   :  { %v543_v42 = vpop.permute.xlu1 %542 }
 0xa2d   :  { %v545_v44 = vmul.f32 %v543_v42, %v537_v43 }
 0xa2f   :  { %547 = vrot.lane.b32.xlu2 %v545_v44, %s1741_s3 }
 0xa89   :  { %v548_v46 = vpop.permute.xlu2 %547 }
 0xa8a   :  { %v550_v47 = vadd.f32 %v548_v46, %v540_v45 }
 0xa8c   :  { %1525 = vtanh.f32 %v550_v47 }
 0xa92   :  { %v1526_v48 = vpop.eup %1525 }
 0xa93   :  { %553 = vrot.lane.b32.xlu0 %v1526_v48, %s1740_s16 }
 0xb05   :  { %v554_v0 = vpop.permute.xlu0 %553 }
 0xb06   :  { %v556_v1 = vmul.f32 %v554_v0, %v537_v43 }
 0xb08   :  { %581 = vrot.lane.b32.xlu1 %v556_v1, %s1741_s3 }
 0xb7a   :  { %v582_v4 = vpop.permute.xlu1 %581 }
 0xb7b   :  { %1440 = vmatmul.msk.f32.vlgmr.msra.gmra.mxu3 %vm128_vm0, %v582_v4  ;;  %1459 = vmatmul.msk.f32.vlgmr.msrb.gmra.mxu0 %vm128_vm0, %v582_v4  ;;  %v749_v4 = vpop.f32.mrf.mxu2 }
 0xb7c   :  { %1063 = vmatpush.msra.mxu3 %v1909_v38  ;;  %v750_v6 = vadd.f32 %v1879_v10, %v749_v4 }
 0xb7e   :  { %1064 = vmatpush.msra.mxu3 %v1915_v39 }
 0xb80   :  { %1065 = vmatpush.msra.mxu3 %v1919_v40 }
 0xb82   :  { %1066 = vmatpush.msra.mxu3 %v1922_v41 }
 0xbfe   :  { %v602_v51 = vpop.f32.mrf.mxu3 }
 0xbff   :  { %v605_v52 = vadd.f32 %v602_v51, %v578_v50 }
 0xc01   :  { %1527 = vtanh.f32 %v605_v52  ;;  %v1441_v54 = vmul.f32 -1.442695, %v605_v52 }
 0xc03   :  { %1529 = vpow2.f32 %v1441_v54 }
 0xc07   :  { %v1528_v53 = vpop.eup %1527 }
 0xc08   :  { %628 = vrot.lane.b32.xlu2 %v1528_v53, %s1740_s16 }
 0xc09   :  { %v1530_v55 = vpop.eup %1529 }
 0xc0a   :  { %v609_v56 = vadd.f32 1.0, %v1530_v55 }
 0xc0c   :  { %1531 = vrcp.f32 %v609_v56  ;;  %v621_v59 = vand.u32 2147483648, %v609_v56  ;;  %vm615_vm7 = vweird.f32 %v609_v56  ;;  %v619_v7 = vand.u32 2147483647, %v609_v56 }
 0xc0e   :  { %v622_v61 = vor.u32 1.1754944e-38, %v621_v59  ;;  %vm620_vm9 = vcmp.eq.f32.partialorder %v619_v7, 8.507059e+37 }
 0xc12   :  { %v1532_v57 = vpop.eup %1531 }
 0xc13   :  { %v611_v2 = vmul.f32 %v1532_v57, %v609_v56  ;;  %vm616_vm6 = vweird.f32 %v1532_v57 }
 0xc14   :  { %vm617_vm8 = vmor %vm615_vm7, %vm616_vm6 }
 0xc15   :  { %v612_v3 = vsub.f32 1.0, %v611_v2 }
 0xc17   :  { %v613_v58 = vmul.f32 %v1532_v57, %v612_v3 }
 0xc19   :  { %v614_v5 = vadd.f32 %v1532_v57, %v613_v58 }
 0xc1b   :  { %v618_v60 = vsel %vm617_vm8, %v1532_v57, %v614_v5 }
 0xc1c   :  { %v623_v63 = vsel %vm620_vm9, %v622_v61, %v618_v60 }
 0xc1d   :  { %v626_v9 = vmul.f32 %v623_v63, %v550_v47 }
 0xc62   :  { %v629_v62 = vpop.permute.xlu2 %628 }
 0xc63   :  { %v631_v8 = vmul.f32 %v629_v62, %v623_v63 }
 0xc65   :  { %633 = vrot.lane.b32.xlu0 %v631_v8, %s1741_s3 }
 0xcd7   :  { %v634_v11 = vpop.permute.xlu0 %633 }
 0xcd8   :  { %v636_v12 = vadd.f32 %v634_v11, %v626_v9 }
 0xcda   :  { %1533 = vtanh.f32 %v636_v12 }
 0xce0   :  { %v1534_v13 = vpop.eup %1533 }
 0xce1   :  { %639 = vrot.lane.b32.xlu1 %v1534_v13, %s1740_s16 }
 0xd53   :  { %v640_v14 = vpop.permute.xlu1 %639 }
 0xd54   :  { %v642_v15 = vmul.f32 %v640_v14, %v623_v63 }
 0xd56   :  { %667 = vrot.lane.b32.xlu2 %v642_v15, %s1741_s3 }
 0xdb0   :  { %v668_v16 = vpop.permute.xlu2 %667 }
 0xdb1   :  { %1443 = vmatmul.msk.f32.vlgmr.msrb.gmra.mxu1 %vm128_vm0, %v668_v16 }
 0xdb2   :  { %1205 = vmatpush.msrb.mxu1 %v1909_v38 }
 0xdb4   :  { %1206 = vmatpush.msrb.mxu1 %v1915_v39 }
 0xdb6   :  { %1207 = vmatpush.msrb.mxu1 %v1919_v40 }
 0xdb8   :  { %1208 = vmatpush.msrb.mxu1 %v1922_v41 }
 0xdb9   :  { %1450 = vmatmul.msk.f32.vlgmr.msra.gmra.mxu1 %vm128_vm0, %v1947_v17 }
 0xdc1   :  { %1462 = vmatmul.msk.f32.vlgmr.msrb.gmra.mxu1 %vm128_vm0, %v668_v16 }
 0xe2e   :  { %v688_v21 = vpop.f32.mrf.mxu1 }
 0xe2f   :  { %v691_v22 = vadd.f32 %v688_v21, %v664_v20 }
 0xe31   :  { %1535 = vtanh.f32 %v691_v22  ;;  %v1444_v24 = vmul.f32 -1.442695, %v691_v22 }
 0xe33   :  { %1537 = vpow2.f32 %v1444_v24 }
 0xe36   :  { %v926_v54 = vpop.f32.mrf.mxu1 }
 0xe37   :  { %v1536_v23 = vpop.eup %1535 }
 0xe38   :  { %714 = vrot.lane.b32.xlu0 %v1536_v23, %s1740_s16 }
 0xe39   :  { %v1538_v25 = vpop.eup %1537 }
 0xe3a   :  { %v695_v26 = vadd.f32 1.0, %v1538_v25 }
 0xe3c   :  { %1539 = vrcp.f32 %v695_v26  ;;  %v707_v31 = vand.u32 2147483648, %v695_v26  ;;  %vm701_vm11 = vweird.f32 %v695_v26  ;;  %v705_v32 = vand.u32 2147483647, %v695_v26 }
 0xe3e   :  { %v708_v34 = vor.u32 1.1754944e-38, %v707_v31  ;;  %vm706_vm13 = vcmp.eq.f32.partialorder %v705_v32, 8.507059e+37 }
 0xe42   :  { %v1540_v27 = vpop.eup %1539 }
 0xe43   :  { %v697_v28 = vmul.f32 %v1540_v27, %v695_v26  ;;  %vm702_vm10 = vweird.f32 %v1540_v27 }
 0xe44   :  { %vm703_vm12 = vmor %vm701_vm11, %vm702_vm10  ;;  %vm870_vm11 = vcmask 254976  }
 0xe45   :  { %v698_v29 = vsub.f32 1.0, %v697_v28 }
 0xe47   :  { %v699_v17 = vmul.f32 %v1540_v27, %v698_v29 }
 0xe49   :  { %v700_v30 = vadd.f32 %v1540_v27, %v699_v17 }
 0xe4b   :  { %v704_v33 = vsel %vm703_vm12, %v1540_v27, %v700_v30 }
 0xe4c   :  { %v709_v42 = vsel %vm706_vm13, %v708_v34, %v704_v33 }
 0xe4d   :  { %v712_v44 = vmul.f32 %v709_v42, %v636_v12 }
 0xeaa   :  { %v715_v35 = vpop.permute.xlu0 %714 }
 0xeab   :  { %v717_v43 = vmul.f32 %v715_v35, %v709_v42 }
 0xead   :  { %719 = vrot.lane.b32.xlu1 %v717_v43, %s1741_s3 }
 0xf1f   :  { %v720_v45 = vpop.permute.xlu1 %719 }
 0xf20   :  { %v2033_v46 = vadd.f32 %v720_v45, %v712_v44 }
 0xf22   :  { %1541 = vtanh.f32 %v2033_v46 }
 0xf28   :  { %v1542_v47 = vpop.eup %1541 }
 0xf29   :  { %725 = vrot.lane.b32.xlu2 %v1542_v47, %s1740_s16 }
 0xf83   :  { %v726_v48 = vpop.permute.xlu2 %725 }
 0xf84   :  { %v728_v0 = vmul.f32 %v726_v48, %v709_v42 }
 0xf86   :  { %753 = vrot.lane.b32.xlu0 %v728_v0, %s1741_s3 }
 0xff8   :  { %v754_v1 = vpop.permute.xlu0 %753 }
 0xff9   :  { %1446 = vmatmul.msk.f32.vlgmr.msrb.gmra.mxu3 %vm128_vm0, %v754_v1  ;;  %1465 = vmatmul.msk.f32.vlgmr.msrb.gmra.mxu2 %vm128_vm0, %v754_v1 }
 0xffa   :  { %1352 = vmatpush.msrb.mxu3 %v1909_v38  ;;  %v2048_v38 = vld [vmem:[#allocation6] ss:$0 sm:$0xff] }
 0xffb   :  { %v2055_v10 = vadd.f32 %v2048_v38, %v926_v54  ;;  %v1210_v54 = vpop.f32.mrf.mxu1 }
 0xffc   :  { %1353 = vmatpush.msrb.mxu3 %v1915_v39  ;;  %v842_v39 = vpop.f32.mrf.mxu0 }
 0xffd   :  { %v1451_v56 = vmul.f32 -1.442695, %v2055_v10 }
 0xffe   :  { %1354 = vmatpush.msrb.mxu3 %v1919_v40  ;;  %v2051_v40 = vadd.f32 %v2048_v38, %v842_v39 }
0x1000   :  { %1355 = vmatpush.msrb.mxu3 %v1922_v41 }
0x1001   :  { %1456 = vmatmul.msk.f32.vlgmr.msra.gmra.mxu3 %vm128_vm0, %v1998_v18  ;;  %v1449_v18 = vmul.f32 -1.442695, %v2051_v40 }
0x1004   :  { %v1139_v35 = vpop.f32.mrf.mxu0 }
0x1005   :  { %v2065_v42 = vadd.f32 %v2048_v38, %v1139_v35 }
0x1007   :  { %v1460_v44 = vmul.f32 -1.442695, %v2065_v42 }
0x107c   :  { %v774_v50 = vpop.f32.mrf.mxu3 }
0x107d   :  { %v777_v51 = vadd.f32 %v774_v50, %v750_v6 }
0x107f   :  { %1543 = vtanh.f32 %v777_v51  ;;  %v1447_v53 = vmul.f32 -1.442695, %v777_v51  ;;  %v997_v51 = vpop.f32.mrf.mxu2 }
0x1081   :  { %1545 = vpow2.f32 %v1447_v53  ;;  %v2078_v53 = vadd.f32 %v2048_v38, %v997_v51 }
0x1082   :  { %1547 = vpow2.f32 %v1449_v18 }
0x1085   :  { %v1544_v52 = vpop.eup %1543 }
0x1086   :  { %800 = vrot.lane.b32.xlu1 %v1544_v52, %s1740_s16 }
0x1087   :  { %v1546_v41 = vpop.eup %1545 }
0x1088   :  { %v781_v55 = vadd.f32 1.0, %v1546_v41  ;;  %v1548_v57 = vpop.eup %1547  ;;  %v1454_v41 = vmul.f32 -1.442695, %v2078_v53 }
0x1089   :  { %v848_v3 = vadd.f32 1.0, %v1548_v57 }
0x108a   :  { %1549 = vrcp.f32 %v781_v55  ;;  %v793_v8 = vand.u32 2147483648, %v781_v55  ;;  %vm787_vm15 = vweird.f32 %v781_v55  ;;  %v791_v9 = vand.u32 2147483647, %v781_v55 }
0x108b   :  { %1551 = vpow2.f32 %v1451_v56  ;;  %v860_v24 = vand.u32 2147483648, %v848_v3  ;;  %vm854_vm4 = vweird.f32 %v848_v3  ;;  %v858_v25 = vand.u32 2147483647, %v848_v3 }
0x108c   :  { %1553 = vrcp.f32 %v848_v3  ;;  %v794_v14 = vor.u32 1.1754944e-38, %v793_v8  ;;  %vm792_vm2 = vcmp.eq.f32.partialorder %v791_v9, 8.507059e+37  ;;  %v1601_v8 = vld [vmem:[%s2249_s0] sm:$0x3] }
0x108d   :  { %v861_v28 = vor.u32 1.1754944e-38, %v860_v24  ;;  %vm859_vm6 = vcmp.eq.f32.partialorder %v858_v25, 8.507059e+37 }
0x1090   :  { %v1550_v2 = vpop.eup %1549 }
0x1091   :  { %v783_v58 = vmul.f32 %v1550_v2, %v781_v55  ;;  %v1552_v5 = vpop.eup %1551  ;;  %vm788_vm14 = vweird.f32 %v1550_v2  ;;  %v2082_v55 = vadd.f32 %v2048_v38, %v1210_v54 }
0x1092   :  { %v932_v7 = vadd.f32 1.0, %v1552_v5  ;;  %v1554_v60 = vpop.eup %1553  ;;  %vm789_vm1 = vmor %vm787_vm15, %vm788_vm14 }
0x1093   :  { %v784_v59 = vsub.f32 1.0, %v783_v58  ;;  %v850_v62 = vmul.f32 %v1554_v60, %v848_v3  ;;  %vm855_vm3 = vweird.f32 %v1554_v60 }
0x1094   :  { %1555 = vrcp.f32 %v932_v7  ;;  %vm856_vm5 = vmor %vm854_vm4, %vm855_vm3  ;;  %v944_v30 = vand.u32 2147483648, %v932_v7  ;;  %vm938_vm8 = vweird.f32 %v932_v7  ;;  %v942_v31 = vand.u32 2147483647, %v932_v7 }
0x1095   :  { %v785_v61 = vmul.f32 %v1550_v2, %v784_v59  ;;  %v851_v11 = vsub.f32 1.0, %v850_v62 }
0x1096   :  { %v945_v33 = vor.u32 1.1754944e-38, %v944_v30  ;;  %vm943_vm10 = vcmp.eq.f32.partialorder %v942_v31, 8.507059e+37 }
0x1097   :  { %v786_v63 = vadd.f32 %v1550_v2, %v785_v61  ;;  %v852_v15 = vmul.f32 %v1554_v60, %v851_v11 }
0x1099   :  { %v790_v13 = vsel %vm789_vm1, %v1550_v2, %v786_v63  ;;  %v853_v22 = vadd.f32 %v1554_v60, %v852_v15 }
0x109a   :  { %v1556_v12 = vpop.eup %1555  ;;  %v2058_v20 = vsel %vm792_vm2, %v794_v14, %v790_v13 }
0x109b   :  { %v934_v16 = vmul.f32 %v1556_v12, %v932_v7  ;;  %v857_v26 = vsel %vm856_vm5, %v1554_v60, %v853_v22  ;;  %vm939_vm7 = vweird.f32 %v1556_v12  ;;  %v798_v43 = vmul.f32 %v2058_v20, %v2033_v46 }
0x109c   :  { %v862_v29 = vsel %vm859_vm6, %v861_v28, %v857_v26  ;;  %vm940_vm9 = vmor %vm938_vm8, %vm939_vm7 }
0x109d   :  { %v935_v23 = vsub.f32 1.0, %v934_v16 }
0x109f   :  { %v936_v27 = vmul.f32 %v1556_v12, %v935_v23 }
0x10a1   :  { %v937_v17 = vadd.f32 %v1556_v12, %v936_v27 }
0x10a3   :  { %v941_v32 = vsel %vm940_vm9, %v1556_v12, %v937_v17 }
0x10a4   :  { %v946_v34 = vsel %vm943_vm10, %v945_v33, %v941_v32  ;;  %v1743_v33 = vmov 32.0  }
0x10f8   :  { %v801_v19 = vpop.permute.xlu1 %800 }
0x10f9   :  { %v803_v21 = vmul.f32 %v801_v19, %v2058_v20 }
0x10fb   :  { %805 = vrot.lane.b32.xlu2 %v803_v21, %s1741_s3 }
0x1103   :  { %865 = vrot.lane.b32.xlu2 %v862_v29, %s1742_s28 }
0x110b   :  { %949 = vrot.lane.b32.xlu2 %v946_v34, %s1742_s28 }
0x1155   :  { %v806_v45 = vpop.permute.xlu2 %805 }
0x1156   :  { %v808_v47 = vadd.f32 %v806_v45, %v798_v43 }
0x1158   :  { %1557 = vtanh.f32 %v808_v47 }
0x1159   :  { %1559 = vpow2.f32 %v1460_v44 }
0x115d   :  { %v866_v48 = vpop.permute.xlu2 %865 }
0x115e   :  { %v1558_v0 = vpop.eup %1557  ;;  %v868_v7 = vmul.f32 %v866_v48, %v2051_v40 }
0x115f   :  { %v1560_v1 = vpop.eup %1559  ;;  %811 = vrot.lane.b32.xlu0 %v1558_v0, %s1740_s16 }
0x1160   :  { %v1145_v4 = vadd.f32 1.0, %v1560_v1  ;;  %v2090_v9 = vadd.f32 %v1601_v8, %v868_v7 }
0x1162   :  { %1561 = vrcp.f32 %v1145_v4  ;;  %v1157_v58 = vand.u32 2147483648, %v1145_v4  ;;  %vm1151_vm13 = vweird.f32 %v1145_v4  ;;  %v1155_v5 = vand.u32 2147483647, %v1145_v4 }
0x1163   :  { %1563 = vpow2.f32 %v1454_v41  ;;  %v871_v12 = vsel %vm870_vm11, %v2090_v9, 0.0 }
0x1164   :  { %v1158_v60 = vor.u32 1.1754944e-38, %v1157_v58  ;;  %vm1156_vm15 = vcmp.eq.f32.partialorder %v1155_v5, 8.507059e+37 }
0x1165   :  { %v950_v6 = vpop.permute.xlu2 %949 }
0x1166   :  { %v952_v50 = vmul.f32 %v950_v6, %v2055_v10 }
0x1168   :  { %v2073_v52 = vadd.f32 %v1896_v36, %v952_v50  ;;  %v1562_v39 = vpop.eup %1561  ;;  %v1463_v36 = vmul.f32 -1.442695, %v2082_v55 }
0x1169   :  { %v1147_v18 = vmul.f32 %v1562_v39, %v1145_v4  ;;  %v1564_v57 = vpop.eup %1563  ;;  %vm1152_vm12 = vweird.f32 %v1562_v39 }
0x116a   :  { %v954_v46 = vsel %vm870_vm11, %v2073_v52, 0.0  ;;  %1565 = vpow2.f32 %v1463_v36  ;;  %v1003_v3 = vadd.f32 1.0, %v1564_v57  ;;  %vm1153_vm14 = vmor %vm1151_vm13, %vm1152_vm12 }
0x116b   :  { %955 = vadd.xlane.f32.xlu2 %v954_v46  ;;  %v1148_v10 = vsub.f32 1.0, %v1147_v18 }
0x116c   :  { %1567 = vrcp.f32 %v1003_v3  ;;  %v1015_v22 = vand.u32 2147483648, %v1003_v3  ;;  %vm1009_vm2 = vweird.f32 %v1003_v3  ;;  %v1013_v23 = vand.u32 2147483647, %v1003_v3 }
0x116d   :  { %v1149_v56 = vmul.f32 %v1562_v39, %v1148_v10  ;;  %v1281_v10 = vpop.f32.mrf.mxu2 }
0x116e   :  { %v1016_v26 = vor.u32 1.1754944e-38, %v1015_v22  ;;  %vm1014_vm4 = vcmp.eq.f32.partialorder %v1013_v23, 8.507059e+37  ;;  %v2118_v36 = vadd.f32 %v2048_v38, %v1281_v10 }
0x116f   :  { %v1150_v2 = vadd.f32 %v1562_v39, %v1149_v56 }
0x1170   :  { %v1566_v61 = vpop.eup %1565 }
0x1171   :  { %v1154_v59 = vsel %vm1153_vm14, %v1562_v39, %v1150_v2  ;;  %v1216_v63 = vadd.f32 1.0, %v1566_v61  ;;  %v1068_v39 = vpop.f32.mrf.mxu3 }
0x1172   :  { %v1159_v62 = vsel %vm1156_vm15, %v1158_v60, %v1154_v59  ;;  %v1568_v11 = vpop.eup %1567  ;;  %v2112_v18 = vadd.f32 %v2048_v38, %v1068_v39 }
0x1173   :  { %1569 = vrcp.f32 %v1216_v63  ;;  %v1005_v40 = vmul.f32 %v1568_v11, %v1003_v3  ;;  %vm1010_vm1 = vweird.f32 %v1568_v11  ;;  %v1228_v29 = vand.u32 2147483648, %v1216_v63 }
0x1174   :  { %vm1011_vm3 = vmor %vm1009_vm2, %vm1010_vm1  ;;  %vm1222_vm6 = vweird.f32 %v1216_v63  ;;  %v1226_v17 = vand.u32 2147483647, %v1216_v63  ;;  %1571 = vrcp.f32 %v1743_v33  ;;  %v1457_v54 = vmul.f32 -1.442695, %v2112_v18 }
0x1175   :  { %v1006_v13 = vsub.f32 1.0, %v1005_v40  ;;  %v1229_v31 = vor.u32 1.1754944e-38, %v1228_v29 }
0x1176   :  { %vm1227_vm8 = vcmp.eq.f32.partialorder %v1226_v17, 8.507059e+37  ;;  %1573 = vpow2.f32 %v1457_v54  ;;  %v1602_v17 = vld [vmem:[%s2249_s0 + $0x4] sm:$0x3] }
0x1177   :  { %v1007_v15 = vmul.f32 %v1568_v11, %v1006_v13 }
0x1179   :  { %v1570_v14 = vpop.eup %1569  ;;  %v1008_v19 = vadd.f32 %v1568_v11, %v1007_v15 }
0x117a   :  { %v1218_v16 = vmul.f32 %v1570_v14, %v1216_v63  ;;  %vm1223_vm5 = vweird.f32 %v1570_v14  ;;  %v1572_v34 = vpop.eup %1571 }
0x117b   :  { %v1012_v24 = vsel %vm1011_vm3, %v1568_v11, %v1008_v19  ;;  %vm1224_vm7 = vmor %vm1222_vm6, %vm1223_vm5  ;;  %v875_v35 = vmul.f32 32.0, %v1572_v34  ;;  %vm879_vm9 = vweird.f32 %v1572_v34 }
0x117c   :  { %v1219_v21 = vsub.f32 1.0, %v1218_v16  ;;  %v1017_v27 = vsel %vm1014_vm4, %v1016_v26, %v1012_v24  ;;  %v1574_v56 = vpop.eup %1573 }
0x117d   :  { %v876_v43 = vsub.f32 1.0, %v875_v35 }
0x117e   :  { %v1220_v25 = vmul.f32 %v1570_v14, %v1219_v21 }
0x117f   :  { %v877_v47 = vmul.f32 %v1572_v34, %v876_v43 }
0x1180   :  { %v1221_v28 = vadd.f32 %v1570_v14, %v1220_v25 }
0x1181   :  { %v878_v48 = vadd.f32 %v1572_v34, %v877_v47 }
0x1182   :  { %v1225_v30 = vsel %vm1224_vm7, %v1570_v14, %v1221_v28 }
0x1183   :  { %1162 = vrot.lane.b32.xlu2 %v1159_v62, %s1742_s28  ;;  %v1230_v32 = vsel %vm1227_vm8, %v1229_v31, %v1225_v30  ;;  %v2098_v0 = vsel %vm879_vm9, %v1572_v34, %v878_v48 }
0x1189   :  { %872 = vadd.xlane.f32.xlu0 %v871_v12 }
0x119d   :  { %1020 = vrot.lane.b32.xlu0 %v1017_v27, %s1742_s28 }
0x11a5   :  { %1233 = vrot.lane.b32.xlu0 %v1230_v32, %s1742_s28 }
0x11d1   :  { %v812_v44 = vpop.permute.xlu0 %811 }
0x11d2   :  { %v814_v45 = vmul.f32 %v812_v44, %v2058_v20 }
0x11d4   :  { %1336 = vrot.lane.b32.xlu1 %v814_v45, %s1741_s3 }
0x11de   :  { %v956_v1 = vpop.xlane.xlu2 %955 }
0x11df   :  { %v957_v4 = vmul.f32 %v956_v1, %v2098_v0 }
0x11e1   :  { %v2102_v6 = vsub.f32 %v2073_v52, %v957_v4 }
0x11e3   :  { %v959_v50 = vmul.f32 %v2102_v6, %v2102_v6 }
0x11e5   :  { %v960_v51 = vsel %vm870_vm11, %v959_v50, 0.0  ;;  %v2140_v50 = vld [vmem:[#allocation7] ss:$0 sm:$0xff] }
0x11e6   :  { %961 = vadd.xlane.f32.xlu2 %v960_v51  ;;  %v1163_v20 = vpop.permute.xlu2 %1162  ;;  %v2142_v51 = vld [vmem:[#allocation9] ss:$0 sm:$0xff] }
0x11e7   :  { %v1165_v46 = vmul.f32 %v1163_v20, %v2065_v42  ;;  %v1466_v42 = vmul.f32 -1.442695, %v2118_v36 }
0x11e9   :  { %v2109_v41 = vadd.f32 %v1905_v37, %v1165_v46  ;;  %1575 = vpow2.f32 %v1466_v42  ;;  %v1074_v37 = vadd.f32 1.0, %v1574_v56 }
0x11eb   :  { %v1167_v52 = vsel %vm870_vm11, %v2109_v41, 0.0  ;;  %1577 = vrcp.f32 %v1074_v37  ;;  %v1086_v40 = vand.u32 2147483648, %v1074_v37  ;;  %vm1080_vm12 = vweird.f32 %v1074_v37 }
0x11ec   :  { %v1084_v13 = vand.u32 2147483647, %v1074_v37 }
0x11ed   :  { %v1087_v16 = vor.u32 1.1754944e-38, %v1086_v40 }
0x11ee   :  { %1168 = vadd.xlane.f32.xlu2 %v1167_v52  ;;  %vm1085_vm14 = vcmp.eq.f32.partialorder %v1084_v13, 8.507059e+37 }
0x11ef   :  { %v1576_v58 = vpop.eup %1575 }
0x11f0   :  { %v1287_v7 = vadd.f32 1.0, %v1576_v58 }
0x11f1   :  { %v1578_v60 = vpop.eup %1577 }
0x11f2   :  { %1579 = vrcp.f32 %v1287_v7  ;;  %v1076_v61 = vmul.f32 %v1578_v60, %v1074_v37  ;;  %vm1081_vm10 = vweird.f32 %v1578_v60  ;;  %v1299_v22 = vand.u32 2147483648, %v1287_v7 }
0x11f3   :  { %vm1082_vm13 = vmor %vm1080_vm12, %vm1081_vm10  ;;  %vm1293_vm1 = vweird.f32 %v1287_v7  ;;  %v1297_v23 = vand.u32 2147483647, %v1287_v7 }
0x11f4   :  { %v1077_v62 = vsub.f32 1.0, %v1076_v61  ;;  %v1300_v25 = vor.u32 1.1754944e-38, %v1299_v22 }
0x11f5   :  { %vm1298_vm3 = vcmp.eq.f32.partialorder %v1297_v23, 8.507059e+37 }
0x11f6   :  { %v1078_v8 = vmul.f32 %v1578_v60, %v1077_v62 }
0x11f8   :  { %v1580_v63 = vpop.eup %1579  ;;  %v1079_v12 = vadd.f32 %v1578_v60, %v1078_v8 }
0x11f9   :  { %v1289_v11 = vmul.f32 %v1580_v63, %v1287_v7  ;;  %vm1294_vm15 = vweird.f32 %v1580_v63 }
0x11fa   :  { %v1083_v14 = vsel %vm1082_vm13, %v1578_v60, %v1079_v12  ;;  %vm1295_vm2 = vmor %vm1293_vm1, %vm1294_vm15 }
0x11fb   :  { %v1088_v19 = vsel %vm1085_vm14, %v1087_v16, %v1083_v14 }
0x11fc   :  { %v873_v57 = vpop.xlane.xlu0 %872 }
0x11fd   :  { %v881_v2 = vmul.f32 %v2098_v0, %v873_v57 }
0x11ff   :  { %v2123_v3 = vsub.f32 %v2090_v9, %v881_v2  ;;  %v1290_v9 = vsub.f32 1.0, %v1289_v11 }
0x1201   :  { %v883_v5 = vmul.f32 %v2123_v3, %v2123_v3  ;;  %v1291_v15 = vmul.f32 %v1580_v63, %v1290_v9 }
0x1203   :  { %v884_v59 = vsel %vm870_vm11, %v883_v5, 0.0  ;;  %v1292_v21 = vadd.f32 %v1580_v63, %v1291_v15 }
0x1204   :  { %885 = vadd.xlane.f32.xlu1 %v884_v59 }
0x1205   :  { %v1296_v24 = vsel %vm1295_vm2, %v1580_v63, %v1292_v21 }
0x1206   :  { %v1301_v26 = vsel %vm1298_vm3, %v1300_v25, %v1296_v24 }
0x120f   :  { %v1021_v27 = vpop.permute.xlu0 %1020 }
0x1210   :  { %v1023_v28 = vmul.f32 %v1021_v27, %v2078_v53 }
0x1212   :  { %v1024_v30 = vadd.f32 %v1602_v17, %v1023_v28 }
0x1214   :  { %v1025_v33 = vsel %vm870_vm11, %v1024_v30, 0.0 }
0x1217   :  { %v1234_v31 = vpop.permute.xlu0 %1233 }
0x1218   :  { %v1236_v32 = vmul.f32 %v1234_v31, %v2082_v55 }
0x121a   :  { %v1237_v34 = vadd.f32 %v1968_v49, %v1236_v32  ;;  %v1603_v32 = vld [vmem:[%s2249_s0 + $0x6] sm:$0x3] }
0x121c   :  { %v1238_v35 = vsel %vm870_vm11, %v1237_v34, 0.0 }
0x121d   :  { %1091 = vrot.lane.b32.xlu1 %v1088_v19, %s1742_s28 }
0x1225   :  { %1304 = vrot.lane.b32.xlu1 %v1301_v26, %s1742_s28 }
0x1246   :  { %v1337_v29 = vpop.permute.xlu1 %1336 }
0x1247   :  { %1468 = vmatmul.msk.f32.vlgmr.msrb.gmra.mxu3 %vm128_vm0, %v1337_v29 }
0x124f   :  { %1026 = vadd.xlane.f32.xlu1 %v1025_v33 }
0x1257   :  { %1239 = vadd.xlane.f32.xlu1 %v1238_v35 }
0x1259   :  { %v962_v53 = vpop.xlane.xlu2 %961 }
0x125a   :  { %v963_v43 = vmul.f32 %v962_v53, %v2098_v0  ;;  %v1604_v53 = vld [vmem:[%s2249_s0 + $0xc] sm:$0x3] }
0x125c   :  { %v964_v44 = vadd.f32 1e-05, %v963_v43 }
0x125e   :  { %1581 = vrsqrt.f32 %v964_v44  ;;  %vm971_vm4 = vweird.f32 %v964_v44 }
0x1264   :  { %v1582_v45 = vpop.eup %1581 }
0x1265   :  { %v966_v47 = vmul.f32 %v1582_v45, %v964_v44  ;;  %vm972_vm0 = vweird.f32 %v1582_v45 }
0x1266   :  { %vm973_vm5 = vmor %vm971_vm4, %vm972_vm0 }
0x1267   :  { %v967_v48 = vmul.f32 %v1582_v45, %v966_v47 }
0x1269   :  { %v968_v1 = vmul.f32 0.5, %v967_v48 }
0x126b   :  { %v969_v4 = vsub.f32 1.5, %v968_v1 }
0x126d   :  { %v970_v55 = vmul.f32 %v1582_v45, %v969_v4 }
0x126f   :  { %v974_v49 = vsel %vm973_vm5, %v1582_v45, %v970_v55 }
0x1270   :  { %v975_v20 = vmul.f32 %v974_v49, %v2102_v6 }
0x1272   :  { %v976_v46 = vmul.f32 %v2140_v50, %v975_v20 }
0x1274   :  { %v977_v39 = vadd.f32 %v2142_v51, %v976_v46 }
0x1276   :  { %1452 = vst.msk [vmem:[%s2257_s8 + $0x2] sm:$0x3] %vm870_vm11, %v977_v39 }
0x1277   :  { %v886_v52 = vpop.xlane.xlu1 %885 }
0x1278   :  { %v887_v54 = vmul.f32 %v886_v52, %v2098_v0 }
0x127a   :  { %v888_v10 = vadd.f32 1e-05, %v887_v54 }
0x127c   :  { %1583 = vrsqrt.f32 %v888_v10  ;;  %vm895_vm7 = vweird.f32 %v888_v10 }
0x1282   :  { %v1584_v42 = vpop.eup %1583 }
0x1283   :  { %v890_v56 = vmul.f32 %v1584_v42, %v888_v10  ;;  %vm896_vm6 = vweird.f32 %v1584_v42 }
0x1284   :  { %vm897_vm8 = vmor %vm895_vm7, %vm896_vm6 }
0x1285   :  { %v891_v37 = vmul.f32 %v1584_v42, %v890_v56 }
0x1287   :  { %v892_v57 = vmul.f32 0.5, %v891_v37 }
0x1289   :  { %v893_v2 = vsub.f32 1.5, %v892_v57 }
0x128b   :  { %v894_v6 = vmul.f32 %v1584_v42, %v893_v2 }
0x128d   :  { %v898_v58 = vsel %vm897_vm8, %v1584_v42, %v894_v6 }
0x128e   :  { %v899_v5 = vmul.f32 %v898_v58, %v2123_v3  ;;  %v1169_v58 = vpop.xlane.xlu2 %1168 }
0x128f   :  { %v1092_v60 = vpop.permute.xlu1 %1091 }
0x1290   :  { %v903_v59 = vmul.f32 %v2140_v50, %v899_v5  ;;  %v1094_v31 = vmul.f32 %v1092_v60, %v2112_v18  ;;  %v1170_v60 = vmul.f32 %v1169_v58, %v2098_v0 }
0x1292   :  { %v907_v7 = vadd.f32 %v2142_v51, %v903_v59  ;;  %v1095_v33 = vadd.f32 %v1603_v32, %v1094_v31 }
0x1294   :  { %908 = vst.msk [vmem:[%s2257_s8] sm:$0x3] %vm870_vm11, %v907_v7  ;;  %v1096_v35 = vsel %vm870_vm11, %v1095_v33, 0.0 }
0x1297   :  { %v1305_v61 = vpop.permute.xlu1 %1304 }
0x12c2   :  { %v1027_v62 = vpop.xlane.xlu1 %1026 }
0x12c3   :  { %v1028_v63 = vmul.f32 %v1027_v62, %v2098_v0 }
0x12c5   :  { %v2160_v8 = vsub.f32 %v1024_v30, %v1028_v63 }
0x12c7   :  { %v1030_v11 = vmul.f32 %v2160_v8, %v2160_v8 }
0x12c9   :  { %v1031_v3 = vsel %vm870_vm11, %v1030_v11, 0.0 }
0x12ca   :  { %v1357_v12 = vpop.f32.mrf.mxu3  ;;  %1032 = vadd.xlane.f32.xlu1 %v1031_v3  ;;  %v1240_v9 = vpop.xlane.xlu1 %1239  ;;  %v1171_v3 = vsub.f32 %v2109_v41, %v1170_v60 }
0x12cb   :  { %v2166_v40 = vadd.f32 %v2048_v38, %v1357_v12  ;;  %v1241_v13 = vmul.f32 %v1240_v9, %v2098_v0 }
0x12cd   :  { %v1469_v14 = vmul.f32 -1.442695, %v2166_v40  ;;  %v2170_v15 = vsub.f32 %v1237_v34, %v1241_v13  ;;  %v1307_v34 = vmul.f32 %v1305_v61, %v2118_v36 }
0x12cf   :  { %1585 = vpow2.f32 %v1469_v14  ;;  %v1243_v16 = vmul.f32 %v2170_v15, %v2170_v15  ;;  %v1308_v43 = vadd.f32 %v1604_v53, %v1307_v34 }
0x12d1   :  { %v1244_v19 = vsel %vm870_vm11, %v1243_v16, 0.0  ;;  %v1309_v44 = vsel %vm870_vm11, %v1308_v43, 0.0 }
0x12d2   :  { %1245 = vadd.xlane.f32.xlu1 %v1244_v19 }
0x12d5   :  { %v1586_v21 = vpop.eup %1585 }
0x12d6   :  { %v1363_v22 = vadd.f32 1.0, %v1586_v21 }
0x12d8   :  { %1587 = vrcp.f32 %v1363_v22  ;;  %v1375_v25 = vand.u32 2147483648, %v1363_v22  ;;  %v1373_v27 = vand.u32 2147483647, %v1363_v22  ;;  %vm1369_vm10 = vweird.f32 %v1363_v22 }
0x12da   :  { %v1376_v29 = vor.u32 1.1754944e-38, %v1375_v25  ;;  %vm1374_vm13 = vcmp.eq.f32.partialorder %v1373_v27, 8.507059e+37 }
0x12de   :  { %v1588_v23 = vpop.eup %1587 }
0x12df   :  { %v1365_v24 = vmul.f32 %v1588_v23, %v1363_v22  ;;  %vm1370_vm9 = vweird.f32 %v1588_v23 }
0x12e0   :  { %vm1371_vm12 = vmor %vm1369_vm10, %vm1370_vm9 }
0x12e1   :  { %v1366_v38 = vsub.f32 1.0, %v1365_v24 }
0x12e3   :  { %v1367_v26 = vmul.f32 %v1588_v23, %v1366_v38 }
0x12e5   :  { %v1368_v28 = vadd.f32 %v1588_v23, %v1367_v26 }
0x12e7   :  { %v1372_v17 = vsel %vm1371_vm12, %v1588_v23, %v1368_v28 }
0x12e8   :  { %v1377_v30 = vsel %vm1374_vm13, %v1376_v29, %v1372_v17 }
0x12e9   :  { %1380 = vrot.lane.b32.xlu0 %v1377_v30, %s1742_s28 }
0x1313   :  { %1097 = vadd.xlane.f32.xlu0 %v1096_v35 }
0x131b   :  { %1310 = vadd.xlane.f32.xlu0 %v1309_v44 }
0x133d   :  { %v1033_v45 = vpop.xlane.xlu1 %1032 }
0x133e   :  { %v1034_v18 = vmul.f32 %v1033_v45, %v2098_v0 }
0x1340   :  { %v1035_v47 = vadd.f32 1e-05, %v1034_v18 }
0x1342   :  { %1589 = vrsqrt.f32 %v1035_v47  ;;  %vm1042_vm15 = vweird.f32 %v1035_v47 }
0x1345   :  { %v1246_v48 = vpop.xlane.xlu1 %1245 }
0x1346   :  { %v1247_v1 = vmul.f32 %v1246_v48, %v2098_v0 }
0x1348   :  { %v1590_v36 = vpop.eup %1589  ;;  %v1248_v4 = vadd.f32 1e-05, %v1247_v1 }
0x1349   :  { %v1037_v55 = vmul.f32 %v1590_v36, %v1035_v47  ;;  %vm1043_vm14 = vweird.f32 %v1590_v36 }
0x134a   :  { %1591 = vrsqrt.f32 %v1248_v4  ;;  %vm1044_vm1 = vmor %vm1042_vm15, %vm1043_vm14  ;;  %vm1255_vm3 = vweird.f32 %v1248_v4 }
0x134b   :  { %v1038_v49 = vmul.f32 %v1590_v36, %v1037_v55 }
0x134d   :  { %v1039_v20 = vmul.f32 0.5, %v1038_v49 }
0x134f   :  { %v1040_v46 = vsub.f32 1.5, %v1039_v20 }
0x1350   :  { %v1592_v39 = vpop.eup %1591 }
0x1351   :  { %v1041_v52 = vmul.f32 %v1590_v36, %v1040_v46  ;;  %v1250_v54 = vmul.f32 %v1592_v39, %v1248_v4  ;;  %vm1256_vm2 = vweird.f32 %v1592_v39 }
0x1352   :  { %vm1257_vm0 = vmor %vm1255_vm3, %vm1256_vm2 }
0x1353   :  { %v1045_v10 = vsel %vm1044_vm1, %v1590_v36, %v1041_v52  ;;  %v1251_v42 = vmul.f32 %v1592_v39, %v1250_v54 }
0x1354   :  { %v1046_v56 = vmul.f32 %v1045_v10, %v2160_v8  ;;  %v1605_v8 = vld [vmem:[%s2249_s0 + $0xe] sm:$0x3] }
0x1355   :  { %v1252_v37 = vmul.f32 0.5, %v1251_v42 }
0x1356   :  { %v1047_v57 = vmul.f32 %v2140_v50, %v1046_v56 }
0x1357   :  { %v1253_v2 = vsub.f32 1.5, %v1252_v37 }
0x1358   :  { %v1048_v6 = vadd.f32 %v2142_v51, %v1047_v57 }
0x1359   :  { %v1254_v5 = vmul.f32 %v1592_v39, %v1253_v2 }
0x135a   :  { %1455 = vst.msk [vmem:[%s2257_s8 + $0x4] sm:$0x3] %vm870_vm11, %v1048_v6 }
0x135b   :  { %v1258_v59 = vsel %vm1257_vm0, %v1592_v39, %v1254_v5  ;;  %v1381_v7 = vpop.permute.xlu0 %1380 }
0x135c   :  { %v1259_v61 = vmul.f32 %v1258_v59, %v2170_v15  ;;  %v1383_v62 = vmul.f32 %v1381_v7, %v2166_v40  ;;  %v1172_v40 = vmul.f32 %v1171_v3, %v1171_v3 }
0x135e   :  { %v1260_v63 = vmul.f32 %v2140_v50, %v1259_v61  ;;  %v1384_v11 = vadd.f32 %v1605_v8, %v1383_v62  ;;  %v1173_v13 = vsel %vm870_vm11, %v1172_v40, 0.0 }
0x1360   :  { %v1261_v12 = vadd.f32 %v2142_v51, %v1260_v63  ;;  %v1385_v9 = vsel %vm870_vm11, %v1384_v11, 0.0 }
0x1361   :  { %1386 = vadd.xlane.f32.xlu2 %v1385_v9 }
0x1362   :  { %1464 = vst.msk [vmem:[%s2257_s8 + $0xa] sm:$0x3] %vm870_vm11, %v1261_v12 }
0x1369   :  { %1174 = vadd.xlane.f32.xlu2 %v1173_v13 }
0x1386   :  { %v1098_v14 = vpop.xlane.xlu0 %1097 }
0x1387   :  { %v1099_v15 = vmul.f32 %v1098_v14, %v2098_v0 }
0x1389   :  { %v1100_v16 = vsub.f32 %v1095_v33, %v1099_v15 }
0x138b   :  { %v1101_v19 = vmul.f32 %v1100_v16, %v1100_v16 }
0x138d   :  { %v1102_v41 = vsel %vm870_vm11, %v1101_v19, 0.0 }
0x138e   :  { %1103 = vadd.xlane.f32.xlu0 %v1102_v41  ;;  %v1311_v21 = vpop.xlane.xlu0 %1310 }
0x138f   :  { %v1312_v22 = vmul.f32 %v1311_v21, %v2098_v0 }
0x1391   :  { %v1313_v23 = vsub.f32 %v1308_v43, %v1312_v22 }
0x1393   :  { %v1314_v24 = vmul.f32 %v1313_v23, %v1313_v23 }
0x1395   :  { %v1315_v38 = vsel %vm870_vm11, %v1314_v24, 0.0 }
0x1396   :  { %1316 = vadd.xlane.f32.xlu0 %v1315_v38 }
0x13d4   :  { %v1387_v25 = vpop.xlane.xlu2 %1386 }
0x13d5   :  { %v1388_v26 = vmul.f32 %v1387_v25, %v2098_v0 }
0x13d7   :  { %v2215_v27 = vsub.f32 %v1384_v11, %v1388_v26 }
0x13d9   :  { %v1390_v28 = vmul.f32 %v2215_v27, %v2215_v27 }
0x13db   :  { %v1391_v29 = vsel %vm870_vm11, %v1390_v28, 0.0 }
0x13dc   :  { %1392 = vadd.xlane.f32.xlu2 %v1391_v29  ;;  %v1175_v17 = vpop.xlane.xlu2 %1174 }
0x13dd   :  { %v1176_v30 = vmul.f32 %v1175_v17, %v2098_v0 }
0x13df   :  { %v1177_v31 = vadd.f32 1e-05, %v1176_v30 }
0x13e1   :  { %1593 = vrsqrt.f32 %v1177_v31  ;;  %vm1184_vm5 = vweird.f32 %v1177_v31 }
0x13e7   :  { %v1594_v32 = vpop.eup %1593 }
0x13e8   :  { %v1179_v33 = vmul.f32 %v1594_v32, %v1177_v31  ;;  %vm1185_vm4 = vweird.f32 %v1594_v32 }
0x13e9   :  { %vm1186_vm6 = vmor %vm1184_vm5, %vm1185_vm4 }
0x13ea   :  { %v1180_v34 = vmul.f32 %v1594_v32, %v1179_v33 }
0x13ec   :  { %v1181_v35 = vmul.f32 0.5, %v1180_v34 }
0x13ee   :  { %v1182_v53 = vsub.f32 1.5, %v1181_v35 }
0x13f0   :  { %v1183_v43 = vmul.f32 %v1594_v32, %v1182_v53 }
0x13f2   :  { %v1187_v44 = vsel %vm1186_vm6, %v1594_v32, %v1183_v43 }
0x13f3   :  { %v1188_v45 = vmul.f32 %v1187_v44, %v1171_v3 }
0x13f5   :  { %v1189_v18 = vmul.f32 %v2140_v50, %v1188_v45 }
0x13f7   :  { %v1190_v47 = vadd.f32 %v2142_v51, %v1189_v18 }
0x13f9   :  { %1461 = vst.msk [vmem:[%s2257_s8 + $0x8] sm:$0x3] %vm870_vm11, %v1190_v47 }
0x1401   :  { %v1104_v48 = vpop.xlane.xlu0 %1103 }
0x1402   :  { %v1105_v1 = vmul.f32 %v1104_v48, %v2098_v0 }
0x1404   :  { %v1106_v36 = vadd.f32 1e-05, %v1105_v1 }
0x1406   :  { %1595 = vrsqrt.f32 %v1106_v36  ;;  %vm1113_vm8 = vweird.f32 %v1106_v36 }
0x1409   :  { %v1317_v4 = vpop.xlane.xlu0 %1316 }
0x140a   :  { %v1318_v55 = vmul.f32 %v1317_v4, %v2098_v0 }
0x140c   :  { %v1596_v49 = vpop.eup %1595  ;;  %v1319_v20 = vadd.f32 1e-05, %v1318_v55 }
0x140d   :  { %v1108_v46 = vmul.f32 %v1596_v49, %v1106_v36  ;;  %vm1114_vm7 = vweird.f32 %v1596_v49 }
0x140e   :  { %1597 = vrsqrt.f32 %v1319_v20  ;;  %vm1115_vm9 = vmor %vm1113_vm8, %vm1114_vm7  ;;  %vm1326_vm12 = vweird.f32 %v1319_v20 }
0x140f   :  { %v1109_v39 = vmul.f32 %v1596_v49, %v1108_v46 }
0x1411   :  { %v1110_v52 = vmul.f32 0.5, %v1109_v39 }
0x1413   :  { %v1111_v54 = vsub.f32 1.5, %v1110_v52 }
0x1414   :  { %v1598_v10 = vpop.eup %1597 }
0x1415   :  { %v1112_v42 = vmul.f32 %v1596_v49, %v1111_v54  ;;  %v1321_v56 = vmul.f32 %v1598_v10, %v1319_v20  ;;  %vm1327_vm10 = vweird.f32 %v1598_v10 }
0x1416   :  { %vm1328_vm13 = vmor %vm1326_vm12, %vm1327_vm10 }
0x1417   :  { %v1116_v37 = vsel %vm1115_vm9, %v1596_v49, %v1112_v42  ;;  %v1322_v57 = vmul.f32 %v1598_v10, %v1321_v56 }
0x1418   :  { %v1117_v2 = vmul.f32 %v1116_v37, %v1100_v16 }
0x1419   :  { %v1323_v6 = vmul.f32 0.5, %v1322_v57 }
0x141a   :  { %v1118_v58 = vmul.f32 %v2140_v50, %v1117_v2 }
0x141b   :  { %v1324_v5 = vsub.f32 1.5, %v1323_v6 }
0x141c   :  { %v1119_v59 = vadd.f32 %v2142_v51, %v1118_v58 }
0x141d   :  { %v1325_v7 = vmul.f32 %v1598_v10, %v1324_v5 }
0x141e   :  { %1458 = vst.msk [vmem:[%s2257_s8 + $0x6] sm:$0x3] %vm870_vm11, %v1119_v59 }
0x141f   :  { %v1329_v60 = vsel %vm1328_vm13, %v1598_v10, %v1325_v7 }
0x1420   :  { %v1330_v61 = vmul.f32 %v1329_v60, %v1313_v23 }
0x1422   :  { %v1331_v62 = vmul.f32 %v2140_v50, %v1330_v61 }
0x1424   :  { %v1332_v63 = vadd.f32 %v2142_v51, %v1331_v62 }
0x1426   :  { %1467 = vst.msk [vmem:[%s2257_s8 + $0xc] sm:$0x3] %vm870_vm11, %v1332_v63 }
0x144f   :  { %v1393_v8 = vpop.xlane.xlu2 %1392 }
0x1450   :  { %v1394_v11 = vmul.f32 %v1393_v8, %v2098_v0 }
0x1452   :  { %v1395_v3 = vadd.f32 1e-05, %v1394_v11 }
0x1454   :  { %1599 = vrsqrt.f32 %v1395_v3  ;;  %vm1402_vm15 = vweird.f32 %v1395_v3 }
0x145a   :  { %v1600_v12 = vpop.eup %1599 }
0x145b   :  { %v1397_v9 = vmul.f32 %v1600_v12, %v1395_v3  ;;  %vm1403_vm14 = vweird.f32 %v1600_v12 }
0x145c   :  { %vm1404_vm1 = vmor %vm1402_vm15, %vm1403_vm14 }
0x145d   :  { %v1398_v40 = vmul.f32 %v1600_v12, %v1397_v9 }
0x145f   :  { %v1399_v13 = vmul.f32 0.5, %v1398_v40 }
0x1461   :  { %v1400_v14 = vsub.f32 1.5, %v1399_v13 }
0x1463   :  { %v1401_v15 = vmul.f32 %v1600_v12, %v1400_v14 }
0x1465   :  { %v1405_v16 = vsel %vm1404_vm1, %v1600_v12, %v1401_v15 }
0x1466   :  { %v1406_v19 = vmul.f32 %v1405_v16, %v2215_v27 }
0x1468   :  { %v1407_v41 = vmul.f32 %v2140_v50, %v1406_v19 }
0x146a   :  { %v1408_v21 = vadd.f32 %v2142_v51, %v1407_v41 }
0x146c   :  { %1470 = vst.msk [vmem:[%s2257_s8 + $0xe] sm:$0x3] %vm870_vm11, %v1408_v21 }
0x146d   :  { %1415 = vsyncpa [#allocation3], 1 }
0x146e   :  { %1416 = vsyncpa [#allocation5], 1 }
0x146f   :  { %1417 = vsyncpa [#allocation8], 1 }

// kernel: _lambda_.7
= control target key start
LH: loop header
LB: loop body
LE: loop exit
PB: predicated region body
PF: predicated region fallthrough
CT: control target
= control target key end

     0   :  { %s2103_s0 = inlined_call_operand.vmem [shape: f32[16,32], index: 0, kind: input, shape index: {}]   ;;  %s2104_s1 = inlined_call_operand.vmem [shape: f32[32,96], index: 1, kind: input, shape index: {}]   ;;  %s2105_s2 = inlined_call_operand.vmem [shape: f32[1,96], index: 2, kind: input, shape index: {}]   ;;  %s2106_s3 = inlined_call_operand.hbm [shape: f32[32,32], index: 3, kind: input, shape index: {}]   ;;  %s2107_s4 = inlined_call_operand.vmem [shape: f32[1,32], index: 4, kind: input, shape index: {}]   ;;  %s2108_s5 = inlined_call_operand.hbm [shape: f32[32,64], index: 5, kind: input, shape index: {}]   ;;  %s2109_s6 = inlined_call_operand.hbm [shape: f32[1,64], index: 6, kind: input, shape index: {}]   ;;  %s2110_s7 = inlined_call_operand.hbm [shape: f32[1,32], index: 7, kind: input, shape index: {}]   ;;  %s2111_s8 = inlined_call_operand.hbm [shape: f32[1,32], index: 8, kind: input, shape index: {}]   ;;  %s2112_s9 = inlined_call_operand.hbm [shape: f32[32,32], index: 9, kind: input, shape index: {}]   ;;  %s2113_s10 = inlined_call_operand.hbm [shape: f32[1,32], index: 10, kind: input, shape index: {}]   ;;  %s2114_s11 = inlined_call_operand.hbm [shape: f32[32,32], index: 11, kind: input, shape index: {}]   ;;  %s2115_s12 = inlined_call_operand.hbm [shape: f32[1,32], index: 12, kind: input, shape index: {}]   ;;  %s2116_s13 = inlined_call_operand.hbm [shape: f32[32,64], index: 13, kind: input, shape index: {}]   ;;  %s2117_s14 = inlined_call_operand.hbm [shape: f32[1,64], index: 14, kind: input, shape index: {}]   ;;  %s2118_s15 = inlined_call_operand.hbm [shape: f32[1,32], index: 15, kind: input, shape index: {}]   ;;  %s2119_s16 = inlined_call_operand.hbm [shape: f32[1,32], index: 16, kind: input, shape index: {}]   ;;  %s2120_s17 = inlined_call_operand.vmem [shape: f32[16,32], index: 17, kind: output, shape index: {}]  }
   0x1   :  { %2123 = sst [smem:[#allocation29_spill]] %s2103_s0 }
   0x2   :  { %2124 = sst [smem:[#allocation30_spill]] %s2104_s1 }
   0x3   :  { %22 = vsyncpa [#allocation3], 0 }
   0x4   :  { %23 = vsyncpa [#allocation5], 0 }
   0x5   :  { %24 = vsyncpa [#allocation8], 0 }
   0x6   :  { %25 = vsyncpa [#allocation11], 0 }
   0x7   :  { %26 = vsyncpa [#allocation14], 0 }
   0x8   :  { %27 = vsyncpa [#allocation17], 0 }
   0x9   :  { %28 = vsyncpa [#allocation20], 0  ;;  %s54_s26 = sshll.u32 %s2108_s5, 4  ;;  %s1706_s27 = smov [#allocation4]   ;;  %s55_s26 = int_to_ptr.hbm [resolvable:$true] %s54_s26 }
   0xa   :  { %s56_s28 = sshll.u32 %s1706_s27, 4  ;;  %s79_s30 = sshll.u32 %s2110_s7, 4  ;;  %s57_s28 = int_to_ptr.vmem [resolvable:$true] %s56_s28  ;;  %s80_s30 = int_to_ptr.hbm [resolvable:$true] %s79_s30 }
   0xb   :  { %s1707_s18 = smov 128   ;;  %s1708_s19 = smov 8  }
   0xc   :  { %62 = dma.hbm_to_vmem [thread:$0]  %s55_s26, 512, %s57_s28, [#allocation5], %s1707_s18, %s1707_s18, %s1708_s19  }
   0xd   :  { %s1709_s1 = smov [#allocation7]   ;;  %s100_s5 = sshll.u32 %s2112_s9, 4  ;;  %s101_s5 = int_to_ptr.hbm [resolvable:$true] %s100_s5 }
   0xe   :  { %s81_s20 = sshll.u32 %s1709_s1, 4  ;;  %s124_s7 = sshll.u32 %s2114_s11, 4  ;;  %s82_s20 = int_to_ptr.vmem [resolvable:$true] %s81_s20  ;;  %s125_s7 = int_to_ptr.hbm [resolvable:$true] %s124_s7 }
   0xf   :  { %84 = dma.hbm_to_vmem [thread:$0]  %s80_s30, 16, %s82_s20, [#allocation8]  }
  0x10   :  { %s1710_s25 = smov [#allocation10]   ;;  %s1711_s26 = smov [#allocation13]  }
  0x11   :  { %s102_s27 = sshll.u32 %s1710_s25, 4  ;;  %s126_s28 = sshll.u32 %s1711_s26, 4  ;;  %s103_s27 = int_to_ptr.vmem [resolvable:$true] %s102_s27  ;;  %s127_s28 = int_to_ptr.vmem [resolvable:$true] %s126_s28 }
  0x12   :  { %108 = dma.hbm_to_vmem [thread:$0]  %s101_s5, 512, %s103_s27, [#allocation11], %s1707_s18, %s1707_s18, %s1708_s19  }
  0x13   :  { %s148_s9 = sshll.u32 %s2116_s13, 4  ;;  %s173_s1 = sshll.u32 %s2118_s15, 4  ;;  %s149_s9 = int_to_ptr.hbm [resolvable:$true] %s148_s9  ;;  %s174_s1 = int_to_ptr.hbm [resolvable:$true] %s173_s1 }
  0x14   :  { %132 = dma.hbm_to_vmem [thread:$0]  %s125_s7, 512, %s127_s28, [#allocation14], %s1707_s18, %s1707_s18, %s1708_s19  }
  0x15   :  { %s1712_s20 = smov [#allocation16]   ;;  %s1713_s22 = smov [#allocation19]  }
  0x16   :  { %s150_s21 = sshll.u32 %s1712_s20, 4  ;;  %s175_s13 = sshll.u32 %s1713_s22, 4  ;;  %s151_s21 = int_to_ptr.vmem [resolvable:$true] %s150_s21  ;;  %s176_s13 = int_to_ptr.vmem [resolvable:$true] %s175_s13 }
  0x17   :  { %156 = dma.hbm_to_vmem [thread:$0]  %s149_s9, 512, %s151_s21, [#allocation17], %s1707_s18, %s1707_s18, %s1708_s19  }
  0x18   :  { %s39_s24 = sshll.u32 %s2106_s3, 4  ;;  %s68_s15 = sshll.u32 %s2109_s6, 4  ;;  %s40_s24 = int_to_ptr.hbm [resolvable:$true] %s39_s24  ;;  %s69_s15 = int_to_ptr.hbm [resolvable:$true] %s68_s15 }
  0x19   :  { %178 = dma.hbm_to_vmem [thread:$0]  %s174_s1, 16, %s176_s13, [#allocation20]  }
  0x1a   :  { %s1714_s27 = smov [#allocation2]   ;;  %s1715_s28 = smov [#allocation6]  }
  0x1b   :  { %s41_s26 = sshll.u32 %s1714_s27, 4  ;;  %s70_s29 = sshll.u32 %s1715_s28, 4  ;;  %s42_s26 = int_to_ptr.vmem [resolvable:$true] %s41_s26  ;;  %s71_s29 = int_to_ptr.vmem [resolvable:$true] %s70_s29 }
  0x1c   :  { %47 = dma.hbm_to_vmem [thread:$0]  %s40_s24, 512, %s42_s26, [#allocation3], %s1707_s18, %s1707_s18, %s1708_s19  }
  0x1d   :  { %s90_s3 = sshll.u32 %s2111_s8, 4  ;;  %s114_s6 = sshll.u32 %s2113_s10, 4  ;;  %s91_s3 = int_to_ptr.hbm [resolvable:$true] %s90_s3  ;;  %s115_s6 = int_to_ptr.hbm [resolvable:$true] %s114_s6 }
  0x1e   :  { %73 = dma.hbm_to_vmem [thread:$0]  %s69_s15, 16, %s71_s29, [#allocation5]  }
  0x1f   :  { %s1716_s1 = smov [#allocation9]   ;;  %s1717_s21 = smov [#allocation12]  }
  0x20   :  { %s92_s20 = sshll.u32 %s1716_s1, 4  ;;  %s116_s18 = sshll.u32 %s1717_s21, 4  ;;  %s93_s20 = int_to_ptr.vmem [resolvable:$true] %s92_s20  ;;  %s117_s18 = int_to_ptr.vmem [resolvable:$true] %s116_s18 }
  0x21   :  { %95 = dma.hbm_to_vmem [thread:$0]  %s91_s3, 16, %s93_s20, [#allocation8]  }
  0x22   :  { %s138_s13 = sshll.u32 %s2115_s12, 4  ;;  %s162_s23 = sshll.u32 %s2117_s14, 4  ;;  %s139_s13 = int_to_ptr.hbm [resolvable:$true] %s138_s13  ;;  %s163_s23 = int_to_ptr.hbm [resolvable:$true] %s162_s23 }
  0x23   :  { %119 = dma.hbm_to_vmem [thread:$0]  %s115_s6, 16, %s117_s18, [#allocation11]  }
  0x24   :  { %s1718_s24 = smov [#allocation15]   ;;  %s1719_s7 = smov [#allocation18]  }
  0x25   :  { %s140_s10 = sshll.u32 %s1718_s24, 4  ;;  %s164_s25 = sshll.u32 %s1719_s7, 4  ;;  %s141_s10 = int_to_ptr.vmem [resolvable:$true] %s140_s10  ;;  %s165_s25 = int_to_ptr.vmem [resolvable:$true] %s164_s25 }
  0x26   :  { %143 = dma.hbm_to_vmem [thread:$0]  %s139_s13, 16, %s141_s10, [#allocation14]  }
  0x27   :  { %s184_s26 = sshll.u32 %s2119_s16, 4  ;;  %s1720_s12 = smov [#allocation21]   ;;  %s185_s26 = int_to_ptr.hbm [resolvable:$true] %s184_s26 }
  0x28   :  { %167 = dma.hbm_to_vmem [thread:$0]  %s163_s23, 16, %s165_s25, [#allocation17]  }
  0x29   :  { %s186_s28 = sshll.u32 %s1720_s12, 4  ;;  %s187_s28 = int_to_ptr.vmem [resolvable:$true] %s186_s28 }
  0x2a   :  { %189 = dma.hbm_to_vmem [thread:$0]  %s185_s26, 16, %s187_s28, [#allocation20]  }
  0x2b   :  { %1692 = dma.done.wait [#allocation3], 512  }
  0x2c   :  { %1693 = vsyncadd [#allocation3], 4294966784 }
  0x2d   :  { %1694 = dma.done.wait [#allocation5], 528  }
  0x2e   :  { %1695 = vsyncadd [#allocation5], 4294966768 }
  0x2f   :  { %1696 = dma.done.wait [#allocation8], 32  }
  0x30   :  { %1697 = vsyncadd [#allocation8], 4294967264 }
  0x31   :  { %1698 = dma.done.wait [#allocation11], 528  }
  0x32   :  { %1699 = vsyncadd [#allocation11], 4294966768 }
  0x33   :  { %1700 = dma.done.wait [#allocation14], 528  }
  0x34   :  { %1701 = vsyncadd [#allocation14], 4294966768 }
  0x35   :  { %1702 = dma.done.wait [#allocation17], 528  }
  0x36   :  { %1703 = vsyncadd [#allocation17], 4294966768 }
  0x37   :  { %1704 = dma.done.wait [#allocation20], 32  }
  0x38   :  { %1705 = vsyncadd [#allocation20], 4294967264  ;;  %s2125_s29 = sld [smem:[#allocation30_spill]]  ;;  %vm252_vm0 = vcmask 261120   ;;  %v1312_v6 = vld [vmem:[%s2105_s2] ss:$0 sm:$0xff]  ;;  %v282_v11 = vlaneseq }
  0x39   :  { %s2126_s21 = sld [smem:[#allocation29_spill]]  ;;  %s1721_s8 = smov 96   ;;  %vm324_vm8 = vcmask 64512   ;;  %v828_v54 = vld [vmem:[#allocation2 + $0x8] sm:$0xff] }
  0x3a   :  { %v1905_v12 = vand.u32 127, %v282_v11  ;;  %s1722_s2 = smov 64  }
  0x3c   :  { %vm336_vm1 = vcmp.ge.s32.totalorder %v1905_v12, 8  ;;  %vm337_vm2 = vcmp.lt.s32.totalorder %v1905_v12, 16  ;;  %vm426_vm3 = vcmp.ge.s32.totalorder %v1905_v12, 16  ;;  %vm427_vm4 = vcmp.lt.s32.totalorder %v1905_v12, 24 }
  0x3d   :  { %vm1911_vm5 = vmand %vm336_vm1, %vm337_vm2  ;;  %vm285_vm6 = vcmp.lt.s32.totalorder %v1905_v12, 8  ;;  %vm494_vm9 = vcmp.ge.s32.totalorder %v1905_v12, 24  ;;  %vm495_vm10 = vcmp.lt.s32.totalorder %v1905_v12, 32 }
  0x3e   :  { %v247_v0 = vld [vmem:[%s2125_s29 + $0x18] sm:$0xff]  ;;  %v246_v1 = vld [vmem:[%s2125_s29 + $0x10] sm:$0xff]  ;;  %v245_v2 = vld [vmem:[%s2125_s29 + $0x8] sm:$0xff] }
  0x3f   :  { %271 = vmatpush.msra.mxu0 %v247_v0  ;;  %v244_v3 = vld [vmem:[%s2125_s29] sm:$0xff]  ;;  %v1890_v5 = vld [vmem:[%s2126_s21 + $0x8] sm:$0xff]  ;;  %vm1918_vm7 = vmand %vm426_vm3, %vm427_vm4 }
  0x40   :  { %v1883_v4 = vld [vmem:[%s2126_s21] sm:$0xff]  ;;  %vm1970_vm11 = vmand %vm494_vm9, %vm495_vm10 }
  0x41   :  { %272 = vmatpush.msra.mxu0 %v246_v1 }
  0x43   :  { %273 = vmatpush.msra.mxu0 %v245_v2 }
  0x45   :  { %274 = vmatpush.msra.mxu0 %v244_v3 }
  0x46   :  { %1246 = vmatmul.msk.f32.vlgmr.msra.gmra.mxu0 %vm252_vm0, %v1883_v4 }
  0x4e   :  { %1247 = vmatmul.msk.f32.gmra.mxu0 %vm252_vm0, %v1890_v5 }
  0xc3   :  { %v276_v7 = vpop.f32.mrf.mxu0 }
  0xc4   :  { %v1897_v8 = vadd.f32 %v1312_v6, %v276_v7 }
  0xc6   :  { %289 = vrot.lane.b32.xlu0 %v1897_v8, %s1721_s8  ;;  %v287_v19 = vsel %vm285_vm6, %v1897_v8, 0.0  ;;  %v339_v20 = vsel %vm1911_vm5, %v1897_v8, 0.0  ;;  %v429_v23 = vsel %vm1918_vm7, %v1897_v8, 0.0 }
  0xcb   :  { %v279_v9 = vpop.f32.mrf.mxu0 }
  0xcc   :  { %v1901_v10 = vadd.f32 %v1312_v6, %v279_v9  ;;  %v497_v9 = vsel %vm1970_vm11, %v1897_v8, 0.0 }
  0xce   :  { %564 = vrot.lane.b32.xlu0 %v1901_v10, %s1721_s8  ;;  %v610_v24 = vsel %vm1911_vm5, %v1901_v10, 0.0  ;;  %v762_v13 = vsel %vm1970_vm11, %v1901_v10, 0.0 }
 0x138   :  { %v1915_v14 = vpop.permute.xlu0 %289 }
 0x139   :  { %v292_v16 = vsel %vm285_vm6, %v1915_v14, 0.0  ;;  %v340_v17 = vsel %vm1911_vm5, %v1915_v14, 0.0  ;;  %v430_v18 = vsel %vm1918_vm7, %v1915_v14, 0.0  ;;  %v498_v0 = vsel %vm1970_vm11, %v1915_v14, 0.0 }
 0x13a   :  { %1248 = vmatpush.xpose.msk.msra.mxu1 %vm252_vm0, %v292_v16  ;;  %1250 = vmatpush.xpose.msk.msrb.mxu0 %vm252_vm0, %v340_v17  ;;  %v562_v14 = vsel %vm285_vm6, %v1901_v10, 0.0 }
 0x13d   :  { %1249 = vmatmul.msk.f32.vlgmr.msra.gmra.mxu1 %vm252_vm0, %v287_v19  ;;  %1251 = vmatmul.msk.f32.vlgmr.msrb.gmra.mxu0 %vm252_vm0, %v339_v20 }
 0x13e   :  { %1256 = vmatpush.xpose.msk.msrb.mxu1 %vm252_vm0, %v430_v18 }
 0x140   :  { %v1942_v21 = vpop.permute.xlu0 %564 }
 0x141   :  { %v611_v22 = vsel %vm1911_vm5, %v1942_v21, 0.0  ;;  %v567_v56 = vsel %vm285_vm6, %v1942_v21, 0.0  ;;  %v698_v11 = vsel %vm1918_vm7, %v1942_v21, 0.0  ;;  %v763_v20 = vsel %vm1970_vm11, %v1942_v21, 0.0 }
 0x142   :  { %1266 = vmatpush.xpose.msk.msra.mxu0 %vm252_vm0, %v611_v22 }
 0x145   :  { %1257 = vmatmul.msk.f32.vlgmr.msrb.gmra.mxu1 %vm252_vm0, %v429_v23  ;;  %1267 = vmatmul.msk.f32.vlgmr.msra.gmra.mxu0 %vm252_vm0, %v610_v24 }
 0x1ba   :  { %v320_v25 = vpop.f32.mrf.mxu1  ;;  %v365_v26 = vpop.f32.mrf.mxu0 }
 0x1bb   :  { %v368_v27 = vmul.f32 0.35355338, %v365_v26  ;;  %v323_v29 = vmul.f32 0.35355338, %v320_v25 }
 0x1bd   :  { %v369_v28 = vsel %vm324_vm8, %v368_v27, -inf  ;;  %v325_v33 = vsel %vm324_vm8, %v323_v29, -inf }
 0x1be   :  { %370 = vmax.xlane.f32.xlu1 %v369_v28 }
 0x1c2   :  { %v455_v30 = vpop.f32.mrf.mxu1  ;;  %v636_v34 = vpop.f32.mrf.mxu0 }
 0x1c3   :  { %v458_v31 = vmul.f32 0.35355338, %v455_v30  ;;  %v639_v35 = vmul.f32 0.35355338, %v636_v34 }
 0x1c5   :  { %v459_v32 = vsel %vm324_vm8, %v458_v31, -inf  ;;  %v640_v36 = vsel %vm324_vm8, %v639_v35, -inf }
 0x1c6   :  { %460 = vmax.xlane.f32.xlu2 %v459_v32  ;;  %326 = vmax.xlane.f32.xlu1 %v325_v33 }
 0x1ce   :  { %641 = vmax.xlane.f32.xlu2 %v640_v36 }
 0x1e6   :  { %293 = vrot.lane.b32.xlu2 %v1897_v8, %s1722_s2  ;;  %v697_v8 = vsel %vm1918_vm7, %v1901_v10, 0.0 }
 0x231   :  { %v371_v37 = vpop.xlane.xlu1 %370 }
 0x232   :  { %v372_v38 = vsub.f32 %v368_v27, %v371_v37 }
 0x234   :  { %v373_v39 = vmul.f32 1.442695, %v372_v38 }
 0x236   :  { %1322 = vpow2.f32 %v373_v39 }
 0x239   :  { %v461_v40 = vpop.xlane.xlu2 %460  ;;  %v327_v41 = vpop.xlane.xlu1 %326 }
 0x23a   :  { %v328_v42 = vsub.f32 %v323_v29, %v327_v41  ;;  %v462_v45 = vsub.f32 %v458_v31, %v461_v40 }
 0x23c   :  { %v1323_v43 = vpop.eup %1322  ;;  %v329_v44 = vmul.f32 1.442695, %v328_v42  ;;  %v463_v47 = vmul.f32 1.442695, %v462_v45 }
 0x23d   :  { %v375_v46 = vsel %vm324_vm8, %v1323_v43, 0.0 }
 0x23e   :  { %376 = vadd.xlane.f32.xlu0 %v375_v46  ;;  %1324 = vpow2.f32 %v329_v44 }
 0x23f   :  { %1326 = vpow2.f32 %v463_v47 }
 0x241   :  { %v642_v48 = vpop.xlane.xlu2 %641 }
 0x242   :  { %v643_v50 = vsub.f32 %v639_v35, %v642_v48 }
 0x244   :  { %v1325_v49 = vpop.eup %1324  ;;  %v644_v52 = vmul.f32 1.442695, %v643_v50 }
 0x245   :  { %v331_v51 = vsel %vm324_vm8, %v1325_v49, 0.0  ;;  %v1327_v55 = vpop.eup %1326 }
 0x246   :  { %332 = vadd.xlane.f32.xlu1 %v331_v51  ;;  %1328 = vpow2.f32 %v644_v52  ;;  %v465_v57 = vsel %vm324_vm8, %v1327_v55, 0.0 }
 0x249   :  { %v294_v53 = vpop.permute.xlu2 %293 }
 0x24a   :  { %1252 = vmatpush.msk.msra.mxu3 %vm1911_vm5, %v294_v53  ;;  %1258 = vmatpush.msk.msra.mxu2 %vm1918_vm7, %v294_v53 }
 0x24b   :  { %1262 = vmatpush.msk.msra.mxu1 %vm1970_vm11, %v294_v53 }
 0x24c   :  { %1254 = vmatpush.msk.msrb.mxu3 %vm285_vm6, %v294_v53  ;;  %1264 = vmatpush.xpose.msk.msrb.mxu2 %vm252_vm0, %v567_v56  ;;  %v1329_v58 = vpop.eup %1328 }
 0x24d   :  { %v646_v59 = vsel %vm324_vm8, %v1329_v58, 0.0 }
 0x24e   :  { %466 = vadd.xlane.f32.xlu1 %v465_v57 }
 0x256   :  { %647 = vadd.xlane.f32.xlu1 %v646_v59 }
 0x26f   :  { %568 = vrot.lane.b32.xlu1 %v1901_v10, %s1722_s2 }
 0x2b1   :  { %v377_v60 = vpop.xlane.xlu0 %376 }
 0x2b2   :  { %1330 = vrcp.f32 %v377_v60 }
 0x2b8   :  { %v1331_v61 = vpop.eup %1330 }
 0x2b9   :  { %v379_v62 = vmul.f32 %v1331_v61, %v1323_v43  ;;  %v333_v63 = vpop.xlane.xlu1 %332  ;;  %v830_v61 = vld [vmem:[#allocation2 + $0x18] sm:$0xff] }
 0x2ba   :  { %1332 = vrcp.f32 %v333_v63 }
 0x2bb   :  { %1253 = vmatmul.msk.f32.vlgmr.msra.gmra.mxu3 %vm324_vm8, %v379_v62  ;;  %v829_v62 = vld [vmem:[#allocation2 + $0x10] sm:$0xff] }
 0x2bc   :  { %1260 = vmatpush.xpose.msk.msra.mxu3 %vm252_vm0, %v498_v0 }
 0x2c0   :  { %v1333_v1 = vpop.eup %1332 }
 0x2c1   :  { %v467_v2 = vpop.xlane.xlu1 %466  ;;  %v335_v3 = vmul.f32 %v1333_v1, %v1325_v49 }
 0x2c2   :  { %1334 = vrcp.f32 %v467_v2 }
 0x2c3   :  { %1255 = vmatmul.msk.f32.vlgmr.msrb.gmra.mxu3 %vm324_vm8, %v335_v3 }
 0x2c8   :  { %v1335_v6 = vpop.eup %1334 }
 0x2c9   :  { %v469_v7 = vmul.f32 %v1335_v6, %v1327_v55  ;;  %v648_v16 = vpop.xlane.xlu1 %647 }
 0x2ca   :  { %1336 = vrcp.f32 %v648_v16 }
 0x2cb   :  { %1259 = vmatmul.msk.f32.vlgmr.msra.gmra.mxu2 %vm324_vm8, %v469_v7  ;;  %1261 = vmatmul.msk.f32.vlgmr.msra.gmra.mxu3 %vm252_vm0, %v497_v9 }
 0x2cc   :  { %1272 = vmatpush.xpose.msk.msra.mxu2 %vm252_vm0, %v698_v11  ;;  %v827_v11 = vld [vmem:[#allocation2] sm:$0xff] }
 0x2d0   :  { %v1337_v17 = vpop.eup %1336 }
 0x2d1   :  { %v650_v18 = vmul.f32 %v1337_v17, %v1329_v58  ;;  %v866_v17 = vld [vmem:[#allocation4 + $0x10] sm:$0xff] }
 0x2d3   :  { %1265 = vmatmul.msk.f32.vlgmr.msrb.gmra.mxu2 %vm252_vm0, %v562_v14 }
 0x2d4   :  { %853 = vmatpush.msrb.mxu2 %v830_v61 }
 0x2d6   :  { %854 = vmatpush.msrb.mxu2 %v829_v62 }
 0x2d8   :  { %855 = vmatpush.msrb.mxu2 %v828_v54 }
 0x2da   :  { %856 = vmatpush.msrb.mxu2 %v827_v11 }
 0x2db   :  { %1273 = vmatmul.msk.f32.vlgmr.msra.gmra.mxu2 %vm252_vm0, %v697_v8  ;;  %v867_v8 = vld [vmem:[#allocation4 + $0x18] sm:$0xff] }
 0x2e1   :  { %v2009_v19 = vpop.permute.xlu1 %568 }
 0x2e2   :  { %1268 = vmatpush.msk.msrb.mxu3 %vm1911_vm5, %v2009_v19  ;;  %1270 = vmatpush.msk.msrb.mxu1 %vm285_vm6, %v2009_v19 }
 0x2e3   :  { %1274 = vmatpush.msk.msrb.mxu0 %vm1918_vm7, %v2009_v19  ;;  %1269 = vmatmul.msk.f32.vlgmr.msrb.gmra.mxu3 %vm324_vm8, %v650_v18 }
 0x2e4   :  { %1276 = vmatpush.xpose.msk.msra.mxu3 %vm252_vm0, %v763_v20 }
 0x2e5   :  { %890 = vmatpush.msra.mxu0 %v867_v8 }
 0x2e7   :  { %891 = vmatpush.msra.mxu0 %v866_v17 }
 0x2eb   :  { %1277 = vmatmul.msk.f32.vlgmr.msra.gmra.mxu3 %vm252_vm0, %v762_v13 }
 0x33e   :  { %v400_v12 = vpop.f32.mrf.mxu3 }
 0x346   :  { %v423_v22 = vpop.f32.mrf.mxu3 }
 0x347   :  { %v424_v23 = vadd.f32 %v423_v22, %v400_v12 }
 0x34e   :  { %v490_v24 = vpop.f32.mrf.mxu2  ;;  %v523_v15 = vpop.f32.mrf.mxu3 }
 0x34f   :  { %v2029_v25 = vadd.f32 %v490_v24, %v424_v23  ;;  %v526_v26 = vmul.f32 0.35355338, %v523_v15  ;;  %v865_v23 = vld [vmem:[#allocation4 + $0x8] sm:$0xff]  ;;  %v864_v24 = vld [vmem:[#allocation4] sm:$0xff] }
 0x350   :  { %892 = vmatpush.msra.mxu0 %v865_v23  ;;  %v1313_v15 = vld [vmem:[%s2107_s4] ss:$0 sm:$0xff]  ;;  %v1016_v23 = vld [vmem:[#allocation10 + $0x10] sm:$0xff] }
 0x351   :  { %v527_v27 = vsel %vm324_vm8, %v526_v26, -inf }
 0x352   :  { %528 = vmax.xlane.f32.xlu2 %v527_v27  ;;  %893 = vmatpush.msra.mxu0 %v864_v24  ;;  %v1015_v24 = vld [vmem:[#allocation10 + $0x8] sm:$0xff] }
 0x356   :  { %v595_v21 = vpop.f32.mrf.mxu2 }
 0x357   :  { %v598_v28 = vmul.f32 0.35355338, %v595_v21 }
 0x359   :  { %v599_v29 = vsel %vm324_vm8, %v598_v28, -inf }
 0x35a   :  { %600 = vmax.xlane.f32.xlu0 %v599_v29 }
 0x35e   :  { %v723_v30 = vpop.f32.mrf.mxu2 }
 0x35f   :  { %v726_v10 = vmul.f32 0.35355338, %v723_v30 }
 0x361   :  { %v727_v31 = vsel %vm324_vm8, %v726_v10, -inf }
 0x362   :  { %728 = vmax.xlane.f32.xlu1 %v727_v31 }
 0x366   :  { %v2034_v32 = vpop.f32.mrf.mxu3 }
 0x36e   :  { %v788_v33 = vpop.f32.mrf.mxu3 }
 0x36f   :  { %v791_v34 = vmul.f32 0.35355338, %v788_v33 }
 0x371   :  { %v792_v35 = vsel %vm324_vm8, %v791_v34, -inf }
 0x372   :  { %793 = vmax.xlane.f32.xlu0 %v792_v35 }
 0x3c5   :  { %v529_v36 = vpop.xlane.xlu2 %528 }
 0x3c6   :  { %v530_v37 = vsub.f32 %v526_v26, %v529_v36 }
 0x3c8   :  { %v531_v38 = vmul.f32 1.442695, %v530_v37 }
 0x3ca   :  { %1338 = vpow2.f32 %v531_v38 }
 0x3cd   :  { %v601_v39 = vpop.xlane.xlu0 %600 }
 0x3ce   :  { %v602_v40 = vsub.f32 %v598_v28, %v601_v39  ;;  %v1314_v28 = vld [vmem:[#allocation6] ss:$0 sm:$0xff] }
 0x3d0   :  { %v1339_v41 = vpop.eup %1338  ;;  %v603_v42 = vmul.f32 1.442695, %v602_v40 }
 0x3d1   :  { %v533_v43 = vsel %vm324_vm8, %v1339_v41, 0.0 }
 0x3d2   :  { %1340 = vpow2.f32 %v603_v42  ;;  %534 = vadd.xlane.f32.xlu0 %v533_v43 }
 0x3d5   :  { %v729_v44 = vpop.xlane.xlu1 %728 }
 0x3d6   :  { %v730_v45 = vsub.f32 %v726_v10, %v729_v44 }
 0x3d8   :  { %v1341_v46 = vpop.eup %1340  ;;  %v731_v47 = vmul.f32 1.442695, %v730_v45 }
 0x3d9   :  { %v605_v48 = vsel %vm324_vm8, %v1341_v46, 0.0 }
 0x3da   :  { %1342 = vpow2.f32 %v731_v47  ;;  %606 = vadd.xlane.f32.xlu2 %v605_v48 }
 0x3e0   :  { %v1343_v49 = vpop.eup %1342 }
 0x3e1   :  { %v733_v50 = vsel %vm324_vm8, %v1343_v49, 0.0 }
 0x3e2   :  { %734 = vadd.xlane.f32.xlu0 %v733_v50 }
 0x3e5   :  { %v794_v51 = vpop.xlane.xlu0 %793 }
 0x3e6   :  { %v795_v52 = vsub.f32 %v791_v34, %v794_v51 }
 0x3e8   :  { %v796_v53 = vmul.f32 1.442695, %v795_v52 }
 0x3ea   :  { %1344 = vpow2.f32 %v796_v53 }
 0x3f0   :  { %v1345_v55 = vpop.eup %1344 }
 0x3f1   :  { %v798_v56 = vsel %vm324_vm8, %v1345_v55, 0.0 }
 0x3f2   :  { %799 = vadd.xlane.f32.xlu2 %v798_v56 }
 0x445   :  { %v535_v57 = vpop.xlane.xlu0 %534 }
 0x446   :  { %1346 = vrcp.f32 %v535_v57 }
 0x44c   :  { %v1347_v58 = vpop.eup %1346 }
 0x44d   :  { %v537_v59 = vmul.f32 %v1347_v58, %v1339_v41  ;;  %v607_v60 = vpop.xlane.xlu2 %606 }
 0x44e   :  { %1348 = vrcp.f32 %v607_v60 }
 0x44f   :  { %1263 = vmatmul.msk.f32.vlgmr.msra.gmra.mxu1 %vm324_vm8, %v537_v59 }
 0x450   :  { %1278 = vmatpush.msk.msra.mxu1 %vm1970_vm11, %v2009_v19 }
 0x454   :  { %v1349_v63 = vpop.eup %1348 }
 0x455   :  { %v609_v0 = vmul.f32 %v1349_v63, %v1341_v46  ;;  %v735_v1 = vpop.xlane.xlu0 %734 }
 0x456   :  { %1350 = vrcp.f32 %v735_v1 }
 0x457   :  { %1271 = vmatmul.msk.f32.vlgmr.msrb.gmra.mxu1 %vm324_vm8, %v609_v0 }
 0x45c   :  { %v1351_v2 = vpop.eup %1350 }
 0x45d   :  { %v737_v3 = vmul.f32 %v1351_v2, %v1343_v49 }
 0x45f   :  { %1275 = vmatmul.msk.f32.vlgmr.msrb.gmra.mxu0 %vm324_vm8, %v737_v3  ;;  %v1723_v3 = vmov 32.0  }
 0x465   :  { %v800_v6 = vpop.xlane.xlu2 %799 }
 0x466   :  { %1352 = vrcp.f32 %v800_v6 }
 0x46c   :  { %v1353_v7 = vpop.eup %1352 }
 0x46d   :  { %v802_v9 = vmul.f32 %v1353_v7, %v1345_v55 }
 0x46f   :  { %1279 = vmatmul.msk.f32.vlgmr.msra.gmra.mxu1 %vm324_vm8, %v802_v9 }
 0x4cc   :  { %v558_v14 = vpop.f32.mrf.mxu1 }
 0x4cd   :  { %v561_v16 = vadd.f32 %v558_v14, %v2029_v25 }
 0x4cf   :  { %1280 = vmatmul.msk.f32.vlgmr.msrb.gmra.mxu2 %vm252_vm0, %v561_v16 }
 0x4d4   :  { %v694_v18 = vpop.f32.mrf.mxu1 }
 0x4d5   :  { %v695_v20 = vadd.f32 %v694_v18, %v2034_v32 }
 0x4dc   :  { %v758_v19 = vpop.f32.mrf.mxu0 }
 0x4dd   :  { %v761_v13 = vadd.f32 %v758_v19, %v695_v20 }
 0x4ec   :  { %v823_v12 = vpop.f32.mrf.mxu1 }
 0x4ed   :  { %v826_v22 = vadd.f32 %v823_v12, %v761_v13 }
 0x4ef   :  { %1281 = vmatmul.msk.f32.gmra.mxu2 %vm252_vm0, %v826_v22  ;;  %v1017_v22 = vld [vmem:[#allocation10 + $0x18] sm:$0xff] }
 0x4f0   :  { %1040 = vmatpush.msrb.mxu3 %v1017_v22 }
 0x4f2   :  { %1041 = vmatpush.msrb.mxu3 %v1016_v23 }
 0x4f4   :  { %1042 = vmatpush.msrb.mxu3 %v1015_v24 }
 0x552   :  { %v858_v25 = vpop.f32.mrf.mxu2 }
 0x553   :  { %v859_v26 = vadd.f32 %v1313_v15, %v858_v25 }
 0x555   :  { %1282 = vmatmul.msk.f32.vlgmr.msra.gmra.mxu0 %vm252_vm0, %v859_v26 }
 0x572   :  { %v861_v27 = vpop.f32.mrf.mxu2 }
 0x573   :  { %v862_v21 = vadd.f32 %v1313_v15, %v861_v27  ;;  %v1014_v15 = vld [vmem:[#allocation10] sm:$0xff] }
 0x574   :  { %1043 = vmatpush.msrb.mxu3 %v1014_v15 }
 0x575   :  { %1283 = vmatmul.msk.f32.gmra.mxu0 %vm252_vm0, %v862_v21  ;;  %v1056_v21 = vld [vmem:[#allocation13 + $0x18] sm:$0xff] }
 0x576   :  { %1079 = vmatpush.msrb.mxu1 %v1056_v21 }
 0x5d2   :  { %v895_v29 = vpop.f32.mrf.mxu0 }
 0x5d3   :  { %v896_v30 = vadd.f32 %v1314_v28, %v895_v29 }
 0x5d5   :  { %v1284_v10 = vmul.f32 -1.442695, %v896_v30 }
 0x5d7   :  { %1354 = vpow2.f32 %v1284_v10 }
 0x5dd   :  { %v1355_v31 = vpop.eup %1354 }
 0x5de   :  { %v907_v32 = vadd.f32 1.0, %v1355_v31 }
 0x5e0   :  { %1356 = vrcp.f32 %v907_v32  ;;  %v920_v36 = vand.u32 2147483648, %v907_v32  ;;  %v918_v38 = vand.u32 2147483647, %v907_v32  ;;  %vm914_vm13 = vweird.f32 %v907_v32 }
 0x5e2   :  { %v921_v40 = vor.u32 1.1754944e-38, %v920_v36  ;;  %vm919_vm15 = vcmp.eq.f32.partialorder %v918_v38, 8.507059e+37  ;;  %v1315_v38 = vld [vmem:[#allocation7] ss:$0 sm:$0xff] }
 0x5e6   :  { %v1357_v33 = vpop.eup %1356 }
 0x5e7   :  { %v910_v34 = vmul.f32 %v1357_v33, %v907_v32  ;;  %vm915_vm12 = vweird.f32 %v1357_v33 }
 0x5e8   :  { %vm916_vm14 = vmor %vm914_vm13, %vm915_vm12 }
 0x5e9   :  { %v911_v35 = vsub.f32 1.0, %v910_v34 }
 0x5eb   :  { %v912_v37 = vmul.f32 %v1357_v33, %v911_v35 }
 0x5ed   :  { %v913_v39 = vadd.f32 %v1357_v33, %v912_v37 }
 0x5ef   :  { %v917_v41 = vsel %vm916_vm14, %v1357_v33, %v913_v39 }
 0x5f0   :  { %v922_v42 = vsel %vm919_vm15, %v921_v40, %v917_v41 }
 0x5f1   :  { %941 = vrot.lane.b32.xlu0 %v922_v42, %s1721_s8  ;;  %v1316_v42 = vld [vmem:[#allocation9] ss:$0 sm:$0xff] }
 0x5f2   :  { %v898_v43 = vpop.f32.mrf.mxu0 }
 0x5f3   :  { %v899_v44 = vadd.f32 %v1314_v28, %v898_v43 }
 0x5f5   :  { %v1285_v45 = vmul.f32 -1.442695, %v899_v44 }
 0x5f7   :  { %1358 = vpow2.f32 %v1285_v45 }
 0x5fd   :  { %v1359_v46 = vpop.eup %1358 }
 0x5fe   :  { %v908_v47 = vadd.f32 1.0, %v1359_v46 }
 0x600   :  { %1360 = vrcp.f32 %v908_v47  ;;  %v935_v51 = vand.u32 2147483648, %v908_v47  ;;  %v933_v53 = vand.u32 2147483647, %v908_v47  ;;  %vm929_vm2 = vweird.f32 %v908_v47 }
 0x601   :  { %1362 = vrcp.f32 %v1723_v3  ;;  %v1318_v3 = vld [vmem:[#allocation15] ss:$0 sm:$0xff] }
 0x602   :  { %v936_v56 = vor.u32 1.1754944e-38, %v935_v51  ;;  %vm934_vm4 = vcmp.eq.f32.partialorder %v933_v53, 8.507059e+37  ;;  %v1054_v53 = vld [vmem:[#allocation13 + $0x8] sm:$0xff] }
 0x606   :  { %v1361_v48 = vpop.eup %1360 }
 0x607   :  { %v925_v49 = vmul.f32 %v1361_v48, %v908_v47  ;;  %vm930_vm1 = vweird.f32 %v1361_v48  ;;  %v1363_v6 = vpop.eup %1362 }
 0x608   :  { %vm931_vm3 = vmor %vm929_vm2, %vm930_vm1  ;;  %v960_v7 = vmul.f32 32.0, %v1363_v6  ;;  %vm964_vm5 = vweird.f32 %v1363_v6 }
 0x609   :  { %v926_v50 = vsub.f32 1.0, %v925_v49 }
 0x60a   :  { %v961_v9 = vsub.f32 1.0, %v960_v7 }
 0x60b   :  { %v927_v52 = vmul.f32 %v1361_v48, %v926_v50 }
 0x60c   :  { %v962_v54 = vmul.f32 %v1363_v6, %v961_v9 }
 0x60d   :  { %v928_v55 = vadd.f32 %v1361_v48, %v927_v52  ;;  %v1055_v52 = vld [vmem:[#allocation13 + $0x10] sm:$0xff] }
 0x60e   :  { %v963_v11 = vadd.f32 %v1363_v6, %v962_v54  ;;  %1080 = vmatpush.msrb.mxu1 %v1055_v52 }
 0x60f   :  { %v932_v57 = vsel %vm931_vm3, %v1361_v48, %v928_v55  ;;  %v1053_v55 = vld [vmem:[#allocation13] sm:$0xff] }
 0x610   :  { %v937_v58 = vsel %vm934_vm4, %v936_v56, %v932_v57  ;;  %v2063_v14 = vsel %vm964_vm5, %v1363_v6, %v963_v11  ;;  %1081 = vmatpush.msrb.mxu1 %v1054_v53  ;;  %v1093_v56 = vld [vmem:[#allocation16 + $0x18] sm:$0xff]  ;;  %v1092_v57 = vld [vmem:[#allocation16 + $0x10] sm:$0xff]  ;;  %v1319_v11 = vld [vmem:[#allocation18] ss:$0 sm:$0xff] }
 0x611   :  { %943 = vrot.lane.b32.xlu2 %v937_v58, %s1721_s8  ;;  %1116 = vmatpush.msra.mxu2 %v1093_v56  ;;  %v1317_v58 = vld [vmem:[#allocation12] ss:$0 sm:$0xff] }
 0x612   :  { %1082 = vmatpush.msrb.mxu1 %v1053_v55 }
 0x613   :  { %1117 = vmatpush.msra.mxu2 %v1092_v57 }
 0x663   :  { %v942_v59 = vpop.permute.xlu0 %941 }
 0x664   :  { %v947_v60 = vmul.f32 %v942_v59, %v896_v30 }
 0x666   :  { %v949_v61 = vadd.f32 %v947_v60, %v1883_v4 }
 0x668   :  { %v953_v62 = vsel %vm252_vm0, %v949_v61, 0.0 }
 0x669   :  { %954 = vadd.xlane.f32.xlu1 %v953_v62 }
 0x66b   :  { %v944_v63 = vpop.permute.xlu2 %943 }
 0x66c   :  { %v948_v0 = vmul.f32 %v944_v63, %v899_v44 }
 0x66e   :  { %v950_v1 = vadd.f32 %v948_v0, %v1890_v5 }
 0x670   :  { %v956_v2 = vsel %vm252_vm0, %v950_v1, 0.0 }
 0x671   :  { %957 = vadd.xlane.f32.xlu0 %v956_v2  ;;  %v1090_v2 = vld [vmem:[#allocation16] sm:$0xff] }
 0x6dc   :  { %v955_v4 = vpop.xlane.xlu1 %954 }
 0x6dd   :  { %v966_v16 = vmul.f32 %v2063_v14, %v955_v4 }
 0x6df   :  { %v968_v8 = vsub.f32 %v949_v61, %v966_v16 }
 0x6e1   :  { %v970_v17 = vmul.f32 %v968_v8, %v968_v8 }
 0x6e3   :  { %v972_v5 = vsel %vm252_vm0, %v970_v17, 0.0 }
 0x6e4   :  { %973 = vadd.xlane.f32.xlu1 %v972_v5  ;;  %v958_v18 = vpop.xlane.xlu0 %957 }
 0x6e5   :  { %v967_v19 = vmul.f32 %v2063_v14, %v958_v18 }
 0x6e7   :  { %v969_v20 = vsub.f32 %v950_v1, %v967_v19  ;;  %v1091_v1 = vld [vmem:[#allocation16 + $0x8] sm:$0xff] }
 0x6e8   :  { %1118 = vmatpush.msra.mxu2 %v1091_v1 }
 0x6e9   :  { %v971_v13 = vmul.f32 %v969_v20, %v969_v20 }
 0x6ea   :  { %1119 = vmatpush.msra.mxu2 %v1090_v2 }
 0x6eb   :  { %v975_v12 = vsel %vm252_vm0, %v971_v13, 0.0 }
 0x6ec   :  { %976 = vadd.xlane.f32.xlu2 %v975_v12 }
 0x757   :  { %v974_v25 = vpop.xlane.xlu1 %973 }
 0x758   :  { %v978_v26 = vmul.f32 %v974_v25, %v2063_v14 }
 0x75a   :  { %v980_v27 = vadd.f32 1e-05, %v978_v26 }
 0x75c   :  { %1364 = vrsqrt.f32 %v980_v27  ;;  %vm988_vm7 = vweird.f32 %v980_v27 }
 0x75f   :  { %v977_v28 = vpop.xlane.xlu2 %976 }
 0x760   :  { %v979_v29 = vmul.f32 %v977_v28, %v2063_v14 }
 0x762   :  { %v1365_v30 = vpop.eup %1364  ;;  %v981_v10 = vadd.f32 1e-05, %v979_v29 }
 0x763   :  { %v983_v31 = vmul.f32 %v1365_v30, %v980_v27  ;;  %vm989_vm6 = vweird.f32 %v1365_v30 }
 0x764   :  { %1366 = vrsqrt.f32 %v981_v10  ;;  %vm990_vm8 = vmor %vm988_vm7, %vm989_vm6  ;;  %vm998_vm10 = vweird.f32 %v981_v10 }
 0x765   :  { %v984_v32 = vmul.f32 %v1365_v30, %v983_v31 }
 0x767   :  { %v985_v33 = vmul.f32 0.5, %v984_v32 }
 0x769   :  { %v986_v34 = vsub.f32 1.5, %v985_v33 }
 0x76a   :  { %v1367_v35 = vpop.eup %1366 }
 0x76b   :  { %v987_v36 = vmul.f32 %v1365_v30, %v986_v34  ;;  %v993_v37 = vmul.f32 %v1367_v35, %v981_v10  ;;  %vm999_vm9 = vweird.f32 %v1367_v35 }
 0x76c   :  { %vm1000_vm11 = vmor %vm998_vm10, %vm999_vm9 }
 0x76d   :  { %v991_v39 = vsel %vm990_vm8, %v1365_v30, %v987_v36  ;;  %v994_v40 = vmul.f32 %v1367_v35, %v993_v37 }
 0x76e   :  { %v1002_v41 = vmul.f32 %v991_v39, %v968_v8 }
 0x76f   :  { %v995_v43 = vmul.f32 0.5, %v994_v40 }
 0x770   :  { %v1007_v44 = vmul.f32 %v1315_v38, %v1002_v41 }
 0x771   :  { %v996_v45 = vsub.f32 1.5, %v995_v43 }
 0x772   :  { %v2071_v46 = vadd.f32 %v1316_v42, %v1007_v44 }
 0x773   :  { %v997_v47 = vmul.f32 %v1367_v35, %v996_v45 }
 0x774   :  { %1286 = vmatmul.msk.f32.vlgmr.msrb.gmra.mxu3 %vm252_vm0, %v2071_v46 }
 0x775   :  { %v1001_v48 = vsel %vm1000_vm11, %v1367_v35, %v997_v47 }
 0x776   :  { %v1003_v49 = vmul.f32 %v1001_v48, %v969_v20 }
 0x778   :  { %v1008_v50 = vmul.f32 %v1315_v38, %v1003_v49 }
 0x77a   :  { %v2075_v51 = vadd.f32 %v1316_v42, %v1008_v50 }
 0x77c   :  { %1287 = vmatmul.msk.f32.gmra.mxu3 %vm252_vm0, %v2075_v51 }
 0x7f7   :  { %v1045_v59 = vpop.f32.mrf.mxu3 }
 0x7f8   :  { %v1046_v60 = vadd.f32 %v1317_v58, %v1045_v59 }
 0x7fa   :  { %v1051_v61 = vmax.f32 %v1046_v60, 0.0 }
 0x7fc   :  { %1288 = vmatmul.msk.f32.vlgmr.msrb.gmra.mxu1 %vm252_vm0, %v1051_v61 }
 0x7ff   :  { %v1048_v62 = vpop.f32.mrf.mxu3 }
 0x800   :  { %v1049_v63 = vadd.f32 %v1317_v58, %v1048_v62 }
 0x802   :  { %v1052_v0 = vmax.f32 %v1049_v63, 0.0 }
 0x804   :  { %1289 = vmatmul.msk.f32.gmra.mxu1 %vm252_vm0, %v1052_v0 }
 0x879   :  { %v1084_v6 = vpop.f32.mrf.mxu1 }
 0x87a   :  { %v1085_v7 = vadd.f32 %v1318_v3, %v1084_v6 }
 0x87c   :  { %1290 = vmatmul.msk.f32.vlgmr.msra.gmra.mxu2 %vm252_vm0, %v1085_v7 }
 0x881   :  { %v1087_v9 = vpop.f32.mrf.mxu1 }
 0x882   :  { %v1088_v54 = vadd.f32 %v1318_v3, %v1087_v9 }
 0x884   :  { %1291 = vmatmul.msk.f32.gmra.mxu2 %vm252_vm0, %v1088_v54 }
 0x8ff   :  { %v1121_v4 = vpop.f32.mrf.mxu2 }
 0x900   :  { %v1122_v16 = vadd.f32 %v1319_v11, %v1121_v4 }
 0x902   :  { %v1292_v8 = vmul.f32 -1.442695, %v1122_v16 }
 0x904   :  { %1368 = vpow2.f32 %v1292_v8  ;;  %v1321_v8 = vld [vmem:[#allocation21] ss:$0 sm:$0xff] }
 0x907   :  { %v1124_v17 = vpop.f32.mrf.mxu2 }
 0x908   :  { %v1125_v5 = vadd.f32 %v1319_v11, %v1124_v17  ;;  %v1320_v11 = vld [vmem:[#allocation19] ss:$0 sm:$0xff] }
 0x90a   :  { %v1369_v18 = vpop.eup %1368  ;;  %v1293_v19 = vmul.f32 -1.442695, %v1125_v5 }
 0x90b   :  { %v1133_v20 = vadd.f32 1.0, %v1369_v18 }
 0x90c   :  { %1370 = vpow2.f32 %v1293_v19 }
 0x90d   :  { %1372 = vrcp.f32 %v1133_v20  ;;  %v1146_v15 = vand.u32 2147483648, %v1133_v20  ;;  %v1144_v26 = vand.u32 2147483647, %v1133_v20  ;;  %vm1140_vm13 = vweird.f32 %v1133_v20 }
 0x90f   :  { %v1147_v28 = vor.u32 1.1754944e-38, %v1146_v15  ;;  %vm1145_vm15 = vcmp.eq.f32.partialorder %v1144_v26, 8.507059e+37 }
 0x912   :  { %v1371_v13 = vpop.eup %1370 }
 0x913   :  { %v1373_v12 = vpop.eup %1372  ;;  %v1134_v22 = vadd.f32 1.0, %v1371_v13 }
 0x914   :  { %v1136_v23 = vmul.f32 %v1373_v12, %v1133_v20  ;;  %vm1141_vm12 = vweird.f32 %v1373_v12 }
 0x915   :  { %1374 = vrcp.f32 %v1134_v22  ;;  %vm1142_vm14 = vmor %vm1140_vm13, %vm1141_vm12  ;;  %v1161_v32 = vand.u32 2147483648, %v1134_v22  ;;  %v1159_v34 = vand.u32 2147483647, %v1134_v22  ;;  %vm1155_vm2 = vweird.f32 %v1134_v22 }
 0x916   :  { %v1137_v24 = vsub.f32 1.0, %v1136_v23 }
 0x917   :  { %v1162_v36 = vor.u32 1.1754944e-38, %v1161_v32  ;;  %vm1160_vm4 = vcmp.eq.f32.partialorder %v1159_v34, 8.507059e+37 }
 0x918   :  { %v1138_v25 = vmul.f32 %v1373_v12, %v1137_v24 }
 0x91a   :  { %v1139_v27 = vadd.f32 %v1373_v12, %v1138_v25 }
 0x91b   :  { %v1375_v21 = vpop.eup %1374 }
 0x91c   :  { %v1143_v29 = vsel %vm1142_vm14, %v1373_v12, %v1139_v27  ;;  %v1151_v30 = vmul.f32 %v1375_v21, %v1134_v22  ;;  %vm1156_vm1 = vweird.f32 %v1375_v21 }
 0x91d   :  { %v1148_v10 = vsel %vm1145_vm15, %v1147_v28, %v1143_v29  ;;  %vm1157_vm3 = vmor %vm1155_vm2, %vm1156_vm1 }
 0x91e   :  { %1167 = vrot.lane.b32.xlu1 %v1148_v10, %s1721_s8  ;;  %v1152_v31 = vsub.f32 1.0, %v1151_v30 }
 0x920   :  { %v1153_v33 = vmul.f32 %v1375_v21, %v1152_v31 }
 0x922   :  { %v1154_v35 = vadd.f32 %v1375_v21, %v1153_v33 }
 0x924   :  { %v1158_v37 = vsel %vm1157_vm3, %v1375_v21, %v1154_v35 }
 0x925   :  { %v1163_v38 = vsel %vm1160_vm4, %v1162_v36, %v1158_v37 }
 0x926   :  { %1169 = vrot.lane.b32.xlu1 %v1163_v38, %s1721_s8 }
 0x990   :  { %v1168_v39 = vpop.permute.xlu1 %1167 }
 0x991   :  { %v1173_v40 = vmul.f32 %v1168_v39, %v1122_v16 }
 0x993   :  { %v1175_v41 = vadd.f32 %v1173_v40, %v2071_v46 }
 0x995   :  { %v1179_v42 = vsel %vm252_vm0, %v1175_v41, 0.0 }
 0x996   :  { %1180 = vadd.xlane.f32.xlu0 %v1179_v42 }
 0x998   :  { %v1170_v43 = vpop.permute.xlu1 %1169 }
 0x999   :  { %v1174_v44 = vmul.f32 %v1170_v43, %v1125_v5 }
 0x99b   :  { %v1176_v45 = vadd.f32 %v1174_v44, %v2075_v51 }
 0x99d   :  { %v1182_v47 = vsel %vm252_vm0, %v1176_v45, 0.0 }
 0x99e   :  { %1183 = vadd.xlane.f32.xlu1 %v1182_v47 }
 0xa09   :  { %v1181_v48 = vpop.xlane.xlu0 %1180 }
 0xa0a   :  { %v1185_v49 = vmul.f32 %v1181_v48, %v2063_v14 }
 0xa0c   :  { %v1187_v50 = vsub.f32 %v1175_v41, %v1185_v49 }
 0xa0e   :  { %v1189_v52 = vmul.f32 %v1187_v50, %v1187_v50 }
 0xa10   :  { %v1191_v53 = vsel %vm252_vm0, %v1189_v52, 0.0 }
 0xa11   :  { %v1184_v55 = vpop.xlane.xlu1 %1183  ;;  %1192 = vadd.xlane.f32.xlu0 %v1191_v53 }
 0xa12   :  { %v1186_v46 = vmul.f32 %v1184_v55, %v2063_v14 }
 0xa14   :  { %v1188_v56 = vsub.f32 %v1176_v45, %v1186_v46 }
 0xa16   :  { %v1190_v57 = vmul.f32 %v1188_v56, %v1188_v56 }
 0xa18   :  { %v1194_v58 = vsel %vm252_vm0, %v1190_v57, 0.0 }
 0xa19   :  { %1195 = vadd.xlane.f32.xlu2 %v1194_v58 }
 0xa84   :  { %v1193_v51 = vpop.xlane.xlu0 %1192 }
 0xa85   :  { %v1197_v59 = vmul.f32 %v1193_v51, %v2063_v14 }
 0xa87   :  { %v1199_v60 = vadd.f32 1e-05, %v1197_v59 }
 0xa89   :  { %1376 = vrsqrt.f32 %v1199_v60  ;;  %vm1207_vm6 = vweird.f32 %v1199_v60 }
 0xa8c   :  { %v1196_v61 = vpop.xlane.xlu2 %1195 }
 0xa8d   :  { %v1198_v62 = vmul.f32 %v1196_v61, %v2063_v14 }
 0xa8f   :  { %v1377_v63 = vpop.eup %1376  ;;  %v1200_v0 = vadd.f32 1e-05, %v1198_v62 }
 0xa90   :  { %v1202_v1 = vmul.f32 %v1377_v63, %v1199_v60  ;;  %vm1208_vm5 = vweird.f32 %v1377_v63 }
 0xa91   :  { %1378 = vrsqrt.f32 %v1200_v0  ;;  %vm1209_vm7 = vmor %vm1207_vm6, %vm1208_vm5  ;;  %vm1217_vm9 = vweird.f32 %v1200_v0 }
 0xa92   :  { %v1203_v2 = vmul.f32 %v1377_v63, %v1202_v1 }
 0xa94   :  { %v1204_v3 = vmul.f32 0.5, %v1203_v2 }
 0xa96   :  { %v1205_v6 = vsub.f32 1.5, %v1204_v3 }
 0xa97   :  { %v1379_v7 = vpop.eup %1378 }
 0xa98   :  { %v1206_v9 = vmul.f32 %v1377_v63, %v1205_v6  ;;  %v1212_v54 = vmul.f32 %v1379_v7, %v1200_v0  ;;  %vm1218_vm8 = vweird.f32 %v1379_v7 }
 0xa99   :  { %vm1219_vm10 = vmor %vm1217_vm9, %vm1218_vm8 }
 0xa9a   :  { %v1210_v4 = vsel %vm1209_vm7, %v1377_v63, %v1206_v9  ;;  %v1213_v16 = vmul.f32 %v1379_v7, %v1212_v54 }
 0xa9b   :  { %v1221_v17 = vmul.f32 %v1210_v4, %v1187_v50 }
 0xa9c   :  { %v1214_v5 = vmul.f32 0.5, %v1213_v16 }
 0xa9d   :  { %v1226_v14 = vmul.f32 %v1320_v11, %v1221_v17 }
 0xa9e   :  { %v1215_v18 = vsub.f32 1.5, %v1214_v5 }
 0xa9f   :  { %v1231_v19 = vadd.f32 %v1321_v8, %v1226_v14 }
 0xaa0   :  { %v1216_v20 = vmul.f32 %v1379_v7, %v1215_v18 }
 0xaa1   :  { %1233 = vst.msk [vmem:[%s2120_s17] sm:$0xff] %vm252_vm0, %v1231_v19 }
 0xaa2   :  { %v1220_v13 = vsel %vm1219_vm10, %v1379_v7, %v1216_v20 }
 0xaa3   :  { %v1222_v12 = vmul.f32 %v1220_v13, %v1188_v56 }
 0xaa5   :  { %v1227_v22 = vmul.f32 %v1320_v11, %v1222_v12 }
 0xaa7   :  { %v1232_v23 = vadd.f32 %v1321_v8, %v1227_v22 }
 0xaa9   :  { %1234 = vst.msk [vmem:[%s2120_s17 + $0x8] sm:$0xff] %vm252_vm0, %v1232_v23 }
 0xaaa   :  { %1239 = vsyncpa [#allocation3], 1 }
 0xaab   :  { %1240 = vsyncpa [#allocation5], 1 }
 0xaac   :  { %1241 = vsyncpa [#allocation8], 1 }
 0xaad   :  { %1242 = vsyncpa [#allocation11], 1 }
 0xaae   :  { %1243 = vsyncpa [#allocation14], 1 }
 0xaaf   :  { %1244 = vsyncpa [#allocation17], 1 }
 0xab0   :  { %1245 = vsyncpa [#allocation20], 1 }

// kernel: _lambda_.8
= control target key start
LH: loop header
LB: loop body
LE: loop exit
PB: predicated region body
PF: predicated region fallthrough
CT: control target
= control target key end

     0   :  { %s2181_s0 = inlined_call_operand.vmem [shape: f32[16,32], index: 0, kind: input, shape index: {}]   ;;  %s2182_s1 = inlined_call_operand.hbm [shape: f32[32,96], index: 1, kind: input, shape index: {}]   ;;  %s2183_s2 = inlined_call_operand.vmem [shape: f32[1,96], index: 2, kind: input, shape index: {}]   ;;  %s2184_s3 = inlined_call_operand.hbm [shape: f32[32,32], index: 3, kind: input, shape index: {}]   ;;  %s2185_s4 = inlined_call_operand.hbm [shape: f32[1,32], index: 4, kind: input, shape index: {}]   ;;  %s2186_s5 = inlined_call_operand.hbm [shape: f32[32,64], index: 5, kind: input, shape index: {}]   ;;  %s2187_s6 = inlined_call_operand.hbm [shape: f32[1,64], index: 6, kind: input, shape index: {}]   ;;  %s2188_s7 = inlined_call_operand.hbm [shape: f32[1,32], index: 7, kind: input, shape index: {}]   ;;  %s2189_s8 = inlined_call_operand.hbm [shape: f32[1,32], index: 8, kind: input, shape index: {}]   ;;  %s2190_s9 = inlined_call_operand.hbm [shape: f32[32,32], index: 9, kind: input, shape index: {}]   ;;  %s2191_s10 = inlined_call_operand.hbm [shape: f32[1,32], index: 10, kind: input, shape index: {}]   ;;  %s2192_s11 = inlined_call_operand.hbm [shape: f32[32,32], index: 11, kind: input, shape index: {}]   ;;  %s2193_s12 = inlined_call_operand.hbm [shape: f32[1,32], index: 12, kind: input, shape index: {}]   ;;  %s2194_s13 = inlined_call_operand.hbm [shape: f32[32,64], index: 13, kind: input, shape index: {}]   ;;  %s2195_s14 = inlined_call_operand.hbm [shape: f32[1,64], index: 14, kind: input, shape index: {}]   ;;  %s2196_s15 = inlined_call_operand.hbm [shape: f32[1,32], index: 15, kind: input, shape index: {}]   ;;  %s2197_s16 = inlined_call_operand.hbm [shape: f32[1,32], index: 16, kind: input, shape index: {}]   ;;  %s2198_s17 = inlined_call_operand.vmem [shape: f32[16,32], index: 17, kind: output, shape index: {}]  }
   0x1   :  { %2200 = sst [smem:[#allocation33_spill]] %s2181_s0 }
   0x2   :  { %2201 = sst [smem:[#allocation34_spill]] %s2182_s1 }
   0x3   :  { %22 = vsyncpa [#allocation3], 0 }
   0x4   :  { %23 = vsyncpa [#allocation5], 0 }
   0x5   :  { %24 = vsyncpa [#allocation8], 0 }
   0x6   :  { %25 = vsyncpa [#allocation11], 0 }
   0x7   :  { %26 = vsyncpa [#allocation14], 0 }
   0x8   :  { %27 = vsyncpa [#allocation17], 0 }
   0x9   :  { %28 = vsyncpa [#allocation20], 0 }
   0xa   :  { %29 = vsyncpa [#allocation23], 0  ;;  %s51_s26 = sshll.u32 %s2184_s3, 4  ;;  %s1788_s27 = smov [#allocation4]   ;;  %s52_s26 = int_to_ptr.hbm [resolvable:$true] %s51_s26 }
   0xb   :  { %s53_s28 = sshll.u32 %s1788_s27, 4  ;;  %s75_s30 = sshll.u32 %s2186_s5, 4  ;;  %s54_s28 = int_to_ptr.vmem [resolvable:$true] %s53_s28  ;;  %s76_s30 = int_to_ptr.hbm [resolvable:$true] %s75_s30 }
   0xc   :  { %s1789_s18 = smov 128   ;;  %s1790_s19 = smov 8  }
   0xd   :  { %59 = dma.hbm_to_vmem [thread:$0]  %s52_s26, 512, %s54_s28, [#allocation5], %s1789_s18, %s1789_s18, %s1790_s19  }
   0xe   :  { %s1791_s1 = smov [#allocation7]   ;;  %s100_s3 = sshll.u32 %s2188_s7, 4  ;;  %s101_s3 = int_to_ptr.hbm [resolvable:$true] %s100_s3 }
   0xf   :  { %s77_s20 = sshll.u32 %s1791_s1, 4  ;;  %s121_s24 = sshll.u32 %s2190_s9, 4  ;;  %s78_s20 = int_to_ptr.vmem [resolvable:$true] %s77_s20  ;;  %s122_s24 = int_to_ptr.hbm [resolvable:$true] %s121_s24 }
  0x10   :  { %83 = dma.hbm_to_vmem [thread:$0]  %s76_s30, 512, %s78_s20, [#allocation8], %s1789_s18, %s1789_s18, %s1790_s19  }
  0x11   :  { %s1792_s25 = smov [#allocation10]   ;;  %s1793_s26 = smov [#allocation13]  }
  0x12   :  { %s102_s27 = sshll.u32 %s1792_s25, 4  ;;  %s123_s28 = sshll.u32 %s1793_s26, 4  ;;  %s103_s27 = int_to_ptr.vmem [resolvable:$true] %s102_s27  ;;  %s124_s28 = int_to_ptr.vmem [resolvable:$true] %s123_s28 }
  0x13   :  { %105 = dma.hbm_to_vmem [thread:$0]  %s101_s3, 16, %s103_s27, [#allocation11]  }
  0x14   :  { %s145_s7 = sshll.u32 %s2192_s11, 4  ;;  %s169_s9 = sshll.u32 %s2194_s13, 4  ;;  %s146_s7 = int_to_ptr.hbm [resolvable:$true] %s145_s7  ;;  %s170_s9 = int_to_ptr.hbm [resolvable:$true] %s169_s9 }
  0x15   :  { %129 = dma.hbm_to_vmem [thread:$0]  %s122_s24, 512, %s124_s28, [#allocation14], %s1789_s18, %s1789_s18, %s1790_s19  }
  0x16   :  { %s1794_s20 = smov [#allocation16]   ;;  %s1795_s22 = smov [#allocation19]  }
  0x17   :  { %s147_s21 = sshll.u32 %s1794_s20, 4  ;;  %s171_s11 = sshll.u32 %s1795_s22, 4  ;;  %s148_s21 = int_to_ptr.vmem [resolvable:$true] %s147_s21  ;;  %s172_s11 = int_to_ptr.vmem [resolvable:$true] %s171_s11 }
  0x18   :  { %153 = dma.hbm_to_vmem [thread:$0]  %s146_s7, 512, %s148_s21, [#allocation17], %s1789_s18, %s1789_s18, %s1790_s19  }
  0x19   :  { %s194_s23 = sshll.u32 %s2196_s15, 4  ;;  %s2202_s25 = sld [smem:[#allocation34_spill]]  ;;  %s195_s23 = int_to_ptr.hbm [resolvable:$true] %s194_s23 }
  0x1a   :  { %177 = dma.hbm_to_vmem [thread:$0]  %s170_s9, 512, %s172_s11, [#allocation20], %s1789_s18, %s1789_s18, %s1790_s19  }
  0x1b   :  { %s1796_s26 = smov [#allocation22]   ;;  %s1797_s29 = smov [#allocation2]  }
  0x1c   :  { %s196_s28 = sshll.u32 %s1796_s26, 4  ;;  %s38_s0 = sshll.u32 %s1797_s29, 4  ;;  %s197_s28 = int_to_ptr.vmem [resolvable:$true] %s196_s28  ;;  %s39_s0 = int_to_ptr.vmem [resolvable:$true] %s38_s0 }
  0x1d   :  { %199 = dma.hbm_to_vmem [thread:$0]  %s195_s23, 16, %s197_s28, [#allocation23]  }
  0x1e   :  { %s65_s15 = sshll.u32 %s2185_s4, 4  ;;  %s89_s20 = sshll.u32 %s2187_s6, 4  ;;  %s66_s15 = int_to_ptr.hbm [resolvable:$true] %s65_s15  ;;  %s90_s20 = int_to_ptr.hbm [resolvable:$true] %s89_s20 }
  0x1f   :  { %s36_s27 = sshll.u32 %s2202_s25, 4  ;;  %s1798_s21 = smov [#allocation6]   ;;  %s37_s27 = int_to_ptr.hbm [resolvable:$true] %s36_s27 }
  0x20   :  { %44 = dma.hbm_to_vmem [thread:$0]  %s37_s27, 512, %s39_s0, [#allocation3], %s1789_s18, %s1789_s18, %s1790_s19  }
  0x21   :  { %s67_s22 = sshll.u32 %s1798_s21, 4  ;;  %s1799_s11 = smov [#allocation9]   ;;  %s68_s22 = int_to_ptr.vmem [resolvable:$true] %s67_s22 }
  0x22   :  { %70 = dma.hbm_to_vmem [thread:$0]  %s66_s15, 16, %s68_s22, [#allocation5]  }
  0x23   :  { %s91_s3 = sshll.u32 %s1799_s11, 4  ;;  %s111_s4 = sshll.u32 %s2189_s8, 4  ;;  %s92_s3 = int_to_ptr.vmem [resolvable:$true] %s91_s3  ;;  %s112_s4 = int_to_ptr.hbm [resolvable:$true] %s111_s4 }
  0x24   :  { %94 = dma.hbm_to_vmem [thread:$0]  %s90_s20, 16, %s92_s3, [#allocation8]  }
  0x25   :  { %s135_s19 = sshll.u32 %s2191_s10, 4  ;;  %s1800_s24 = smov [#allocation12]   ;;  %s136_s19 = int_to_ptr.hbm [resolvable:$true] %s135_s19 }
  0x26   :  { %s113_s6 = sshll.u32 %s1800_s24, 4  ;;  %s1801_s25 = smov [#allocation15]   ;;  %s114_s6 = int_to_ptr.vmem [resolvable:$true] %s113_s6 }
  0x27   :  { %116 = dma.hbm_to_vmem [thread:$0]  %s112_s4, 16, %s114_s6, [#allocation11]  }
  0x28   :  { %s137_s27 = sshll.u32 %s1801_s25, 4  ;;  %s159_s29 = sshll.u32 %s2193_s12, 4  ;;  %s138_s27 = int_to_ptr.vmem [resolvable:$true] %s137_s27  ;;  %s160_s29 = int_to_ptr.hbm [resolvable:$true] %s159_s29 }
  0x29   :  { %140 = dma.hbm_to_vmem [thread:$0]  %s136_s19, 16, %s138_s27, [#allocation14]  }
  0x2a   :  { %s183_s7 = sshll.u32 %s2195_s14, 4  ;;  %s1802_s30 = smov [#allocation18]   ;;  %s184_s7 = int_to_ptr.hbm [resolvable:$true] %s183_s7 }
  0x2b   :  { %s161_s10 = sshll.u32 %s1802_s30, 4  ;;  %s1803_s15 = smov [#allocation21]   ;;  %s162_s10 = int_to_ptr.vmem [resolvable:$true] %s161_s10 }
  0x2c   :  { %164 = dma.hbm_to_vmem [thread:$0]  %s160_s29, 16, %s162_s10, [#allocation17]  }
  0x2d   :  { %s185_s1 = sshll.u32 %s1803_s15, 4  ;;  %s205_s21 = sshll.u32 %s2197_s16, 4  ;;  %s186_s1 = int_to_ptr.vmem [resolvable:$true] %s185_s1  ;;  %s206_s21 = int_to_ptr.hbm [resolvable:$true] %s205_s21 }
  0x2e   :  { %188 = dma.hbm_to_vmem [thread:$0]  %s184_s7, 16, %s186_s1, [#allocation20]  }
  0x2f   :  { %s1804_s12 = smov [#allocation24]  }
  0x30   :  { %s207_s22 = sshll.u32 %s1804_s12, 4  ;;  %s208_s22 = int_to_ptr.vmem [resolvable:$true] %s207_s22 }
  0x31   :  { %210 = dma.hbm_to_vmem [thread:$0]  %s206_s21, 16, %s208_s22, [#allocation23]  }
  0x32   :  { %1772 = dma.done.wait [#allocation3], 512  }
  0x33   :  { %1773 = vsyncadd [#allocation3], 4294966784 }
  0x34   :  { %1774 = dma.done.wait [#allocation5], 528  }
  0x35   :  { %1775 = vsyncadd [#allocation5], 4294966768 }
  0x36   :  { %1776 = dma.done.wait [#allocation8], 528  }
  0x37   :  { %1777 = vsyncadd [#allocation8], 4294966768 }
  0x38   :  { %1778 = dma.done.wait [#allocation11], 32  }
  0x39   :  { %1779 = vsyncadd [#allocation11], 4294967264 }
  0x3a   :  { %1780 = dma.done.wait [#allocation14], 528  }
  0x3b   :  { %1781 = vsyncadd [#allocation14], 4294966768 }
  0x3c   :  { %1782 = dma.done.wait [#allocation17], 528  }
  0x3d   :  { %1783 = vsyncadd [#allocation17], 4294966768 }
  0x3e   :  { %1784 = dma.done.wait [#allocation20], 528  }
  0x3f   :  { %1785 = vsyncadd [#allocation20], 4294966768 }
  0x40   :  { %1786 = dma.done.wait [#allocation23], 32  }
  0x41   :  { %1787 = vsyncadd [#allocation23], 4294967264  ;;  %v276_v0 = vld [vmem:[#allocation2 + $0x18] sm:$0xff]  ;;  %v275_v1 = vld [vmem:[#allocation2 + $0x10] sm:$0xff]  ;;  %s2203_s11 = sld [smem:[#allocation33_spill]]  ;;  %vm281_vm0 = vcmask 261120   ;;  %v311_v11 = vlaneseq }
  0x42   :  { %300 = vmatpush.msra.mxu0 %v276_v0  ;;  %v274_v2 = vld [vmem:[#allocation2 + $0x8] sm:$0xff]  ;;  %v273_v3 = vld [vmem:[#allocation2] sm:$0xff]  ;;  %s1805_s13 = smov 96   ;;  %vm353_vm8 = vcmask 64512  }
  0x43   :  { %v1344_v6 = vld [vmem:[%s2183_s2] ss:$0 sm:$0xff]  ;;  %v1986_v12 = vand.u32 127, %v311_v11  ;;  %s1806_s2 = smov 64   ;;  %v857_v54 = vld [vmem:[#allocation4 + $0x8] sm:$0xff] }
  0x44   :  { %301 = vmatpush.msra.mxu0 %v275_v1 }
  0x45   :  { %vm365_vm1 = vcmp.ge.s32.totalorder %v1986_v12, 8  ;;  %vm366_vm2 = vcmp.lt.s32.totalorder %v1986_v12, 16  ;;  %vm455_vm3 = vcmp.ge.s32.totalorder %v1986_v12, 16  ;;  %vm456_vm4 = vcmp.lt.s32.totalorder %v1986_v12, 24 }
  0x46   :  { %302 = vmatpush.msra.mxu0 %v274_v2  ;;  %vm1992_vm5 = vmand %vm365_vm1, %vm366_vm2  ;;  %vm314_vm6 = vcmp.lt.s32.totalorder %v1986_v12, 8  ;;  %vm523_vm9 = vcmp.ge.s32.totalorder %v1986_v12, 24  ;;  %vm524_vm10 = vcmp.lt.s32.totalorder %v1986_v12, 32 }
  0x47   :  { %v1964_v4 = vld [vmem:[%s2203_s11] sm:$0xff]  ;;  %v1971_v5 = vld [vmem:[%s2203_s11 + $0x8] sm:$0xff]  ;;  %vm1999_vm7 = vmand %vm455_vm3, %vm456_vm4 }
  0x48   :  { %303 = vmatpush.msra.mxu0 %v273_v3  ;;  %vm2051_vm11 = vmand %vm523_vm9, %vm524_vm10 }
  0x49   :  { %1276 = vmatmul.msk.f32.vlgmr.msra.gmra.mxu0 %vm281_vm0, %v1964_v4 }
  0x51   :  { %1277 = vmatmul.msk.f32.gmra.mxu0 %vm281_vm0, %v1971_v5 }
  0xc6   :  { %v305_v7 = vpop.f32.mrf.mxu0 }
  0xc7   :  { %v1978_v8 = vadd.f32 %v1344_v6, %v305_v7 }
  0xc9   :  { %318 = vrot.lane.b32.xlu0 %v1978_v8, %s1805_s13  ;;  %v316_v19 = vsel %vm314_vm6, %v1978_v8, 0.0  ;;  %v368_v20 = vsel %vm1992_vm5, %v1978_v8, 0.0  ;;  %v458_v23 = vsel %vm1999_vm7, %v1978_v8, 0.0 }
  0xce   :  { %v308_v9 = vpop.f32.mrf.mxu0 }
  0xcf   :  { %v1982_v10 = vadd.f32 %v1344_v6, %v308_v9  ;;  %v526_v9 = vsel %vm2051_vm11, %v1978_v8, 0.0 }
  0xd1   :  { %593 = vrot.lane.b32.xlu0 %v1982_v10, %s1805_s13  ;;  %v639_v24 = vsel %vm1992_vm5, %v1982_v10, 0.0  ;;  %v791_v13 = vsel %vm2051_vm11, %v1982_v10, 0.0 }
 0x13b   :  { %v1996_v14 = vpop.permute.xlu0 %318 }
 0x13c   :  { %v321_v16 = vsel %vm314_vm6, %v1996_v14, 0.0  ;;  %v369_v17 = vsel %vm1992_vm5, %v1996_v14, 0.0  ;;  %v459_v18 = vsel %vm1999_vm7, %v1996_v14, 0.0  ;;  %v527_v0 = vsel %vm2051_vm11, %v1996_v14, 0.0 }
 0x13d   :  { %1278 = vmatpush.xpose.msk.msra.mxu1 %vm281_vm0, %v321_v16  ;;  %1280 = vmatpush.xpose.msk.msrb.mxu0 %vm281_vm0, %v369_v17  ;;  %v591_v14 = vsel %vm314_vm6, %v1982_v10, 0.0 }
 0x140   :  { %1279 = vmatmul.msk.f32.vlgmr.msra.gmra.mxu1 %vm281_vm0, %v316_v19  ;;  %1281 = vmatmul.msk.f32.vlgmr.msrb.gmra.mxu0 %vm281_vm0, %v368_v20 }
 0x141   :  { %1286 = vmatpush.xpose.msk.msrb.mxu1 %vm281_vm0, %v459_v18 }
 0x143   :  { %v2023_v21 = vpop.permute.xlu0 %593 }
 0x144   :  { %v640_v22 = vsel %vm1992_vm5, %v2023_v21, 0.0  ;;  %v596_v56 = vsel %vm314_vm6, %v2023_v21, 0.0  ;;  %v727_v11 = vsel %vm1999_vm7, %v2023_v21, 0.0  ;;  %v792_v20 = vsel %vm2051_vm11, %v2023_v21, 0.0 }
 0x145   :  { %1296 = vmatpush.xpose.msk.msra.mxu0 %vm281_vm0, %v640_v22 }
 0x148   :  { %1287 = vmatmul.msk.f32.vlgmr.msrb.gmra.mxu1 %vm281_vm0, %v458_v23  ;;  %1297 = vmatmul.msk.f32.vlgmr.msra.gmra.mxu0 %vm281_vm0, %v639_v24 }
 0x1bd   :  { %v349_v25 = vpop.f32.mrf.mxu1  ;;  %v394_v26 = vpop.f32.mrf.mxu0 }
 0x1be   :  { %v397_v27 = vmul.f32 0.35355338, %v394_v26  ;;  %v352_v29 = vmul.f32 0.35355338, %v349_v25 }
 0x1c0   :  { %v398_v28 = vsel %vm353_vm8, %v397_v27, -inf  ;;  %v354_v33 = vsel %vm353_vm8, %v352_v29, -inf }
 0x1c1   :  { %399 = vmax.xlane.f32.xlu1 %v398_v28 }
 0x1c5   :  { %v484_v30 = vpop.f32.mrf.mxu1  ;;  %v665_v34 = vpop.f32.mrf.mxu0 }
 0x1c6   :  { %v487_v31 = vmul.f32 0.35355338, %v484_v30  ;;  %v668_v35 = vmul.f32 0.35355338, %v665_v34 }
 0x1c8   :  { %v488_v32 = vsel %vm353_vm8, %v487_v31, -inf  ;;  %v669_v36 = vsel %vm353_vm8, %v668_v35, -inf }
 0x1c9   :  { %489 = vmax.xlane.f32.xlu2 %v488_v32  ;;  %355 = vmax.xlane.f32.xlu1 %v354_v33 }
 0x1d1   :  { %670 = vmax.xlane.f32.xlu2 %v669_v36 }
 0x1e9   :  { %322 = vrot.lane.b32.xlu2 %v1978_v8, %s1806_s2  ;;  %v726_v8 = vsel %vm1999_vm7, %v1982_v10, 0.0 }
 0x234   :  { %v400_v37 = vpop.xlane.xlu1 %399 }
 0x235   :  { %v401_v38 = vsub.f32 %v397_v27, %v400_v37 }
 0x237   :  { %v402_v39 = vmul.f32 1.442695, %v401_v38 }
 0x239   :  { %1354 = vpow2.f32 %v402_v39 }
 0x23c   :  { %v490_v40 = vpop.xlane.xlu2 %489  ;;  %v356_v41 = vpop.xlane.xlu1 %355 }
 0x23d   :  { %v357_v42 = vsub.f32 %v352_v29, %v356_v41  ;;  %v491_v45 = vsub.f32 %v487_v31, %v490_v40 }
 0x23f   :  { %v1355_v43 = vpop.eup %1354  ;;  %v358_v44 = vmul.f32 1.442695, %v357_v42  ;;  %v492_v47 = vmul.f32 1.442695, %v491_v45 }
 0x240   :  { %v404_v46 = vsel %vm353_vm8, %v1355_v43, 0.0 }
 0x241   :  { %405 = vadd.xlane.f32.xlu0 %v404_v46  ;;  %1356 = vpow2.f32 %v358_v44 }
 0x242   :  { %1358 = vpow2.f32 %v492_v47 }
 0x244   :  { %v671_v48 = vpop.xlane.xlu2 %670 }
 0x245   :  { %v672_v50 = vsub.f32 %v668_v35, %v671_v48 }
 0x247   :  { %v1357_v49 = vpop.eup %1356  ;;  %v673_v52 = vmul.f32 1.442695, %v672_v50 }
 0x248   :  { %v360_v51 = vsel %vm353_vm8, %v1357_v49, 0.0  ;;  %v1359_v55 = vpop.eup %1358 }
 0x249   :  { %361 = vadd.xlane.f32.xlu1 %v360_v51  ;;  %1360 = vpow2.f32 %v673_v52  ;;  %v494_v57 = vsel %vm353_vm8, %v1359_v55, 0.0 }
 0x24c   :  { %v323_v53 = vpop.permute.xlu2 %322 }
 0x24d   :  { %1282 = vmatpush.msk.msra.mxu3 %vm1992_vm5, %v323_v53  ;;  %1288 = vmatpush.msk.msra.mxu2 %vm1999_vm7, %v323_v53 }
 0x24e   :  { %1292 = vmatpush.msk.msra.mxu1 %vm2051_vm11, %v323_v53 }
 0x24f   :  { %1284 = vmatpush.msk.msrb.mxu3 %vm314_vm6, %v323_v53  ;;  %1294 = vmatpush.xpose.msk.msrb.mxu2 %vm281_vm0, %v596_v56  ;;  %v1361_v58 = vpop.eup %1360 }
 0x250   :  { %v675_v59 = vsel %vm353_vm8, %v1361_v58, 0.0 }
 0x251   :  { %495 = vadd.xlane.f32.xlu1 %v494_v57 }
 0x259   :  { %676 = vadd.xlane.f32.xlu1 %v675_v59 }
 0x272   :  { %597 = vrot.lane.b32.xlu1 %v1982_v10, %s1806_s2 }
 0x2b4   :  { %v406_v60 = vpop.xlane.xlu0 %405 }
 0x2b5   :  { %1362 = vrcp.f32 %v406_v60 }
 0x2bb   :  { %v1363_v61 = vpop.eup %1362 }
 0x2bc   :  { %v408_v62 = vmul.f32 %v1363_v61, %v1355_v43  ;;  %v362_v63 = vpop.xlane.xlu1 %361  ;;  %v859_v61 = vld [vmem:[#allocation4 + $0x18] sm:$0xff] }
 0x2bd   :  { %1364 = vrcp.f32 %v362_v63 }
 0x2be   :  { %1283 = vmatmul.msk.f32.vlgmr.msra.gmra.mxu3 %vm353_vm8, %v408_v62  ;;  %v858_v62 = vld [vmem:[#allocation4 + $0x10] sm:$0xff] }
 0x2bf   :  { %1290 = vmatpush.xpose.msk.msra.mxu3 %vm281_vm0, %v527_v0 }
 0x2c3   :  { %v1365_v1 = vpop.eup %1364 }
 0x2c4   :  { %v496_v2 = vpop.xlane.xlu1 %495  ;;  %v364_v3 = vmul.f32 %v1365_v1, %v1357_v49 }
 0x2c5   :  { %1366 = vrcp.f32 %v496_v2 }
 0x2c6   :  { %1285 = vmatmul.msk.f32.vlgmr.msrb.gmra.mxu3 %vm353_vm8, %v364_v3 }
 0x2cb   :  { %v1367_v6 = vpop.eup %1366 }
 0x2cc   :  { %v498_v7 = vmul.f32 %v1367_v6, %v1359_v55  ;;  %v677_v16 = vpop.xlane.xlu1 %676 }
 0x2cd   :  { %1368 = vrcp.f32 %v677_v16 }
 0x2ce   :  { %1289 = vmatmul.msk.f32.vlgmr.msra.gmra.mxu2 %vm353_vm8, %v498_v7  ;;  %1291 = vmatmul.msk.f32.vlgmr.msra.gmra.mxu3 %vm281_vm0, %v526_v9 }
 0x2cf   :  { %1302 = vmatpush.xpose.msk.msra.mxu2 %vm281_vm0, %v727_v11  ;;  %v856_v11 = vld [vmem:[#allocation4] sm:$0xff] }
 0x2d3   :  { %v1369_v17 = vpop.eup %1368 }
 0x2d4   :  { %v679_v18 = vmul.f32 %v1369_v17, %v1361_v58  ;;  %v895_v17 = vld [vmem:[#allocation7 + $0x10] sm:$0xff] }
 0x2d6   :  { %1295 = vmatmul.msk.f32.vlgmr.msrb.gmra.mxu2 %vm281_vm0, %v591_v14 }
 0x2d7   :  { %882 = vmatpush.msrb.mxu2 %v859_v61 }
 0x2d9   :  { %883 = vmatpush.msrb.mxu2 %v858_v62 }
 0x2db   :  { %884 = vmatpush.msrb.mxu2 %v857_v54 }
 0x2dd   :  { %885 = vmatpush.msrb.mxu2 %v856_v11 }
 0x2de   :  { %1303 = vmatmul.msk.f32.vlgmr.msra.gmra.mxu2 %vm281_vm0, %v726_v8  ;;  %v896_v8 = vld [vmem:[#allocation7 + $0x18] sm:$0xff] }
 0x2e4   :  { %v2090_v19 = vpop.permute.xlu1 %597 }
 0x2e5   :  { %1298 = vmatpush.msk.msrb.mxu3 %vm1992_vm5, %v2090_v19  ;;  %1300 = vmatpush.msk.msrb.mxu1 %vm314_vm6, %v2090_v19 }
 0x2e6   :  { %1304 = vmatpush.msk.msrb.mxu0 %vm1999_vm7, %v2090_v19  ;;  %1299 = vmatmul.msk.f32.vlgmr.msrb.gmra.mxu3 %vm353_vm8, %v679_v18 }
 0x2e7   :  { %1306 = vmatpush.xpose.msk.msra.mxu3 %vm281_vm0, %v792_v20 }
 0x2e8   :  { %919 = vmatpush.msra.mxu0 %v896_v8 }
 0x2ea   :  { %920 = vmatpush.msra.mxu0 %v895_v17 }
 0x2ee   :  { %1307 = vmatmul.msk.f32.vlgmr.msra.gmra.mxu3 %vm281_vm0, %v791_v13 }
 0x341   :  { %v429_v12 = vpop.f32.mrf.mxu3 }
 0x349   :  { %v452_v22 = vpop.f32.mrf.mxu3 }
 0x34a   :  { %v453_v23 = vadd.f32 %v452_v22, %v429_v12 }
 0x351   :  { %v519_v24 = vpop.f32.mrf.mxu2  ;;  %v552_v15 = vpop.f32.mrf.mxu3 }
 0x352   :  { %v2110_v25 = vadd.f32 %v519_v24, %v453_v23  ;;  %v555_v26 = vmul.f32 0.35355338, %v552_v15  ;;  %v894_v23 = vld [vmem:[#allocation7 + $0x8] sm:$0xff]  ;;  %v893_v24 = vld [vmem:[#allocation7] sm:$0xff]  ;;  %v1345_v15 = vld [vmem:[#allocation6] ss:$0 sm:$0xff] }
 0x353   :  { %921 = vmatpush.msra.mxu0 %v894_v23  ;;  %v1045_v23 = vld [vmem:[#allocation13 + $0x10] sm:$0xff] }
 0x354   :  { %v556_v27 = vsel %vm353_vm8, %v555_v26, -inf }
 0x355   :  { %557 = vmax.xlane.f32.xlu2 %v556_v27  ;;  %922 = vmatpush.msra.mxu0 %v893_v24  ;;  %v1044_v24 = vld [vmem:[#allocation13 + $0x8] sm:$0xff] }
 0x359   :  { %v624_v21 = vpop.f32.mrf.mxu2 }
 0x35a   :  { %v627_v28 = vmul.f32 0.35355338, %v624_v21 }
 0x35c   :  { %v628_v29 = vsel %vm353_vm8, %v627_v28, -inf }
 0x35d   :  { %629 = vmax.xlane.f32.xlu0 %v628_v29 }
 0x361   :  { %v752_v30 = vpop.f32.mrf.mxu2 }
 0x362   :  { %v755_v10 = vmul.f32 0.35355338, %v752_v30 }
 0x364   :  { %v756_v31 = vsel %vm353_vm8, %v755_v10, -inf }
 0x365   :  { %757 = vmax.xlane.f32.xlu1 %v756_v31 }
 0x369   :  { %v2115_v32 = vpop.f32.mrf.mxu3 }
 0x371   :  { %v817_v33 = vpop.f32.mrf.mxu3 }
 0x372   :  { %v820_v34 = vmul.f32 0.35355338, %v817_v33 }
 0x374   :  { %v821_v35 = vsel %vm353_vm8, %v820_v34, -inf }
 0x375   :  { %822 = vmax.xlane.f32.xlu0 %v821_v35 }
 0x3c8   :  { %v558_v36 = vpop.xlane.xlu2 %557 }
 0x3c9   :  { %v559_v37 = vsub.f32 %v555_v26, %v558_v36 }
 0x3cb   :  { %v560_v38 = vmul.f32 1.442695, %v559_v37 }
 0x3cd   :  { %1370 = vpow2.f32 %v560_v38 }
 0x3d0   :  { %v630_v39 = vpop.xlane.xlu0 %629 }
 0x3d1   :  { %v631_v40 = vsub.f32 %v627_v28, %v630_v39  ;;  %v1346_v28 = vld [vmem:[#allocation9] ss:$0 sm:$0xff] }
 0x3d3   :  { %v1371_v41 = vpop.eup %1370  ;;  %v632_v42 = vmul.f32 1.442695, %v631_v40 }
 0x3d4   :  { %v562_v43 = vsel %vm353_vm8, %v1371_v41, 0.0 }
 0x3d5   :  { %1372 = vpow2.f32 %v632_v42  ;;  %563 = vadd.xlane.f32.xlu0 %v562_v43 }
 0x3d8   :  { %v758_v44 = vpop.xlane.xlu1 %757 }
 0x3d9   :  { %v759_v45 = vsub.f32 %v755_v10, %v758_v44 }
 0x3db   :  { %v1373_v46 = vpop.eup %1372  ;;  %v760_v47 = vmul.f32 1.442695, %v759_v45 }
 0x3dc   :  { %v634_v48 = vsel %vm353_vm8, %v1373_v46, 0.0 }
 0x3dd   :  { %1374 = vpow2.f32 %v760_v47  ;;  %635 = vadd.xlane.f32.xlu2 %v634_v48 }
 0x3e3   :  { %v1375_v49 = vpop.eup %1374 }
 0x3e4   :  { %v762_v50 = vsel %vm353_vm8, %v1375_v49, 0.0 }
 0x3e5   :  { %763 = vadd.xlane.f32.xlu0 %v762_v50 }
 0x3e8   :  { %v823_v51 = vpop.xlane.xlu0 %822 }
 0x3e9   :  { %v824_v52 = vsub.f32 %v820_v34, %v823_v51 }
 0x3eb   :  { %v825_v53 = vmul.f32 1.442695, %v824_v52 }
 0x3ed   :  { %1376 = vpow2.f32 %v825_v53 }
 0x3f3   :  { %v1377_v55 = vpop.eup %1376 }
 0x3f4   :  { %v827_v56 = vsel %vm353_vm8, %v1377_v55, 0.0 }
 0x3f5   :  { %828 = vadd.xlane.f32.xlu2 %v827_v56 }
 0x448   :  { %v564_v57 = vpop.xlane.xlu0 %563 }
 0x449   :  { %1378 = vrcp.f32 %v564_v57 }
 0x44f   :  { %v1379_v58 = vpop.eup %1378 }
 0x450   :  { %v566_v59 = vmul.f32 %v1379_v58, %v1371_v41  ;;  %v636_v60 = vpop.xlane.xlu2 %635 }
 0x451   :  { %1380 = vrcp.f32 %v636_v60 }
 0x452   :  { %1293 = vmatmul.msk.f32.vlgmr.msra.gmra.mxu1 %vm353_vm8, %v566_v59 }
 0x453   :  { %1308 = vmatpush.msk.msra.mxu1 %vm2051_vm11, %v2090_v19 }
 0x457   :  { %v1381_v63 = vpop.eup %1380 }
 0x458   :  { %v638_v0 = vmul.f32 %v1381_v63, %v1373_v46  ;;  %v764_v1 = vpop.xlane.xlu0 %763 }
 0x459   :  { %1382 = vrcp.f32 %v764_v1 }
 0x45a   :  { %1301 = vmatmul.msk.f32.vlgmr.msrb.gmra.mxu1 %vm353_vm8, %v638_v0 }
 0x45f   :  { %v1383_v2 = vpop.eup %1382 }
 0x460   :  { %v766_v3 = vmul.f32 %v1383_v2, %v1375_v49 }
 0x462   :  { %1305 = vmatmul.msk.f32.vlgmr.msrb.gmra.mxu0 %vm353_vm8, %v766_v3  ;;  %v1807_v3 = vmov 32.0  }
 0x468   :  { %v829_v6 = vpop.xlane.xlu2 %828 }
 0x469   :  { %1384 = vrcp.f32 %v829_v6 }
 0x46f   :  { %v1385_v7 = vpop.eup %1384 }
 0x470   :  { %v831_v9 = vmul.f32 %v1385_v7, %v1377_v55 }
 0x472   :  { %1309 = vmatmul.msk.f32.vlgmr.msra.gmra.mxu1 %vm353_vm8, %v831_v9 }
 0x4cf   :  { %v587_v14 = vpop.f32.mrf.mxu1 }
 0x4d0   :  { %v590_v16 = vadd.f32 %v587_v14, %v2110_v25 }
 0x4d2   :  { %1310 = vmatmul.msk.f32.vlgmr.msrb.gmra.mxu2 %vm281_vm0, %v590_v16 }
 0x4d7   :  { %v723_v18 = vpop.f32.mrf.mxu1 }
 0x4d8   :  { %v724_v20 = vadd.f32 %v723_v18, %v2115_v32 }
 0x4df   :  { %v787_v19 = vpop.f32.mrf.mxu0 }
 0x4e0   :  { %v790_v13 = vadd.f32 %v787_v19, %v724_v20 }
 0x4ef   :  { %v852_v12 = vpop.f32.mrf.mxu1 }
 0x4f0   :  { %v855_v22 = vadd.f32 %v852_v12, %v790_v13 }
 0x4f2   :  { %1311 = vmatmul.msk.f32.gmra.mxu2 %vm281_vm0, %v855_v22  ;;  %v1046_v22 = vld [vmem:[#allocation13 + $0x18] sm:$0xff] }
 0x4f3   :  { %1069 = vmatpush.msrb.mxu3 %v1046_v22 }
 0x4f5   :  { %1070 = vmatpush.msrb.mxu3 %v1045_v23 }
 0x4f7   :  { %1071 = vmatpush.msrb.mxu3 %v1044_v24 }
 0x555   :  { %v887_v25 = vpop.f32.mrf.mxu2 }
 0x556   :  { %v888_v26 = vadd.f32 %v1345_v15, %v887_v25 }
 0x558   :  { %1312 = vmatmul.msk.f32.vlgmr.msra.gmra.mxu0 %vm281_vm0, %v888_v26 }
 0x575   :  { %v890_v27 = vpop.f32.mrf.mxu2 }
 0x576   :  { %v891_v21 = vadd.f32 %v1345_v15, %v890_v27  ;;  %v1043_v15 = vld [vmem:[#allocation13] sm:$0xff] }
 0x577   :  { %1072 = vmatpush.msrb.mxu3 %v1043_v15 }
 0x578   :  { %1313 = vmatmul.msk.f32.gmra.mxu0 %vm281_vm0, %v891_v21  ;;  %v1085_v21 = vld [vmem:[#allocation16 + $0x18] sm:$0xff] }
 0x579   :  { %1108 = vmatpush.msrb.mxu1 %v1085_v21 }
 0x5d5   :  { %v924_v29 = vpop.f32.mrf.mxu0 }
 0x5d6   :  { %v925_v30 = vadd.f32 %v1346_v28, %v924_v29 }
 0x5d8   :  { %v1314_v10 = vmul.f32 -1.442695, %v925_v30 }
 0x5da   :  { %1386 = vpow2.f32 %v1314_v10 }
 0x5e0   :  { %v1387_v31 = vpop.eup %1386 }
 0x5e1   :  { %v936_v32 = vadd.f32 1.0, %v1387_v31 }
 0x5e3   :  { %1388 = vrcp.f32 %v936_v32  ;;  %v949_v36 = vand.u32 2147483648, %v936_v32  ;;  %v947_v38 = vand.u32 2147483647, %v936_v32  ;;  %vm943_vm13 = vweird.f32 %v936_v32 }
 0x5e5   :  { %v950_v40 = vor.u32 1.1754944e-38, %v949_v36  ;;  %vm948_vm15 = vcmp.eq.f32.partialorder %v947_v38, 8.507059e+37  ;;  %v1347_v38 = vld [vmem:[#allocation10] ss:$0 sm:$0xff] }
 0x5e9   :  { %v1389_v33 = vpop.eup %1388 }
 0x5ea   :  { %v939_v34 = vmul.f32 %v1389_v33, %v936_v32  ;;  %vm944_vm12 = vweird.f32 %v1389_v33 }
 0x5eb   :  { %vm945_vm14 = vmor %vm943_vm13, %vm944_vm12 }
 0x5ec   :  { %v940_v35 = vsub.f32 1.0, %v939_v34 }
 0x5ee   :  { %v941_v37 = vmul.f32 %v1389_v33, %v940_v35 }
 0x5f0   :  { %v942_v39 = vadd.f32 %v1389_v33, %v941_v37 }
 0x5f2   :  { %v946_v41 = vsel %vm945_vm14, %v1389_v33, %v942_v39 }
 0x5f3   :  { %v951_v42 = vsel %vm948_vm15, %v950_v40, %v946_v41 }
 0x5f4   :  { %970 = vrot.lane.b32.xlu0 %v951_v42, %s1805_s13  ;;  %v1348_v42 = vld [vmem:[#allocation12] ss:$0 sm:$0xff] }
 0x5f5   :  { %v927_v43 = vpop.f32.mrf.mxu0 }
 0x5f6   :  { %v928_v44 = vadd.f32 %v1346_v28, %v927_v43 }
 0x5f8   :  { %v1315_v45 = vmul.f32 -1.442695, %v928_v44 }
 0x5fa   :  { %1390 = vpow2.f32 %v1315_v45 }
 0x600   :  { %v1391_v46 = vpop.eup %1390 }
 0x601   :  { %v937_v47 = vadd.f32 1.0, %v1391_v46 }
 0x603   :  { %1392 = vrcp.f32 %v937_v47  ;;  %v964_v51 = vand.u32 2147483648, %v937_v47  ;;  %v962_v53 = vand.u32 2147483647, %v937_v47  ;;  %vm958_vm2 = vweird.f32 %v937_v47 }
 0x604   :  { %1394 = vrcp.f32 %v1807_v3  ;;  %v1350_v3 = vld [vmem:[#allocation18] ss:$0 sm:$0xff] }
 0x605   :  { %v965_v56 = vor.u32 1.1754944e-38, %v964_v51  ;;  %vm963_vm4 = vcmp.eq.f32.partialorder %v962_v53, 8.507059e+37  ;;  %v1083_v53 = vld [vmem:[#allocation16 + $0x8] sm:$0xff] }
 0x609   :  { %v1393_v48 = vpop.eup %1392 }
 0x60a   :  { %v954_v49 = vmul.f32 %v1393_v48, %v937_v47  ;;  %vm959_vm1 = vweird.f32 %v1393_v48  ;;  %v1395_v6 = vpop.eup %1394 }
 0x60b   :  { %vm960_vm3 = vmor %vm958_vm2, %vm959_vm1  ;;  %v989_v7 = vmul.f32 32.0, %v1395_v6  ;;  %vm993_vm5 = vweird.f32 %v1395_v6 }
 0x60c   :  { %v955_v50 = vsub.f32 1.0, %v954_v49 }
 0x60d   :  { %v990_v9 = vsub.f32 1.0, %v989_v7 }
 0x60e   :  { %v956_v52 = vmul.f32 %v1393_v48, %v955_v50 }
 0x60f   :  { %v991_v54 = vmul.f32 %v1395_v6, %v990_v9 }
 0x610   :  { %v957_v55 = vadd.f32 %v1393_v48, %v956_v52  ;;  %v1084_v52 = vld [vmem:[#allocation16 + $0x10] sm:$0xff] }
 0x611   :  { %v992_v11 = vadd.f32 %v1395_v6, %v991_v54  ;;  %1109 = vmatpush.msrb.mxu1 %v1084_v52 }
 0x612   :  { %v961_v57 = vsel %vm960_vm3, %v1393_v48, %v957_v55  ;;  %v1082_v55 = vld [vmem:[#allocation16] sm:$0xff] }
 0x613   :  { %v966_v58 = vsel %vm963_vm4, %v965_v56, %v961_v57  ;;  %v2141_v14 = vsel %vm993_vm5, %v1395_v6, %v992_v11  ;;  %1110 = vmatpush.msrb.mxu1 %v1083_v53  ;;  %v1122_v56 = vld [vmem:[#allocation19 + $0x18] sm:$0xff]  ;;  %v1121_v57 = vld [vmem:[#allocation19 + $0x10] sm:$0xff]  ;;  %v1351_v11 = vld [vmem:[#allocation21] ss:$0 sm:$0xff] }
 0x614   :  { %972 = vrot.lane.b32.xlu2 %v966_v58, %s1805_s13  ;;  %1145 = vmatpush.msra.mxu2 %v1122_v56  ;;  %v1349_v58 = vld [vmem:[#allocation15] ss:$0 sm:$0xff] }
 0x615   :  { %1111 = vmatpush.msrb.mxu1 %v1082_v55 }
 0x616   :  { %1146 = vmatpush.msra.mxu2 %v1121_v57 }
 0x666   :  { %v971_v59 = vpop.permute.xlu0 %970 }
 0x667   :  { %v976_v60 = vmul.f32 %v971_v59, %v925_v30 }
 0x669   :  { %v978_v61 = vadd.f32 %v976_v60, %v1964_v4 }
 0x66b   :  { %v982_v62 = vsel %vm281_vm0, %v978_v61, 0.0 }
 0x66c   :  { %983 = vadd.xlane.f32.xlu1 %v982_v62 }
 0x66e   :  { %v973_v63 = vpop.permute.xlu2 %972 }
 0x66f   :  { %v977_v0 = vmul.f32 %v973_v63, %v928_v44 }
 0x671   :  { %v979_v1 = vadd.f32 %v977_v0, %v1971_v5 }
 0x673   :  { %v985_v2 = vsel %vm281_vm0, %v979_v1, 0.0 }
 0x674   :  { %986 = vadd.xlane.f32.xlu0 %v985_v2  ;;  %v1119_v2 = vld [vmem:[#allocation19] sm:$0xff] }
 0x6df   :  { %v984_v4 = vpop.xlane.xlu1 %983 }
 0x6e0   :  { %v995_v16 = vmul.f32 %v2141_v14, %v984_v4 }
 0x6e2   :  { %v997_v8 = vsub.f32 %v978_v61, %v995_v16 }
 0x6e4   :  { %v999_v17 = vmul.f32 %v997_v8, %v997_v8 }
 0x6e6   :  { %v1001_v5 = vsel %vm281_vm0, %v999_v17, 0.0 }
 0x6e7   :  { %1002 = vadd.xlane.f32.xlu1 %v1001_v5  ;;  %v987_v18 = vpop.xlane.xlu0 %986 }
 0x6e8   :  { %v996_v19 = vmul.f32 %v2141_v14, %v987_v18 }
 0x6ea   :  { %v998_v20 = vsub.f32 %v979_v1, %v996_v19  ;;  %v1120_v1 = vld [vmem:[#allocation19 + $0x8] sm:$0xff] }
 0x6eb   :  { %1147 = vmatpush.msra.mxu2 %v1120_v1 }
 0x6ec   :  { %v1000_v13 = vmul.f32 %v998_v20, %v998_v20 }
 0x6ed   :  { %1148 = vmatpush.msra.mxu2 %v1119_v2 }
 0x6ee   :  { %v1004_v12 = vsel %vm281_vm0, %v1000_v13, 0.0 }
 0x6ef   :  { %1005 = vadd.xlane.f32.xlu2 %v1004_v12 }
 0x75a   :  { %v1003_v25 = vpop.xlane.xlu1 %1002 }
 0x75b   :  { %v1007_v26 = vmul.f32 %v1003_v25, %v2141_v14 }
 0x75d   :  { %v1009_v27 = vadd.f32 1e-05, %v1007_v26 }
 0x75f   :  { %1396 = vrsqrt.f32 %v1009_v27  ;;  %vm1017_vm7 = vweird.f32 %v1009_v27 }
 0x762   :  { %v1006_v28 = vpop.xlane.xlu2 %1005 }
 0x763   :  { %v1008_v29 = vmul.f32 %v1006_v28, %v2141_v14 }
 0x765   :  { %v1397_v30 = vpop.eup %1396  ;;  %v1010_v10 = vadd.f32 1e-05, %v1008_v29 }
 0x766   :  { %v1012_v31 = vmul.f32 %v1397_v30, %v1009_v27  ;;  %vm1018_vm6 = vweird.f32 %v1397_v30 }
 0x767   :  { %1398 = vrsqrt.f32 %v1010_v10  ;;  %vm1019_vm8 = vmor %vm1017_vm7, %vm1018_vm6  ;;  %vm1027_vm10 = vweird.f32 %v1010_v10 }
 0x768   :  { %v1013_v32 = vmul.f32 %v1397_v30, %v1012_v31 }
 0x76a   :  { %v1014_v33 = vmul.f32 0.5, %v1013_v32 }
 0x76c   :  { %v1015_v34 = vsub.f32 1.5, %v1014_v33 }
 0x76d   :  { %v1399_v35 = vpop.eup %1398 }
 0x76e   :  { %v1016_v36 = vmul.f32 %v1397_v30, %v1015_v34  ;;  %v1022_v37 = vmul.f32 %v1399_v35, %v1010_v10  ;;  %vm1028_vm9 = vweird.f32 %v1399_v35 }
 0x76f   :  { %vm1029_vm11 = vmor %vm1027_vm10, %vm1028_vm9 }
 0x770   :  { %v1020_v39 = vsel %vm1019_vm8, %v1397_v30, %v1016_v36  ;;  %v1023_v40 = vmul.f32 %v1399_v35, %v1022_v37 }
 0x771   :  { %v1031_v41 = vmul.f32 %v1020_v39, %v997_v8 }
 0x772   :  { %v1024_v43 = vmul.f32 0.5, %v1023_v40 }
 0x773   :  { %v1036_v44 = vmul.f32 %v1347_v38, %v1031_v41 }
 0x774   :  { %v1025_v45 = vsub.f32 1.5, %v1024_v43 }
 0x775   :  { %v2149_v46 = vadd.f32 %v1348_v42, %v1036_v44 }
 0x776   :  { %v1026_v47 = vmul.f32 %v1399_v35, %v1025_v45 }
 0x777   :  { %1316 = vmatmul.msk.f32.vlgmr.msrb.gmra.mxu3 %vm281_vm0, %v2149_v46 }
 0x778   :  { %v1030_v48 = vsel %vm1029_vm11, %v1399_v35, %v1026_v47 }
 0x779   :  { %v1032_v49 = vmul.f32 %v1030_v48, %v998_v20 }
 0x77b   :  { %v1037_v50 = vmul.f32 %v1347_v38, %v1032_v49 }
 0x77d   :  { %v2153_v51 = vadd.f32 %v1348_v42, %v1037_v50 }
 0x77f   :  { %1317 = vmatmul.msk.f32.gmra.mxu3 %vm281_vm0, %v2153_v51 }
 0x7fa   :  { %v1074_v59 = vpop.f32.mrf.mxu3 }
 0x7fb   :  { %v1075_v60 = vadd.f32 %v1349_v58, %v1074_v59 }
 0x7fd   :  { %v1080_v61 = vmax.f32 %v1075_v60, 0.0 }
 0x7ff   :  { %1318 = vmatmul.msk.f32.vlgmr.msrb.gmra.mxu1 %vm281_vm0, %v1080_v61 }
 0x802   :  { %v1077_v62 = vpop.f32.mrf.mxu3 }
 0x803   :  { %v1078_v63 = vadd.f32 %v1349_v58, %v1077_v62 }
 0x805   :  { %v1081_v0 = vmax.f32 %v1078_v63, 0.0 }
 0x807   :  { %1319 = vmatmul.msk.f32.gmra.mxu1 %vm281_vm0, %v1081_v0 }
 0x87c   :  { %v1113_v6 = vpop.f32.mrf.mxu1 }
 0x87d   :  { %v1114_v7 = vadd.f32 %v1350_v3, %v1113_v6 }
 0x87f   :  { %1320 = vmatmul.msk.f32.vlgmr.msra.gmra.mxu2 %vm281_vm0, %v1114_v7 }
 0x884   :  { %v1116_v9 = vpop.f32.mrf.mxu1 }
 0x885   :  { %v1117_v54 = vadd.f32 %v1350_v3, %v1116_v9 }
 0x887   :  { %1321 = vmatmul.msk.f32.gmra.mxu2 %vm281_vm0, %v1117_v54 }
 0x902   :  { %v1150_v4 = vpop.f32.mrf.mxu2 }
 0x903   :  { %v1151_v16 = vadd.f32 %v1351_v11, %v1150_v4 }
 0x905   :  { %v1322_v8 = vmul.f32 -1.442695, %v1151_v16 }
 0x907   :  { %1400 = vpow2.f32 %v1322_v8  ;;  %v1353_v8 = vld [vmem:[#allocation24] ss:$0 sm:$0xff] }
 0x90a   :  { %v1153_v17 = vpop.f32.mrf.mxu2 }
 0x90b   :  { %v1154_v5 = vadd.f32 %v1351_v11, %v1153_v17  ;;  %v1352_v11 = vld [vmem:[#allocation22] ss:$0 sm:$0xff] }
 0x90d   :  { %v1401_v18 = vpop.eup %1400  ;;  %v1323_v19 = vmul.f32 -1.442695, %v1154_v5 }
 0x90e   :  { %v1162_v20 = vadd.f32 1.0, %v1401_v18 }
 0x90f   :  { %1402 = vpow2.f32 %v1323_v19 }
 0x910   :  { %1404 = vrcp.f32 %v1162_v20  ;;  %v1175_v15 = vand.u32 2147483648, %v1162_v20  ;;  %v1173_v26 = vand.u32 2147483647, %v1162_v20  ;;  %vm1169_vm13 = vweird.f32 %v1162_v20 }
 0x912   :  { %v1176_v28 = vor.u32 1.1754944e-38, %v1175_v15  ;;  %vm1174_vm15 = vcmp.eq.f32.partialorder %v1173_v26, 8.507059e+37 }
 0x915   :  { %v1403_v13 = vpop.eup %1402 }
 0x916   :  { %v1405_v12 = vpop.eup %1404  ;;  %v1163_v22 = vadd.f32 1.0, %v1403_v13 }
 0x917   :  { %v1165_v23 = vmul.f32 %v1405_v12, %v1162_v20  ;;  %vm1170_vm12 = vweird.f32 %v1405_v12 }
 0x918   :  { %1406 = vrcp.f32 %v1163_v22  ;;  %vm1171_vm14 = vmor %vm1169_vm13, %vm1170_vm12  ;;  %v1190_v32 = vand.u32 2147483648, %v1163_v22  ;;  %v1188_v34 = vand.u32 2147483647, %v1163_v22  ;;  %vm1184_vm2 = vweird.f32 %v1163_v22 }
 0x919   :  { %v1166_v24 = vsub.f32 1.0, %v1165_v23 }
 0x91a   :  { %v1191_v36 = vor.u32 1.1754944e-38, %v1190_v32  ;;  %vm1189_vm4 = vcmp.eq.f32.partialorder %v1188_v34, 8.507059e+37 }
 0x91b   :  { %v1167_v25 = vmul.f32 %v1405_v12, %v1166_v24 }
 0x91d   :  { %v1168_v27 = vadd.f32 %v1405_v12, %v1167_v25 }
 0x91e   :  { %v1407_v21 = vpop.eup %1406 }
 0x91f   :  { %v1172_v29 = vsel %vm1171_vm14, %v1405_v12, %v1168_v27  ;;  %v1180_v30 = vmul.f32 %v1407_v21, %v1163_v22  ;;  %vm1185_vm1 = vweird.f32 %v1407_v21 }
 0x920   :  { %v1177_v10 = vsel %vm1174_vm15, %v1176_v28, %v1172_v29  ;;  %vm1186_vm3 = vmor %vm1184_vm2, %vm1185_vm1 }
 0x921   :  { %1196 = vrot.lane.b32.xlu1 %v1177_v10, %s1805_s13  ;;  %v1181_v31 = vsub.f32 1.0, %v1180_v30 }
 0x923   :  { %v1182_v33 = vmul.f32 %v1407_v21, %v1181_v31 }
 0x925   :  { %v1183_v35 = vadd.f32 %v1407_v21, %v1182_v33 }
 0x927   :  { %v1187_v37 = vsel %vm1186_vm3, %v1407_v21, %v1183_v35 }
 0x928   :  { %v1192_v38 = vsel %vm1189_vm4, %v1191_v36, %v1187_v37 }
 0x929   :  { %1198 = vrot.lane.b32.xlu1 %v1192_v38, %s1805_s13 }
 0x993   :  { %v1197_v39 = vpop.permute.xlu1 %1196 }
 0x994   :  { %v1202_v40 = vmul.f32 %v1197_v39, %v1151_v16 }
 0x996   :  { %v1204_v41 = vadd.f32 %v1202_v40, %v2149_v46 }
 0x998   :  { %v1208_v42 = vsel %vm281_vm0, %v1204_v41, 0.0 }
 0x999   :  { %1209 = vadd.xlane.f32.xlu0 %v1208_v42 }
 0x99b   :  { %v1199_v43 = vpop.permute.xlu1 %1198 }
 0x99c   :  { %v1203_v44 = vmul.f32 %v1199_v43, %v1154_v5 }
 0x99e   :  { %v1205_v45 = vadd.f32 %v1203_v44, %v2153_v51 }
 0x9a0   :  { %v1211_v47 = vsel %vm281_vm0, %v1205_v45, 0.0 }
 0x9a1   :  { %1212 = vadd.xlane.f32.xlu1 %v1211_v47 }
 0xa0c   :  { %v1210_v48 = vpop.xlane.xlu0 %1209 }
 0xa0d   :  { %v1214_v49 = vmul.f32 %v1210_v48, %v2141_v14 }
 0xa0f   :  { %v1216_v50 = vsub.f32 %v1204_v41, %v1214_v49 }
 0xa11   :  { %v1218_v52 = vmul.f32 %v1216_v50, %v1216_v50 }
 0xa13   :  { %v1220_v53 = vsel %vm281_vm0, %v1218_v52, 0.0 }
 0xa14   :  { %v1213_v55 = vpop.xlane.xlu1 %1212  ;;  %1221 = vadd.xlane.f32.xlu0 %v1220_v53 }
 0xa15   :  { %v1215_v46 = vmul.f32 %v1213_v55, %v2141_v14 }
 0xa17   :  { %v1217_v56 = vsub.f32 %v1205_v45, %v1215_v46 }
 0xa19   :  { %v1219_v57 = vmul.f32 %v1217_v56, %v1217_v56 }
 0xa1b   :  { %v1223_v58 = vsel %vm281_vm0, %v1219_v57, 0.0 }
 0xa1c   :  { %1224 = vadd.xlane.f32.xlu2 %v1223_v58 }
 0xa87   :  { %v1222_v51 = vpop.xlane.xlu0 %1221 }
 0xa88   :  { %v1226_v59 = vmul.f32 %v1222_v51, %v2141_v14 }
 0xa8a   :  { %v1228_v60 = vadd.f32 1e-05, %v1226_v59 }
 0xa8c   :  { %1408 = vrsqrt.f32 %v1228_v60  ;;  %vm1236_vm6 = vweird.f32 %v1228_v60 }
 0xa8f   :  { %v1225_v61 = vpop.xlane.xlu2 %1224 }
 0xa90   :  { %v1227_v62 = vmul.f32 %v1225_v61, %v2141_v14 }
 0xa92   :  { %v1409_v63 = vpop.eup %1408  ;;  %v1229_v0 = vadd.f32 1e-05, %v1227_v62 }
 0xa93   :  { %v1231_v1 = vmul.f32 %v1409_v63, %v1228_v60  ;;  %vm1237_vm5 = vweird.f32 %v1409_v63 }
 0xa94   :  { %1410 = vrsqrt.f32 %v1229_v0  ;;  %vm1238_vm7 = vmor %vm1236_vm6, %vm1237_vm5  ;;  %vm1246_vm9 = vweird.f32 %v1229_v0 }
 0xa95   :  { %v1232_v2 = vmul.f32 %v1409_v63, %v1231_v1 }
 0xa97   :  { %v1233_v3 = vmul.f32 0.5, %v1232_v2 }
 0xa99   :  { %v1234_v6 = vsub.f32 1.5, %v1233_v3 }
 0xa9a   :  { %v1411_v7 = vpop.eup %1410 }
 0xa9b   :  { %v1235_v9 = vmul.f32 %v1409_v63, %v1234_v6  ;;  %v1241_v54 = vmul.f32 %v1411_v7, %v1229_v0  ;;  %vm1247_vm8 = vweird.f32 %v1411_v7 }
 0xa9c   :  { %vm1248_vm10 = vmor %vm1246_vm9, %vm1247_vm8 }
 0xa9d   :  { %v1239_v4 = vsel %vm1238_vm7, %v1409_v63, %v1235_v9  ;;  %v1242_v16 = vmul.f32 %v1411_v7, %v1241_v54 }
 0xa9e   :  { %v1250_v17 = vmul.f32 %v1239_v4, %v1216_v50 }
 0xa9f   :  { %v1243_v5 = vmul.f32 0.5, %v1242_v16 }
 0xaa0   :  { %v1255_v14 = vmul.f32 %v1352_v11, %v1250_v17 }
 0xaa1   :  { %v1244_v18 = vsub.f32 1.5, %v1243_v5 }
 0xaa2   :  { %v1260_v19 = vadd.f32 %v1353_v8, %v1255_v14 }
 0xaa3   :  { %v1245_v20 = vmul.f32 %v1411_v7, %v1244_v18 }
 0xaa4   :  { %1262 = vst.msk [vmem:[%s2198_s17] sm:$0xff] %vm281_vm0, %v1260_v19 }
 0xaa5   :  { %v1249_v13 = vsel %vm1248_vm10, %v1411_v7, %v1245_v20 }
 0xaa6   :  { %v1251_v12 = vmul.f32 %v1249_v13, %v1217_v56 }
 0xaa8   :  { %v1256_v22 = vmul.f32 %v1352_v11, %v1251_v12 }
 0xaaa   :  { %v1261_v23 = vadd.f32 %v1353_v8, %v1256_v22 }
 0xaac   :  { %1263 = vst.msk [vmem:[%s2198_s17 + $0x8] sm:$0xff] %vm281_vm0, %v1261_v23 }
 0xaad   :  { %1268 = vsyncpa [#allocation3], 1 }
 0xaae   :  { %1269 = vsyncpa [#allocation5], 1 }
 0xaaf   :  { %1270 = vsyncpa [#allocation8], 1 }
 0xab0   :  { %1271 = vsyncpa [#allocation11], 1 }
 0xab1   :  { %1272 = vsyncpa [#allocation14], 1 }
 0xab2   :  { %1273 = vsyncpa [#allocation17], 1 }
 0xab3   :  { %1274 = vsyncpa [#allocation20], 1 }
 0xab4   :  { %1275 = vsyncpa [#allocation23], 1 }

// kernel: _lambda_.9
= control target key start
LH: loop header
LB: loop body
LE: loop exit
PB: predicated region body
PF: predicated region fallthrough
CT: control target
= control target key end

     0   :  { %16 = vsyncpa [#allocation3], 0  ;;  %s309_s16 = smov [#allocation2]   ;;  %s310_s18 = smov 128   ;;  %s427_s0 = inlined_call_operand.vmem [shape: f32[8,32], index: 0, kind: input, shape index: {}]   ;;  %s428_s1 = inlined_call_operand.vmem [shape: f32[32,32], index: 1, kind: input, shape index: {}]   ;;  %s429_s2 = inlined_call_operand.vmem [shape: f32[1,32], index: 2, kind: input, shape index: {}]   ;;  %s430_s3 = inlined_call_operand.hbm [shape: f32[32,32], index: 3, kind: input, shape index: {}]   ;;  %s431_s4 = inlined_call_operand.vmem [shape: f32[1,32], index: 4, kind: input, shape index: {}]   ;;  %s432_s5 = inlined_call_operand.vmem [shape: f32[1,32], index: 5, kind: input, shape index: {}]   ;;  %s433_s6 = inlined_call_operand.vmem [shape: f32[1,32], index: 6, kind: input, shape index: {}]   ;;  %s434_s7 = inlined_call_operand.vmem [shape: f32[32,8], index: 7, kind: input, shape index: {}]   ;;  %s435_s8 = inlined_call_operand.vmem [shape: f32[1,8], index: 8, kind: input, shape index: {}]   ;;  %s436_s9 = inlined_call_operand.vmem [shape: f32[8,8], index: 9, kind: output, shape index: {0}]   ;;  %s437_s10 = inlined_call_operand.vmem [shape: f32[8,8], index: 10, kind: output, shape index: {1}]  }
   0x1   :  { %s27_s15 = sshll.u32 %s430_s3, 4  ;;  %s29_s17 = sshll.u32 %s309_s16, 4  ;;  %s28_s15 = int_to_ptr.hbm [resolvable:$true] %s27_s15  ;;  %s30_s17 = int_to_ptr.vmem [resolvable:$true] %s29_s17 }
   0x2   :  { %s311_s19 = smov 8  }
   0x3   :  { %35 = dma.hbm_to_vmem [thread:$0]  %s28_s15, 512, %s30_s17, [#allocation3], %s310_s18, %s310_s18, %s311_s19  }
   0x4   :  { %307 = dma.done.wait [#allocation3], 512  }
   0x5   :  { %308 = vsyncadd [#allocation3], 4294966784  ;;  %v54_v0 = vld [vmem:[%s428_s1 + $0x18] sm:$0xff]  ;;  %v53_v2 = vld [vmem:[%s428_s1 + $0x10] sm:$0xff]  ;;  %vm59_vm0 = vcmask 261120   ;;  %v312_v30 = vmov 32.0  }
   0x6   :  { %v86_v1 = vld [vmem:[#allocation2 + $0x18] sm:$0xff]  ;;  %75 = vmatpush.msra.mxu0 %v54_v0  ;;  %v85_v3 = vld [vmem:[#allocation2 + $0x10] sm:$0xff]  ;;  %v52_v4 = vld [vmem:[%s428_s1 + $0x8] sm:$0xff]  ;;  %vm200_vm12 = vcmask 64512  }
   0x7   :  { %103 = vmatpush.msra.mxu1 %v86_v1  ;;  %v84_v5 = vld [vmem:[#allocation2 + $0x8] sm:$0xff]  ;;  %v51_v6 = vld [vmem:[%s428_s1] sm:$0xff]  ;;  %v135_v47 = vld [vmem:[%s434_s7 + $0x18] sm:$0xff] }
   0x8   :  { %76 = vmatpush.msra.mxu0 %v53_v2  ;;  %v83_v7 = vld [vmem:[#allocation2] sm:$0xff]  ;;  %192 = vmatpush.msra.mxu2 %v135_v47  ;;  %v134_v48 = vld [vmem:[%s434_s7 + $0x10] sm:$0xff]  ;;  %v133_v49 = vld [vmem:[%s434_s7 + $0x8] sm:$0xff] }
   0x9   :  { %104 = vmatpush.msra.mxu1 %v85_v3  ;;  %v50_v8 = vld [vmem:[%s427_s0] sm:$0xff]  ;;  %241 = vmatpush.msra.mxu3 %v135_v47 }
   0xa   :  { %77 = vmatpush.msra.mxu0 %v52_v4  ;;  %v268_v9 = vld [vmem:[%s429_s2] ss:$0 sm:$0xff]  ;;  %193 = vmatpush.msra.mxu2 %v134_v48 }
   0xb   :  { %105 = vmatpush.msra.mxu1 %v84_v5  ;;  %v269_v10 = vld [vmem:[%s431_s4] ss:$0 sm:$0xff]  ;;  %242 = vmatpush.msra.mxu3 %v134_v48 }
   0xc   :  { %78 = vmatpush.msra.mxu0 %v51_v6  ;;  %v132_v50 = vld [vmem:[%s434_s7] sm:$0xff]  ;;  %194 = vmatpush.msra.mxu2 %v133_v49 }
   0xd   :  { %106 = vmatpush.msra.mxu1 %v83_v7  ;;  %259 = vmatmul.msk.f32.vlgmr.msra.gmra.mxu0 %vm59_vm0, %v50_v8  ;;  %v270_v60 = vld [vmem:[%s432_s5] ss:$0 sm:$0xff] }
   0xe   :  { %260 = vmatmul.msk.f32.vlgmr.msra.gmra.mxu1 %vm59_vm0, %v50_v8  ;;  %243 = vmatpush.msra.mxu3 %v133_v49  ;;  %v271_v63 = vld [vmem:[%s433_s6] ss:$0 sm:$0xff] }
   0xf   :  { %195 = vmatpush.msra.mxu2 %v132_v50 }
  0x10   :  { %244 = vmatpush.msra.mxu3 %v132_v50 }
  0x8a   :  { %v80_v11 = vpop.f32.mrf.mxu0 }
  0x8b   :  { %v108_v12 = vpop.f32.mrf.mxu1  ;;  %v81_v13 = vadd.f32 %v268_v9, %v80_v11 }
  0x8c   :  { %v109_v14 = vadd.f32 %v269_v10, %v108_v12 }
  0x8d   :  { %v137_v16 = vsel %vm59_vm0, %v81_v13, 0.0 }
  0x8e   :  { %v261_v15 = vmul.f32 -1.442695, %v109_v14  ;;  %138 = vadd.xlane.f32.xlu0 %v137_v16 }
  0x90   :  { %273 = vpow2.f32 %v261_v15  ;;  %v272_v15 = vld [vmem:[%s435_s8] ss:$0 sm:$0xff] }
  0x96   :  { %v274_v17 = vpop.eup %273 }
  0x97   :  { %v114_v18 = vadd.f32 1.0, %v274_v17 }
  0x99   :  { %275 = vrcp.f32 %v114_v18  ;;  %v126_v22 = vand.u32 2147483648, %v114_v18  ;;  %v124_v24 = vand.u32 2147483647, %v114_v18  ;;  %vm120_vm2 = vweird.f32 %v114_v18 }
  0x9a   :  { %277 = vrcp.f32 %v312_v30 }
  0x9b   :  { %v127_v26 = vor.u32 1.1754944e-38, %v126_v22  ;;  %vm125_vm4 = vcmp.eq.f32.partialorder %v124_v24, 8.507059e+37 }
  0x9f   :  { %v276_v19 = vpop.eup %275 }
  0xa0   :  { %v116_v20 = vmul.f32 %v276_v19, %v114_v18  ;;  %vm121_vm1 = vweird.f32 %v276_v19  ;;  %v278_v31 = vpop.eup %277 }
  0xa1   :  { %vm122_vm3 = vmor %vm120_vm2, %vm121_vm1  ;;  %v141_v32 = vmul.f32 32.0, %v278_v31  ;;  %vm145_vm5 = vweird.f32 %v278_v31 }
  0xa2   :  { %v117_v21 = vsub.f32 1.0, %v116_v20 }
  0xa3   :  { %v142_v33 = vsub.f32 1.0, %v141_v32 }
  0xa4   :  { %v118_v23 = vmul.f32 %v276_v19, %v117_v21 }
  0xa5   :  { %v143_v34 = vmul.f32 %v278_v31, %v142_v33 }
  0xa6   :  { %v119_v25 = vadd.f32 %v276_v19, %v118_v23 }
  0xa7   :  { %v144_v35 = vadd.f32 %v278_v31, %v143_v34 }
  0xa8   :  { %v123_v27 = vsel %vm122_vm3, %v276_v19, %v119_v25 }
  0xa9   :  { %v128_v28 = vsel %vm125_vm4, %v127_v26, %v123_v27  ;;  %v146_v36 = vsel %vm145_vm5, %v278_v31, %v144_v35 }
  0xaa   :  { %v202_v29 = vsel %vm59_vm0, %v128_v28, 0.0 }
  0xab   :  { %203 = vadd.xlane.f32.xlu0 %v202_v29 }
 0x101   :  { %v139_v37 = vpop.xlane.xlu0 %138 }
 0x102   :  { %v147_v38 = vmul.f32 %v146_v36, %v139_v37 }
 0x104   :  { %v148_v39 = vsub.f32 %v81_v13, %v147_v38 }
 0x106   :  { %v149_v40 = vmul.f32 %v148_v39, %v148_v39 }
 0x108   :  { %v150_v41 = vsel %vm59_vm0, %v149_v40, 0.0 }
 0x109   :  { %151 = vadd.xlane.f32.xlu1 %v150_v41 }
 0x11e   :  { %v204_v42 = vpop.xlane.xlu0 %203 }
 0x11f   :  { %v205_v43 = vmul.f32 %v204_v42, %v146_v36 }
 0x121   :  { %v206_v44 = vsub.f32 %v128_v28, %v205_v43 }
 0x123   :  { %v207_v45 = vmul.f32 %v206_v44, %v206_v44 }
 0x125   :  { %v208_v46 = vsel %vm59_vm0, %v207_v45, 0.0 }
 0x126   :  { %209 = vadd.xlane.f32.xlu1 %v208_v46 }
 0x17c   :  { %v152_v51 = vpop.xlane.xlu1 %151 }
 0x17d   :  { %v153_v52 = vmul.f32 %v152_v51, %v146_v36 }
 0x17f   :  { %v154_v53 = vadd.f32 1e-05, %v153_v52 }
 0x181   :  { %279 = vrsqrt.f32 %v154_v53  ;;  %vm161_vm7 = vweird.f32 %v154_v53 }
 0x187   :  { %v280_v54 = vpop.eup %279 }
 0x188   :  { %v156_v55 = vmul.f32 %v280_v54, %v154_v53  ;;  %vm162_vm6 = vweird.f32 %v280_v54 }
 0x189   :  { %vm163_vm8 = vmor %vm161_vm7, %vm162_vm6 }
 0x18a   :  { %v157_v56 = vmul.f32 %v280_v54, %v156_v55 }
 0x18c   :  { %v158_v57 = vmul.f32 0.5, %v157_v56 }
 0x18e   :  { %v159_v58 = vsub.f32 1.5, %v158_v57 }
 0x190   :  { %v160_v59 = vmul.f32 %v280_v54, %v159_v58 }
 0x192   :  { %v164_v61 = vsel %vm163_vm8, %v280_v54, %v160_v59 }
 0x193   :  { %v165_v62 = vmul.f32 %v164_v61, %v148_v39 }
 0x195   :  { %v169_v0 = vmul.f32 %v270_v60, %v165_v62 }
 0x197   :  { %v173_v1 = vadd.f32 %v271_v63, %v169_v0 }
 0x199   :  { %v210_v2 = vpop.xlane.xlu1 %209  ;;  %262 = vmatmul.msk.f32.vlgmr.msra.gmra.mxu2 %vm59_vm0, %v173_v1 }
 0x19a   :  { %v211_v3 = vmul.f32 %v210_v2, %v146_v36 }
 0x19c   :  { %v212_v4 = vadd.f32 1e-05, %v211_v3 }
 0x19e   :  { %281 = vrsqrt.f32 %v212_v4  ;;  %vm219_vm10 = vweird.f32 %v212_v4 }
 0x1a4   :  { %v282_v5 = vpop.eup %281 }
 0x1a5   :  { %v214_v6 = vmul.f32 %v282_v5, %v212_v4  ;;  %vm220_vm9 = vweird.f32 %v282_v5 }
 0x1a6   :  { %vm221_vm11 = vmor %vm219_vm10, %vm220_vm9 }
 0x1a7   :  { %v215_v7 = vmul.f32 %v282_v5, %v214_v6 }
 0x1a9   :  { %v216_v8 = vmul.f32 0.5, %v215_v7 }
 0x1ab   :  { %v217_v9 = vsub.f32 1.5, %v216_v8 }
 0x1ad   :  { %v218_v10 = vmul.f32 %v282_v5, %v217_v9 }
 0x1af   :  { %v222_v11 = vsel %vm221_vm11, %v282_v5, %v218_v10 }
 0x1b0   :  { %v223_v12 = vmul.f32 %v222_v11, %v206_v44 }
 0x1b2   :  { %v224_v13 = vmul.f32 %v270_v60, %v223_v12 }
 0x1b4   :  { %v225_v14 = vadd.f32 %v271_v63, %v224_v13 }
 0x1b6   :  { %263 = vmatmul.msk.f32.vlgmr.msra.gmra.mxu3 %vm59_vm0, %v225_v14 }
 0x21c   :  { %v197_v16 = vpop.f32.mrf.mxu2 }
 0x21d   :  { %v198_v17 = vadd.f32 %v272_v15, %v197_v16 }
 0x21f   :  { %201 = vst.msk [vmem:[%s436_s9] sm:$0xff] %vm200_vm12, %v198_v17 }
 0x239   :  { %v246_v18 = vpop.f32.mrf.mxu3 }
 0x23a   :  { %v247_v19 = vadd.f32 %v272_v15, %v246_v18 }
 0x23c   :  { %249 = vst.msk [vmem:[%s437_s10] sm:$0xff] %vm200_vm12, %v247_v19 }
 0x23d   :  { %258 = vsyncpa [#allocation3], 1 }

</bundles_post_ra>
